<compile_context>
chip_gen: v7x
topology: tpu7x:2x2x1
jax: 0.10.0
libtpu: 0.0.40
codegen_flags: <defaults>
</compile_context>

<pallas_src>
import functools

import jax
import jax.numpy as jnp
from jax.experimental import pallas as pl
from jax.experimental.pallas import tpu as pltpu


def _make_time_kernel(NB, H, W, HID, K):
    P = (K - 1) // 2
    C_GATES = 4 * HID
    EPS = 1e-5

    def kernel(gx_ref, wh_ref, gmix_ref, gamma_ref, beta_ref,   # inputs
               xt_ref, hy_ref, cy_ref,                          # outputs
               hwide_s, cx_s):                                  # carried state
        t = pl.program_id(1)

        # Reset recurrent state at the first timestep of every batch tile.
        # Halo rows / out-of-window columns of hwide_s are only ever written here.
        @pl.when(t == 0)
        def _():
            hwide_s[...] = jnp.zeros_like(hwide_s)
            cx_s[...] = jnp.zeros_like(cx_s)

        # gates_x[t] (bf16, conv bias already folded in) -> f32 accumulator
        gates = gx_ref[0].astype(jnp.float32)                   # (NB, H, W, 4*HID)

        # ---- recurrent conv: dx-fused im2col scratch + K dy-tap matmuls ----
        hw = hwide_s[...].astype(jnp.bfloat16)                  # (NB, H+2P, W, K*HID)
        for dy in range(K):
            gates = gates + jax.lax.dot_general(
                hw[:, dy:dy + H, :, :], wh_ref[dy],             # (NB,H,W,K*HID)x(K*HID,4H)
                dimension_numbers=(((3,), (0,)), ((), ())),
                preferred_element_type=jnp.float32)

        # ---- GroupNorm (per sample, per 32-channel group over H, W) ----
        # gmix (block-diagonal group-averaging matrix) is loop-invariant and
        # hoisted to the wrapper.
        csum = jnp.sum(gates, axis=(1, 2))                      # (NB, C)
        mean_c = jnp.dot(csum, gmix_ref[...])                   # per-group mean, (NB, C)
        centered = gates - mean_c[:, None, None, :]
        vsum = jnp.sum(centered * centered, axis=(1, 2))        # (NB, C)
        var_c = jnp.dot(vsum, gmix_ref[...])                    # biased var, (NB, C)
        rstd_c = jax.lax.rsqrt(var_c + EPS)
        gates = centered * rstd_c[:, None, None, :]
        gates = gates * gamma_ref[...][None, None] + beta_ref[...][None, None]

        # ---- LSTM gates: channel order was permuted in the wrapper to
        # [i | f | o | c], so sigmoid covers exactly lanes [0:3H], tanh [3H:4H].
        sg = jax.nn.sigmoid(gates[..., :3 * HID])
        cg = jnp.tanh(gates[..., 3 * HID:])
        ig = sg[..., 0:HID]
        fg = sg[..., HID:2 * HID]
        og = sg[..., 2 * HID:3 * HID]

        cy = fg * cx_s[...] + ig * cg
        hy = og * jnp.tanh(cy)

        # ---- carry state ----
        cx_s[...] = cy
        # Scatter hy into the K column-shifted lane blocks of the wide im2col
        # scratch (interior rows only; halos stay zero from the t==0 init), so the
        # next step's read needs no concatenate.
        for dx in range(K):
            lo = max(0, P - dx)
            hi = min(W, W + P - dx)
            hwide_s[:, P:P + H, lo:hi, dx * HID:(dx + 1) * HID] = (
                hy[:, :, lo + dx - P:hi + dx - P, :])

        # per-step sequence output
        # TODO(synk): make this store lane-dense ((W*HID)-wide last dim) once a
        # minor-dim-collapsing reshape is reliably lowerable in-kernel.
        xt_ref[0] = hy.astype(xt_ref.dtype)

        # final hidden/cell state written exactly once, at the last timestep
        @pl.when(t == pl.num_programs(1) - 1)
        def _():
            hy_ref[...] = hy
            cy_ref[...] = cy

    return kernel


def _pick_batch_block(B):
    """Batch samples per grid step.

    Single-TC chips (v5e / v6e): put the whole batch in one grid step (fewer
    ~0.35 us grid steps, bigger matmul M).  Two-TC chips (v4 / v5p / v7x): keep
    two parallel batch blocks so the 'parallel' grid axis splits across cores.
    Heuristic only — affects performance, never correctness.
    """
    try:
        kind = jax.devices()[0].device_kind.lower()
    except Exception:
        kind = ""
    two_tc = any(tag in kind for tag in ("v7", "7x", "v5p", "v4", "v3", "v2"))
    if two_tc and B >= 2 and B % 2 == 0:
        return B // 2
    return B


@functools.partial(jax.jit,
                   static_argnames=("hidden_dim", "kernel_size", "batch_block"))
def convlstm_forward(inputs_nchw, w_oihw, b, gamma, beta, *,
                     hidden_dim, kernel_size, batch_block=None):
    """inputs_nchw: (S, B, C_in, H, W)  -- same convention as the PyTorch module.

    Returns (xt, (hy, cy)) with xt: (S, B, hid, H, W), hy/cy: (B, hid, H, W).
    Initial hidden / cell state is zero (the benchmarked path of the module).
    """
    S, B, C_in, H, W = inputs_nchw.shape
    HID = hidden_dim
    K = kernel_size
    P = (K - 1) // 2
    C_GATES = 4 * HID
    CPG = 32                       # GroupNorm channels per group (num_groups = 4H/32)
    f32 = jnp.float32
    bf16 = jnp.bfloat16

    assert C_GATES % CPG == 0, "module requires 4*hidden_dim divisible by 32"
    assert HID % CPG == 0, ("gate-channel permutation assumes each gate spans "
                            "whole 32-channel GroupNorm groups (hidden_dim % 32 == 0)")

    NB = batch_block if batch_block is not None else _pick_batch_block(B)
    assert B % NB == 0

    # Permute gate channels (i,f,c,o) -> (i,f,o,c); with HID % 32 == 0 the
    # permutation moves whole GroupNorm groups, so normalization commutes with it
    # once gamma/beta/bias/weights are permuted identically.
    perm = jnp.concatenate([jnp.arange(0, HID), jnp.arange(HID, 2 * HID),
                            jnp.arange(3 * HID, 4 * HID), jnp.arange(2 * HID, 3 * HID)])
    w_p = w_oihw[perm]
    b_p = b[perm].astype(f32)
    gamma_p = gamma[perm].astype(f32).reshape(1, C_GATES)
    beta_p = beta[perm].astype(f32).reshape(1, C_GATES)

    # split the conv weight into its x (input) and hx (recurrent) halves
    wx_hwio = jnp.transpose(w_p[:, :C_in], (2, 3, 1, 0)).astype(bf16)    # (K,K,Cin,4H)
    wh_hwio = jnp.transpose(w_p[:, C_in:], (2, 3, 1, 0))                 # (K,K,HID,4H)
    wh_fused = wh_hwio.reshape(K, K * HID, C_GATES).astype(bf16)         # dx folded into rows

    # ---- hoisted, time-parallel input convolution: gates_x[t] = conv(x[t], Wx) + b
    # (bias added in f32, result stored bf16 to halve per-step streamed bytes) ----
    x_nhwc = jnp.transpose(inputs_nchw, (0, 1, 3, 4, 2))                 # (S,B,H,W,Cin)
    gates_x = jax.lax.conv_general_dilated(
        x_nhwc.reshape(S * B, H, W, C_in).astype(bf16), wx_hwio,
        window_strides=(1, 1), padding=[(P, P), (P, P)],
        dimension_numbers=("NHWC", "HWIO", "NHWC"),
        preferred_element_type=f32)
    gates_x = (gates_x + b_p[None, None, None, :]).astype(bf16).reshape(
        S, B, H, W, C_GATES)

    # hoisted GroupNorm block-diagonal group-averaging matrix (loop-invariant)
    grp = jnp.arange(C_GATES) // CPG
    gmix = (grp[:, None] == grp[None, :]).astype(f32) / float(H * W * CPG)

    kernel = _make_time_kernel(NB, H, W, HID, K)

    grid_spec = pltpu.PrefetchScalarGridSpec(
        num_scalar_prefetch=0,
        grid=(B // NB, S),   # batch blocks: parallel; time: sequential (recurrent)
        in_specs=[
            pl.BlockSpec((1, NB, H, W, C_GATES), lambda bb, t: (t, bb, 0, 0, 0)),
            pl.BlockSpec((K, K * HID, C_GATES), lambda bb, t: (0, 0, 0)),
            pl.BlockSpec((C_GATES, C_GATES), lambda bb, t: (0, 0)),
            pl.BlockSpec((1, C_GATES), lambda bb, t: (0, 0)),
            pl.BlockSpec((1, C_GATES), lambda bb, t: (0, 0)),
        ],
        out_specs=[
            pl.BlockSpec((1, NB, H, W, HID), lambda bb, t: (t, bb, 0, 0, 0)),
            pl.BlockSpec((NB, H, W, HID), lambda bb, t: (bb, 0, 0, 0)),
            pl.BlockSpec((NB, H, W, HID), lambda bb, t: (bb, 0, 0, 0)),
        ],
        scratch_shapes=[
            pltpu.VMEM((NB, H + 2 * P, W, K * HID), f32),   # hx im2col ("wide") carry
            pltpu.VMEM((NB, H, W, HID), f32),               # cx carry
        ],
    )

    xt_nhwc, hy_nhwc, cy_nhwc = pl.pallas_call(
        kernel,
        out_shape=(
            jax.ShapeDtypeStruct((S, B, H, W, HID), inputs_nchw.dtype),
            jax.ShapeDtypeStruct((B, H, W, HID), f32),
            jax.ShapeDtypeStruct((B, H, W, HID), f32),
        ),
        grid_spec=grid_spec,
        compiler_params=pltpu.CompilerParams(
            dimension_semantics=("parallel", "arbitrary"),
            vmem_limit_bytes=32 * 1024 * 1024),
    )(gates_x, wh_fused, gmix, gamma_p, beta_p)

    # back to the PyTorch NCHW convention
    xt = jnp.transpose(xt_nhwc, (0, 1, 4, 2, 3))
    hy = jnp.transpose(hy_nhwc, (0, 3, 1, 2))
    cy = jnp.transpose(cy_nhwc, (0, 3, 1, 2))
    return xt, (hy, cy)


def convlstm_reference(inputs_nchw, w_oihw, b, gamma, beta, *, hidden_dim, kernel_size):
    """Pure-JAX f32 reference mirroring the PyTorch forward (NCHW)."""
    S, B, C_in, H, W = inputs_nchw.shape
    hid = hidden_dim
    p = (kernel_size - 1) // 2
    G = (4 * hid) // 32
    hx = jnp.zeros((B, hid, H, W), jnp.float32)
    cx = jnp.zeros_like(hx)
    outs = []
    for t in range(S):
        x = inputs_nchw[t]
        comb = jnp.concatenate([x, hx], axis=1)
        gates = jax.lax.conv_general_dilated(
            comb, w_oihw, (1, 1), [(p, p), (p, p)],
            dimension_numbers=("NCHW", "OIHW", "NCHW"))
        gates = gates + b[None, :, None, None]
        g5 = gates.reshape(B, G, (4 * hid) // G, H, W)
        mean = g5.mean(axis=(2, 3, 4), keepdims=True)
        var = ((g5 - mean) ** 2).mean(axis=(2, 3, 4), keepdims=True)
        g5 = (g5 - mean) / jnp.sqrt(var + 1e-5)
        gates = g5.reshape(B, 4 * hid, H, W) * gamma[None, :, None, None] + beta[None, :, None, None]
        i, f, c, o = jnp.split(gates, 4, axis=1)
        cx = jax.nn.sigmoid(f) * cx + jax.nn.sigmoid(i) * jnp.tanh(c)
        hx = jax.nn.sigmoid(o) * jnp.tanh(cx)
        outs.append(hx)
    return jnp.stack(outs), (hx, cx)


if __name__ == "__main__":
    SEQ, BATCH, C_IN, HID, H, W, K = 8, 2, 4, 32, 16, 16, 3

    key = jax.random.PRNGKey(0)
    k_x, k_w, k_b, k_g, k_bt = jax.random.split(key, 5)

    inputs = jax.random.normal(k_x, (SEQ, BATCH, C_IN, H, W), jnp.float32)
    # deterministic synthetic parameters (shapes match nn.Conv2d / nn.GroupNorm)
    w_oihw = 0.1 * jax.random.normal(k_w, (4 * HID, C_IN + HID, K, K), jnp.float32)
    b = 0.1 * jax.random.normal(k_b, (4 * HID,), jnp.float32)
    gamma = 1.0 + 0.1 * jax.random.normal(k_g, (4 * HID,), jnp.float32)
    beta = 0.1 * jax.random.normal(k_bt, (4 * HID,), jnp.float32)

    xt, (hy, cy) = convlstm_forward(inputs, w_oihw, b, gamma, beta,
                                    hidden_dim=HID, kernel_size=K)
    jax.block_until_ready((xt, hy, cy))

    xt_ref, (hy_ref, cy_ref) = convlstm_reference(inputs, w_oihw, b, gamma, beta,
                                                  hidden_dim=HID, kernel_size=K)

    assert xt.shape == (SEQ, BATCH, HID, H, W)
    assert hy.shape == (BATCH, HID, H, W) and cy.shape == (BATCH, HID, H, W)
    # bf16 MXU operands + bf16-stored gates_x (f32 accumulation everywhere) ->
    # slightly looser tolerance than pure f32.
    assert jnp.allclose(xt, xt_ref, atol=4e-2, rtol=4e-2)
    assert jnp.allclose(hy, hy_ref, atol=4e-2, rtol=4e-2)
    assert jnp.allclose(cy, cy_ref, atol=4e-2, rtol=4e-2)

    print("KERNEL_OK")
</pallas_src>

<mosaic_0001>
module attributes {stable_mosaic.version = 11 : i64} {
  func.func @kernel(%arg0: i32, %arg1: i32, %arg2: memref<1x2x16x16x128xbf16, #tpu.memory_space<vmem>>, %arg3: memref<3x96x128xbf16, #tpu.memory_space<vmem>>, %arg4: memref<128x128xf32, #tpu.memory_space<vmem>>, %arg5: memref<1x128xf32, #tpu.memory_space<vmem>>, %arg6: memref<1x128xf32, #tpu.memory_space<vmem>>, %arg7: memref<1x2x16x16x32xf32, #tpu.memory_space<vmem>>, %arg8: memref<2x16x16x32xf32, #tpu.memory_space<vmem>>, %arg9: memref<2x16x16x32xf32, #tpu.memory_space<vmem>>, %arg10: memref<2x18x16x96xf32, #tpu.memory_space<vmem>>, %arg11: memref<2x16x16x32xf32, #tpu.memory_space<vmem>>) attributes {dimension_semantics = [#tpu.dimension_semantics<parallel>, #tpu.dimension_semantics<arbitrary>], iteration_bounds = array<i64: 1, 8>, scalar_prefetch = 0 : i64, scratch_operands = 2 : i64, tpu.core_type = #tpu.core_type<tc>, window_params = [{transform_indices = @transform_0, window_bounds = array<i64: 1, 2, 16, 16, 128>}, {pipeline_mode = #tpu.pipeline_mode<synchronous>, transform_indices = @transform_1, window_bounds = array<i64: 3, 96, 128>}, {pipeline_mode = #tpu.pipeline_mode<synchronous>, transform_indices = @transform_2, window_bounds = array<i64: 128, 128>}, {pipeline_mode = #tpu.pipeline_mode<synchronous>, transform_indices = @transform_3, window_bounds = array<i64: 1, 128>}, {pipeline_mode = #tpu.pipeline_mode<synchronous>, transform_indices = @transform_4, window_bounds = array<i64: 1, 128>}, {transform_indices = @transform_5, window_bounds = array<i64: 1, 2, 16, 16, 32>}, {transform_indices = @transform_6, window_bounds = array<i64: 2, 16, 16, 32>}, {transform_indices = @transform_7, window_bounds = array<i64: 2, 16, 16, 32>}]} {
    %c0_i32 = arith.constant 0 : i32
    %0 = arith.cmpi eq, %arg1, %c0_i32 : i32
    %1 = arith.extui %0 : i1 to i32
    %c0_i32_0 = arith.constant 0 : i32
    %2 = arith.cmpi ne, %1, %c0_i32_0 : i32
    scf.if %2 {
      %cst_56 = arith.constant 0.000000e+00 : f32
      %76 = vector.broadcast %cst_56 : f32 to vector<2x18x16x96xf32>
      %c0_57 = arith.constant 0 : index
      %c0_58 = arith.constant 0 : index
      %c0_59 = arith.constant 0 : index
      %c0_60 = arith.constant 0 : index
      %77 = vector.load %arg10[%c0_57, %c0_58, %c0_59, %c0_60] : memref<2x18x16x96xf32, #tpu.memory_space<vmem>>, vector<2x18x16x96xf32>
      tpu.vector_store %arg10[%c0_57, %c0_58, %c0_59, %c0_60], %76 {strides = array<i32>} : memref<2x18x16x96xf32, #tpu.memory_space<vmem>>, vector<2x18x16x96xf32>,
      %cst_61 = arith.constant 0.000000e+00 : f32
      %78 = vector.broadcast %cst_61 : f32 to vector<2x16x16x32xf32>
      %c0_62 = arith.constant 0 : index
      %c0_63 = arith.constant 0 : index
      %c0_64 = arith.constant 0 : index
      %c0_65 = arith.constant 0 : index
      %79 = vector.load %arg11[%c0_62, %c0_63, %c0_64, %c0_65] : memref<2x16x16x32xf32, #tpu.memory_space<vmem>>, vector<2x16x16x32xf32>
      tpu.vector_store %arg11[%c0_62, %c0_63, %c0_64, %c0_65], %78 {strides = array<i32>} : memref<2x16x16x32xf32, #tpu.memory_space<vmem>>, vector<2x16x16x32xf32>,
    } else {
    }
    %c0 = arith.constant 0 : index
    %c0_1 = arith.constant 0 : index
    %c0_2 = arith.constant 0 : index
    %c0_3 = arith.constant 0 : index
    %c0_4 = arith.constant 0 : index
    %3 = vector.load %arg2[%c0, %c0_1, %c0_2, %c0_3, %c0_4] : memref<1x2x16x16x128xbf16, #tpu.memory_space<vmem>>, vector<1x2x16x16x128xbf16>
    %4 = vector.shape_cast %3 : vector<1x2x16x16x128xbf16> to vector<2x16x16x128xbf16>
    %5 = arith.extf %4 : vector<2x16x16x128xbf16> to vector<2x16x16x128xf32>
    %c0_5 = arith.constant 0 : index
    %c0_6 = arith.constant 0 : index
    %c0_7 = arith.constant 0 : index
    %c0_8 = arith.constant 0 : index
    %6 = vector.load %arg10[%c0_5, %c0_6, %c0_7, %c0_8] : memref<2x18x16x96xf32, #tpu.memory_space<vmem>>, vector<2x18x16x96xf32>
    %7 = arith.truncf %6 : vector<2x18x16x96xf32> to vector<2x18x16x96xbf16>
    %8 = vector.extract_strided_slice %7 {offsets = [0, 0, 0, 0], sizes = [2, 16, 16, 96], strides = [1, 1, 1, 1]} : vector<2x18x16x96xbf16> to vector<2x16x16x96xbf16>
    %c0_9 = arith.constant 0 : index
    %c0_10 = arith.constant 0 : index
    %c0_11 = arith.constant 0 : index
    %9 = vector.load %arg3[%c0_9, %c0_10, %c0_11] : memref<3x96x128xbf16, #tpu.memory_space<vmem>>, vector<1x96x128xbf16>
    %10 = vector.shape_cast %9 : vector<1x96x128xbf16> to vector<96x128xbf16>
    %cst = arith.constant dense<0.000000e+00> : vector<2x16x16x128xf32>
    %11 = tpu.matmul %8, %10, %cst {dimension_numbers = #tpu.dot_dimension_numbers<[3], [0], [0, 1, 2], [1], [0, 0, 0, 1, 0, 2, 1, 1], [], []>} : vector<2x16x16x96xbf16>, vector<96x128xbf16>, vector<2x16x16x128xf32> -> vector<2x16x16x128xf32>
    %12 = arith.addf %5, %11 : vector<2x16x16x128xf32>
    %13 = vector.extract_strided_slice %7 {offsets = [0, 1, 0, 0], sizes = [2, 16, 16, 96], strides = [1, 1, 1, 1]} : vector<2x18x16x96xbf16> to vector<2x16x16x96xbf16>
    %c1 = arith.constant 1 : index
    %c0_12 = arith.constant 0 : index
    %c0_13 = arith.constant 0 : index
    %14 = vector.load %arg3[%c1, %c0_12, %c0_13] : memref<3x96x128xbf16, #tpu.memory_space<vmem>>, vector<1x96x128xbf16>
    %15 = vector.shape_cast %14 : vector<1x96x128xbf16> to vector<96x128xbf16>
    %cst_14 = arith.constant dense<0.000000e+00> : vector<2x16x16x128xf32>
    %16 = tpu.matmul %13, %15, %cst_14 {dimension_numbers = #tpu.dot_dimension_numbers<[3], [0], [0, 1, 2], [1], [0, 0, 0, 1, 0, 2, 1, 1], [], []>} : vector<2x16x16x96xbf16>, vector<96x128xbf16>, vector<2x16x16x128xf32> -> vector<2x16x16x128xf32>
    %17 = arith.addf %12, %16 : vector<2x16x16x128xf32>
    %18 = vector.extract_strided_slice %7 {offsets = [0, 2, 0, 0], sizes = [2, 16, 16, 96], strides = [1, 1, 1, 1]} : vector<2x18x16x96xbf16> to vector<2x16x16x96xbf16>
    %c2 = arith.constant 2 : index
    %c0_15 = arith.constant 0 : index
    %c0_16 = arith.constant 0 : index
    %19 = vector.load %arg3[%c2, %c0_15, %c0_16] : memref<3x96x128xbf16, #tpu.memory_space<vmem>>, vector<1x96x128xbf16>
    %20 = vector.shape_cast %19 : vector<1x96x128xbf16> to vector<96x128xbf16>
    %cst_17 = arith.constant dense<0.000000e+00> : vector<2x16x16x128xf32>
    %21 = tpu.matmul %18, %20, %cst_17 {dimension_numbers = #tpu.dot_dimension_numbers<[3], [0], [0, 1, 2], [1], [0, 0, 0, 1, 0, 2, 1, 1], [], []>} : vector<2x16x16x96xbf16>, vector<96x128xbf16>, vector<2x16x16x128xf32> -> vector<2x16x16x128xf32>
    %22 = arith.addf %17, %21 : vector<2x16x16x128xf32>
    %cst_18 = arith.constant dense<0.000000e+00> : vector<2x128xf32>
    %23 = vector.multi_reduction <add>, %22, %cst_18 [1, 2] : vector<2x16x16x128xf32> to vector<2x128xf32>
    %c0_19 = arith.constant 0 : index
    %c0_20 = arith.constant 0 : index
    %24 = vector.load %arg4[%c0_19, %c0_20] : memref<128x128xf32, #tpu.memory_space<vmem>>, vector<128x128xf32>
    %cst_21 = arith.constant dense<0.000000e+00> : vector<2x128xf32>
    %25 = tpu.matmul %23, %24, %cst_21 {dimension_numbers = #tpu.dot_dimension_numbers<[1], [0], [0], [1], [0, 0, 1, 1], [], []>} : vector<2x128xf32>, vector<128x128xf32>, vector<2x128xf32> -> vector<2x128xf32>
    %26 = vector.shape_cast %25 : vector<2x128xf32> to vector<2x1x1x128xf32>
    %27 = vector.broadcast %26 : vector<2x1x1x128xf32> to vector<2x16x16x128xf32>
    %28 = arith.subf %22, %27 : vector<2x16x16x128xf32>
    %29 = arith.mulf %28, %28 : vector<2x16x16x128xf32>
    %cst_22 = arith.constant dense<0.000000e+00> : vector<2x128xf32>
    %30 = vector.multi_reduction <add>, %29, %cst_22 [1, 2] : vector<2x16x16x128xf32> to vector<2x128xf32>
    %c0_23 = arith.constant 0 : index
    %c0_24 = arith.constant 0 : index
    %31 = vector.load %arg4[%c0_23, %c0_24] : memref<128x128xf32, #tpu.memory_space<vmem>>, vector<128x128xf32>
    %cst_25 = arith.constant dense<0.000000e+00> : vector<2x128xf32>
    %32 = tpu.matmul %30, %31, %cst_25 {dimension_numbers = #tpu.dot_dimension_numbers<[1], [0], [0], [1], [0, 0, 1, 1], [], []>} : vector<2x128xf32>, vector<128x128xf32>, vector<2x128xf32> -> vector<2x128xf32>
    %cst_26 = arith.constant 9.99999974E-6 : f32
    %33 = vector.broadcast %cst_26 : f32 to vector<2x128xf32>
    %34 = arith.addf %32, %33 : vector<2x128xf32>
    %35 = math.rsqrt %34 : vector<2x128xf32>
    %36 = vector.shape_cast %35 : vector<2x128xf32> to vector<2x1x1x128xf32>
    %37 = vector.broadcast %36 : vector<2x1x1x128xf32> to vector<2x16x16x128xf32>
    %38 = arith.mulf %28, %37 : vector<2x16x16x128xf32>
    %c0_27 = arith.constant 0 : index
    %c0_28 = arith.constant 0 : index
    %39 = vector.load %arg5[%c0_27, %c0_28] : memref<1x128xf32, #tpu.memory_space<vmem>>, vector<1x128xf32>
    %40 = vector.shape_cast %39 : vector<1x128xf32> to vector<1x1x1x128xf32>
    %41 = vector.broadcast %40 : vector<1x1x1x128xf32> to vector<2x16x16x128xf32>
    %42 = arith.mulf %38, %41 : vector<2x16x16x128xf32>
    %c0_29 = arith.constant 0 : index
    %c0_30 = arith.constant 0 : index
    %43 = vector.load %arg6[%c0_29, %c0_30] : memref<1x128xf32, #tpu.memory_space<vmem>>, vector<1x128xf32>
    %44 = vector.shape_cast %43 : vector<1x128xf32> to vector<1x1x1x128xf32>
    %45 = vector.broadcast %44 : vector<1x1x1x128xf32> to vector<2x16x16x128xf32>
    %46 = arith.addf %42, %45 : vector<2x16x16x128xf32>
    %47 = vector.extract_strided_slice %46 {offsets = [0, 0, 0, 0], sizes = [2, 16, 16, 96], strides = [1, 1, 1, 1]} : vector<2x16x16x128xf32> to vector<2x16x16x96xf32>
    %48 = arith.negf %47 : vector<2x16x16x96xf32>
    %49 = math.exp %48 : vector<2x16x16x96xf32>
    %cst_31 = arith.constant 1.000000e+00 : f32
    %50 = vector.broadcast %cst_31 : f32 to vector<2x16x16x96xf32>
    %51 = arith.addf %50, %49 : vector<2x16x16x96xf32>
    %52 = arith.divf %50, %51 : vector<2x16x16x96xf32>
    %53 = vector.extract_strided_slice %46 {offsets = [0, 0, 0, 96], sizes = [2, 16, 16, 32], strides = [1, 1, 1, 1]} : vector<2x16x16x128xf32> to vector<2x16x16x32xf32>
    %54 = math.tanh %53 : vector<2x16x16x32xf32>
    %55 = vector.extract_strided_slice %52 {offsets = [0, 0, 0, 0], sizes = [2, 16, 16, 32], strides = [1, 1, 1, 1]} : vector<2x16x16x96xf32> to vector<2x16x16x32xf32>
    %56 = vector.extract_strided_slice %52 {offsets = [0, 0, 0, 32], sizes = [2, 16, 16, 32], strides = [1, 1, 1, 1]} : vector<2x16x16x96xf32> to vector<2x16x16x32xf32>
    %57 = vector.extract_strided_slice %52 {offsets = [0, 0, 0, 64], sizes = [2, 16, 16, 32], strides = [1, 1, 1, 1]} : vector<2x16x16x96xf32> to vector<2x16x16x32xf32>
    %c0_32 = arith.constant 0 : index
    %c0_33 = arith.constant 0 : index
    %c0_34 = arith.constant 0 : index
    %c0_35 = arith.constant 0 : index
    %58 = vector.load %arg11[%c0_32, %c0_33, %c0_34, %c0_35] : memref<2x16x16x32xf32, #tpu.memory_space<vmem>>, vector<2x16x16x32xf32>
    %59 = arith.mulf %56, %58 : vector<2x16x16x32xf32>
    %60 = arith.mulf %55, %54 : vector<2x16x16x32xf32>
    %61 = arith.addf %59, %60 : vector<2x16x16x32xf32>
    %62 = math.tanh %61 : vector<2x16x16x32xf32>
    %63 = arith.mulf %57, %62 : vector<2x16x16x32xf32>
    %c0_36 = arith.constant 0 : index
    %c0_37 = arith.constant 0 : index
    %c0_38 = arith.constant 0 : index
    %c0_39 = arith.constant 0 : index
    %64 = vector.load %arg11[%c0_36, %c0_37, %c0_38, %c0_39] : memref<2x16x16x32xf32, #tpu.memory_space<vmem>>, vector<2x16x16x32xf32>
    tpu.vector_store %arg11[%c0_36, %c0_37, %c0_38, %c0_39], %61 {strides = array<i32>} : memref<2x16x16x32xf32, #tpu.memory_space<vmem>>, vector<2x16x16x32xf32>,
    %65 = vector.extract_strided_slice %63 {offsets = [0, 0, 0, 0], sizes = [2, 16, 15, 32], strides = [1, 1, 1, 1]} : vector<2x16x16x32xf32> to vector<2x16x15x32xf32>
    %c0_40 = arith.constant 0 : index
    %c1_41 = arith.constant 1 : index
    %c1_42 = arith.constant 1 : index
    %c0_43 = arith.constant 0 : index
    %66 = vector.load %arg10[%c0_40, %c1_41, %c1_42, %c0_43] : memref<2x18x16x96xf32, #tpu.memory_space<vmem>>, vector<2x16x15x32xf32>
    tpu.vector_store %arg10[%c0_40, %c1_41, %c1_42, %c0_43], %65 {strides = array<i32>} : memref<2x18x16x96xf32, #tpu.memory_space<vmem>>, vector<2x16x15x32xf32>,
    %c0_44 = arith.constant 0 : index
    %c1_45 = arith.constant 1 : index
    %c0_46 = arith.constant 0 : index
    %c32 = arith.constant 32 : index
    %67 = vector.load %arg10[%c0_44, %c1_45, %c0_46, %c32] : memref<2x18x16x96xf32, #tpu.memory_space<vmem>>, vector<2x16x16x32xf32>
    tpu.vector_store %arg10[%c0_44, %c1_45, %c0_46, %c32], %63 {strides = array<i32>} : memref<2x18x16x96xf32, #tpu.memory_space<vmem>>, vector<2x16x16x32xf32>,
    %68 = vector.extract_strided_slice %63 {offsets = [0, 0, 1, 0], sizes = [2, 16, 15, 32], strides = [1, 1, 1, 1]} : vector<2x16x16x32xf32> to vector<2x16x15x32xf32>
    %c0_47 = arith.constant 0 : index
    %c1_48 = arith.constant 1 : index
    %c0_49 = arith.constant 0 : index
    %c64 = arith.constant 64 : index
    %69 = vector.load %arg10[%c0_47, %c1_48, %c0_49, %c64] : memref<2x18x16x96xf32, #tpu.memory_space<vmem>>, vector<2x16x15x32xf32>
    tpu.vector_store %arg10[%c0_47, %c1_48, %c0_49, %c64], %68 {strides = array<i32>} : memref<2x18x16x96xf32, #tpu.memory_space<vmem>>, vector<2x16x15x32xf32>,
    %c0_50 = arith.constant 0 : index
    %c0_51 = arith.constant 0 : index
    %c0_52 = arith.constant 0 : index
    %c0_53 = arith.constant 0 : index
    %c0_54 = arith.constant 0 : index
    %70 = vector.load %arg7[%c0_50, %c0_51, %c0_52, %c0_53, %c0_54] : memref<1x2x16x16x32xf32, #tpu.memory_space<vmem>>, vector<1x2x16x16x32xf32>
    %71 = vector.shape_cast %70 : vector<1x2x16x16x32xf32> to vector<2x16x16x32xf32>
    %72 = vector.shape_cast %63 : vector<2x16x16x32xf32> to vector<1x2x16x16x32xf32>
    tpu.vector_store %arg7[%c0_50, %c0_51, %c0_52, %c0_53, %c0_54], %72 {strides = array<i32>} : memref<1x2x16x16x32xf32, #tpu.memory_space<vmem>>, vector<1x2x16x16x32xf32>,
    %c7_i32 = arith.constant 7 : i32
    %73 = arith.cmpi eq, %arg1, %c7_i32 : i32
    %74 = arith.extui %73 : i1 to i32
    %c0_i32_55 = arith.constant 0 : i32
    %75 = arith.cmpi ne, %74, %c0_i32_55 : i32
    scf.if %75 {
      %c0_56 = arith.constant 0 : index
      %c0_57 = arith.constant 0 : index
      %c0_58 = arith.constant 0 : index
      %c0_59 = arith.constant 0 : index
      %76 = vector.load %arg8[%c0_56, %c0_57, %c0_58, %c0_59] : memref<2x16x16x32xf32, #tpu.memory_space<vmem>>, vector<2x16x16x32xf32>
      tpu.vector_store %arg8[%c0_56, %c0_57, %c0_58, %c0_59], %63 {strides = array<i32>} : memref<2x16x16x32xf32, #tpu.memory_space<vmem>>, vector<2x16x16x32xf32>,
      %c0_60 = arith.constant 0 : index
      %c0_61 = arith.constant 0 : index
      %c0_62 = arith.constant 0 : index
      %c0_63 = arith.constant 0 : index
      %77 = vector.load %arg9[%c0_60, %c0_61, %c0_62, %c0_63] : memref<2x16x16x32xf32, #tpu.memory_space<vmem>>, vector<2x16x16x32xf32>
      tpu.vector_store %arg9[%c0_60, %c0_61, %c0_62, %c0_63], %61 {strides = array<i32>} : memref<2x16x16x32xf32, #tpu.memory_space<vmem>>, vector<2x16x16x32xf32>,
    } else {
    }
    return
  }
  func.func @transform_0(%arg0: i32, %arg1: i32) -> (i32, i32, i32, i32, i32) {
    %c0_i32 = arith.constant 0 : i32
    %c0_i32_0 = arith.constant 0 : i32
    %c0_i32_1 = arith.constant 0 : i32
    %c0_i32_2 = arith.constant 0 : i32
    return %arg1, %arg0, %c0_i32, %c0_i32_0, %c0_i32_1 : i32, i32, i32, i32, i32
  }
  func.func @transform_1(%arg0: i32, %arg1: i32) -> (i32, i32, i32) {
    %c0_i32 = arith.constant 0 : i32
    %c0_i32_0 = arith.constant 0 : i32
    %c0_i32_1 = arith.constant 0 : i32
    %c0_i32_2 = arith.constant 0 : i32
    return %c0_i32, %c0_i32_0, %c0_i32_1 : i32, i32, i32
  }
  func.func @transform_2(%arg0: i32, %arg1: i32) -> (i32, i32) {
    %c0_i32 = arith.constant 0 : i32
    %c0_i32_0 = arith.constant 0 : i32
    %c0_i32_1 = arith.constant 0 : i32
    return %c0_i32, %c0_i32_0 : i32, i32
  }
  func.func @transform_3(%arg0: i32, %arg1: i32) -> (i32, i32) {
    %c0_i32 = arith.constant 0 : i32
    %c0_i32_0 = arith.constant 0 : i32
    %c0_i32_1 = arith.constant 0 : i32
    return %c0_i32, %c0_i32_0 : i32, i32
  }
  func.func @transform_4(%arg0: i32, %arg1: i32) -> (i32, i32) {
    %c0_i32 = arith.constant 0 : i32
    %c0_i32_0 = arith.constant 0 : i32
    %c0_i32_1 = arith.constant 0 : i32
    return %c0_i32, %c0_i32_0 : i32, i32
  }
  func.func @transform_5(%arg0: i32, %arg1: i32) -> (i32, i32, i32, i32, i32) {
    %c0_i32 = arith.constant 0 : i32
    %c0_i32_0 = arith.constant 0 : i32
    %c0_i32_1 = arith.constant 0 : i32
    %c0_i32_2 = arith.constant 0 : i32
    return %arg1, %arg0, %c0_i32, %c0_i32_0, %c0_i32_1 : i32, i32, i32, i32, i32
  }
  func.func @transform_6(%arg0: i32, %arg1: i32) -> (i32, i32, i32, i32) {
    %c0_i32 = arith.constant 0 : i32
    %c0_i32_0 = arith.constant 0 : i32
    %c0_i32_1 = arith.constant 0 : i32
    %c0_i32_2 = arith.constant 0 : i32
    return %arg0, %c0_i32, %c0_i32_0, %c0_i32_1 : i32, i32, i32, i32
  }
  func.func @transform_7(%arg0: i32, %arg1: i32) -> (i32, i32, i32, i32) {
    %c0_i32 = arith.constant 0 : i32
    %c0_i32_0 = arith.constant 0 : i32
    %c0_i32_1 = arith.constant 0 : i32
    %c0_i32_2 = arith.constant 0 : i32
    return %arg0, %c0_i32, %c0_i32_0, %c0_i32_1 : i32, i32, i32, i32
  }
}

</mosaic_0001>

<bundles_post_ra>
// kernel: convlstm_forward.1
= control target key start
LH: loop header
LB: loop body
LE: loop exit
PB: predicated region body
PF: predicated region fallthrough
CT: control target
= control target key end

     0   :  { %s12714_s0 = inlined_call_operand.vmem [shape: bf16[8,2,16,16,128], index: 0, kind: input, shape index: {}]   ;;  %s12715_s1 = inlined_call_operand.vmem [shape: bf16[3,96,128], index: 1, kind: input, shape index: {}]   ;;  %s12716_s2 = inlined_call_operand.vmem [shape: f32[128,128], index: 2, kind: input, shape index: {}]   ;;  %s12717_s3 = inlined_call_operand.vmem [shape: f32[1,128], index: 3, kind: input, shape index: {}]   ;;  %s12718_s4 = inlined_call_operand.vmem [shape: f32[1,128], index: 4, kind: input, shape index: {}]   ;;  %s12719_s5 = inlined_call_operand.hbm [shape: f32[8,2,16,16,32], index: 5, kind: output, shape index: {0}]   ;;  %s12720_s6 = inlined_call_operand.hbm [shape: f32[2,16,16,32], index: 6, kind: output, shape index: {1}]   ;;  %s12721_s7 = inlined_call_operand.hbm [shape: f32[2,16,16,32], index: 7, kind: output, shape index: {2}]  }
   0x1   :  { %12994 = sst [smem:[#allocation137_spill]] %s12714_s0 }
   0x2   :  { %13 = vsyncpa [#allocation5], 0 }
   0x3   :  { %15 = vsyncpa [#allocation5 + $0x1], 0 }
   0x4   :  { %16 = vsyncpa [#allocation7], 0  ;;  %s7784_s24 = smov 0   ;;  %s7786_s25 = smov 0  }
   0x5   :  { %s7788_s26 = smov 0   ;;  %s7790_s27 = smov 0  }
   0x6   :  { %s7792_s28 = smov 0   ;;  %s7794_s29 = smov 0  }
   0x7 LB: > { %s5902_s30 = sadd.s32 4294967295, %s7729_s29   ;;  %s5903_s8 = sadd.s32 4294967294, %s7729_s29   ;;  %s7729_s29 = sphi %s7794_s29, %s22_s29   ;;  %s7725_s28 = sphi %s7792_s28, %s13656_s28   ;;  %s7721_s27 = sphi %s7790_s27, %s13655_s27   ;;  %s7717_s26 = sphi %s7788_s26, %s13654_s26   ;;  %s7713_s25 = sphi %s7786_s25, %s13653_s25   ;;  %s7709_s24 = sphi %s7784_s24, %s13652_s24  }
   0x8   : > { %s31_s9 = sadd.s32 1, %s7725_s28  ;;  %s155_s10 = sadd.s32 1, %s7717_s26 }
   0x9   : > { %p32_p0 = scmp.ge.s32.totalorder %s31_s9, 8  ;;  %p165_p1 = scmp.ne.s32.totalorder %s7717_s26, %s7713_s25 }
   0xa   : > { %p7820_p2 = scmp.eq.s32.totalorder %s5902_s30, 7  ;;  %p171_p3 = scmp.ne.s32.totalorder %s7713_s25, %s7709_s24 }
   0xb   : > { %s13658_s9 = smov (%p32_p0, %s31_s9), 0  ;;  %p172_p5 = scmp.eq.s32.totalorder %s5903_s8, 7 }
   0xc   : > { %p7830_p4 = por %p7820_p2, %p165_p1  ;;  %s150_s13 = ssub.s32 %s7725_s28, %s13658_s9 }
   0xd   : > { %p5906_p6 = scmp.ge.s32.totalorder %s7729_s29, 1  ;;  %p153_p7 = scmp.eq.s32.totalorder %s150_s13, 0 }
   0xe   : > { %p7837_p8 = por %p172_p5, %p171_p3  ;;  %p268_p9 = scmp.lt.s32.totalorder %s7729_s29, 9 }
   0xf   : > { %s7843_s15 = scalar_select %p153_p7, %s7717_s26, %s155_s10  }
  0x10   : > { %p269_p10 = pnand %p5906_p6, %p268_p9 }
  0x12   : > { %272 = sbr.rel (%p269_p10) target bundleno = 2139 (0x85b), region = 40 }
  0x19   : > { %s298_s16 = sand.u32 1, %s7713_s25   ;;  %p306_p11 = scmp.lt.s32.totalorder %s7721_s27, 7 }
  0x1a   : > { %s5907_s17 = sshll.u32 %s298_s16, 9  ;;  %s12998_s0 = sld [smem:[#allocation137_spill]] }
  0x1b   : > { %s307_s18 = scalar_select %p306_p11, %s7721_s27, 7 }
  0x1c   : > { %s7855_s23 = scalar_lea.vmem [#allocation4], %s5907_s17  ;;  %p5910_p12 = scmp.ne.s32.totalorder %s7721_s27, 0 }
  0x1d   : > { %s6125_s19 = sshll.u32 %s307_s18, 8  ;;  %vm324_vm0 = vcmask (!%p5910_p12), 785408   ;;  %vm397_vm1 = vcmask (!%p5910_p12), 261120   ;;  %v7731_v0 = vmov (!%p5910_p12), 0.0  }
  0x1e   : > { %323 = sbr.rel (%p5910_p12) target bundleno = 98 (0x62), region = 44  ;;  %325 = vst.msk [vmem:[#allocation2] sm:$0xff] (!%p5910_p12), %vm324_vm0, %v7731_v0  ;;  %326 = vst.msk [vmem:[#allocation2 + $0x8] sm:$0xff] (!%p5910_p12), %vm324_vm0, %v7731_v0 }
  0x1f   : > { %327 = vst.msk [vmem:[#allocation2 + $0x10] sm:$0xff] (!%p5910_p12), %vm324_vm0, %v7731_v0  ;;  %328 = vst.msk [vmem:[#allocation2 + $0x18] sm:$0xff] (!%p5910_p12), %vm324_vm0, %v7731_v0 }
  0x20   : > { %s7853_s22 = scalar_lea.vmem %s12998_s0, %s6125_s19  ;;  %329 = vst.msk [vmem:[#allocation2 + $0x20] sm:$0xff] (!%p5910_p12), %vm324_vm0, %v7731_v0  ;;  %330 = vst.msk [vmem:[#allocation2 + $0x28] sm:$0xff] (!%p5910_p12), %vm324_vm0, %v7731_v0 }
  0x21   : > { %331 = vst.msk [vmem:[#allocation2 + $0x30] sm:$0xff] (!%p5910_p12), %vm324_vm0, %v7731_v0  ;;  %332 = vst.msk [vmem:[#allocation2 + $0x38] sm:$0xff] (!%p5910_p12), %vm324_vm0, %v7731_v0 }
  0x22   : > { %333 = vst.msk [vmem:[#allocation2 + $0x40] sm:$0xff] (!%p5910_p12), %vm324_vm0, %v7731_v0  ;;  %334 = vst.msk [vmem:[#allocation2 + $0x48] sm:$0xff] (!%p5910_p12), %vm324_vm0, %v7731_v0 }
  0x23   : > { %335 = vst.msk [vmem:[#allocation2 + $0x50] sm:$0xff] (!%p5910_p12), %vm324_vm0, %v7731_v0  ;;  %336 = vst.msk [vmem:[#allocation2 + $0x58] sm:$0xff] (!%p5910_p12), %vm324_vm0, %v7731_v0 }
  0x24   : > { %337 = vst.msk [vmem:[#allocation2 + $0x60] sm:$0xff] (!%p5910_p12), %vm324_vm0, %v7731_v0  ;;  %338 = vst.msk [vmem:[#allocation2 + $0x68] sm:$0xff] (!%p5910_p12), %vm324_vm0, %v7731_v0 }
  0x25   : > { %339 = vst.msk [vmem:[#allocation2 + $0x70] sm:$0xff] %vm324_vm0, %v7731_v0  ;;  %340 = vst.msk [vmem:[#allocation2 + $0x78] sm:$0xff] %vm324_vm0, %v7731_v0 }
  0x26   : > { %341 = vst.msk [vmem:[#allocation2 + $0x80] sm:$0xff] %vm324_vm0, %v7731_v0  ;;  %342 = vst.msk [vmem:[#allocation2 + $0x88] sm:$0xff] %vm324_vm0, %v7731_v0 }
  0x27   : > { %343 = vst.msk [vmem:[#allocation2 + $0x90] sm:$0xff] %vm324_vm0, %v7731_v0  ;;  %344 = vst.msk [vmem:[#allocation2 + $0x98] sm:$0xff] %vm324_vm0, %v7731_v0 }
  0x28   : > { %345 = vst.msk [vmem:[#allocation2 + $0xa0] sm:$0xff] %vm324_vm0, %v7731_v0  ;;  %346 = vst.msk [vmem:[#allocation2 + $0xa8] sm:$0xff] %vm324_vm0, %v7731_v0 }
  0x29   : > { %347 = vst.msk [vmem:[#allocation2 + $0xb0] sm:$0xff] %vm324_vm0, %v7731_v0  ;;  %348 = vst.msk [vmem:[#allocation2 + $0xb8] sm:$0xff] %vm324_vm0, %v7731_v0 }
  0x2a   : > { %349 = vst.msk [vmem:[#allocation2 + $0xc0] sm:$0xff] %vm324_vm0, %v7731_v0  ;;  %350 = vst.msk [vmem:[#allocation2 + $0xc8] sm:$0xff] %vm324_vm0, %v7731_v0 }
  0x2b   : > { %351 = vst.msk [vmem:[#allocation2 + $0xd0] sm:$0xff] %vm324_vm0, %v7731_v0  ;;  %352 = vst.msk [vmem:[#allocation2 + $0xd8] sm:$0xff] %vm324_vm0, %v7731_v0 }
  0x2c   : > { %353 = vst.msk [vmem:[#allocation2 + $0xe0] sm:$0xff] %vm324_vm0, %v7731_v0  ;;  %354 = vst.msk [vmem:[#allocation2 + $0xe8] sm:$0xff] %vm324_vm0, %v7731_v0 }
  0x2d   : > { %355 = vst.msk [vmem:[#allocation2 + $0xf0] sm:$0xff] %vm324_vm0, %v7731_v0  ;;  %356 = vst.msk [vmem:[#allocation2 + $0xf8] sm:$0xff] %vm324_vm0, %v7731_v0 }
  0x2e   : > { %357 = vst.msk [vmem:[#allocation2 + $0x100] sm:$0xff] %vm324_vm0, %v7731_v0  ;;  %358 = vst.msk [vmem:[#allocation2 + $0x108] sm:$0xff] %vm324_vm0, %v7731_v0 }
  0x2f   : > { %359 = vst.msk [vmem:[#allocation2 + $0x110] sm:$0xff] %vm324_vm0, %v7731_v0  ;;  %360 = vst.msk [vmem:[#allocation2 + $0x118] sm:$0xff] %vm324_vm0, %v7731_v0 }
  0x30   : > { %361 = vst.msk [vmem:[#allocation2 + $0x120] sm:$0xff] %vm324_vm0, %v7731_v0  ;;  %362 = vst.msk [vmem:[#allocation2 + $0x128] sm:$0xff] %vm324_vm0, %v7731_v0 }
  0x31   : > { %363 = vst.msk [vmem:[#allocation2 + $0x130] sm:$0xff] %vm324_vm0, %v7731_v0  ;;  %364 = vst.msk [vmem:[#allocation2 + $0x138] sm:$0xff] %vm324_vm0, %v7731_v0 }
  0x32   : > { %365 = vst.msk [vmem:[#allocation2 + $0x140] sm:$0xff] %vm324_vm0, %v7731_v0  ;;  %366 = vst.msk [vmem:[#allocation2 + $0x148] sm:$0xff] %vm324_vm0, %v7731_v0 }
  0x33   : > { %367 = vst.msk [vmem:[#allocation2 + $0x150] sm:$0xff] %vm324_vm0, %v7731_v0  ;;  %368 = vst.msk [vmem:[#allocation2 + $0x158] sm:$0xff] %vm324_vm0, %v7731_v0 }
  0x34   : > { %369 = vst.msk [vmem:[#allocation2 + $0x160] sm:$0xff] %vm324_vm0, %v7731_v0  ;;  %370 = vst.msk [vmem:[#allocation2 + $0x168] sm:$0xff] %vm324_vm0, %v7731_v0 }
  0x35   : > { %371 = vst.msk [vmem:[#allocation2 + $0x170] sm:$0xff] %vm324_vm0, %v7731_v0  ;;  %372 = vst.msk [vmem:[#allocation2 + $0x178] sm:$0xff] %vm324_vm0, %v7731_v0 }
  0x36   : > { %373 = vst.msk [vmem:[#allocation2 + $0x180] sm:$0xff] %vm324_vm0, %v7731_v0  ;;  %374 = vst.msk [vmem:[#allocation2 + $0x188] sm:$0xff] %vm324_vm0, %v7731_v0 }
  0x37   : > { %375 = vst.msk [vmem:[#allocation2 + $0x190] sm:$0xff] %vm324_vm0, %v7731_v0  ;;  %376 = vst.msk [vmem:[#allocation2 + $0x198] sm:$0xff] %vm324_vm0, %v7731_v0 }
  0x38   : > { %377 = vst.msk [vmem:[#allocation2 + $0x1a0] sm:$0xff] %vm324_vm0, %v7731_v0  ;;  %378 = vst.msk [vmem:[#allocation2 + $0x1a8] sm:$0xff] %vm324_vm0, %v7731_v0 }
  0x39   : > { %379 = vst.msk [vmem:[#allocation2 + $0x1b0] sm:$0xff] %vm324_vm0, %v7731_v0  ;;  %380 = vst.msk [vmem:[#allocation2 + $0x1b8] sm:$0xff] %vm324_vm0, %v7731_v0 }
  0x3a   : > { %381 = vst.msk [vmem:[#allocation2 + $0x1c0] sm:$0xff] %vm324_vm0, %v7731_v0  ;;  %382 = vst.msk [vmem:[#allocation2 + $0x1c8] sm:$0xff] %vm324_vm0, %v7731_v0 }
  0x3b   : > { %383 = vst.msk [vmem:[#allocation2 + $0x1d0] sm:$0xff] %vm324_vm0, %v7731_v0  ;;  %384 = vst.msk [vmem:[#allocation2 + $0x1d8] sm:$0xff] %vm324_vm0, %v7731_v0 }
  0x3c   : > { %385 = vst.msk [vmem:[#allocation2 + $0x1e0] sm:$0xff] %vm324_vm0, %v7731_v0  ;;  %386 = vst.msk [vmem:[#allocation2 + $0x1e8] sm:$0xff] %vm324_vm0, %v7731_v0 }
  0x3d   : > { %387 = vst.msk [vmem:[#allocation2 + $0x1f0] sm:$0xff] %vm324_vm0, %v7731_v0  ;;  %388 = vst.msk [vmem:[#allocation2 + $0x1f8] sm:$0xff] %vm324_vm0, %v7731_v0 }
  0x3e   : > { %389 = vst.msk [vmem:[#allocation2 + $0x200] sm:$0xff] %vm324_vm0, %v7731_v0  ;;  %390 = vst.msk [vmem:[#allocation2 + $0x208] sm:$0xff] %vm324_vm0, %v7731_v0 }
  0x3f   : > { %391 = vst.msk [vmem:[#allocation2 + $0x210] sm:$0xff] %vm324_vm0, %v7731_v0  ;;  %392 = vst.msk [vmem:[#allocation2 + $0x218] sm:$0xff] %vm324_vm0, %v7731_v0 }
  0x40   : > { %393 = vst.msk [vmem:[#allocation2 + $0x220] sm:$0xff] %vm324_vm0, %v7731_v0  ;;  %394 = vst.msk [vmem:[#allocation2 + $0x228] sm:$0xff] %vm324_vm0, %v7731_v0 }
  0x41   : > { %395 = vst.msk [vmem:[#allocation2 + $0x230] sm:$0xff] %vm324_vm0, %v7731_v0  ;;  %396 = vst.msk [vmem:[#allocation2 + $0x238] sm:$0xff] %vm324_vm0, %v7731_v0 }
  0x42   : > { %398 = vst.msk [vmem:[#allocation3] sm:$0xff] %vm397_vm1, %v7731_v0  ;;  %399 = vst.msk [vmem:[#allocation3 + $0x8] sm:$0xff] %vm397_vm1, %v7731_v0 }
  0x43   : > { %400 = vst.msk [vmem:[#allocation3 + $0x10] sm:$0xff] %vm397_vm1, %v7731_v0  ;;  %401 = vst.msk [vmem:[#allocation3 + $0x18] sm:$0xff] %vm397_vm1, %v7731_v0 }
  0x44   : > { %402 = vst.msk [vmem:[#allocation3 + $0x20] sm:$0xff] %vm397_vm1, %v7731_v0  ;;  %403 = vst.msk [vmem:[#allocation3 + $0x28] sm:$0xff] %vm397_vm1, %v7731_v0 }
  0x45   : > { %404 = vst.msk [vmem:[#allocation3 + $0x30] sm:$0xff] %vm397_vm1, %v7731_v0  ;;  %405 = vst.msk [vmem:[#allocation3 + $0x38] sm:$0xff] %vm397_vm1, %v7731_v0 }
  0x46   : > { %406 = vst.msk [vmem:[#allocation3 + $0x40] sm:$0xff] %vm397_vm1, %v7731_v0  ;;  %407 = vst.msk [vmem:[#allocation3 + $0x48] sm:$0xff] %vm397_vm1, %v7731_v0 }
  0x47   : > { %408 = vst.msk [vmem:[#allocation3 + $0x50] sm:$0xff] %vm397_vm1, %v7731_v0  ;;  %409 = vst.msk [vmem:[#allocation3 + $0x58] sm:$0xff] %vm397_vm1, %v7731_v0 }
  0x48   : > { %410 = vst.msk [vmem:[#allocation3 + $0x60] sm:$0xff] %vm397_vm1, %v7731_v0  ;;  %411 = vst.msk [vmem:[#allocation3 + $0x68] sm:$0xff] %vm397_vm1, %v7731_v0 }
  0x49   : > { %412 = vst.msk [vmem:[#allocation3 + $0x70] sm:$0xff] %vm397_vm1, %v7731_v0  ;;  %413 = vst.msk [vmem:[#allocation3 + $0x78] sm:$0xff] %vm397_vm1, %v7731_v0 }
  0x4a   : > { %414 = vst.msk [vmem:[#allocation3 + $0x80] sm:$0xff] %vm397_vm1, %v7731_v0  ;;  %415 = vst.msk [vmem:[#allocation3 + $0x88] sm:$0xff] %vm397_vm1, %v7731_v0 }
  0x4b   : > { %416 = vst.msk [vmem:[#allocation3 + $0x90] sm:$0xff] %vm397_vm1, %v7731_v0  ;;  %417 = vst.msk [vmem:[#allocation3 + $0x98] sm:$0xff] %vm397_vm1, %v7731_v0 }
  0x4c   : > { %418 = vst.msk [vmem:[#allocation3 + $0xa0] sm:$0xff] %vm397_vm1, %v7731_v0  ;;  %419 = vst.msk [vmem:[#allocation3 + $0xa8] sm:$0xff] %vm397_vm1, %v7731_v0 }
  0x4d   : > { %420 = vst.msk [vmem:[#allocation3 + $0xb0] sm:$0xff] %vm397_vm1, %v7731_v0  ;;  %421 = vst.msk [vmem:[#allocation3 + $0xb8] sm:$0xff] %vm397_vm1, %v7731_v0 }
  0x4e   : > { %422 = vst.msk [vmem:[#allocation3 + $0xc0] sm:$0xff] %vm397_vm1, %v7731_v0  ;;  %423 = vst.msk [vmem:[#allocation3 + $0xc8] sm:$0xff] %vm397_vm1, %v7731_v0 }
  0x4f   : > { %424 = vst.msk [vmem:[#allocation3 + $0xd0] sm:$0xff] %vm397_vm1, %v7731_v0  ;;  %425 = vst.msk [vmem:[#allocation3 + $0xd8] sm:$0xff] %vm397_vm1, %v7731_v0 }
  0x50   : > { %426 = vst.msk [vmem:[#allocation3 + $0xe0] sm:$0xff] %vm397_vm1, %v7731_v0  ;;  %427 = vst.msk [vmem:[#allocation3 + $0xe8] sm:$0xff] %vm397_vm1, %v7731_v0 }
  0x51   : > { %428 = vst.msk [vmem:[#allocation3 + $0xf0] sm:$0xff] %vm397_vm1, %v7731_v0  ;;  %429 = vst.msk [vmem:[#allocation3 + $0xf8] sm:$0xff] %vm397_vm1, %v7731_v0 }
  0x52   : > { %430 = vst.msk [vmem:[#allocation3 + $0x100] sm:$0xff] %vm397_vm1, %v7731_v0  ;;  %431 = vst.msk [vmem:[#allocation3 + $0x108] sm:$0xff] %vm397_vm1, %v7731_v0 }
  0x53   : > { %432 = vst.msk [vmem:[#allocation3 + $0x110] sm:$0xff] %vm397_vm1, %v7731_v0  ;;  %433 = vst.msk [vmem:[#allocation3 + $0x118] sm:$0xff] %vm397_vm1, %v7731_v0 }
  0x54   : > { %434 = vst.msk [vmem:[#allocation3 + $0x120] sm:$0xff] %vm397_vm1, %v7731_v0  ;;  %435 = vst.msk [vmem:[#allocation3 + $0x128] sm:$0xff] %vm397_vm1, %v7731_v0 }
  0x55   : > { %436 = vst.msk [vmem:[#allocation3 + $0x130] sm:$0xff] %vm397_vm1, %v7731_v0  ;;  %437 = vst.msk [vmem:[#allocation3 + $0x138] sm:$0xff] %vm397_vm1, %v7731_v0 }
  0x56   : > { %438 = vst.msk [vmem:[#allocation3 + $0x140] sm:$0xff] %vm397_vm1, %v7731_v0  ;;  %439 = vst.msk [vmem:[#allocation3 + $0x148] sm:$0xff] %vm397_vm1, %v7731_v0 }
  0x57   : > { %440 = vst.msk [vmem:[#allocation3 + $0x150] sm:$0xff] %vm397_vm1, %v7731_v0  ;;  %441 = vst.msk [vmem:[#allocation3 + $0x158] sm:$0xff] %vm397_vm1, %v7731_v0 }
  0x58   : > { %442 = vst.msk [vmem:[#allocation3 + $0x160] sm:$0xff] %vm397_vm1, %v7731_v0  ;;  %443 = vst.msk [vmem:[#allocation3 + $0x168] sm:$0xff] %vm397_vm1, %v7731_v0 }
  0x59   : > { %444 = vst.msk [vmem:[#allocation3 + $0x170] sm:$0xff] %vm397_vm1, %v7731_v0  ;;  %445 = vst.msk [vmem:[#allocation3 + $0x178] sm:$0xff] %vm397_vm1, %v7731_v0 }
  0x5a   : > { %446 = vst.msk [vmem:[#allocation3 + $0x180] sm:$0xff] %vm397_vm1, %v7731_v0  ;;  %447 = vst.msk [vmem:[#allocation3 + $0x188] sm:$0xff] %vm397_vm1, %v7731_v0 }
  0x5b   : > { %448 = vst.msk [vmem:[#allocation3 + $0x190] sm:$0xff] %vm397_vm1, %v7731_v0  ;;  %449 = vst.msk [vmem:[#allocation3 + $0x198] sm:$0xff] %vm397_vm1, %v7731_v0 }
  0x5c   : > { %450 = vst.msk [vmem:[#allocation3 + $0x1a0] sm:$0xff] %vm397_vm1, %v7731_v0  ;;  %451 = vst.msk [vmem:[#allocation3 + $0x1a8] sm:$0xff] %vm397_vm1, %v7731_v0 }
  0x5d   : > { %452 = vst.msk [vmem:[#allocation3 + $0x1b0] sm:$0xff] %vm397_vm1, %v7731_v0  ;;  %453 = vst.msk [vmem:[#allocation3 + $0x1b8] sm:$0xff] %vm397_vm1, %v7731_v0 }
  0x5e   : > { %454 = vst.msk [vmem:[#allocation3 + $0x1c0] sm:$0xff] %vm397_vm1, %v7731_v0  ;;  %455 = vst.msk [vmem:[#allocation3 + $0x1c8] sm:$0xff] %vm397_vm1, %v7731_v0 }
  0x5f   : > { %456 = vst.msk [vmem:[#allocation3 + $0x1d0] sm:$0xff] %vm397_vm1, %v7731_v0  ;;  %457 = vst.msk [vmem:[#allocation3 + $0x1d8] sm:$0xff] %vm397_vm1, %v7731_v0 }
  0x60   : > { %458 = vst.msk [vmem:[#allocation3 + $0x1e0] sm:$0xff] %vm397_vm1, %v7731_v0  ;;  %459 = vst.msk [vmem:[#allocation3 + $0x1e8] sm:$0xff] %vm397_vm1, %v7731_v0 }
  0x61   : > { %460 = vst.msk [vmem:[#allocation3 + $0x1f0] sm:$0xff] %vm397_vm1, %v7731_v0  ;;  %461 = vst.msk [vmem:[#allocation3 + $0x1f8] sm:$0xff] %vm397_vm1, %v7731_v0 }
  0x62 PF: > { %v8133_v1 = vld [vmem:[%s12715_s1 + $0x30] sm:$0xff]   ;;  %v7064_v2 = vld [vmem:[%s12715_s1] sm:$0xff]   ;;  %v8142_v3 = vld [vmem:[%s12715_s1 + $0x38] sm:$0xff]   ;;  %vm746_vm2 = vcmask 785408   ;;  %vm7733_vm3 = vmmov 0   ;;  %vm2104_vm4 = vcmask 1041409  }
  0x63   : > { %6510 = vmatprep.subr.bf16.mxu0 %v8133_v1  ;;  %6434 = vmatprep.subr.bf16.mxu1 %v7064_v2  ;;  %v7066_v4 = vld [vmem:[%s12715_s1 + $0x8] sm:$0xff]   ;;  %v8152_v5 = vld [vmem:[%s12715_s1 + $0x40] sm:$0xff]   ;;  %v7068_v6 = vld [vmem:[%s12715_s1 + $0x10] sm:$0xff]   ;;  %s7737_s30 = smov 96   ;;  %vm4838_vm5 = vcmask 261120   ;;  %s7738_s8 = smov 64  }
  0x64   : > { %6511 = vmatpush3.bf16.msra.mxu0 %v8133_v1  ;;  %6435 = vmatpush3.bf16.msra.mxu1 %v7064_v2  ;;  %v8162_v7 = vld [vmem:[%s12715_s1 + $0x48] sm:$0xff]   ;;  %v7070_v8 = vld [vmem:[%s12715_s1 + $0x18] sm:$0xff]   ;;  %v592_v9 = vld [vmem:[#allocation2 + $0x10] sm:$0xff]  ;;  %vm5161_vm6 = vcmask 260096   ;;  %vm5417_vm7 = vcmask 523520   ;;  %vm5482_vm8 = vcmask 785921  }
  0x65   : > { %6512 = vmatprep.subr.bf16.mxu0 %v8142_v3  ;;  %6436 = vmatprep.subr.bf16.mxu1 %v7066_v4  ;;  %v593_v10 = vld [vmem:[#allocation2 + $0x18] sm:$0xff]  ;;  %v8172_v11 = vld [vmem:[%s12715_s1 + $0x50] sm:$0xff]   ;;  %v7072_v13 = vld [vmem:[%s12715_s1 + $0x20] sm:$0xff]   ;;  %vm5484_vm9 = vcmask 785920   ;;  %p6115_p13 = scmp.ne.s32.totalorder %s7721_s27, 7 }
  0x66   : > { %v663_v12 = vpack.c.bf16 %v593_v10, %v592_v9  ;;  %v590_v14 = vld [vmem:[#allocation2] sm:$0xff]  ;;  %v591_v15 = vld [vmem:[#allocation2 + $0x8] sm:$0xff]  ;;  %v8183_v17 = vld [vmem:[%s12715_s1 + $0x58] sm:$0xff]  }
  0x67   : > { %v662_v16 = vpack.c.bf16 %v591_v15, %v590_v14  ;;  %v7074_v18 = vld [vmem:[%s12715_s1 + $0x28] sm:$0xff]   ;;  %v594_v19 = vld [vmem:[#allocation2 + $0x20] sm:$0xff]  ;;  %v596_v22 = vld [vmem:[#allocation2 + $0x30] sm:$0xff] }
  0x68   : > { %6513 = vmatpush3.bf16.msra.mxu0 %v8142_v3  ;;  %6437 = vmatpush3.bf16.msra.mxu1 %v7066_v4  ;;  %v595_v20 = vld [vmem:[#allocation2 + $0x28] sm:$0xff]  ;;  %v7075_v21 = vld [vmem:[%s12715_s1 + $0x60] sm:$0xff]   ;;  %v597_v23 = vld [vmem:[#allocation2 + $0x38] sm:$0xff] }
  0x69   : > { %6514 = vmatprep.subr.bf16.mxu0 %v8152_v5  ;;  %6438 = vmatprep.subr.bf16.mxu1 %v7068_v6  ;;  %v8194_v24 = vpack.c.bf16 %v595_v20, %v594_v19  ;;  %v8197_v25 = vpack.c.bf16 %v597_v23, %v596_v22  ;;  %v7076_v26 = vld [vmem:[%s12715_s1 + $0x68] sm:$0xff]   ;;  %v598_v27 = vld [vmem:[#allocation2 + $0x40] sm:$0xff]  ;;  %v600_v29 = vld [vmem:[#allocation2 + $0x50] sm:$0xff] }
  0x6a   : > { %6522 = vmatprep.mubr.msk.bf16.mxu0 %vm746_vm2, %v663_v12  ;;  %6446 = vmatprep.mubr.msk.bf16.mxu1 %vm746_vm2, %v662_v16  ;;  %v599_v28 = vld [vmem:[#allocation2 + $0x48] sm:$0xff]  ;;  %v601_v30 = vld [vmem:[#allocation2 + $0x58] sm:$0xff]  ;;  %v7077_v31 = vld [vmem:[%s12715_s1 + $0x70] sm:$0xff]  }
  0x6b   : > { %v8214_v32 = vpack.c.bf16 %v599_v28, %v598_v27  ;;  %v8217_v33 = vpack.c.bf16 %v601_v30, %v600_v29  ;;  %v7078_v34 = vld [vmem:[%s12715_s1 + $0x78] sm:$0xff]   ;;  %v602_v35 = vld [vmem:[#allocation2 + $0x60] sm:$0xff]  ;;  %v603_v36 = vld [vmem:[#allocation2 + $0x68] sm:$0xff] }
  0x6c   : > { %6515 = vmatpush3.bf16.msra.mxu0 %v8152_v5  ;;  %6439 = vmatpush3.bf16.msra.mxu1 %v7068_v6  ;;  %v604_v37 = vld [vmem:[#allocation2 + $0x70] sm:$0xff]  ;;  %v605_v38 = vld [vmem:[#allocation2 + $0x78] sm:$0xff]  ;;  %v7079_v39 = vld [vmem:[%s12715_s1 + $0x80] sm:$0xff]   ;;  %v8236_v40 = vpack.c.bf16 %v603_v36, %v602_v35 }
  0x6d   : > { %6516 = vmatprep.subr.bf16.mxu0 %v8162_v7  ;;  %6440 = vmatprep.subr.bf16.mxu1 %v7070_v8  ;;  %v8239_v41 = vpack.c.bf16 %v605_v38, %v604_v37  ;;  %v7080_v42 = vld [vmem:[%s12715_s1 + $0x88] sm:$0xff]   ;;  %v606_v43 = vld [vmem:[#allocation2 + $0x80] sm:$0xff]  ;;  %v608_v45 = vld [vmem:[#allocation2 + $0x90] sm:$0xff] }
  0x6e   : > { %v607_v44 = vld [vmem:[#allocation2 + $0x88] sm:$0xff]  ;;  %v609_v46 = vld [vmem:[#allocation2 + $0x98] sm:$0xff]  ;;  %v610_v49 = vld [vmem:[#allocation2 + $0xa0] sm:$0xff] }
  0x6f   : > { %v8255_v47 = vpack.c.bf16 %v607_v44, %v606_v43  ;;  %v8258_v48 = vpack.c.bf16 %v609_v46, %v608_v45  ;;  %v611_v50 = vld [vmem:[#allocation2 + $0xa8] sm:$0xff]  ;;  %v612_v51 = vld [vmem:[#allocation2 + $0xb0] sm:$0xff]  ;;  %v613_v52 = vld [vmem:[#allocation2 + $0xb8] sm:$0xff] }
  0x70   : > { %6517 = vmatpush3.bf16.msra.mxu0 %v8162_v7  ;;  %6441 = vmatpush3.bf16.msra.mxu1 %v7070_v8  ;;  %v8269_v53 = vpack.c.bf16 %v611_v50, %v610_v49  ;;  %v8271_v54 = vpack.c.bf16 %v613_v52, %v612_v51  ;;  %v614_v55 = vld [vmem:[#allocation2 + $0xc0] sm:$0xff]  ;;  %v615_v56 = vld [vmem:[#allocation2 + $0xc8] sm:$0xff]  ;;  %v616_v57 = vld [vmem:[#allocation2 + $0xd0] sm:$0xff] }
  0x71   : > { %6518 = vmatprep.subr.bf16.mxu0 %v8172_v11  ;;  %6442 = vmatprep.subr.bf16.mxu1 %v7072_v13  ;;  %v617_v58 = vld [vmem:[#allocation2 + $0xd8] sm:$0xff]  ;;  %v8281_v59 = vpack.c.bf16 %v615_v56, %v614_v55  ;;  %v618_v61 = vld [vmem:[#allocation2 + $0xe0] sm:$0xff]  ;;  %v619_v62 = vld [vmem:[#allocation2 + $0xe8] sm:$0xff] }
  0x72   : > { %v8283_v60 = vpack.c.bf16 %v617_v58, %v616_v57  ;;  %v620_v63 = vld [vmem:[#allocation2 + $0xf0] sm:$0xff]  ;;  %v621_v0 = vld [vmem:[#allocation2 + $0xf8] sm:$0xff]  ;;  %v623_v4 = vld [vmem:[#allocation2 + $0x108] sm:$0xff] }
  0x73   : > { %v8295_v2 = vpack.c.bf16 %v621_v0, %v620_v63  ;;  %v629_v6 = vld [vmem:[#allocation2 + $0x138] sm:$0xff]  ;;  %v627_v8 = vld [vmem:[#allocation2 + $0x128] sm:$0xff]  ;;  %v632_v14 = vld [vmem:[#allocation2 + $0x150] sm:$0xff] }
  0x74   : > { %6519 = vmatpush3.bf16.msra.mxu0 %v8172_v11  ;;  %6443 = vmatpush3.bf16.msra.mxu1 %v7072_v13  ;;  %v631_v13 = vld [vmem:[#allocation2 + $0x148] sm:$0xff]  ;;  %v633_v15 = vld [vmem:[#allocation2 + $0x158] sm:$0xff]  ;;  %v636_v20 = vld [vmem:[#allocation2 + $0x170] sm:$0xff] }
  0x75   : > { %6520 = vmatprep.subr.bf16.mxu0 %v8183_v17  ;;  %6444 = vmatprep.subr.bf16.mxu1 %v7074_v18  ;;  %v635_v19 = vld [vmem:[#allocation2 + $0x168] sm:$0xff]  ;;  %v640_v29 = vld [vmem:[#allocation2 + $0x190] sm:$0xff]  ;;  %v641_v30 = vld [vmem:[#allocation2 + $0x198] sm:$0xff] }
  0x76   : > { %v639_v27 = vld [vmem:[#allocation2 + $0x188] sm:$0xff]  ;;  %v8346_v35 = vpack.c.bf16 %v641_v30, %v640_v29  ;;  %v645_v37 = vld [vmem:[#allocation2 + $0x1b8] sm:$0xff]  ;;  %v646_v38 = vld [vmem:[#allocation2 + $0x1c0] sm:$0xff] }
  0x77   : > { %v650_v44 = vld [vmem:[#allocation2 + $0x1e0] sm:$0xff]  ;;  %v651_v45 = vld [vmem:[#allocation2 + $0x1e8] sm:$0xff] }
  0x78   : > { %6521 = vmatpush3.bf16.msra.mxu0 %v8183_v17  ;;  %6445 = vmatpush3.bf16.msra.mxu1 %v7074_v18  ;;  %v634_v18 = vld [vmem:[#allocation2 + $0x160] sm:$0xff]  ;;  %v692_v49 = vpack.c.bf16 %v651_v45, %v650_v44  ;;  %v655_v51 = vld [vmem:[#allocation2 + $0x208] sm:$0xff] }
  0x79   : > { %6586 = vmatprep.subr.bf16.mxu0 %v7075_v21  ;;  %6780 = vmatprep.subr.bf16.mxu1 %v8133_v1  ;;  %v8324_v22 = vpack.c.bf16 %v635_v19, %v634_v18  ;;  %v654_v50 = vld [vmem:[#allocation2 + $0x200] sm:$0xff]  ;;  %v659_v58 = vld [vmem:[#allocation2 + $0x228] sm:$0xff] }
  0x7a   : > { %v694_v55 = vpack.c.bf16 %v655_v51, %v654_v50  ;;  %v658_v57 = vld [vmem:[#allocation2 + $0x220] sm:$0xff]  ;;  %v2091_v50 = vld [vmem:[%s12716_s2 + $0x28] sm:$0xff] }
  0x7b   : > { %6523 = vmatmul.mubr.msk.bf16.vlgmr.msra.gmra.mrb[0].mxu0 %vm746_vm2, %v8194_v24  ;;  %6447 = vmatmul.mubr.msk.bf16.vlgmr.msra.gmra.mrb[0].mxu1 %vm746_vm2, %v663_v12  ;;  %v630_v12 = vld [vmem:[#allocation2 + $0x140] sm:$0xff]  ;;  %v6255_v51 = vld [vmem:[%s7853_s22 + $0x8] sm:$0xff]  }
  0x7c   : > { %6587 = vmatpush3.bf16.msra.mxu0 %v7075_v21  ;;  %6526 = vmatprep.mubr.msk.bf16.mxu0 %vm746_vm2, %v8197_v25  ;;  %v8313_v16 = vpack.c.bf16 %v631_v13, %v630_v12  ;;  %v637_v21 = vld [vmem:[#allocation2 + $0x178] sm:$0xff] }
  0x7d   : > { %6450 = vmatprep.mubr.msk.bf16.mxu1 %vm746_vm2, %v8194_v24  ;;  %6588 = vmatprep.subr.bf16.mxu0 %v7076_v26  ;;  %v8326_v23 = vpack.c.bf16 %v637_v21, %v636_v20 }
  0x7e   : > { %6786 = vmatpush3.bf16.msra.mxu1 %v8133_v1  ;;  %v8293_v1 = vpack.c.bf16 %v619_v62, %v618_v61  ;;  %v661_v61 = vld [vmem:[#allocation2 + $0x238] sm:$0xff] }
  0x7f   : > { %6781 = vmatprep.subr.bf16.mxu1 %v8142_v3 }
  0x80   : > { %6589 = vmatpush3.bf16.msra.mxu0 %v7076_v26  ;;  %v638_v26 = vld [vmem:[#allocation2 + $0x180] sm:$0xff] }
  0x81   : > { %6590 = vmatprep.subr.bf16.mxu0 %v7077_v31  ;;  %v8336_v28 = vpack.c.bf16 %v639_v27, %v638_v26 }
  0x82   : > { %6787 = vmatpush3.bf16.msra.mxu1 %v8142_v3  ;;  %v622_v3 = vld [vmem:[#allocation2 + $0x100] sm:$0xff] }
  0x83   : > { %6527 = vmatmul.mubr.msk.bf16.gmra.mrb[4].mxu0 %vm746_vm2, %v8214_v32  ;;  %6782 = vmatprep.subr.bf16.mxu1 %v8152_v5  ;;  %v8305_v9 = vpack.c.bf16 %v623_v4, %v622_v3 }
  0x84   : > { %6451 = vmatmul.mubr.msk.bf16.gmra.mrb[4].mxu1 %vm746_vm2, %v8197_v25  ;;  %6530 = vmatprep.mubr.msk.bf16.mxu0 %vm746_vm2, %v8217_v33 }
  0x85   : > { %6454 = vmatprep.mubr.msk.bf16.mxu1 %vm746_vm2, %v8214_v32  ;;  %6591 = vmatpush3.bf16.msra.mxu0 %v7077_v31  ;;  %v642_v31 = vld [vmem:[#allocation2 + $0x1a0] sm:$0xff] }
  0x86   : > { %6592 = vmatprep.subr.bf16.mxu0 %v7078_v34  ;;  %6788 = vmatpush3.bf16.msra.mxu1 %v8152_v5  ;;  %v628_v5 = vld [vmem:[#allocation2 + $0x130] sm:$0xff] }
  0x87   : > { %6783 = vmatprep.subr.bf16.mxu1 %v8162_v7  ;;  %v681_v10 = vpack.c.bf16 %v629_v6, %v628_v5 }
  0x89   : > { %6593 = vmatpush3.bf16.msra.mxu0 %v7078_v34  ;;  %v643_v34 = vld [vmem:[#allocation2 + $0x1a8] sm:$0xff] }
  0x8a   : > { %6594 = vmatprep.subr.bf16.mxu0 %v7079_v39  ;;  %6789 = vmatpush3.bf16.msra.mxu1 %v8162_v7  ;;  %v626_v7 = vld [vmem:[#allocation2 + $0x120] sm:$0xff]  ;;  %v8348_v36 = vpack.c.bf16 %v643_v34, %v642_v31 }
  0x8b   : > { %6531 = vmatmul.mubr.msk.bf16.gmra.mrb[8].mxu0 %vm746_vm2, %v8236_v40  ;;  %6784 = vmatprep.subr.bf16.mxu1 %v8172_v11 }
  0x8c   : > { %6455 = vmatmul.mubr.msk.bf16.gmra.mrb[8].mxu1 %vm746_vm2, %v8217_v33  ;;  %6534 = vmatprep.mubr.msk.bf16.mxu0 %vm746_vm2, %v8239_v41 }
  0x8d   : > { %6458 = vmatprep.mubr.msk.bf16.mxu1 %vm746_vm2, %v8236_v40  ;;  %6595 = vmatpush3.bf16.msra.mxu0 %v7079_v39  ;;  %v647_v39 = vld [vmem:[#allocation2 + $0x1c8] sm:$0xff] }
  0x8e   : > { %6596 = vmatprep.subr.bf16.mxu0 %v7080_v42  ;;  %6790 = vmatpush3.bf16.msra.mxu1 %v8172_v11  ;;  %v680_v11 = vpack.c.bf16 %v627_v8, %v626_v7  ;;  %v690_v43 = vpack.c.bf16 %v647_v39, %v646_v38  ;;  %v2086_v38 = vld [vmem:[%s12716_s2] sm:$0xff]  ;;  %v2087_v39 = vld [vmem:[%s12716_s2 + $0x8] sm:$0xff] }
  0x8f   : > { %6785 = vmatprep.subr.bf16.mxu1 %v8183_v17 }
  0x91   : > { %6597 = vmatpush3.bf16.msra.mxu0 %v7080_v42 }
  0x92   : > { %6791 = vmatpush3.bf16.msra.mxu1 %v8183_v17  ;;  %v8315_v17 = vpack.c.bf16 %v633_v15, %v632_v14 }
  0x93   : > { %6535 = vmatmul.mubr.msk.bf16.gmra.mrb[12].mxu0 %vm746_vm2, %v8255_v47 }
  0x94   : > { %6459 = vmatmul.mubr.msk.bf16.gmra.mrb[12].mxu1 %vm746_vm2, %v8239_v41  ;;  %6538 = vmatprep.mubr.msk.bf16.mxu0 %vm746_vm2, %v8258_v48 }
  0x95   : > { %6462 = vmatprep.mubr.msk.bf16.mxu1 %vm746_vm2, %v8255_v47 }
  0x9b   : > { %6539 = vmatmul.mubr.msk.bf16.gmra.mrb[16].mxu0 %vm746_vm2, %v8269_v53 }
  0x9c   : > { %6463 = vmatmul.mubr.msk.bf16.gmra.mrb[16].mxu1 %vm746_vm2, %v8258_v48  ;;  %6542 = vmatprep.mubr.msk.bf16.mxu0 %vm746_vm2, %v8271_v54 }
  0x9d   : > { %6466 = vmatprep.mubr.msk.bf16.mxu1 %vm746_vm2, %v8269_v53 }
  0xa3   : > { %6543 = vmatmul.mubr.msk.bf16.gmra.mrb[20].mxu0 %vm746_vm2, %v8281_v59 }
  0xa4   : > { %6467 = vmatmul.mubr.msk.bf16.gmra.mrb[20].mxu1 %vm746_vm2, %v8271_v54  ;;  %6546 = vmatprep.mubr.msk.bf16.mxu0 %vm746_vm2, %v8283_v60 }
  0xa5   : > { %6470 = vmatprep.mubr.msk.bf16.mxu1 %vm746_vm2, %v8281_v59 }
  0xab   : > { %6547 = vmatmul.mubr.msk.bf16.gmra.mrb[24].mxu0 %vm746_vm2, %v8293_v1 }
  0xac   : > { %6471 = vmatmul.mubr.msk.bf16.gmra.mrb[24].mxu1 %vm746_vm2, %v8283_v60  ;;  %6550 = vmatprep.mubr.msk.bf16.mxu0 %vm746_vm2, %v8295_v2 }
  0xad   : > { %6474 = vmatprep.mubr.msk.bf16.mxu1 %vm746_vm2, %v8293_v1 }
  0xb3   : > { %6551 = vmatmul.mubr.msk.bf16.gmra.mrb[28].mxu0 %vm746_vm2, %v8305_v9 }
  0xb4   : > { %6475 = vmatmul.mubr.msk.bf16.gmra.mrb[28].mxu1 %vm746_vm2, %v8295_v2  ;;  %6554 = vmatprep.mubr.msk.bf16.mxu0 %vm746_vm2, %v681_v10 }
  0xb5   : > { %6478 = vmatprep.mubr.msk.bf16.mxu1 %vm746_vm2, %v680_v11 }
  0xbb   : > { %6555 = vmatmul.mubr.msk.bf16.gmra.mrb[32].mxu0 %vm746_vm2, %v8313_v16 }
  0xbc   : > { %6479 = vmatmul.mubr.msk.bf16.gmra.mrb[32].mxu1 %vm746_vm2, %v681_v10  ;;  %6558 = vmatprep.mubr.msk.bf16.mxu0 %vm746_vm2, %v8315_v17 }
  0xbd   : > { %6482 = vmatprep.mubr.msk.bf16.mxu1 %vm746_vm2, %v8313_v16 }
  0xc3   : > { %6559 = vmatmul.mubr.msk.bf16.gmra.mrb[36].mxu0 %vm746_vm2, %v8324_v22 }
  0xc4   : > { %6483 = vmatmul.mubr.msk.bf16.gmra.mrb[36].mxu1 %vm746_vm2, %v8315_v17  ;;  %6562 = vmatprep.mubr.msk.bf16.mxu0 %vm746_vm2, %v8326_v23 }
  0xc5   : > { %6486 = vmatprep.mubr.msk.bf16.mxu1 %vm746_vm2, %v8324_v22 }
  0xcb   : > { %6563 = vmatmul.mubr.msk.bf16.gmra.mrb[40].mxu0 %vm746_vm2, %v8336_v28 }
  0xcc   : > { %6487 = vmatmul.mubr.msk.bf16.gmra.mrb[40].mxu1 %vm746_vm2, %v8326_v23  ;;  %6598 = vmatprep.mubr.msk.bf16.mxu0 %vm746_vm2, %v8194_v24  ;;  %v644_v24 = vld [vmem:[#allocation2 + $0x1b0] sm:$0xff] }
  0xcd   : > { %6490 = vmatprep.mubr.msk.bf16.mxu1 %vm746_vm2, %v8336_v28  ;;  %v689_v42 = vpack.c.bf16 %v645_v37, %v644_v24 }
  0xd3   : > { %6599 = vmatmul.mubr.msk.bf16.vlgmr.msra.gmra.mrb[0].mxu0 %vm746_vm2, %v8197_v25  ;;  %v648_v25 = vld [vmem:[#allocation2 + $0x1d0] sm:$0xff] }
  0xd4   : > { %6491 = vmatmul.mubr.msk.bf16.gmra.mrb[44].mxu1 %vm746_vm2, %v8346_v35  ;;  %6602 = vmatprep.mubr.msk.bf16.mxu0 %vm746_vm2, %v8214_v32  ;;  %v649_v32 = vld [vmem:[#allocation2 + $0x1d8] sm:$0xff] }
  0xd5   : > { %6494 = vmatprep.mubr.msk.bf16.mxu1 %vm746_vm2, %v8348_v36  ;;  %v691_v46 = vpack.c.bf16 %v649_v32, %v648_v25  ;;  %v2088_v25 = vld [vmem:[%s12716_s2 + $0x10] sm:$0xff]  ;;  %v2089_v32 = vld [vmem:[%s12716_s2 + $0x18] sm:$0xff] }
  0xd6   : > { %v8516_v45 = vpack.c.bf16 %v2089_v32, %v2088_v25  ;;  %v6257_v32 = vld [vmem:[%s7853_s22 + $0x18] sm:$0xff]  }
  0xdb   : > { %6603 = vmatmul.mubr.msk.bf16.gmra.mrb[4].mxu0 %vm746_vm2, %v8217_v33  ;;  %v652_v33 = vld [vmem:[#allocation2 + $0x1f0] sm:$0xff] }
  0xdc   : > { %6495 = vmatmul.mubr.msk.bf16.gmra.mrb[48].mxu1 %vm746_vm2, %v689_v42  ;;  %6606 = vmatprep.mubr.msk.bf16.mxu0 %vm746_vm2, %v8236_v40  ;;  %v653_v40 = vld [vmem:[#allocation2 + $0x1f8] sm:$0xff] }
  0xdd   : > { %6498 = vmatprep.mubr.msk.bf16.mxu1 %vm746_vm2, %v690_v43  ;;  %v693_v52 = vpack.c.bf16 %v653_v40, %v652_v33  ;;  %v2090_v40 = vld [vmem:[%s12716_s2 + $0x20] sm:$0xff] }
  0xe3   : > { %6607 = vmatmul.mubr.msk.bf16.gmra.mrb[8].mxu0 %vm746_vm2, %v8239_v41  ;;  %v656_v41 = vld [vmem:[#allocation2 + $0x210] sm:$0xff] }
  0xe4   : > { %6499 = vmatmul.mubr.msk.bf16.gmra.mrb[52].mxu1 %vm746_vm2, %v691_v46  ;;  %6610 = vmatprep.mubr.msk.bf16.mxu0 %vm746_vm2, %v8255_v47  ;;  %v657_v47 = vld [vmem:[#allocation2 + $0x218] sm:$0xff] }
  0xe5   : > { %6502 = vmatprep.mubr.msk.bf16.mxu1 %vm746_vm2, %v692_v49  ;;  %v695_v56 = vpack.c.bf16 %v657_v47, %v656_v41 }
  0xeb   : > { %6611 = vmatmul.mubr.msk.bf16.gmra.mrb[12].mxu0 %vm746_vm2, %v8258_v48  ;;  %v624_v48 = vld [vmem:[#allocation2 + $0x110] sm:$0xff] }
  0xec   : > { %6503 = vmatmul.mubr.msk.bf16.gmra.mrb[56].mxu1 %vm746_vm2, %v693_v52  ;;  %6614 = vmatprep.mubr.msk.bf16.mxu0 %vm746_vm2, %v8269_v53  ;;  %v625_v53 = vld [vmem:[#allocation2 + $0x118] sm:$0xff] }
  0xed   : > { %6506 = vmatprep.mubr.msk.bf16.mxu1 %vm746_vm2, %v694_v55 }
  0xf3   : > { %6615 = vmatmul.mubr.msk.bf16.gmra.mrb[16].mxu0 %vm746_vm2, %v8271_v54  ;;  %v679_v54 = vpack.c.bf16 %v625_v53, %v624_v48  ;;  %v2092_v53 = vld [vmem:[%s12716_s2 + $0x30] sm:$0xff] }
  0xf4   : > { %6507 = vmatmul.mubr.msk.bf16.gmra.mrb[60].mxu1 %vm746_vm2, %v695_v56  ;;  %6618 = vmatprep.mubr.msk.bf16.mxu0 %vm746_vm2, %v8281_v59  ;;  %v696_v59 = vpack.c.bf16 %v659_v58, %v658_v57 }
  0xf5   : > { %6566 = vmatprep.mubr.msk.bf16.mxu1 %vm746_vm2, %v8346_v35 }
  0xfb   : > { %6619 = vmatmul.mubr.msk.bf16.gmra.mrb[20].mxu0 %vm746_vm2, %v8283_v60  ;;  %v660_v60 = vld [vmem:[#allocation2 + $0x230] sm:$0xff] }
  0xfc   : > { %6567 = vmatmul.mubr.msk.bf16.vlgmr.msra.gmra.mrb[44].mxu1 %vm746_vm2, %v8348_v36  ;;  %6622 = vmatprep.mubr.msk.bf16.mxu0 %vm746_vm2, %v8293_v1  ;;  %v697_v62 = vpack.c.bf16 %v661_v61, %v660_v60  ;;  %v6134_v60 = vunpack.c.h.bf16 %v6255_v51 }
  0xfd   : > { %6570 = vmatprep.mubr.msk.bf16.mxu1 %vm746_vm2, %v689_v42 }
 0x103   : > { %6623 = vmatmul.mubr.msk.bf16.gmra.mrb[24].mxu0 %vm746_vm2, %v8295_v2 }
 0x104   : > { %6571 = vmatmul.mubr.msk.bf16.gmra.mrb[48].mxu1 %vm746_vm2, %v690_v43  ;;  %6626 = vmatprep.mubr.msk.bf16.mxu0 %vm746_vm2, %v8305_v9 }
 0x105   : > { %6574 = vmatprep.mubr.msk.bf16.mxu1 %vm746_vm2, %v691_v46 }
 0x10b   : > { %6627 = vmatmul.mubr.msk.bf16.gmra.mrb[28].mxu0 %vm746_vm2, %v679_v54  ;;  %v2093_v54 = vld [vmem:[%s12716_s2 + $0x38] sm:$0xff] }
 0x10c   : > { %6575 = vmatmul.mubr.msk.bf16.gmra.mrb[52].mxu1 %vm746_vm2, %v692_v49  ;;  %6630 = vmatprep.mubr.msk.bf16.mxu0 %vm746_vm2, %v8313_v16 }
 0x10d   : > { %6578 = vmatprep.mubr.msk.bf16.mxu1 %vm746_vm2, %v693_v52 }
 0x113   : > { %6631 = vmatmul.mubr.msk.bf16.gmra.mrb[32].mxu0 %vm746_vm2, %v8315_v17 }
 0x114   : > { %6579 = vmatmul.mubr.msk.bf16.gmra.mrb[56].mxu1 %vm746_vm2, %v694_v55  ;;  %6634 = vmatprep.mubr.msk.bf16.mxu0 %vm746_vm2, %v8324_v22 }
 0x115   : > { %6582 = vmatprep.mubr.msk.bf16.mxu1 %vm746_vm2, %v695_v56 }
 0x11b   : > { %6635 = vmatmul.mubr.msk.bf16.gmra.mrb[36].mxu0 %vm746_vm2, %v8326_v23 }
 0x11c   : > { %6583 = vmatmul.mubr.msk.bf16.gmra.mrb[60].mxu1 %vm746_vm2, %v696_v59  ;;  %6638 = vmatprep.mubr.msk.bf16.mxu0 %vm746_vm2, %v8336_v28 }
 0x123   : > { %6639 = vmatmul.mubr.msk.bf16.gmra.mrb[40].mxu0 %vm746_vm2, %v8346_v35 }
 0x124   : > { %6642 = vmatprep.mubr.msk.bf16.mxu0 %vm746_vm2, %v8348_v36 }
 0x12b   : > { %6643 = vmatmul.mubr.msk.bf16.gmra.mrb[44].mxu0 %vm746_vm2, %v689_v42  ;;  %v12722_v42 = vmov 0.0|0.0  }
 0x12c   : > { %6646 = vmatprep.mubr.msk.bf16.mxu0 %vm746_vm2, %v690_v43  ;;  %6732 = vmatprep.subr.bf16.mxu1 %v12722_v42  ;;  %v8504_v43 = vpack.c.bf16 %v2087_v39, %v2086_v38  ;;  %v2094_v38 = vld [vmem:[%s12716_s2 + $0x40] sm:$0xff]  ;;  %v2095_v39 = vld [vmem:[%s12716_s2 + $0x48] sm:$0xff] }
 0x12e   : > { %6734 = vmatpush3.bf16.msra.mxu1 %v8504_v43 }
 0x12f   : > { %6735 = vmatprep.subr.bf16.mxu1 %v12722_v42 }
 0x132   : > { %6737 = vmatpush3.bf16.msra.mxu1 %v8516_v45 }
 0x133   : > { %6647 = vmatmul.mubr.msk.bf16.gmra.mrb[48].mxu0 %vm746_vm2, %v691_v46  ;;  %6738 = vmatprep.subr.bf16.mxu1 %v12722_v42 }
 0x134   : > { %6650 = vmatprep.mubr.msk.bf16.mxu0 %vm746_vm2, %v692_v49 }
 0x13b   : > { %6651 = vmatmul.mubr.msk.bf16.gmra.mrb[52].mxu0 %vm746_vm2, %v693_v52  ;;  %v8533_v52 = vpack.c.bf16 %v2091_v50, %v2090_v40  ;;  %v8565_v50 = vpack.c.bf16 %v2095_v39, %v2094_v38 }
 0x13c   : > { %6654 = vmatprep.mubr.msk.bf16.mxu0 %vm746_vm2, %v694_v55  ;;  %v6128_v55 = vld [vmem:[%s7853_s22] sm:$0xff]  }
 0x13d   : > { %12999 = vst [vmem:[#allocation11_spill] sm:$0xff] %v8533_v52  ;;  %6740 = vmatpush3.bf16.msra.mxu1 %v8533_v52  ;;  %v6129_v57 = vunpack.c.l.bf16 %v6128_v55  ;;  %v6130_v61 = vunpack.c.h.bf16 %v6128_v55  ;;  %13001 = vst [vmem:[#allocation13_spill] sm:$0xff] %v8565_v50  ;;  %v6256_v55 = vld [vmem:[%s7853_s22 + $0x10] sm:$0xff]  }
 0x13e   : > { %6741 = vmatprep.subr.bf16.mxu1 %v12722_v42  ;;  %v6138_v38 = vunpack.c.h.bf16 %v6256_v55 }
 0x143   : > { %6655 = vmatmul.mubr.msk.bf16.gmra.mrb[56].mxu0 %vm746_vm2, %v695_v56  ;;  %v6133_v56 = vunpack.c.l.bf16 %v6255_v51 }
 0x144   : > { %6658 = vmatprep.mubr.msk.bf16.mxu0 %vm746_vm2, %v696_v59  ;;  %v8552_v59 = vpack.c.bf16 %v2093_v54, %v2092_v53 }
 0x146   : > { %13000 = vst [vmem:[#allocation12_spill] sm:$0xff] %v8552_v59  ;;  %6743 = vmatpush3.bf16.msra.mxu1 %v8552_v59  ;;  %v6141_v59 = vunpack.c.l.bf16 %v6257_v32 }
 0x147   : > { %6744 = vmatprep.subr.bf16.mxu1 %v12722_v42 }
 0x14a   : > { %6746 = vmatpush3.bf16.msra.mxu1 %v8565_v50 }
 0x14b   : > { %6659 = vmatmul.mubr.msk.bf16.gmra.mrb[60].mxu0 %vm746_vm2, %v697_v62 }
 0x14e   : > { %v8425_v63 = vpop.f32.mrb[0].mxu1 }
 0x14f   : > { %v8427_v0 = vpop.f32.mrb[1].mxu1  ;;  %v1134_v62 = vadd.f32 %v8425_v63, %v6133_v56 }
 0x150   : > { %v8429_v1 = vpop.f32.mrb[2].mxu1  ;;  %v1132_v25 = vadd.f32 %v6129_v57, %v8427_v0  ;;  %v13005_v57 = vmov 0.0|0.0  }
 0x151   : > { %v8431_v2 = vpop.f32.mrb[3].mxu1  ;;  %v1135_v51 = vadd.f32 %v8429_v1, %v6134_v60  ;;  %6747 = vmatprep.subr.bf16.mxu1 %v13005_v57  ;;  %v2096_v1 = vld [vmem:[%s12716_s2 + $0x50] sm:$0xff]  ;;  %v6137_v60 = vunpack.c.l.bf16 %v6256_v55  ;;  %v6259_v55 = vld [vmem:[%s7853_s22 + $0x28] sm:$0xff]  }
 0x152   : > { %v1133_v53 = vadd.f32 %v6130_v61, %v8431_v2  ;;  %v2097_v2 = vld [vmem:[%s12716_s2 + $0x58] sm:$0xff] }
 0x157   : > { %v8433_v3 = vpop.f32.mrb[4].mxu1 }
 0x158   : > { %v8435_v4 = vpop.f32.mrb[5].mxu1 }
 0x159   : > { %v8437_v5 = vpop.f32.mrb[6].mxu1 }
 0x15a   : > { %v8439_v6 = vpop.f32.mrb[7].mxu1 }
 0x15f   : > { %v8441_v7 = vpop.f32.mrb[8].mxu1 }
 0x160   : > { %v8443_v8 = vpop.f32.mrb[9].mxu1 }
 0x161   : > { %v8445_v9 = vpop.f32.mrb[10].mxu1 }
 0x162   : > { %v8447_v10 = vpop.f32.mrb[11].mxu1 }
 0x167   : > { %v8449_v11 = vpop.f32.mrb[12].mxu1 }
 0x168   : > { %v8451_v12 = vpop.f32.mrb[13].mxu1 }
 0x169   : > { %v8453_v13 = vpop.f32.mrb[14].mxu1 }
 0x16a   : > { %v8455_v14 = vpop.f32.mrb[15].mxu1 }
 0x16f   : > { %v8457_v15 = vpop.f32.mrb[16].mxu1 }
 0x170   : > { %v8459_v16 = vpop.f32.mrb[17].mxu1 }
 0x171   : > { %v8461_v17 = vpop.f32.mrb[18].mxu1 }
 0x172   : > { %v8463_v18 = vpop.f32.mrb[19].mxu1 }
 0x177   : > { %v8465_v19 = vpop.f32.mrb[20].mxu1 }
 0x178   : > { %v8467_v20 = vpop.f32.mrb[21].mxu1 }
 0x179   : > { %v8469_v21 = vpop.f32.mrb[22].mxu1 }
 0x17a   : > { %v8471_v22 = vpop.f32.mrb[23].mxu1 }
 0x17f   : > { %v8473_v23 = vpop.f32.mrb[24].mxu1 }
 0x180   : > { %v8475_v26 = vpop.f32.mrb[25].mxu1 }
 0x181   : > { %v8477_v27 = vpop.f32.mrb[26].mxu1 }
 0x182   : > { %v8479_v28 = vpop.f32.mrb[27].mxu1 }
 0x187   : > { %v8481_v29 = vpop.f32.mrb[28].mxu1 }
 0x188   : > { %v8483_v30 = vpop.f32.mrb[29].mxu1 }
 0x189   : > { %v8485_v31 = vpop.f32.mrb[30].mxu1 }
 0x18a   : > { %v8487_v34 = vpop.f32.mrb[31].mxu1 }
 0x18f   : > { %v8489_v35 = vpop.f32.mrb[32].mxu1 }
 0x190   : > { %v8491_v36 = vpop.f32.mrb[33].mxu1 }
 0x191   : > { %v8493_v24 = vpop.f32.mrb[34].mxu1 }
 0x192   : > { %v8495_v37 = vpop.f32.mrb[35].mxu1 }
 0x197   : > { %v8514_v44 = vpop.f32.mrb[36].mxu1 }
 0x198   : > { %v8518_v46 = vpop.f32.mrb[37].mxu1 }
 0x199   : > { %v8520_v49 = vpop.f32.mrb[38].mxu1 }
 0x19a   : > { %v8523_v33 = vpop.f32.mrb[39].mxu1 }
 0x19f   : > { %v8536_v41 = vpop.f32.mrb[40].mxu1 }
 0x1a0   : > { %v8538_v47 = vpop.f32.mrb[41].mxu1 }
 0x1a1   : > { %v8541_v48 = vpop.f32.mrb[42].mxu1 }
 0x1a2   : > { %v8550_v58 = vpop.f32.mrb[43].mxu1 }
 0x1a6   : > { %v6600_v40 = vpop.f32.mrb[0].mxu0 }
 0x1a7   : > { %v8569_v63 = vadd.f32 %v6600_v40, %v1134_v62  ;;  %v1693_v56 = vpop.f32.mrb[1].mxu0  ;;  %v8586_v62 = vpack.c.bf16 %v2097_v2, %v2096_v1  ;;  %v2098_v40 = vld [vmem:[%s12716_s2 + $0x60] sm:$0xff] }
 0x1a8   : > { %v8572_v54 = vadd.f32 %v1693_v56, %v1132_v25  ;;  %v6601_v42 = vpop.f32.mrb[2].mxu0  ;;  %v1138_v25 = vadd.f32 %v8433_v3, %v6141_v59  ;;  %v1137_v59 = vadd.f32 %v6138_v38, %v8439_v6  ;;  %v6258_v1 = vld [vmem:[%s7853_s22 + $0x20] sm:$0xff]   ;;  %v6149_v6 = vunpack.c.l.bf16 %v6259_v55 }
 0x1a9   : > { %13002 = vst [vmem:[#allocation14_spill] sm:$0xff] %v8569_v63  ;;  %v8575_v52 = vadd.f32 %v6601_v42, %v1135_v51  ;;  %v1696_v0 = vpop.f32.mrb[3].mxu0  ;;  %13007 = vst [vmem:[#allocation18_spill] sm:$0xff] %v8586_v62  ;;  %v6142_v42 = vunpack.c.h.bf16 %v6257_v32  ;;  %6749 = vmatpush3.bf16.msra.mxu1 %v8586_v62  ;;  %v2099_v51 = vld [vmem:[%s12716_s2 + $0x68] sm:$0xff]  ;;  %v1136_v32 = vadd.f32 %v6137_v60, %v8435_v4  ;;  %v2100_v4 = vld [vmem:[%s12716_s2 + $0x70] sm:$0xff]  ;;  %v12730_v38 = vmov 0.0  }
 0x1aa   : > { %13003 = vst [vmem:[#allocation15_spill] sm:$0xff] %v8572_v54  ;;  %v8584_v61 = vadd.f32 %v1696_v0, %v1133_v53  ;;  %6750 = vmatprep.subr.bf16.mxu1 %v13005_v57  ;;  %v8602_v0 = vpack.c.bf16 %v2099_v51, %v2098_v40  ;;  %6694 = vmatprep.mubr.msk.f32.mxu1 %vm7733_vm3, %v12730_v38  ;;  %v6150_v51 = vunpack.c.h.bf16 %v6259_v55  ;;  %v6260_v38 = vld [vmem:[%s7853_s22 + $0x30] sm:$0xff]  }
 0x1ab   : > { %13004 = vst [vmem:[#allocation16_spill] sm:$0xff] %v8575_v52  ;;  %v1139_v3 = vadd.f32 %v8437_v5, %v6142_v42  ;;  %v2101_v5 = vld [vmem:[%s12716_s2 + $0x78] sm:$0xff] }
 0x1ac   : > { %13006 = vst [vmem:[#allocation17_spill] sm:$0xff] %v8584_v61  ;;  %v2012_v39 = vadd.f32 %v8584_v61, %v8572_v54 }
 0x1ad   : > { %6752 = vmatpush3.bf16.msra.mxu1 %v8602_v0 }
 0x1ae   : > { %v2013_v56 = vadd.f32 %v8569_v63, %v2012_v39  ;;  %v6604_v53 = vpop.f32.mrb[4].mxu0  ;;  %6753 = vmatprep.subr.bf16.mxu1 %v13005_v57  ;;  %v6145_v39 = vunpack.c.l.bf16 %v6258_v1 }
 0x1af   : > { %v8607_v2 = vadd.f32 %v6604_v53, %v1138_v25  ;;  %v1709_v61 = vpop.f32.mrb[5].mxu0 }
 0x1b0   : > { %v8609_v54 = vadd.f32 %v1709_v61, %v1136_v32  ;;  %v2014_v62 = vadd.f32 %v8575_v52, %v2013_v56  ;;  %v6605_v50 = vpop.f32.mrb[6].mxu0  ;;  %v8622_v61 = vpack.c.bf16 %v2101_v5, %v2100_v4  ;;  %v1142_v56 = vadd.f32 %v8441_v7, %v6149_v6 }
 0x1b1   : > { %13008 = vst [vmem:[#allocation19_spill] sm:$0xff] %v8607_v2  ;;  %v8619_v60 = vadd.f32 %v6605_v50, %v1139_v3  ;;  %v1712_v42 = vpop.f32.mrb[7].mxu0  ;;  %v6146_v50 = vunpack.c.h.bf16 %v6258_v1  ;;  %v1140_v53 = vadd.f32 %v6145_v39, %v8443_v8  ;;  %v6261_v3 = vld [vmem:[%s7853_s22 + $0x38] sm:$0xff]   ;;  %v1143_v5 = vadd.f32 %v8445_v9, %v6150_v51 }
 0x1b2   : > { %13009 = vst [vmem:[#allocation20_spill] sm:$0xff] %v8609_v54  ;;  %v2015_v25 = vadd.f32 %v8609_v54, %v2014_v62  ;;  %v8627_v40 = vadd.f32 %v1712_v42, %v1137_v59  ;;  %6755 = vmatpush3.bf16.msra.mxu1 %v8622_v61  ;;  %v6157_v6 = vunpack.c.l.bf16 %v6261_v3  ;;  %v6153_v39 = vunpack.c.l.bf16 %v6260_v38 }
 0x1b3   : > { %13010 = vst [vmem:[#allocation21_spill] sm:$0xff] %v8619_v60  ;;  %6756 = vmatprep.subr.bf16.mxu1 %v13005_v57  ;;  %v1141_v59 = vadd.f32 %v6146_v50, %v8447_v10  ;;  %v6158_v9 = vunpack.c.h.bf16 %v6261_v3  ;;  %v6154_v51 = vunpack.c.h.bf16 %v6260_v38  ;;  %v6263_v50 = vld [vmem:[%s7853_s22 + $0x48] sm:$0xff]  }
 0x1b4   : > { %13011 = vst [vmem:[#allocation22_spill] sm:$0xff] %v8627_v40  ;;  %v2016_v32 = vadd.f32 %v8627_v40, %v2015_v25  ;;  %v1144_v10 = vadd.f32 %v6153_v39, %v8451_v12 }
 0x1b6   : > { %v6608_v4 = vpop.f32.mrb[8].mxu0  ;;  %v2017_v1 = vadd.f32 %v8607_v2, %v2016_v32 }
 0x1b7   : > { %v8637_v62 = vadd.f32 %v6608_v4, %v1142_v56  ;;  %v1725_v55 = vpop.f32.mrb[9].mxu0  ;;  %v1146_v4 = vadd.f32 %v8449_v11, %v6157_v6  ;;  %v6165_v11 = vunpack.c.l.bf16 %v6263_v50 }
 0x1b8   : > { %v8641_v42 = vadd.f32 %v1725_v55, %v1140_v53  ;;  %v6609_v7 = vpop.f32.mrb[10].mxu0  ;;  %v2018_v56 = vadd.f32 %v8619_v60, %v2017_v1  ;;  %v1147_v53 = vadd.f32 %v8453_v13, %v6158_v9  ;;  %v6262_v55 = vld [vmem:[%s7853_s22 + $0x40] sm:$0xff]   ;;  %v6166_v13 = vunpack.c.h.bf16 %v6263_v50 }
 0x1b9   : > { %13012 = vst [vmem:[#allocation23_spill] sm:$0xff] %v8637_v62  ;;  %v8643_v25 = vadd.f32 %v6609_v7, %v1143_v5  ;;  %v1728_v8 = vpop.f32.mrb[11].mxu0  ;;  %v6161_v6 = vunpack.c.l.bf16 %v6262_v55  ;;  %v6162_v39 = vunpack.c.h.bf16 %v6262_v55 }
 0x1ba   : > { %13013 = vst [vmem:[#allocation24_spill] sm:$0xff] %v8641_v42  ;;  %v8645_v40 = vadd.f32 %v1728_v8, %v1141_v59  ;;  %v1145_v59 = vadd.f32 %v6154_v51, %v8455_v14  ;;  %v2019_v3 = vadd.f32 %v8641_v42, %v2018_v56  ;;  %v6265_v51 = vld [vmem:[%s7853_s22 + $0x58] sm:$0xff]  }
 0x1bb   : > { %13014 = vst [vmem:[#allocation25_spill] sm:$0xff] %v8643_v25  ;;  %v1148_v14 = vadd.f32 %v6161_v6, %v8459_v16 }
 0x1bc   : > { %13015 = vst [vmem:[#allocation26_spill] sm:$0xff] %v8645_v40  ;;  %v2020_v9 = vadd.f32 %v8645_v40, %v2019_v3 }
 0x1be   : > { %v6612_v32 = vpop.f32.mrb[12].mxu0  ;;  %v2021_v50 = vadd.f32 %v8637_v62, %v2020_v9 }
 0x1bf   : > { %v8653_v2 = vadd.f32 %v6612_v32, %v1146_v4  ;;  %v1741_v5 = vpop.f32.mrb[13].mxu0  ;;  %v1150_v4 = vadd.f32 %v8457_v15, %v6165_v11  ;;  %v6264_v32 = vld [vmem:[%s7853_s22 + $0x50] sm:$0xff]   ;;  %v6173_v15 = vunpack.c.l.bf16 %v6265_v51 }
 0x1c0   : > { %v8657_v38 = vadd.f32 %v1741_v5, %v1144_v10  ;;  %v6613_v1 = vpop.f32.mrb[14].mxu0  ;;  %v1151_v10 = vadd.f32 %v8461_v17, %v6166_v13  ;;  %v6169_v11 = vunpack.c.l.bf16 %v6264_v32  ;;  %v6174_v17 = vunpack.c.h.bf16 %v6265_v51 }
 0x1c1   : > { %13016 = vst [vmem:[#allocation27_spill] sm:$0xff] %v8653_v2  ;;  %v8659_v7 = vadd.f32 %v6613_v1, %v1147_v53  ;;  %v1744_v12 = vpop.f32.mrb[15].mxu0  ;;  %v6170_v6 = vunpack.c.h.bf16 %v6264_v32  ;;  %v2022_v13 = vadd.f32 %v8643_v25, %v2021_v50 }
 0x1c2   : > { %13017 = vst [vmem:[#allocation28_spill] sm:$0xff] %v8657_v38  ;;  %v8661_v8 = vadd.f32 %v1744_v12, %v1145_v59  ;;  %v1149_v59 = vadd.f32 %v6162_v39, %v8463_v18  ;;  %v1152_v18 = vadd.f32 %v6169_v11, %v8467_v20  ;;  %v6267_v39 = vld [vmem:[%s7853_s22 + $0x68] sm:$0xff]  }
 0x1c3   : > { %13018 = vst [vmem:[#allocation29_spill] sm:$0xff] %v8659_v7  ;;  %v2023_v51 = vadd.f32 %v8657_v38, %v2022_v13  ;;  %v6181_v20 = vunpack.c.l.bf16 %v6267_v39 }
 0x1c4   : > { %13019 = vst [vmem:[#allocation30_spill] sm:$0xff] %v8661_v8 }
 0x1c5   : > { %v2024_v13 = vadd.f32 %v8661_v8, %v2023_v51 }
 0x1c6   : > { %v6616_v56 = vpop.f32.mrb[16].mxu0 }
 0x1c7   : > { %v8669_v5 = vadd.f32 %v6616_v56, %v1150_v4  ;;  %v1757_v53 = vpop.f32.mrb[17].mxu0  ;;  %v1154_v4 = vadd.f32 %v8465_v19, %v6173_v15  ;;  %v6266_v56 = vld [vmem:[%s7853_s22 + $0x60] sm:$0xff]  }
 0x1c8   : > { %v8673_v55 = vadd.f32 %v1757_v53, %v1148_v14  ;;  %v6617_v3 = vpop.f32.mrb[18].mxu0  ;;  %v1155_v14 = vadd.f32 %v8469_v21, %v6174_v17  ;;  %v6177_v11 = vunpack.c.l.bf16 %v6266_v56 }
 0x1c9   : > { %13020 = vst [vmem:[#allocation31_spill] sm:$0xff] %v8669_v5  ;;  %v8675_v1 = vadd.f32 %v6617_v3, %v1151_v10  ;;  %v1760_v16 = vpop.f32.mrb[19].mxu0 }
 0x1ca   : > { %13021 = vst [vmem:[#allocation32_spill] sm:$0xff] %v8673_v55  ;;  %v8677_v12 = vadd.f32 %v1760_v16, %v1149_v59  ;;  %v1153_v59 = vadd.f32 %v6170_v6, %v8471_v22  ;;  %v6182_v22 = vunpack.c.h.bf16 %v6267_v39  ;;  %v6178_v6 = vunpack.c.h.bf16 %v6266_v56 }
 0x1cb   : > { %13022 = vst [vmem:[#allocation33_spill] sm:$0xff] %v8675_v1  ;;  %v2025_v39 = vadd.f32 %v8653_v2, %v2024_v13  ;;  %v6271_v2 = vld [vmem:[%s7853_s22 + $0x88] sm:$0xff]  }
 0x1cc   : > { %13023 = vst [vmem:[#allocation34_spill] sm:$0xff] %v8677_v12 }
 0x1ce   : > { %v6620_v9 = vpop.f32.mrb[20].mxu0 }
 0x1cf   : > { %v8685_v53 = vadd.f32 %v6620_v9, %v1154_v4  ;;  %v1773_v10 = vpop.f32.mrb[21].mxu0  ;;  %v8687_v3 = vpop.f32.mrb[44].mxu1  ;;  %v1156_v9 = vadd.f32 %v6177_v11, %v8475_v26 }
 0x1d0   : > { %v8691_v32 = vadd.f32 %v1773_v10, %v1152_v18  ;;  %v6621_v19 = vpop.f32.mrb[22].mxu0  ;;  %v8693_v50 = vpop.f32.mrb[45].mxu1  ;;  %v1158_v18 = vadd.f32 %v8473_v23, %v6181_v20  ;;  %v6269_v10 = vld [vmem:[%s7853_s22 + $0x78] sm:$0xff]  }
 0x1d1   : > { %13024 = vst [vmem:[#allocation35_spill] sm:$0xff] %v8685_v53  ;;  %v8695_v15 = vadd.f32 %v6621_v19, %v1155_v14  ;;  %v1776_v21 = vpop.f32.mrb[23].mxu0  ;;  %v8697_v16 = vpop.f32.mrb[46].mxu1  ;;  %v1159_v14 = vadd.f32 %v8477_v27, %v6182_v22  ;;  %v6268_v19 = vld [vmem:[%s7853_s22 + $0x70] sm:$0xff]   ;;  %v6189_v26 = vunpack.c.l.bf16 %v6269_v10 }
 0x1d2   : > { %13025 = vst [vmem:[#allocation36_spill] sm:$0xff] %v8691_v32  ;;  %v8699_v17 = vadd.f32 %v1776_v21, %v1153_v59  ;;  %v8701_v4 = vpop.f32.mrb[47].mxu1  ;;  %v1157_v21 = vadd.f32 %v6178_v6, %v8479_v28  ;;  %v6185_v11 = vunpack.c.l.bf16 %v6268_v19  ;;  %v6190_v28 = vunpack.c.h.bf16 %v6269_v10 }
 0x1d3   : > { %v6186_v6 = vunpack.c.h.bf16 %v6268_v19  ;;  %v1162_v13 = vadd.f32 %v8481_v29, %v6189_v26 }
 0x1d6   : > { %v6624_v38 = vpop.f32.mrb[24].mxu0 }
 0x1d7   : > { %v8709_v25 = vadd.f32 %v6624_v38, %v1158_v18  ;;  %v1789_v62 = vpop.f32.mrb[25].mxu0  ;;  %v8711_v59 = vpop.f32.mrb[48].mxu1 }
 0x1d8   : > { %v8715_v56 = vadd.f32 %v1789_v62, %v1156_v9  ;;  %v6625_v23 = vpop.f32.mrb[26].mxu0  ;;  %v8717_v51 = vpop.f32.mrb[49].mxu1  ;;  %v2026_v62 = vadd.f32 %v8659_v7, %v2025_v39  ;;  %v1160_v9 = vadd.f32 %v6185_v11, %v8483_v30  ;;  %v6197_v30 = vunpack.c.l.bf16 %v6271_v2 }
 0x1d9   : > { %v8719_v20 = vadd.f32 %v6625_v23, %v1159_v14  ;;  %v1792_v27 = vpop.f32.mrb[27].mxu0  ;;  %v8721_v38 = vpop.f32.mrb[50].mxu1  ;;  %v1163_v14 = vadd.f32 %v8485_v31, %v6190_v28  ;;  %v6270_v23 = vld [vmem:[%s7853_s22 + $0x80] sm:$0xff]  }
 0x1da   : > { %v8723_v22 = vadd.f32 %v1792_v27, %v1157_v21  ;;  %v8725_v18 = vpop.f32.mrb[51].mxu1  ;;  %v1161_v27 = vadd.f32 %v6186_v6, %v8487_v34  ;;  %v2027_v10 = vadd.f32 %v8673_v55, %v2026_v62  ;;  %v6193_v11 = vunpack.c.l.bf16 %v6270_v23  ;;  %v6273_v55 = vld [vmem:[%s7853_s22 + $0x98] sm:$0xff]  }
 0x1db   : > { %v6198_v34 = vunpack.c.h.bf16 %v6271_v2  ;;  %v6194_v6 = vunpack.c.h.bf16 %v6270_v23  ;;  %v1166_v62 = vadd.f32 %v8489_v35, %v6197_v30 }
 0x1de   : > { %v6628_v8 = vpop.f32.mrb[28].mxu0 }
 0x1df   : > { %v8733_v40 = vadd.f32 %v6628_v8, %v1162_v13  ;;  %v1805_v42 = vpop.f32.mrb[29].mxu0  ;;  %v8735_v21 = vpop.f32.mrb[52].mxu1 }
 0x1e0   : > { %v8739_v19 = vadd.f32 %v1805_v42, %v1160_v9  ;;  %v6629_v29 = vpop.f32.mrb[30].mxu0  ;;  %v8741_v39 = vpop.f32.mrb[53].mxu1  ;;  %v2028_v42 = vadd.f32 %v8677_v12, %v2027_v10  ;;  %v1164_v9 = vadd.f32 %v6193_v11, %v8491_v36  ;;  %v6205_v36 = vunpack.c.l.bf16 %v6273_v55 }
 0x1e1   : > { %v8743_v26 = vadd.f32 %v6629_v29, %v1163_v14  ;;  %v1808_v31 = vpop.f32.mrb[31].mxu0  ;;  %v8745_v8 = vpop.f32.mrb[54].mxu1  ;;  %v1167_v14 = vadd.f32 %v8493_v24, %v6198_v34  ;;  %v6272_v29 = vld [vmem:[%s7853_s22 + $0x90] sm:$0xff]  }
 0x1e2   : > { %v8747_v28 = vadd.f32 %v1808_v31, %v1161_v27  ;;  %v8749_v13 = vpop.f32.mrb[55].mxu1  ;;  %v1165_v31 = vadd.f32 %v6194_v6, %v8495_v37  ;;  %v2029_v2 = vadd.f32 %v8669_v5, %v2028_v42  ;;  %v6201_v11 = vunpack.c.l.bf16 %v6272_v29 }
 0x1e3   : > { %v6206_v37 = vunpack.c.h.bf16 %v6273_v55  ;;  %v6202_v6 = vunpack.c.h.bf16 %v6272_v29 }
 0x1e6   : > { %v6632_v7 = vpop.f32.mrb[32].mxu0 }
 0x1e7   : > { %v8757_v60 = vadd.f32 %v6632_v7, %v1166_v62  ;;  %v1821_v54 = vpop.f32.mrb[33].mxu0  ;;  %v8759_v27 = vpop.f32.mrb[56].mxu1 }
 0x1e8   : > { %v8763_v23 = vadd.f32 %v1821_v54, %v1164_v9  ;;  %v6633_v35 = vpop.f32.mrb[34].mxu0  ;;  %v8765_v10 = vpop.f32.mrb[57].mxu1  ;;  %v2030_v54 = vadd.f32 %v8675_v1, %v2029_v2  ;;  %v1170_v9 = vadd.f32 %v8514_v44, %v6205_v36  ;;  %v1169_v2 = vadd.f32 %v6202_v6, %v8523_v33 }
 0x1e9   : > { %13026 = vst [vmem:[#allocation37_spill] sm:$0xff] %v8757_v60  ;;  %v8767_v30 = vadd.f32 %v6633_v35, %v1167_v14  ;;  %v1824_v24 = vpop.f32.mrb[35].mxu0  ;;  %v8769_v7 = vpop.f32.mrb[58].mxu1  ;;  %v1168_v14 = vadd.f32 %v6201_v11, %v8518_v46  ;;  %v6275_v35 = vld [vmem:[%s7853_s22 + $0xa8] sm:$0xff]  }
 0x1ea   : > { %v8771_v34 = vadd.f32 %v1824_v24, %v1165_v31  ;;  %v8773_v62 = vpop.f32.mrb[59].mxu1  ;;  %v1171_v31 = vadd.f32 %v8520_v49, %v6206_v37  ;;  %v6274_v24 = vld [vmem:[%s7853_s22 + $0xa0] sm:$0xff]   ;;  %v2031_v1 = vadd.f32 %v8691_v32, %v2030_v54  ;;  %v6213_v11 = vunpack.c.l.bf16 %v6275_v35  ;;  %v6277_v32 = vld [vmem:[%s7853_s22 + $0xb8] sm:$0xff]  }
 0x1eb   : > { %13027 = vst [vmem:[#allocation38_spill] sm:$0xff] %v8767_v30 }
 0x1ec   : > { %v2049_v42 = vadd.f32 %v8771_v34, %v8763_v23 }
 0x1ee   : > { %v2050_v5 = vadd.f32 %v8757_v60, %v2049_v42  ;;  %v6636_v12 = vpop.f32.mrb[36].mxu0  ;;  %v6209_v42 = vunpack.c.l.bf16 %v6274_v24 }
 0x1ef   : > { %v8784_v52 = vadd.f32 %v6636_v12, %v1170_v9  ;;  %v1837_v55 = vpop.f32.mrb[37].mxu0  ;;  %v8786_v29 = vpop.f32.mrb[60].mxu1  ;;  %v6214_v9 = vunpack.c.h.bf16 %v6275_v35 }
 0x1f0   : > { %v8790_v63 = vadd.f32 %v1837_v55, %v1168_v14  ;;  %v2051_v44 = vadd.f32 %v8767_v30, %v2050_v5  ;;  %v6637_v46 = vpop.f32.mrb[38].mxu0  ;;  %v8793_v36 = vpop.f32.mrb[61].mxu1  ;;  %v6210_v5 = vunpack.c.h.bf16 %v6274_v24  ;;  %v2032_v14 = vadd.f32 %v8699_v17, %v2031_v1 }
 0x1f1   : > { %v8795_v49 = vadd.f32 %v6637_v46, %v1171_v31  ;;  %v1840_v12 = vpop.f32.mrb[39].mxu0  ;;  %v8797_v37 = vpop.f32.mrb[62].mxu1  ;;  %v1174_v31 = vadd.f32 %v8536_v41, %v6213_v11  ;;  %v1172_v46 = vadd.f32 %v6209_v42, %v8538_v47  ;;  %v6221_v11 = vunpack.c.l.bf16 %v6277_v32 }
 0x1f2   : > { %13028 = vst [vmem:[#allocation39_spill] sm:$0xff] %v8790_v63  ;;  %v2052_v33 = vadd.f32 %v8790_v63, %v2051_v44  ;;  %v8800_v6 = vadd.f32 %v1840_v12, %v1169_v2  ;;  %v8802_v54 = vpop.f32.mrb[63].mxu1  ;;  %v1175_v44 = vadd.f32 %v8541_v48, %v6214_v9  ;;  %v6276_v2 = vld [vmem:[%s7853_s22 + $0xb0] sm:$0xff]   ;;  %v1173_v35 = vadd.f32 %v6210_v5, %v8550_v58 }
 0x1f3   : > { %v2033_v1 = vadd.f32 %v8685_v53, %v2032_v14  ;;  %v6217_v48 = vunpack.c.l.bf16 %v6276_v2  ;;  %v6218_v58 = vunpack.c.h.bf16 %v6276_v2  ;;  %v6880_v14 = vadd.f32 %v8687_v3, %v6221_v11  ;;  %v6278_v53 = vld [vmem:[%s7853_s22 + $0xc0] sm:$0xff]  }
 0x1f4   : > { %v2053_v55 = vadd.f32 %v8800_v6, %v2052_v33 }
 0x1f5   : > { %v2034_v5 = vadd.f32 %v8695_v15, %v2033_v1 }
 0x1f6   : > { %v2054_v30 = vadd.f32 %v8784_v52, %v2053_v55  ;;  %v6640_v60 = vpop.f32.mrb[40].mxu0  ;;  %v6222_v55 = vunpack.c.h.bf16 %v6277_v32  ;;  %v6886_v32 = vadd.f32 %v6218_v58, %v8701_v4  ;;  %v6226_v58 = vunpack.c.h.bf16 %v6278_v53 }
 0x1f7   : > { %v8812_v12 = vadd.f32 %v6640_v60, %v1174_v31  ;;  %v1853_v63 = vpop.f32.mrb[41].mxu0  ;;  %v6279_v31 = vld [vmem:[%s7853_s22 + $0xc8] sm:$0xff]   ;;  %v2035_v2 = vadd.f32 %v8715_v56, %v2034_v5 }
 0x1f8   : > { %v8816_v24 = vadd.f32 %v1853_v63, %v1172_v46  ;;  %v2055_v41 = vadd.f32 %v8795_v49, %v2054_v30  ;;  %v6641_v47 = vpop.f32.mrb[42].mxu0  ;;  %v6882_v30 = vadd.f32 %v6217_v48, %v8693_v50  ;;  %v6229_v11 = vunpack.c.l.bf16 %v6279_v31 }
 0x1f9   : > { %v8819_v42 = vadd.f32 %v6641_v47, %v1175_v44  ;;  %v1856_v33 = vpop.f32.mrb[43].mxu0  ;;  %v6884_v47 = vadd.f32 %v8697_v16, %v6222_v55  ;;  %v6225_v16 = vunpack.c.l.bf16 %v6278_v53  ;;  %v2036_v4 = vadd.f32 %v8723_v22, %v2035_v2 }
 0x1fa   : > { %v2056_v60 = vadd.f32 %v8816_v24, %v2055_v41  ;;  %v8822_v9 = vadd.f32 %v1856_v33, %v1173_v35  ;;  %v6894_v53 = vadd.f32 %v6226_v58, %v8725_v18 }
 0x1fc   : > { %v2057_v63 = vadd.f32 %v8822_v9, %v2056_v60 }
 0x1fe   : > { %v2058_v46 = vadd.f32 %v8812_v12, %v2057_v63  ;;  %v6644_v44 = vpop.f32.mrb[44].mxu0  ;;  %v6230_v63 = vunpack.c.h.bf16 %v6279_v31  ;;  %v2037_v31 = vadd.f32 %v8709_v25, %v2036_v4 }
 0x1ff   : > { %v8832_v41 = vadd.f32 %v6880_v14, %v6644_v44  ;;  %v1869_v35 = vpop.f32.mrb[45].mxu0  ;;  %v6888_v14 = vadd.f32 %v8711_v59, %v6229_v11 }
 0x200   : > { %v8836_v1 = vadd.f32 %v6882_v30, %v1869_v35  ;;  %v2059_v3 = vadd.f32 %v8819_v42, %v2058_v46  ;;  %v6645_v50 = vpop.f32.mrb[46].mxu0  ;;  %v6890_v30 = vadd.f32 %v6225_v16, %v8717_v51  ;;  %v6281_v46 = vld [vmem:[%s7853_s22 + $0xd8] sm:$0xff]   ;;  %v6892_v35 = vadd.f32 %v8721_v38, %v6230_v63 }
 0x201   : > { %v8839_v33 = vadd.f32 %v6884_v47, %v6645_v50  ;;  %v1872_v48 = vpop.f32.mrb[47].mxu0  ;;  %v6280_v50 = vld [vmem:[%s7853_s22 + $0xd0] sm:$0xff]   ;;  %v6237_v11 = vunpack.c.l.bf16 %v6281_v46  ;;  %v2038_v4 = vadd.f32 %v8719_v20, %v2037_v31 }
 0x202   : > { %v2060_v60 = vadd.f32 %v8836_v1, %v2059_v3  ;;  %v8842_v55 = vadd.f32 %v6886_v32, %v1872_v48  ;;  %v6233_v38 = vunpack.c.l.bf16 %v6280_v50  ;;  %v6234_v18 = vunpack.c.h.bf16 %v6280_v50 }
 0x204   : > { %v2061_v5 = vadd.f32 %v8842_v55, %v2060_v60  ;;  %v6902_v50 = vadd.f32 %v6234_v18, %v8749_v13 }
 0x206   : > { %v2062_v44 = vadd.f32 %v8832_v41, %v2061_v5  ;;  %v6648_v47 = vpop.f32.mrb[48].mxu0  ;;  %v6238_v5 = vunpack.c.h.bf16 %v6281_v46  ;;  %v2039_v46 = vadd.f32 %v8739_v19, %v2038_v4 }
 0x207   : > { %v8852_v3 = vadd.f32 %v6888_v14, %v6648_v47  ;;  %v1885_v32 = vpop.f32.mrb[49].mxu0  ;;  %v6896_v14 = vadd.f32 %v8735_v21, %v6237_v11 }
 0x208   : > { %v8856_v2 = vadd.f32 %v6890_v30, %v1885_v32  ;;  %v2063_v59 = vadd.f32 %v8839_v33, %v2062_v44  ;;  %v6649_v51 = vpop.f32.mrb[50].mxu0  ;;  %v6898_v30 = vadd.f32 %v6233_v38, %v8741_v39  ;;  %v6283_v44 = vld [vmem:[%s7853_s22 + $0xe8] sm:$0xff]   ;;  %v6900_v32 = vadd.f32 %v8745_v8, %v6238_v5 }
 0x209   : > { %v8859_v48 = vadd.f32 %v6892_v35, %v6649_v51  ;;  %v1888_v16 = vpop.f32.mrb[51].mxu0  ;;  %v6282_v51 = vld [vmem:[%s7853_s22 + $0xe0] sm:$0xff]   ;;  %v6245_v11 = vunpack.c.l.bf16 %v6283_v44  ;;  %v2040_v4 = vadd.f32 %v8747_v28, %v2039_v46 }
 0x20a   : > { %v2064_v60 = vadd.f32 %v8856_v2, %v2063_v59  ;;  %v8862_v63 = vadd.f32 %v6894_v53, %v1888_v16  ;;  %v6241_v8 = vunpack.c.l.bf16 %v6282_v51  ;;  %v6242_v13 = vunpack.c.h.bf16 %v6282_v51 }
 0x20c   : > { %v2065_v58 = vadd.f32 %v8862_v63, %v2064_v60  ;;  %v6910_v51 = vadd.f32 %v6242_v13, %v8773_v62 }
 0x20e   : > { %v2066_v47 = vadd.f32 %v8852_v3, %v2065_v58  ;;  %v6652_v35 = vpop.f32.mrb[52].mxu0  ;;  %v6246_v58 = vunpack.c.h.bf16 %v6283_v44  ;;  %v2041_v44 = vadd.f32 %v8733_v40, %v2040_v4 }
 0x20f   : > { %v8872_v59 = vadd.f32 %v6896_v14, %v6652_v35  ;;  %v1901_v53 = vpop.f32.mrb[53].mxu0  ;;  %v6904_v14 = vadd.f32 %v8759_v27, %v6245_v11 }
 0x210   : > { %v8876_v31 = vadd.f32 %v6898_v30, %v1901_v53  ;;  %v2067_v21 = vadd.f32 %v8859_v48, %v2066_v47  ;;  %v6653_v39 = vpop.f32.mrb[54].mxu0  ;;  %v6906_v30 = vadd.f32 %v6241_v8, %v8765_v10  ;;  %v6285_v47 = vld [vmem:[%s7853_s22 + $0xf8] sm:$0xff]   ;;  %v6908_v53 = vadd.f32 %v8769_v7, %v6246_v58 }
 0x211   : > { %v8879_v16 = vadd.f32 %v6900_v32, %v6653_v39  ;;  %v1904_v38 = vpop.f32.mrb[55].mxu0  ;;  %v6284_v39 = vld [vmem:[%s7853_s22 + $0xf0] sm:$0xff]   ;;  %v6253_v10 = vunpack.c.l.bf16 %v6285_v47  ;;  %s7735_s22 = smov 32  }
 0x212   : > { %v2068_v60 = vadd.f32 %v8876_v31, %v2067_v21  ;;  %v8882_v5 = vadd.f32 %v6902_v50, %v1904_v38  ;;  %v6250_v4 = vunpack.c.h.bf16 %v6284_v39 }
 0x213   : > { %v6912_v13 = vadd.f32 %v8786_v29, %v6253_v10 }
 0x214   : > { %v2069_v18 = vadd.f32 %v8882_v5, %v2068_v60  ;;  %v6249_v60 = vunpack.c.l.bf16 %v6284_v39 }
 0x216   : > { %v2070_v35 = vadd.f32 %v8872_v59, %v2069_v18  ;;  %v6656_v32 = vpop.f32.mrb[56].mxu0  ;;  %v6254_v18 = vunpack.c.h.bf16 %v6285_v47  ;;  %v6918_v47 = vadd.f32 %v6250_v4, %v8802_v54 }
 0x217   : > { %v8892_v21 = vadd.f32 %v6904_v14, %v6656_v32  ;;  %v1917_v50 = vpop.f32.mrb[57].mxu0  ;;  %v2042_v14 = vadd.f32 %v8743_v26, %v2041_v44 }
 0x218   : > { %v8896_v46 = vadd.f32 %v6906_v30, %v1917_v50  ;;  %v2071_v27 = vadd.f32 %v8879_v16, %v2070_v35  ;;  %v6657_v11 = vpop.f32.mrb[58].mxu0  ;;  %v6914_v30 = vadd.f32 %v6249_v60, %v8793_v36 }
 0x219   : > { %v8899_v38 = vadd.f32 %v6908_v53, %v6657_v11  ;;  %v1920_v8 = vpop.f32.mrb[59].mxu0  ;;  %v6916_v53 = vadd.f32 %v8797_v37, %v6254_v18 }
 0x21a   : > { %v2072_v7 = vadd.f32 %v8896_v46, %v2071_v27  ;;  %v8902_v58 = vadd.f32 %v6910_v51, %v1920_v8  ;;  %v2043_v51 = vrot.slane %v2042_v14, 4 }
 0x21c   : > { %v2073_v62 = vadd.f32 %v8902_v58, %v2072_v7  ;;  %v2044_v60 = vadd.f32 %v2043_v51, %v2042_v14  ;;  %v13029_v14 = vmov 0.0   ;;  %v13030_v51 = vld [vmem:[#allocation11_spill] sm:$0xff] }
 0x21e   : > { %v2074_v35 = vadd.f32 %v8892_v21, %v2073_v62  ;;  %v6660_v32 = vpop.f32.mrb[60].mxu0  ;;  %v2045_v18 = vrot.slane %v2044_v60, 2 }
 0x21f   : > { %v8910_v50 = vadd.f32 %v6912_v13, %v6660_v32  ;;  %v1933_v27 = vpop.f32.mrb[61].mxu0 }
 0x220   : > { %v8913_v11 = vadd.f32 %v6914_v30, %v1933_v27  ;;  %v2075_v39 = vadd.f32 %v8899_v38, %v2074_v35  ;;  %v6661_v44 = vpop.f32.mrb[62].mxu0  ;;  %v2046_v62 = vadd.f32 %v2045_v18, %v2044_v60  ;;  %v3177_v60 = vld [vmem:[#allocation3 + $0x18] sm:$0xff]  ;;  %v3178_v18 = vld [vmem:[#allocation3 + $0x20] sm:$0xff] }
 0x221   : > { %v8916_v8 = vadd.f32 %v6916_v53, %v6661_v44  ;;  %v1936_v29 = vpop.f32.mrb[63].mxu0  ;;  %v13031_v44 = vld [vmem:[#allocation12_spill] sm:$0xff] }
 0x222   : > { %v2076_v36 = vadd.f32 %v8913_v11, %v2075_v39  ;;  %v8919_v10 = vadd.f32 %v6918_v47, %v1936_v29  ;;  %v2047_v32 = vrot.slane %v2046_v62, 1  ;;  %v13032_v29 = vld [vmem:[#allocation13_spill] sm:$0xff] }
 0x224   : > { %v2077_v37 = vadd.f32 %v8919_v10, %v2076_v36  ;;  %v2048_v27 = vadd.f32 %v2047_v32, %v2046_v62  ;;  %v3174_v36 = vld [vmem:[#allocation3] sm:$0xff]  ;;  %v3185_v32 = vld [vmem:[#allocation3 + $0x58] sm:$0xff] }
 0x225   : > { %3302 = vrot.lane.b32.xlu0 %v3174_v36, %s7735_s22  ;;  %v3190_v36 = vld [vmem:[#allocation3 + $0x80] sm:$0xff] }
 0x226   : > { %v2078_v7 = vadd.f32 %v8910_v50, %v2077_v37  ;;  %v3175_v37 = vld [vmem:[#allocation3 + $0x8] sm:$0xff] }
 0x228   : > { %v2079_v54 = vadd.f32 %v8916_v8, %v2078_v7  ;;  %v3179_v7 = vld [vmem:[#allocation3 + $0x28] sm:$0xff] }
 0x229   : > { %3304 = vrot.lane.b32.xlu0 %v3175_v37, %s7735_s22  ;;  %v3193_v37 = vld [vmem:[#allocation3 + $0x98] sm:$0xff] }
 0x22a   : > { %v2080_v4 = vrot.slane %v2079_v54, 4 }
 0x22c   : > { %v2081_v13 = vadd.f32 %v2080_v4, %v2079_v54  ;;  %v3183_v54 = vld [vmem:[#allocation3 + $0x48] sm:$0xff]  ;;  %v3182_v4 = vld [vmem:[#allocation3 + $0x40] sm:$0xff] }
 0x22d   : > { %3310 = vrot.lane.b32.xlu0 %v3178_v18, %s7735_s22 }
 0x22e   : > { %v2082_v30 = vrot.slane %v2081_v13, 2 }
 0x230   : > { %v2083_v35 = vadd.f32 %v2082_v30, %v2081_v13  ;;  %v7736_v13 = vmov 1966171168  }
 0x231   : > { %v2179_v30 = vunpack.c.l.s4 %v7736_v13  ;;  %v3197_v13 = vld [vmem:[#allocation3 + $0xb8] sm:$0xff] }
 0x232   : > { %v2084_v53 = vrot.slane %v2083_v35, 1 }
 0x234   : > { %v2085_v39 = vadd.f32 %v2084_v53, %v2083_v35  ;;  %v2181_v35 = vlaneseq  ;;  %v3184_v53 = vld [vmem:[#allocation3 + $0x50] sm:$0xff] }
 0x236   : > { %v2105_v47 = vsel %vm2104_vm4, %v2085_v39, %v2048_v27  ;;  %v2180_v27 = vunpack.c.0.s8 %v2179_v30  ;;  %v2182_v39 = vshrl.u32 %v2181_v35, 7  ;;  %v3196_v30 = vld [vmem:[#allocation3 + $0xb0] sm:$0xff]  ;;  %v13034_v35 = vld [vmem:[#allocation15_spill] sm:$0xff] }
 0x237   : > { %6695 = vmatmul.mubr.f32.vlgmr.msra.gmra.mrb[64].mxu1 %v2105_v47  ;;  %v3187_v47 = vld [vmem:[#allocation3 + $0x68] sm:$0xff] }
 0x238   : > { %6758 = vmatpush3.bf16.msra.mxu1 %v8504_v43  ;;  %6729 = vmatprep.mubr.msk.f32.mxu1 %vm7733_vm3, %v13029_v14  ;;  %v13033_v43 = vld [vmem:[#allocation18_spill] sm:$0xff]  ;;  %v3186_v14 = vld [vmem:[#allocation3 + $0x60] sm:$0xff] }
 0x239   : > { %6759 = vmatprep.subr.bf16.mxu1 %v13005_v57 }
 0x23c   : > { %6761 = vmatpush3.bf16.msra.mxu1 %v8516_v45  ;;  %v3176_v45 = vld [vmem:[#allocation3 + $0x10] sm:$0xff] }
 0x23d   : > { %6762 = vmatprep.subr.bf16.mxu1 %v13005_v57  ;;  %3306 = vrot.lane.b32.xlu1 %v3176_v45, %s7735_s22  ;;  %v3191_v45 = vld [vmem:[#allocation3 + $0x88] sm:$0xff] }
 0x240   : > { %6764 = vmatpush3.bf16.msra.mxu1 %v13030_v51  ;;  %v8954_v51 = vsub.s32 %v2180_v27, %v2182_v39 }
 0x241   : > { %6765 = vmatprep.subr.bf16.mxu1 %v13005_v57  ;;  %3308 = vrot.lane.b32.xlu1 %v3177_v60, %s7735_s22 }
 0x244   : > { %6767 = vmatpush3.bf16.msra.mxu1 %v13031_v44  ;;  %v3189_v44 = vld [vmem:[#allocation3 + $0x78] sm:$0xff] }
 0x245   : > { %6768 = vmatprep.subr.bf16.mxu1 %v13005_v57  ;;  %3312 = vrot.lane.b32.xlu1 %v3179_v7, %s7735_s22  ;;  %v3192_v7 = vld [vmem:[#allocation3 + $0x90] sm:$0xff] }
 0x248   : > { %6770 = vmatpush3.bf16.msra.mxu1 %v13032_v29  ;;  %v3188_v29 = vld [vmem:[#allocation3 + $0x70] sm:$0xff] }
 0x249   : > { %6771 = vmatprep.subr.bf16.mxu1 %v13005_v57 }
 0x24c   : > { %6773 = vmatpush3.bf16.msra.mxu1 %v13033_v43 }
 0x24d   : > { %6774 = vmatprep.subr.bf16.mxu1 %v13005_v57 }
 0x250   : > { %6776 = vmatpush3.bf16.msra.mxu1 %v8602_v0  ;;  %v3180_v0 = vld [vmem:[#allocation3 + $0x30] sm:$0xff] }
 0x251   : > { %6777 = vmatprep.subr.bf16.mxu1 %v13005_v57  ;;  %v3181_v57 = vld [vmem:[#allocation3 + $0x38] sm:$0xff]  ;;  %3314 = vrot.lane.b32.xlu0 %v3180_v0, %s7735_s22  ;;  %v8965_v0 = vsub.s32 0, %v2182_v39 }
 0x252   : > { %3316 = vrot.lane.b32.xlu1 %v3181_v57, %s7735_s22 }
 0x254   : > { %6779 = vmatpush3.bf16.msra.mxu1 %v8622_v61 }
 0x255   : > { %3318 = vrot.lane.b32.xlu0 %v3182_v4, %s7735_s22 }
 0x256   : > { %3320 = vrot.lane.b32.xlu1 %v3183_v54, %s7735_s22  ;;  %v3194_v54 = vld [vmem:[#allocation3 + $0xa0] sm:$0xff] }
 0x259   : > { %3322 = vrot.lane.b32.xlu0 %v3184_v53, %s7735_s22  ;;  %v13036_v53 = vld [vmem:[#allocation17_spill] sm:$0xff] }
 0x25a   : > { %3324 = vrot.lane.b32.xlu1 %v3185_v32, %s7735_s22 }
 0x25d   : > { %3326 = vrot.lane.b32.xlu0 %v3186_v14, %s7735_s22  ;;  %v3199_v14 = vld [vmem:[#allocation3 + $0xc8] sm:$0xff] }
 0x25e   : > { %3328 = vrot.lane.b32.xlu1 %v3187_v47, %s7735_s22 }
 0x261   : > { %3330 = vrot.lane.b32.xlu0 %v3188_v29, %s7735_s22  ;;  %v13038_v29 = vld [vmem:[#allocation14_spill] sm:$0xff] }
 0x262   : > { %3332 = vrot.lane.b32.xlu1 %v3189_v44, %s7735_s22  ;;  %v3198_v44 = vld [vmem:[#allocation3 + $0xc0] sm:$0xff] }
 0x265   : > { %3334 = vrot.lane.b32.xlu0 %v3190_v36, %s7735_s22 }
 0x266   : > { %3336 = vrot.lane.b32.xlu1 %v3191_v45, %s7735_s22  ;;  %v13040_v45 = vld [vmem:[#allocation37_spill] sm:$0xff] }
 0x269   : > { %3338 = vrot.lane.b32.xlu0 %v3192_v7, %s7735_s22  ;;  %v3201_v7 = vld [vmem:[#allocation3 + $0xd8] sm:$0xff] }
 0x26a   : > { %3340 = vrot.lane.b32.xlu1 %v3193_v37, %s7735_s22 }
 0x26d   : > { %3342 = vrot.lane.b32.xlu0 %v3194_v54, %s7735_s22 }
 0x271   : > { %3346 = vrot.lane.b32.xlu0 %v3196_v30, %s7735_s22  ;;  %v13045_v30 = vld [vmem:[#allocation20_spill] sm:$0xff] }
 0x275   : > { %3350 = vrot.lane.b32.xlu0 %v3198_v44, %s7735_s22 }
 0x30a   : > { %v2173_v61 = vpop.f32.mrb[64].mxu1 }
 0x30b   : > { %v6696_v62 = vpop.f32.mrb[65].mxu1  ;;  %v2184_v43 = vrot.slane %v2173_v61, %v8954_v51  ;;  %v3195_v61 = vld [vmem:[#allocation3 + $0xa8] sm:$0xff] }
 0x30c   : > { %3344 = vrot.lane.b32.xlu1 %v3195_v61, %s7735_s22  ;;  %v13044_v61 = vld [vmem:[#allocation38_spill] sm:$0xff] }
 0x30d   : > { %v2185_v60 = vcombine.high %v2184_v43, %v2184_v43  ;;  %v2192_v18 = vrot.slane %v2184_v43, %v8954_v51 }
 0x30f   : > { %v2199_v57 = vrot.slane %v2185_v60, %v8954_v51  ;;  %v8970_v4 = vrot.slane %v2192_v18, %v8965_v0  ;;  %v13042_v18 = vld [vmem:[#allocation16_spill] sm:$0xff] }
 0x310   : > { %3348 = vrot.lane.b32.xlu1 %v3197_v13, %s7735_s22  ;;  %v3200_v13 = vld [vmem:[#allocation3 + $0xd0] sm:$0xff] }
 0x311   : > { %v8973_v62 = vrot.slane %v2199_v57, %v8965_v0  ;;  %v8979_v32 = vsub.f32 %v13034_v35, %v8970_v4  ;;  %v8983_v27 = vsub.f32 %v13036_v53, %v8970_v4  ;;  %v8997_v43 = vsub.f32 %v13038_v29, %v8970_v4  ;;  %v13047_v53 = vld [vmem:[#allocation39_spill] sm:$0xff]  ;;  %3354 = vrot.lane.b32.xlu0 %v3200_v13, %s7735_s22 }
 0x312   : > { %v9015_v57 = vsub.f32 %v13042_v18, %v8970_v4  ;;  %v9023_v35 = vsub.f32 %v13045_v30, %v8970_v4 }
 0x313   : > { %13035 = vst [vmem:[#allocation11_spill] sm:$0xff] %v8979_v32  ;;  %13037 = vst [vmem:[#allocation12_spill] sm:$0xff] %v8983_v27  ;;  %v8987_v39 = vsub.f32 %v8763_v23, %v8973_v62  ;;  %v8991_v47 = vsub.f32 %v8771_v34, %v8973_v62  ;;  %v9001_v36 = vsub.f32 %v13040_v45, %v8973_v62 }
 0x314   : > { %13039 = vst [vmem:[#allocation13_spill] sm:$0xff] %v8997_v43  ;;  %v2274_v23 = vmul.f32 %v8979_v32, %v8979_v32  ;;  %v2275_v34 = vmul.f32 %v8983_v27, %v8983_v27  ;;  %3352 = vrot.lane.b32.xlu1 %v3199_v14, %s7735_s22  ;;  %13043 = vst [vmem:[#allocation15_spill] sm:$0xff] %v9015_v57  ;;  %v9019_v54 = vsub.f32 %v13044_v61, %v8973_v62  ;;  %v13048_v61 = vld [vmem:[#allocation22_spill] sm:$0xff] }
 0x315   : > { %13041 = vst [vmem:[#allocation18_spill] sm:$0xff] %v9001_v36  ;;  %v2306_v60 = vmul.f32 %v8987_v39, %v8987_v39  ;;  %v2307_v37 = vmul.f32 %v8991_v47, %v8991_v47  ;;  %13046 = vst [vmem:[#allocation17_spill] sm:$0xff] %v9023_v35  ;;  %v9027_v29 = vsub.f32 %v13047_v53, %v8973_v62  ;;  %v3203_v53 = vld [vmem:[#allocation3 + $0xe8] sm:$0xff] }
 0x316   : > { %v2276_v14 = vmul.f32 %v8997_v43, %v8997_v43  ;;  %v2308_v44 = vmul.f32 %v9001_v36, %v9001_v36  ;;  %v2338_v45 = vadd.f32 %v2275_v34, %v2274_v23  ;;  %v9036_v27 = vsub.f32 %v13048_v61, %v8970_v4 }
 0x317   : > { %v2375_v18 = vadd.f32 %v2307_v37, %v2306_v60  ;;  %v9040_v30 = vsub.f32 %v8800_v6, %v8973_v62  ;;  %v2277_v43 = vmul.f32 %v9015_v57, %v9015_v57  ;;  %v2309_v23 = vmul.f32 %v9019_v54, %v9019_v54  ;;  %v3202_v37 = vld [vmem:[#allocation3 + $0xe0] sm:$0xff] }
 0x318   : > { %3356 = vrot.lane.b32.xlu1 %v3201_v7, %s7735_s22  ;;  %13049 = vst [vmem:[#allocation14_spill] sm:$0xff] %v9036_v27  ;;  %v2339_v34 = vadd.f32 %v2338_v45, %v2276_v14  ;;  %v13050_v7 = vld [vmem:[#allocation19_spill] sm:$0xff]  ;;  %v9053_v6 = vsub.f32 %v8784_v52, %v8973_v62  ;;  %v2278_v13 = vmul.f32 %v9023_v35, %v9023_v35  ;;  %v13052_v14 = vld [vmem:[#allocation21_spill] sm:$0xff]  ;;  %v3205_v52 = vld [vmem:[#allocation3 + $0xf8] sm:$0xff] }
 0x319   : > { %v2376_v60 = vadd.f32 %v2375_v18, %v2308_v44  ;;  %v9049_v61 = vsub.f32 %v13050_v7, %v8970_v4  ;;  %v2310_v57 = vmul.f32 %v9027_v29, %v9027_v29  ;;  %v9062_v44 = vsub.f32 %v13052_v14, %v8970_v4  ;;  %3358 = vrot.lane.b32.xlu0 %v3202_v37, %s7735_s22 }
 0x31a   : > { %v2340_v32 = vadd.f32 %v2339_v34, %v2277_v43  ;;  %v9066_v45 = vsub.f32 %v8795_v49, %v8973_v62  ;;  %v2279_v18 = vmul.f32 %v9036_v27, %v9036_v27  ;;  %v2311_v43 = vmul.f32 %v9040_v30, %v9040_v30 }
 0x31b   : > { %13051 = vst [vmem:[#allocation37_spill] sm:$0xff] %v9049_v61  ;;  %v2377_v36 = vadd.f32 %v2376_v60, %v2309_v23  ;;  %13053 = vst [vmem:[#allocation16_spill] sm:$0xff] %v9062_v44  ;;  %v13054_v60 = vld [vmem:[#allocation24_spill] sm:$0xff]  ;;  %v9079_v49 = vsub.f32 %v8816_v24, %v8973_v62  ;;  %v2280_v37 = vmul.f32 %v9049_v61, %v9049_v61 }
 0x31c   : > { %3360 = vrot.lane.b32.xlu1 %v3203_v53, %s7735_s22  ;;  %v2341_v23 = vadd.f32 %v2340_v32, %v2278_v13  ;;  %v3204_v53 = vld [vmem:[#allocation3 + $0xf0] sm:$0xff]  ;;  %v9075_v7 = vsub.f32 %v13054_v60, %v8970_v4  ;;  %v2312_v14 = vmul.f32 %v9053_v6, %v9053_v6  ;;  %v13056_v32 = vld [vmem:[#allocation26_spill] sm:$0xff]  ;;  %v3207_v24 = vld [vmem:[#allocation3 + $0x108] sm:$0xff]  ;;  %v2281_v13 = vmul.f32 %v9062_v44, %v9062_v44 }
 0x31d   : > { %v2378_v34 = vadd.f32 %v2377_v36, %v2310_v57  ;;  %v9088_v36 = vsub.f32 %v13056_v32, %v8970_v4  ;;  %v9092_v57 = vsub.f32 %v8822_v9, %v8973_v62  ;;  %3362 = vrot.lane.b32.xlu0 %v3204_v53, %s7735_s22  ;;  %v9105_v9 = vsub.f32 %v8812_v12, %v8973_v62  ;;  %v3209_v12 = vld [vmem:[#allocation3 + $0x118] sm:$0xff] }
 0x31e   : > { %13055 = vst [vmem:[#allocation38_spill] sm:$0xff] %v9075_v7  ;;  %v2342_v27 = vadd.f32 %v2341_v23, %v2279_v18  ;;  %v2313_v18 = vmul.f32 %v9066_v45, %v9066_v45  ;;  %v2282_v53 = vmul.f32 %v9075_v7, %v9075_v7  ;;  %v2314_v32 = vmul.f32 %v9079_v49, %v9079_v49 }
 0x31f   : > { %v2379_v35 = vadd.f32 %v2378_v34, %v2311_v43  ;;  %13057 = vst [vmem:[#allocation20_spill] sm:$0xff] %v9088_v36  ;;  %v13058_v34 = vld [vmem:[#allocation23_spill] sm:$0xff] }
 0x320   : > { %3364 = vrot.lane.b32.xlu1 %v3205_v52, %s7735_s22  ;;  %v2343_v43 = vadd.f32 %v2342_v27, %v2280_v37  ;;  %v3206_v52 = vld [vmem:[#allocation3 + $0x100] sm:$0xff]  ;;  %v9101_v60 = vsub.f32 %v13058_v34, %v8970_v4  ;;  %v13060_v27 = vld [vmem:[#allocation25_spill] sm:$0xff]  ;;  %v9118_v37 = vsub.f32 %v8819_v42, %v8973_v62  ;;  %v9131_v42 = vsub.f32 %v8836_v1, %v8973_v62  ;;  %v3211_v1 = vld [vmem:[#allocation3 + $0x128] sm:$0xff] }
 0x321   : > { %v2380_v23 = vadd.f32 %v2379_v35, %v2312_v14  ;;  %v9114_v35 = vsub.f32 %v13060_v27, %v8970_v4  ;;  %3366 = vrot.lane.b32.xlu0 %v3206_v52, %s7735_s22  ;;  %v2283_v14 = vmul.f32 %v9088_v36, %v9088_v36  ;;  %v2316_v27 = vmul.f32 %v9105_v9, %v9105_v9 }
 0x322   : > { %13059 = vst [vmem:[#allocation39_spill] sm:$0xff] %v9101_v60  ;;  %v2344_v44 = vadd.f32 %v2343_v43, %v2281_v13  ;;  %v2315_v13 = vmul.f32 %v9092_v57, %v9092_v57  ;;  %v2284_v52 = vmul.f32 %v9101_v60, %v9101_v60 }
 0x323   : > { %v2381_v61 = vadd.f32 %v2380_v23, %v2313_v18  ;;  %13061 = vst [vmem:[#allocation22_spill] sm:$0xff] %v9114_v35  ;;  %v13062_v23 = vld [vmem:[#allocation28_spill] sm:$0xff] }
 0x324   : > { %3368 = vrot.lane.b32.xlu1 %v3207_v24, %s7735_s22  ;;  %v2345_v18 = vadd.f32 %v2344_v44, %v2282_v53  ;;  %v3208_v24 = vld [vmem:[#allocation3 + $0x110] sm:$0xff]  ;;  %v9127_v34 = vsub.f32 %v13062_v23, %v8970_v4  ;;  %v9144_v53 = vsub.f32 %v8842_v55, %v8973_v62  ;;  %v9157_v55 = vsub.f32 %v8832_v41, %v8973_v62  ;;  %v3213_v41 = vld [vmem:[#allocation3 + $0x138] sm:$0xff] }
 0x325   : > { %v2382_v43 = vadd.f32 %v2381_v61, %v2314_v32  ;;  %v13064_v61 = vld [vmem:[#allocation30_spill] sm:$0xff]  ;;  %3370 = vrot.lane.b32.xlu0 %v3208_v24, %s7735_s22  ;;  %v2285_v32 = vmul.f32 %v9114_v35, %v9114_v35 }
 0x326   : > { %13063 = vst [vmem:[#allocation19_spill] sm:$0xff] %v9127_v34  ;;  %v2346_v36 = vadd.f32 %v2345_v18, %v2283_v14  ;;  %v9140_v44 = vsub.f32 %v13064_v61, %v8970_v4  ;;  %v2317_v14 = vmul.f32 %v9118_v37, %v9118_v37  ;;  %v2286_v24 = vmul.f32 %v9127_v34, %v9127_v34 }
 0x327   : > { %v2383_v7 = vadd.f32 %v2382_v43, %v2315_v13  ;;  %v13066_v43 = vld [vmem:[#allocation27_spill] sm:$0xff]  ;;  %v2318_v61 = vmul.f32 %v9131_v42, %v9131_v42 }
 0x328   : > { %3372 = vrot.lane.b32.xlu1 %v3209_v12, %s7735_s22  ;;  %13065 = vst [vmem:[#allocation21_spill] sm:$0xff] %v9140_v44  ;;  %v2347_v13 = vadd.f32 %v2346_v36, %v2284_v52  ;;  %v3210_v12 = vld [vmem:[#allocation3 + $0x120] sm:$0xff]  ;;  %v9153_v23 = vsub.f32 %v13066_v43, %v8970_v4  ;;  %v9170_v52 = vsub.f32 %v8839_v33, %v8973_v62 }
 0x329   : > { %v2384_v18 = vadd.f32 %v2383_v7, %v2316_v27  ;;  %v13068_v7 = vld [vmem:[#allocation29_spill] sm:$0xff]  ;;  %3374 = vrot.lane.b32.xlu0 %v3210_v12, %s7735_s22  ;;  %v2287_v27 = vmul.f32 %v9140_v44, %v9140_v44  ;;  %v9183_v33 = vsub.f32 %v8856_v2, %v8973_v62  ;;  %v3215_v2 = vld [vmem:[#allocation3 + $0x148] sm:$0xff] }
 0x32a   : > { %13067 = vst [vmem:[#allocation24_spill] sm:$0xff] %v9153_v23  ;;  %v2348_v35 = vadd.f32 %v2347_v13, %v2285_v32  ;;  %v9166_v36 = vsub.f32 %v13068_v7, %v8970_v4  ;;  %v2319_v32 = vmul.f32 %v9144_v53, %v9144_v53  ;;  %v2288_v12 = vmul.f32 %v9153_v23, %v9153_v23 }
 0x32b   : > { %v2385_v60 = vadd.f32 %v2384_v18, %v2317_v14  ;;  %v13070_v18 = vld [vmem:[#allocation32_spill] sm:$0xff]  ;;  %v2320_v7 = vmul.f32 %v9157_v55, %v9157_v55 }
 0x32c   : > { %3376 = vrot.lane.b32.xlu1 %v3211_v1, %s7735_s22  ;;  %13069 = vst [vmem:[#allocation26_spill] sm:$0xff] %v9166_v36  ;;  %v2349_v14 = vadd.f32 %v2348_v35, %v2286_v24  ;;  %v3212_v1 = vld [vmem:[#allocation3 + $0x130] sm:$0xff]  ;;  %v9179_v43 = vsub.f32 %v13070_v18, %v8970_v4  ;;  %v9196_v24 = vsub.f32 %v8862_v63, %v8973_v62 }
 0x32d   : > { %v2386_v13 = vadd.f32 %v2385_v60, %v2318_v61  ;;  %v13072_v60 = vld [vmem:[#allocation34_spill] sm:$0xff]  ;;  %3378 = vrot.lane.b32.xlu0 %v3212_v1, %s7735_s22  ;;  %v2289_v61 = vmul.f32 %v9166_v36, %v9166_v36  ;;  %v9209_v63 = vsub.f32 %v8852_v3, %v8973_v62 }
 0x32e   : > { %13071 = vst [vmem:[#allocation23_spill] sm:$0xff] %v9179_v43  ;;  %v2350_v44 = vadd.f32 %v2349_v14, %v2287_v27  ;;  %v9192_v35 = vsub.f32 %v13072_v60, %v8970_v4  ;;  %v2321_v27 = vmul.f32 %v9170_v52, %v9170_v52  ;;  %v2290_v1 = vmul.f32 %v9179_v43, %v9179_v43  ;;  %v3217_v3 = vld [vmem:[#allocation3 + $0x158] sm:$0xff] }
 0x32f   : > { %v2387_v34 = vadd.f32 %v2386_v13, %v2319_v32  ;;  %v13074_v13 = vld [vmem:[#allocation31_spill] sm:$0xff]  ;;  %v2322_v60 = vmul.f32 %v9183_v33, %v9183_v33 }
 0x330   : > { %3380 = vrot.lane.b32.xlu1 %v3213_v41, %s7735_s22  ;;  %13073 = vst [vmem:[#allocation25_spill] sm:$0xff] %v9192_v35  ;;  %v2351_v32 = vadd.f32 %v2350_v44, %v2288_v12  ;;  %v3214_v41 = vld [vmem:[#allocation3 + $0x140] sm:$0xff]  ;;  %v9205_v18 = vsub.f32 %v13074_v13, %v8970_v4  ;;  %v9222_v12 = vsub.f32 %v8859_v48, %v8973_v62 }
 0x331   : > { %v2388_v14 = vadd.f32 %v2387_v34, %v2320_v7  ;;  %v13075_v34 = vld [vmem:[#allocation33_spill] sm:$0xff]  ;;  %3382 = vrot.lane.b32.xlu0 %v3214_v41, %s7735_s22  ;;  %v2291_v7 = vmul.f32 %v9192_v35, %v9192_v35  ;;  %v9235_v48 = vsub.f32 %v8876_v31, %v8973_v62  ;;  %v3219_v31 = vld [vmem:[#allocation3 + $0x168] sm:$0xff] }
 0x332   : > { %v2352_v36 = vadd.f32 %v2351_v32, %v2289_v61  ;;  %v9218_v44 = vsub.f32 %v13075_v34, %v8970_v4  ;;  %v2323_v61 = vmul.f32 %v9196_v24, %v9196_v24  ;;  %v2292_v41 = vmul.f32 %v9205_v18, %v9205_v18 }
 0x333   : > { %v2389_v23 = vadd.f32 %v2388_v14, %v2321_v27  ;;  %v13077_v14 = vld [vmem:[#allocation36_spill] sm:$0xff]  ;;  %v2324_v34 = vmul.f32 %v9209_v63, %v9209_v63 }
 0x334   : > { %3384 = vrot.lane.b32.xlu1 %v3215_v2, %s7735_s22  ;;  %13076 = vst [vmem:[#allocation28_spill] sm:$0xff] %v9218_v44  ;;  %v2353_v27 = vadd.f32 %v2352_v36, %v2290_v1  ;;  %v3216_v2 = vld [vmem:[#allocation3 + $0x150] sm:$0xff]  ;;  %v9231_v13 = vsub.f32 %v13077_v14, %v8970_v4  ;;  %v9248_v36 = vsub.f32 %v8882_v5, %v8973_v62 }
 0x335   : > { %v2390_v32 = vadd.f32 %v2389_v23, %v2322_v60  ;;  %v9244_v23 = vsub.f32 %v8699_v17, %v8970_v4  ;;  %3386 = vrot.lane.b32.xlu0 %v3216_v2, %s7735_s22  ;;  %v2293_v1 = vmul.f32 %v9218_v44, %v9218_v44  ;;  %v2325_v60 = vmul.f32 %v9222_v12, %v9222_v12 }
 0x336   : > { %v2354_v35 = vadd.f32 %v2353_v27, %v2291_v7  ;;  %v13078_v27 = vld [vmem:[#allocation35_spill] sm:$0xff]  ;;  %v9261_v5 = vsub.f32 %v8872_v59, %v8973_v62  ;;  %v2326_v2 = vmul.f32 %v9235_v48, %v9235_v48  ;;  %v3221_v59 = vld [vmem:[#allocation3 + $0x178] sm:$0xff] }
 0x337   : > { %v2391_v43 = vadd.f32 %v2390_v32, %v2323_v61  ;;  %v9257_v17 = vsub.f32 %v13078_v27, %v8970_v4  ;;  %v2294_v32 = vmul.f32 %v9231_v13, %v9231_v13 }
 0x338   : > { %3388 = vrot.lane.b32.xlu1 %v3217_v3, %s7735_s22  ;;  %v2355_v7 = vadd.f32 %v2354_v35, %v2292_v41  ;;  %v3218_v3 = vld [vmem:[#allocation3 + $0x160] sm:$0xff]  ;;  %v9274_v35 = vsub.f32 %v8879_v16, %v8973_v62  ;;  %v2295_v41 = vmul.f32 %v9244_v23, %v9244_v23  ;;  %v9287_v16 = vsub.f32 %v8896_v46, %v8973_v62  ;;  %v3223_v46 = vld [vmem:[#allocation3 + $0x188] sm:$0xff] }
 0x339   : > { %v2392_v61 = vadd.f32 %v2391_v43, %v2324_v34  ;;  %v9270_v43 = vsub.f32 %v8695_v15, %v8970_v4  ;;  %3390 = vrot.lane.b32.xlu0 %v3218_v3, %s7735_s22  ;;  %v2327_v34 = vmul.f32 %v9248_v36, %v9248_v36  ;;  %v9283_v15 = vsub.f32 %v8715_v56, %v8970_v4 }
 0x33a   : > { %v2356_v14 = vadd.f32 %v2355_v7, %v2293_v1  ;;  %v2296_v7 = vmul.f32 %v9257_v17, %v9257_v17  ;;  %v9300_v56 = vsub.f32 %v8902_v58, %v8973_v62  ;;  %v9313_v58 = vsub.f32 %v8892_v21, %v8973_v62  ;;  %v3225_v21 = vld [vmem:[#allocation3 + $0x198] sm:$0xff] }
 0x33b   : > { %v2393_v44 = vadd.f32 %v2392_v61, %v2325_v60  ;;  %v2328_v61 = vmul.f32 %v9261_v5, %v9261_v5 }
 0x33c   : > { %3392 = vrot.lane.b32.xlu1 %v3219_v31, %s7735_s22  ;;  %v2357_v1 = vadd.f32 %v2356_v14, %v2294_v32  ;;  %v3220_v31 = vld [vmem:[#allocation3 + $0x170] sm:$0xff]  ;;  %v2297_v32 = vmul.f32 %v9270_v43, %v9270_v43 }
 0x33d   : > { %v2394_v60 = vadd.f32 %v2393_v44, %v2326_v2  ;;  %v9296_v44 = vsub.f32 %v8723_v22, %v8970_v4  ;;  %3394 = vrot.lane.b32.xlu0 %v3220_v31, %s7735_s22  ;;  %v2329_v2 = vmul.f32 %v9274_v35, %v9274_v35  ;;  %v9309_v22 = vsub.f32 %v8709_v25, %v8970_v4 }
 0x33e   : > { %v2358_v3 = vadd.f32 %v2357_v1, %v2295_v41  ;;  %v2330_v1 = vmul.f32 %v9287_v16, %v9287_v16  ;;  %v9326_v25 = vsub.f32 %v8899_v38, %v8973_v62  ;;  %v9339_v38 = vsub.f32 %v8913_v11, %v8973_v62  ;;  %v3227_v11 = vld [vmem:[#allocation3 + $0x1a8] sm:$0xff] }
 0x33f   : > { %v2395_v27 = vadd.f32 %v2394_v60, %v2327_v34  ;;  %v2298_v34 = vmul.f32 %v9283_v15, %v9283_v15 }
 0x340   : > { %3396 = vrot.lane.b32.xlu1 %v3221_v59, %s7735_s22  ;;  %v2359_v14 = vadd.f32 %v2358_v3, %v2296_v7  ;;  %v3222_v59 = vld [vmem:[#allocation3 + $0x180] sm:$0xff]  ;;  %v9322_v7 = vsub.f32 %v8719_v20, %v8970_v4  ;;  %v2331_v3 = vmul.f32 %v9300_v56, %v9300_v56  ;;  %v9335_v20 = vsub.f32 %v8739_v19, %v8970_v4 }
 0x341   : > { %v2396_v41 = vadd.f32 %v2395_v27, %v2328_v61  ;;  %3398 = vrot.lane.b32.xlu0 %v3222_v59, %s7735_s22  ;;  %v2299_v61 = vmul.f32 %v9296_v44, %v9296_v44  ;;  %v9352_v19 = vsub.f32 %v8919_v10, %v8973_v62  ;;  %v9365_v10 = vsub.f32 %v8910_v50, %v8973_v62  ;;  %v3229_v50 = vld [vmem:[#allocation3 + $0x1b8] sm:$0xff] }
 0x342   : > { %v2360_v60 = vadd.f32 %v2359_v14, %v2297_v32  ;;  %v2332_v14 = vmul.f32 %v9313_v58, %v9313_v58 }
 0x343   : > { %v2397_v31 = vadd.f32 %v2396_v41, %v2329_v2  ;;  %v2300_v2 = vmul.f32 %v9309_v22, %v9309_v22 }
 0x344   : > { %3400 = vrot.lane.b32.xlu1 %v3223_v46, %s7735_s22  ;;  %v2361_v27 = vadd.f32 %v2360_v60, %v2298_v34  ;;  %v3224_v46 = vld [vmem:[#allocation3 + $0x190] sm:$0xff]  ;;  %v9348_v34 = vsub.f32 %v8747_v28, %v8970_v4  ;;  %v2333_v60 = vmul.f32 %v9326_v25, %v9326_v25  ;;  %v9361_v28 = vsub.f32 %v8733_v40, %v8970_v4 }
 0x345   : > { %v2398_v32 = vadd.f32 %v2397_v31, %v2330_v1  ;;  %3402 = vrot.lane.b32.xlu0 %v3224_v46, %s7735_s22  ;;  %v2301_v1 = vmul.f32 %v9322_v7, %v9322_v7  ;;  %v9378_v40 = vsub.f32 %v8916_v8, %v8973_v62 }
 0x346   : > { %v2362_v41 = vadd.f32 %v2361_v27, %v2299_v61  ;;  %v2334_v27 = vmul.f32 %v9339_v38, %v9339_v38 }
 0x347   : > { %v2399_v59 = vadd.f32 %v2398_v32, %v2331_v3  ;;  %v2302_v3 = vmul.f32 %v9335_v20, %v9335_v20 }
 0x348   : > { %3404 = vrot.lane.b32.xlu1 %v3225_v21, %s7735_s22  ;;  %v2363_v31 = vadd.f32 %v2362_v41, %v2300_v2  ;;  %v3226_v21 = vld [vmem:[#allocation3 + $0x1a0] sm:$0xff]  ;;  %v9374_v2 = vsub.f32 %v8743_v26, %v8970_v4  ;;  %v2335_v41 = vmul.f32 %v9352_v19, %v9352_v19  ;;  %v2304_v26 = vmul.f32 %v9361_v28, %v9361_v28 }
 0x349   : > { %v2400_v61 = vadd.f32 %v2399_v59, %v2332_v14  ;;  %3406 = vrot.lane.b32.xlu0 %v3226_v21, %s7735_s22  ;;  %v2303_v14 = vmul.f32 %v9348_v34, %v9348_v34  ;;  %v2336_v4 = vmul.f32 %v9365_v10, %v9365_v10 }
 0x34a   : > { %v2364_v32 = vadd.f32 %v2363_v31, %v2301_v1  ;;  %13079 = vst [vmem:[#allocation30_spill] sm:$0xff] %v9374_v2  ;;  %v2305_v31 = vmul.f32 %v9374_v2, %v9374_v2  ;;  %v3235_v2 = vld [vmem:[#allocation3 + $0x1e8] sm:$0xff] }
 0x34b   : > { %v2401_v46 = vadd.f32 %v2400_v61, %v2333_v60  ;;  %v3231_v60 = vld [vmem:[#allocation3 + $0x1c8] sm:$0xff]  ;;  %v2337_v61 = vmul.f32 %v9378_v40, %v9378_v40 }
 0x34c   : > { %3408 = vrot.lane.b32.xlu1 %v3227_v11, %s7735_s22  ;;  %v2365_v59 = vadd.f32 %v2364_v32, %v2302_v3  ;;  %v3228_v11 = vld [vmem:[#allocation3 + $0x1b0] sm:$0xff] }
 0x34d   : > { %v2402_v1 = vadd.f32 %v2401_v46, %v2334_v27  ;;  %3410 = vrot.lane.b32.xlu0 %v3228_v11, %s7735_s22  ;;  %v3230_v27 = vld [vmem:[#allocation3 + $0x1c0] sm:$0xff] }
 0x34e   : > { %v2366_v8 = vadd.f32 %v2365_v59, %v2303_v14  ;;  %v3233_v14 = vld [vmem:[#allocation3 + $0x1d8] sm:$0xff]  ;;  %v3232_v59 = vld [vmem:[#allocation3 + $0x1d0] sm:$0xff] }
 0x34f   : > { %v2403_v62 = vadd.f32 %v2402_v1, %v2335_v41 }
 0x350   : > { %3412 = vrot.lane.b32.xlu1 %v3229_v50, %s7735_s22  ;;  %v2367_v21 = vadd.f32 %v2366_v8, %v2304_v26  ;;  %v3234_v8 = vld [vmem:[#allocation3 + $0x1e0] sm:$0xff] }
 0x351   : > { %v2404_v3 = vadd.f32 %v2403_v62, %v2336_v4  ;;  %3414 = vrot.lane.b32.xlu0 %v3230_v27, %s7735_s22 }
 0x352   : > { %v2368_v32 = vadd.f32 %v2367_v21, %v2305_v31 }
 0x353   : > { %v2405_v46 = vadd.f32 %v2404_v3, %v2337_v61  ;;  %v3236_v3 = vld [vmem:[#allocation3 + $0x1f0] sm:$0xff] }
 0x354   : > { %3416 = vrot.lane.b32.xlu1 %v3231_v60, %s7735_s22  ;;  %v2369_v50 = vrot.slane %v2368_v32, 4  ;;  %v3237_v60 = vld [vmem:[#allocation3 + $0x1f8] sm:$0xff] }
 0x355   : > { %v2406_v41 = vrot.slane %v2405_v46, 4  ;;  %3418 = vrot.lane.b32.xlu0 %v3232_v59, %s7735_s22  ;;  %v9406_v59 = vpop.permute.xlu1 %3306 }
 0x356   : > { %v2370_v1 = vadd.f32 %v2369_v50, %v2368_v32  ;;  %13081 = vst [vmem:[#allocation29_spill] sm:$0xff] %v9406_v59 }
 0x357   : > { %v2407_v11 = vadd.f32 %v2406_v41, %v2405_v46 }
 0x358   : > { %3420 = vrot.lane.b32.xlu1 %v3233_v14, %s7735_s22  ;;  %v2371_v26 = vrot.slane %v2370_v1, 2 }
 0x359   : > { %v2408_v4 = vrot.slane %v2407_v11, 2  ;;  %3422 = vrot.lane.b32.xlu0 %v3234_v8, %s7735_s22 }
 0x35a   : > { %v2372_v62 = vadd.f32 %v2371_v26, %v2370_v1  ;;  %v9410_v26 = vpop.permute.xlu1 %3308 }
 0x35b   : > { %v2409_v31 = vadd.f32 %v2408_v4, %v2407_v11  ;;  %13083 = vst [vmem:[#allocation34_spill] sm:$0xff] %v9410_v26 }
 0x35c   : > { %3424 = vrot.lane.b32.xlu1 %v3235_v2, %s7735_s22  ;;  %v2373_v61 = vrot.slane %v2372_v62, 1  ;;  %v9404_v2 = vpop.permute.xlu0 %3302 }
 0x35d   : > { %v2410_v21 = vrot.slane %v2409_v31, 1  ;;  %3426 = vrot.lane.b32.xlu0 %v3236_v3, %s7735_s22  ;;  %13080 = vst [vmem:[#allocation27_spill] sm:$0xff] %v9404_v2 }
 0x35e   : > { %v2374_v27 = vadd.f32 %v2373_v61, %v2372_v62  ;;  %v9417_v62 = vpop.permute.xlu1 %3312 }
 0x35f   : > { %v2411_v32 = vadd.f32 %v2410_v21, %v2409_v31  ;;  %13085 = vst [vmem:[#allocation33_spill] sm:$0xff] %v9417_v62 }
 0x360   : > { %3428 = vrot.lane.b32.xlu1 %v3237_v60, %s7735_s22  ;;  %v9408_v11 = vpop.permute.xlu0 %3304 }
 0x361   : > { %v2414_v46 = vsel %vm2104_vm4, %v2411_v32, %v2374_v27  ;;  %13082 = vst [vmem:[#allocation32_spill] sm:$0xff] %v9408_v11 }
 0x362   : > { %6730 = vmatmul.mubr.f32.vlgmr.msra.gmra.mrb[66].mxu1 %v2414_v46  ;;  %v9424_v21 = vpop.permute.xlu1 %3316 }
 0x363   : > { %13087 = vst [vmem:[#allocation35_spill] sm:$0xff] %v9424_v21 }
 0x364   : > { %v9415_v8 = vpop.permute.xlu0 %3310 }
 0x365   : > { %13084 = vst [vmem:[#allocation31_spill] sm:$0xff] %v9415_v8 }
 0x366   : > { %v9429_v32 = vpop.permute.xlu1 %3320 }
 0x367   : > { %13089 = vst [vmem:[#allocation41_spill] sm:$0xff] %v9429_v32  ;;  %v13091_v32 = vld [vmem:[#allocation18_spill] sm:$0xff] }
 0x368   : > { %v9422_v61 = vpop.permute.xlu0 %3314 }
 0x369   : > { %13086 = vst [vmem:[#allocation36_spill] sm:$0xff] %v9422_v61 }
 0x36a   : > { %v9450_v21 = vpop.permute.xlu1 %3324 }
 0x36b   : > { %13092 = vst [vmem:[#allocation18_spill] sm:$0xff] %v9450_v21 }
 0x36c   : > { %v9427_v27 = vpop.permute.xlu0 %3318 }
 0x36d   : > { %13088 = vst [vmem:[#allocation40_spill] sm:$0xff] %v9427_v27 }
 0x435   : > { %v2482_v14 = vpop.f32.mrb[66].mxu1 }
 0x436   : > { %v2483_v50 = vadd.f32 1e-05, %v2482_v14  ;;  %v6731_v41 = vpop.f32.mrb[67].mxu1  ;;  %v9435_v14 = vld [vmem:[%s12717_s3] ss:$0 sm:$0xff] }
 0x437   : > { %v9441_v41 = vld [vmem:[%s12718_s4] ss:$0 sm:$0xff] }
 0x438   : > { %7081 = vrsqrt.f32 %v2483_v50 }
 0x442   : > { %v7082_v1 = vpop.eup %7081 }
 0x443   : > { %v9413_v4 = vrot.slane %v7082_v1, %v8954_v51  ;;  %v9443_v1 = vpop.permute.xlu0 %3322 }
 0x444   : > { %13090 = vst [vmem:[#allocation42_spill] sm:$0xff] %v9443_v1 }
 0x445   : > { %v2495_v31 = vcombine.high %v9413_v4, %v9413_v4 }
 0x447   : > { %v2509_v60 = vrot.slane %v2495_v31, %v8954_v51  ;;  %v9474_v26 = vpop.permute.xlu0 %3326 }
 0x448   : > { %13093 = vst [vmem:[#allocation43_spill] sm:$0xff] %v9474_v26  ;;  %v13103_v26 = vld [vmem:[#allocation15_spill] sm:$0xff] }
 0x449   : > { %v2517_v3 = vrot.slane %v2509_v60, %v8965_v0 }
 0x44b   : > { %v2557_v46 = vmul.f32 %v2517_v3, %v9040_v30  ;;  %v2552_v60 = vmul.f32 %v2517_v3, %v8987_v39  ;;  %v2553_v30 = vmul.f32 %v2517_v3, %v8991_v47  ;;  %v2554_v27 = vmul.f32 %v2517_v3, %v13091_v32 }
 0x44c   : > { %v2556_v61 = vmul.f32 %v2517_v3, %v9027_v29  ;;  %v2558_v62 = vmul.f32 %v2517_v3, %v9053_v6  ;;  %v2559_v1 = vmul.f32 %v2517_v3, %v9066_v45  ;;  %v2560_v31 = vmul.f32 %v2517_v3, %v9079_v49 }
 0x44d   : > { %v2628_v50 = vmul.f32 %v9435_v14, %v2557_v46  ;;  %v2555_v46 = vmul.f32 %v2517_v3, %v9019_v54  ;;  %v2561_v39 = vmul.f32 %v2517_v3, %v9092_v57  ;;  %v2562_v47 = vmul.f32 %v2517_v3, %v9105_v9 }
 0x44e   : > { %v2563_v32 = vmul.f32 %v2517_v3, %v9118_v37  ;;  %v2564_v21 = vmul.f32 %v2517_v3, %v9131_v42  ;;  %v2565_v54 = vmul.f32 %v2517_v3, %v9144_v53  ;;  %v2566_v29 = vmul.f32 %v2517_v3, %v9157_v55 }
 0x44f   : > { %v9456_v8 = vadd.f32 %v9441_v41, %v2628_v50  ;;  %v2567_v6 = vmul.f32 %v2517_v3, %v9170_v52  ;;  %v2568_v50 = vmul.f32 %v2517_v3, %v9183_v33  ;;  %v2569_v45 = vmul.f32 %v2517_v3, %v9196_v24  ;;  %v9480_v24 = vpop.permute.xlu1 %3328 }
 0x450   : > { %v2570_v49 = vmul.f32 %v2517_v3, %v9209_v63  ;;  %v2571_v57 = vmul.f32 %v2517_v3, %v9222_v12  ;;  %v2572_v9 = vmul.f32 %v2517_v3, %v9235_v48  ;;  %v2573_v37 = vmul.f32 %v2517_v3, %v9248_v36  ;;  %13094 = vst [vmem:[#allocation44_spill] sm:$0xff] %v9480_v24 }
 0x451   : > { %v2574_v42 = vmul.f32 %v2517_v3, %v9261_v5  ;;  %v2575_v53 = vmul.f32 %v2517_v3, %v9274_v35  ;;  %v2576_v55 = vmul.f32 %v2517_v3, %v9287_v16  ;;  %v2577_v52 = vmul.f32 %v2517_v3, %v9300_v56 }
 0x452   : > { %v2578_v33 = vmul.f32 %v2517_v3, %v9313_v58  ;;  %v2579_v63 = vmul.f32 %v2517_v3, %v9326_v25  ;;  %v2580_v12 = vmul.f32 %v2517_v3, %v9339_v38  ;;  %v2581_v48 = vmul.f32 %v2517_v3, %v9352_v19 }
 0x453   : > { %v2582_v36 = vmul.f32 %v2517_v3, %v9365_v10  ;;  %v2583_v5 = vmul.f32 %v2517_v3, %v9378_v40  ;;  %v2623_v35 = vmul.f32 %v9435_v14, %v2552_v60  ;;  %v2624_v16 = vmul.f32 %v9435_v14, %v2553_v30 }
 0x454   : > { %v2625_v56 = vmul.f32 %v9435_v14, %v2554_v27  ;;  %v2626_v58 = vmul.f32 %v9435_v14, %v2555_v46  ;;  %v2627_v24 = vmul.f32 %v9435_v14, %v2556_v61  ;;  %v2629_v25 = vmul.f32 %v9435_v14, %v2558_v62  ;;  %v9502_v46 = vpop.permute.xlu0 %3330 }
 0x455   : > { %v2630_v38 = vmul.f32 %v9435_v14, %v2559_v1  ;;  %v2631_v19 = vmul.f32 %v9435_v14, %v2560_v31  ;;  %v2632_v10 = vmul.f32 %v9435_v14, %v2561_v39  ;;  %v2633_v40 = vmul.f32 %v9435_v14, %v2562_v47  ;;  %13095 = vst [vmem:[#allocation45_spill] sm:$0xff] %v9502_v46  ;;  %v9508_v47 = vpop.permute.xlu1 %3332 }
 0x456   : > { %v2634_v3 = vmul.f32 %v9435_v14, %v2563_v32  ;;  %v2635_v60 = vmul.f32 %v9435_v14, %v2564_v21  ;;  %v2636_v27 = vmul.f32 %v9435_v14, %v2565_v54  ;;  %v2637_v30 = vmul.f32 %v9435_v14, %v2566_v29  ;;  %13096 = vst [vmem:[#allocation46_spill] sm:$0xff] %v9508_v47 }
 0x457   : > { %v2638_v61 = vmul.f32 %v9435_v14, %v2567_v6  ;;  %v2639_v62 = vmul.f32 %v9435_v14, %v2568_v50  ;;  %v2640_v1 = vmul.f32 %v9435_v14, %v2569_v45  ;;  %v2641_v31 = vmul.f32 %v9435_v14, %v2570_v49 }
 0x458   : > { %v2642_v39 = vmul.f32 %v9435_v14, %v2571_v57  ;;  %v2643_v21 = vmul.f32 %v9435_v14, %v2572_v9  ;;  %v2644_v32 = vmul.f32 %v9435_v14, %v2573_v37  ;;  %v2645_v54 = vmul.f32 %v9435_v14, %v2574_v42 }
 0x459   : > { %v2646_v29 = vmul.f32 %v9435_v14, %v2575_v53  ;;  %v2647_v6 = vmul.f32 %v9435_v14, %v2576_v55  ;;  %v2648_v50 = vmul.f32 %v9435_v14, %v2577_v52  ;;  %v2649_v45 = vmul.f32 %v9435_v14, %v2578_v33  ;;  %v9531_v52 = vpop.permute.xlu0 %3334  ;;  %v9533_v33 = vpop.permute.xlu1 %3336 }
 0x45a   : > { %v2650_v49 = vmul.f32 %v9435_v14, %v2579_v63  ;;  %v2651_v57 = vmul.f32 %v9435_v14, %v2580_v12  ;;  %v2652_v47 = vmul.f32 %v9435_v14, %v2581_v48  ;;  %v2653_v9 = vmul.f32 %v9435_v14, %v2582_v36  ;;  %13098 = vst [vmem:[#allocation47_spill] sm:$0xff] %v9531_v52  ;;  %v13100_v63 = vld [vmem:[#allocation11_spill] sm:$0xff]  ;;  %v13101_v48 = vld [vmem:[#allocation12_spill] sm:$0xff] }
 0x45b   : > { %v2654_v37 = vmul.f32 %v9435_v14, %v2583_v5  ;;  %v13097_v42 = vrot.slane %v9413_v4, %v8954_v51  ;;  %v9529_v55 = vadd.f32 %v9441_v41, %v2627_v24  ;;  %13099 = vst [vmem:[#allocation48_spill] sm:$0xff] %v9533_v33  ;;  %v13102_v5 = vld [vmem:[#allocation13_spill] sm:$0xff] }
 0x45c   : > { %v13105_v4 = vld [vmem:[#allocation17_spill] sm:$0xff] }
 0x45d   : > { %v9526_v53 = vrot.slane %v13097_v42, %v8965_v0  ;;  %v9543_v0 = vpop.permute.xlu0 %3338  ;;  %v13106_v42 = vld [vmem:[#allocation14_spill] sm:$0xff]  ;;  %v9551_v59 = vpop.permute.xlu1 %3340 }
 0x45e   : > { %13104 = vst [vmem:[#allocation11_spill] sm:$0xff] %v9543_v0  ;;  %13107 = vst [vmem:[#allocation12_spill] sm:$0xff] %v9551_v59  ;;  %v9559_v0 = vadd.f32 %v9441_v41, %v2624_v16  ;;  %v9580_v16 = vadd.f32 %v9441_v41, %v2633_v40  ;;  %v9601_v40 = vadd.f32 %v9441_v41, %v2639_v62 }
 0x45f   : > { %v2520_v12 = vmul.f32 %v9526_v53, %v13100_v63  ;;  %v2521_v36 = vmul.f32 %v9526_v53, %v13101_v48  ;;  %v2522_v46 = vmul.f32 %v9526_v53, %v13102_v5  ;;  %v2523_v51 = vmul.f32 %v9526_v53, %v13103_v26 }
 0x460   : > { %v2524_v24 = vmul.f32 %v9526_v53, %v13105_v4  ;;  %v2525_v33 = vmul.f32 %v9526_v53, %v13106_v42  ;;  %v9556_v26 = vadd.f32 %v9441_v41, %v2623_v35  ;;  %v9562_v4 = vadd.f32 %v9441_v41, %v2625_v56 }
 0x461   : > { %v2591_v52 = vmul.f32 %v9435_v14, %v2520_v12  ;;  %v2592_v63 = vmul.f32 %v9435_v14, %v2521_v36  ;;  %v2593_v48 = vmul.f32 %v9435_v14, %v2522_v46  ;;  %v2594_v5 = vmul.f32 %v9435_v14, %v2523_v51  ;;  %v9623_v51 = vpop.permute.xlu1 %3344 }
 0x462   : > { %v9565_v42 = vadd.f32 %v9441_v41, %v2626_v58  ;;  %v9568_v12 = vadd.f32 %v9441_v41, %v2629_v25  ;;  %v9571_v36 = vadd.f32 %v9441_v41, %v2630_v38  ;;  %v9574_v46 = vadd.f32 %v9441_v41, %v2631_v19  ;;  %13109 = vst [vmem:[#allocation15_spill] sm:$0xff] %v9623_v51 }
 0x463   : > { %v9577_v35 = vadd.f32 %v9441_v41, %v2632_v10  ;;  %v9583_v56 = vadd.f32 %v9441_v41, %v2634_v3  ;;  %v9586_v58 = vadd.f32 %v9441_v41, %v2635_v60  ;;  %v9589_v25 = vadd.f32 %v9441_v41, %v2636_v27  ;;  %v9609_v27 = vpop.permute.xlu0 %3342 }
 0x464   : > { %v9592_v38 = vadd.f32 %v9441_v41, %v2637_v30  ;;  %v9595_v19 = vadd.f32 %v9441_v41, %v2638_v61  ;;  %v9598_v10 = vadd.f32 %v9441_v41, %v2591_v52  ;;  %v9604_v3 = vadd.f32 %v9441_v41, %v2640_v1  ;;  %13108 = vst [vmem:[#allocation13_spill] sm:$0xff] %v9609_v27 }
 0x465   : > { %v9607_v60 = vadd.f32 %v9441_v41, %v2641_v31  ;;  %v9612_v30 = vadd.f32 %v9441_v41, %v2642_v39  ;;  %v9615_v61 = vadd.f32 %v9441_v41, %v2643_v21  ;;  %v9618_v52 = vadd.f32 %v9441_v41, %v2644_v32 }
 0x466   : > { %v9621_v62 = vadd.f32 %v9441_v41, %v2645_v54  ;;  %v9626_v1 = vadd.f32 %v9441_v41, %v2592_v63  ;;  %v9629_v31 = vadd.f32 %v9441_v41, %v2646_v29  ;;  %v9632_v39 = vadd.f32 %v9441_v41, %v2647_v6 }
 0x467   : > { %v9635_v21 = vadd.f32 %v9441_v41, %v2648_v50  ;;  %v9638_v32 = vadd.f32 %v9441_v41, %v2649_v45  ;;  %v9641_v54 = vadd.f32 %v9441_v41, %v2650_v49  ;;  %v9644_v51 = vadd.f32 %v9441_v41, %v2651_v57  ;;  %v13117_v50 = vld [vmem:[#allocation37_spill] sm:$0xff]  ;;  %v9662_v57 = vpop.permute.xlu0 %3346 }
 0x468   : > { %v9647_v63 = vadd.f32 %v9441_v41, %v2652_v47  ;;  %v9650_v29 = vadd.f32 %v9441_v41, %v2653_v9  ;;  %v9653_v6 = vadd.f32 %v9441_v41, %v2654_v37  ;;  %v2526_v27 = vmul.f32 %v9526_v53, %v13117_v50  ;;  %13118 = vst [vmem:[#allocation37_spill] sm:$0xff] %v9662_v57  ;;  %v13119_v47 = vld [vmem:[#allocation16_spill] sm:$0xff]  ;;  %v9671_v50 = vpop.permute.xlu1 %3348 }
 0x469   : > { %13110 = vst [vmem:[#allocation17_spill] sm:$0xff] %v9635_v21  ;;  %13111 = vst [vmem:[#allocation14_spill] sm:$0xff] %v9638_v32  ;;  %v2595_v45 = vmul.f32 %v9435_v14, %v2524_v24  ;;  %v9659_v49 = vadd.f32 %v9441_v41, %v2593_v48  ;;  %7083 = vtanh.f32 %v9598_v10  ;;  %v2527_v59 = vmul.f32 %v9526_v53, %v13119_v47  ;;  %v13121_v24 = vld [vmem:[#allocation38_spill] sm:$0xff]  ;;  %v13122_v47 = vld [vmem:[#allocation20_spill] sm:$0xff] }
 0x46a   : > { %13112 = vst [vmem:[#allocation49_spill] sm:$0xff] %v9641_v54  ;;  %13113 = vst [vmem:[#allocation50_spill] sm:$0xff] %v9644_v51  ;;  %v2596_v9 = vmul.f32 %v9435_v14, %v2525_v33  ;;  %v9668_v37 = vadd.f32 %v9441_v41, %v2594_v5  ;;  %7085 = vtanh.f32 %v9626_v1  ;;  %v2528_v48 = vmul.f32 %v9526_v53, %v13121_v24 }
 0x46b   : > { %13114 = vst [vmem:[#allocation51_spill] sm:$0xff] %v9647_v63  ;;  %13115 = vst [vmem:[#allocation52_spill] sm:$0xff] %v9650_v29  ;;  %v2597_v11 = vmul.f32 %v9435_v14, %v2526_v27  ;;  %v9677_v2 = vadd.f32 %v9441_v41, %v2595_v45  ;;  %7087 = vtanh.f32 %v9659_v49  ;;  %v2529_v33 = vmul.f32 %v9526_v53, %v13122_v47  ;;  %v13125_v27 = vld [vmem:[#allocation39_spill] sm:$0xff] }
 0x46c   : > { %13116 = vst [vmem:[#allocation53_spill] sm:$0xff] %v9653_v6  ;;  %13120 = vst [vmem:[#allocation16_spill] sm:$0xff] %v9671_v50  ;;  %v2598_v5 = vmul.f32 %v9435_v14, %v2527_v59  ;;  %v9684_v57 = vadd.f32 %v9441_v41, %v2596_v9  ;;  %7089 = vtanh.f32 %v9668_v37  ;;  %v9687_v50 = vpop.permute.xlu0 %3350  ;;  %v9689_v24 = vpop.permute.xlu1 %3352  ;;  %v2530_v45 = vmul.f32 %v9526_v53, %v13125_v27  ;;  %v13127_v59 = vld [vmem:[#allocation22_spill] sm:$0xff] }
 0x46d   : > { %13123 = vst [vmem:[#allocation38_spill] sm:$0xff] %v9687_v50  ;;  %13124 = vst [vmem:[#allocation20_spill] sm:$0xff] %v9689_v24  ;;  %v2599_v6 = vmul.f32 %v9435_v14, %v2528_v48  ;;  %v9695_v29 = vadd.f32 %v9441_v41, %v2597_v11  ;;  %7091 = vtanh.f32 %v9677_v2  ;;  %v2531_v9 = vmul.f32 %v9526_v53, %v13127_v59  ;;  %v13129_v48 = vld [vmem:[#allocation19_spill] sm:$0xff] }
 0x46e   : > { %v2600_v47 = vmul.f32 %v9435_v14, %v2529_v33  ;;  %v9702_v63 = vadd.f32 %v9441_v41, %v2598_v5  ;;  %7093 = vtanh.f32 %v9684_v57  ;;  %v2532_v11 = vmul.f32 %v9526_v53, %v13129_v48  ;;  %v13132_v5 = vld [vmem:[#allocation21_spill] sm:$0xff] }
 0x46f   : > { %13126 = vst [vmem:[#allocation39_spill] sm:$0xff] %v9695_v29  ;;  %v2601_v27 = vmul.f32 %v9435_v14, %v2530_v45  ;;  %v9710_v51 = vadd.f32 %v9441_v41, %v2599_v6  ;;  %7095 = vtanh.f32 %v9695_v29  ;;  %v2533_v59 = vmul.f32 %v9526_v53, %v13132_v5  ;;  %v13135_v29 = vld [vmem:[#allocation24_spill] sm:$0xff] }
 0x470   : > { %13128 = vst [vmem:[#allocation22_spill] sm:$0xff] %v9702_v63  ;;  %v9714_v33 = vpop.permute.xlu0 %3354  ;;  %v2602_v54 = vmul.f32 %v9435_v14, %v2531_v9  ;;  %7097 = vtanh.f32 %v9702_v63  ;;  %v9723_v48 = vpop.permute.xlu1 %3356  ;;  %v13136_v9 = vld [vmem:[#allocation26_spill] sm:$0xff] }
 0x471   : > { %13130 = vst [vmem:[#allocation19_spill] sm:$0xff] %v9710_v51  ;;  %13131 = vst [vmem:[#allocation54_spill] sm:$0xff] %v9714_v33  ;;  %v2603_v33 = vmul.f32 %v9435_v14, %v2532_v11  ;;  %v9730_v5 = vadd.f32 %v9441_v41, %v2601_v27  ;;  %7099 = vtanh.f32 %v9710_v51  ;;  %v13140_v51 = vld [vmem:[#allocation23_spill] sm:$0xff] }
 0x472   : > { %13134 = vst [vmem:[#allocation55_spill] sm:$0xff] %v9723_v48  ;;  %v2604_v48 = vmul.f32 %v9435_v14, %v2533_v59  ;;  %v9738_v63 = vadd.f32 %v9441_v41, %v2602_v54  ;;  %v13141_v54 = vld [vmem:[#allocation25_spill] sm:$0xff] }
 0x473   : > { %v7084_v24 = vpop.eup %7083  ;;  %v9750_v59 = vadd.f32 %v9441_v41, %v2603_v33  ;;  %v2538_v33 = vmul.f32 %v9526_v53, %v9205_v18 }
 0x474   : > { %v7086_v50 = vpop.eup %7085  ;;  %3622 = vrot.lane.b32.xlu0 %v7084_v24, %s7735_s22  ;;  %v9720_v24 = vadd.f32 %v9441_v41, %v2600_v47  ;;  %v2535_v47 = vmul.f32 %v9526_v53, %v13136_v9  ;;  %13137 = vst [vmem:[#allocation24_spill] sm:$0xff] %v9738_v63  ;;  %v9741_v11 = vpop.permute.xlu0 %3358 }
 0x475   : > { %3624 = vrot.lane.b32.xlu1 %v7086_v50, %s7735_s22  ;;  %v7088_v45 = vpop.eup %7087  ;;  %v2534_v50 = vmul.f32 %v9526_v53, %v13135_v29  ;;  %13138 = vst [vmem:[#allocation26_spill] sm:$0xff] %v9741_v11  ;;  %v9744_v27 = vpop.permute.xlu1 %3360 }
 0x476   : > { %13133 = vst [vmem:[#allocation21_spill] sm:$0xff] %v9720_v24  ;;  %v7090_v6 = vpop.eup %7089  ;;  %7101 = vtanh.f32 %v9720_v24  ;;  %13139 = vst [vmem:[#allocation56_spill] sm:$0xff] %v9744_v27  ;;  %v2537_v24 = vmul.f32 %v9526_v53, %v13141_v54  ;;  %v2606_v11 = vmul.f32 %v9435_v14, %v2535_v47  ;;  %v13143_v47 = vld [vmem:[#allocation28_spill] sm:$0xff] }
 0x477   : > { %v7092_v29 = vpop.eup %7091  ;;  %v2605_v9 = vmul.f32 %v9435_v14, %v2534_v50  ;;  %7103 = vtanh.f32 %v9730_v5  ;;  %v2539_v54 = vmul.f32 %v9526_v53, %v13143_v47 }
 0x478   : > { %3626 = vrot.lane.b32.xlu0 %v7088_v45, %s7735_s22  ;;  %v7094_v45 = vpop.eup %7093  ;;  %7105 = vtanh.f32 %v9738_v63  ;;  %v2608_v63 = vmul.f32 %v9435_v14, %v2537_v24  ;;  %v2541_v24 = vmul.f32 %v9526_v53, %v9244_v23 }
 0x479   : > { %3628 = vrot.lane.b32.xlu1 %v7090_v6, %s7735_s22  ;;  %v2536_v6 = vmul.f32 %v9526_v53, %v13140_v51  ;;  %v7096_v51 = vpop.eup %7095  ;;  %7107 = vtanh.f32 %v9750_v59 }
 0x47a   : > { %v7098_v27 = vpop.eup %7097 }
 0x47b   : > { %v2607_v50 = vmul.f32 %v9435_v14, %v2536_v6  ;;  %v7100_v18 = vpop.eup %7099  ;;  %v9779_v6 = vpop.permute.xlu1 %3364 }
 0x47c   : > { %3630 = vrot.lane.b32.xlu0 %v7092_v29, %s7735_s22  ;;  %v9758_v29 = vadd.f32 %v9441_v41, %v2604_v48  ;;  %v9770_v48 = vpop.permute.xlu0 %3362  ;;  %13144 = vst [vmem:[#allocation25_spill] sm:$0xff] %v9779_v6  ;;  %v9794_v6 = vadd.f32 %v9441_v41, %v2608_v63  ;;  %v2543_v63 = vmul.f32 %v9526_v53, %v9270_v43 }
 0x47d   : > { %3632 = vrot.lane.b32.xlu1 %v7094_v45, %s7735_s22  ;;  %v9766_v45 = vadd.f32 %v9441_v41, %v2605_v9  ;;  %13142 = vst [vmem:[#allocation23_spill] sm:$0xff] %v9770_v48  ;;  %v2609_v48 = vmul.f32 %v9435_v14, %v2538_v33  ;;  %v9786_v47 = vadd.f32 %v9441_v41, %v2607_v50 }
 0x47e   : > { %7109 = vtanh.f32 %v9758_v29 }
 0x47f   : > { %7111 = vtanh.f32 %v9766_v45  ;;  %v9800_v50 = vpop.permute.xlu1 %3368 }
 0x480   : > { %3634 = vrot.lane.b32.xlu0 %v7096_v51, %s7735_s22  ;;  %v9776_v51 = vadd.f32 %v9441_v41, %v2606_v11  ;;  %v7102_v9 = vpop.eup %7101  ;;  %v2610_v11 = vmul.f32 %v9435_v14, %v2539_v54  ;;  %v9797_v33 = vpop.permute.xlu0 %3366  ;;  %13146 = vst [vmem:[#allocation57_spill] sm:$0xff] %v9800_v50  ;;  %v9806_v54 = vadd.f32 %v9441_v41, %v2609_v48 }
 0x481   : > { %3636 = vrot.lane.b32.xlu1 %v7098_v27, %s7735_s22  ;;  %v2540_v27 = vmul.f32 %v9526_v53, %v9231_v13  ;;  %v7104_v13 = vpop.eup %7103  ;;  %13145 = vst [vmem:[#allocation28_spill] sm:$0xff] %v9797_v33  ;;  %v2612_v33 = vmul.f32 %v9435_v14, %v2541_v24  ;;  %v2544_v48 = vmul.f32 %v9526_v53, %v9283_v15 }
 0x482   : > { %7113 = vtanh.f32 %v9776_v51  ;;  %v2545_v24 = vmul.f32 %v9526_v53, %v9296_v44 }
 0x483   : > { %v2611_v23 = vmul.f32 %v9435_v14, %v2540_v27  ;;  %7115 = vtanh.f32 %v9786_v47 }
 0x484   : > { %3638 = vrot.lane.b32.xlu0 %v7100_v18, %s7735_s22  ;;  %v7106_v18 = vpop.eup %7105  ;;  %7117 = vtanh.f32 %v9794_v6  ;;  %v9826_v43 = vpop.permute.xlu0 %3370 }
 0x485   : > { %3640 = vrot.lane.b32.xlu1 %v7102_v9, %s7735_s22  ;;  %v2542_v9 = vmul.f32 %v9526_v53, %v9257_v17  ;;  %v7108_v17 = vpop.eup %7107  ;;  %7119 = vtanh.f32 %v9806_v54  ;;  %13147 = vst [vmem:[#allocation58_spill] sm:$0xff] %v9826_v43  ;;  %v2615_v43 = vmul.f32 %v9435_v14, %v2544_v48 }
 0x487   : > { %v2613_v27 = vmul.f32 %v9435_v14, %v2542_v9  ;;  %v9835_v9 = vpop.permute.xlu1 %3372 }
 0x488   : > { %3642 = vrot.lane.b32.xlu0 %v7104_v13, %s7735_s22  ;;  %v9814_v13 = vadd.f32 %v9441_v41, %v2610_v11  ;;  %v7110_v50 = vpop.eup %7109  ;;  %v2614_v11 = vmul.f32 %v9435_v14, %v2543_v63  ;;  %13148 = vst [vmem:[#allocation59_spill] sm:$0xff] %v9835_v9  ;;  %v2616_v63 = vmul.f32 %v9435_v14, %v2545_v24  ;;  %v9853_v48 = vpop.permute.xlu0 %3374 }
 0x489   : > { %3644 = vrot.lane.b32.xlu1 %v7106_v18, %s7735_s22  ;;  %v9822_v18 = vadd.f32 %v9441_v41, %v2611_v23  ;;  %v7112_v15 = vpop.eup %7111  ;;  %v9842_v44 = vadd.f32 %v9441_v41, %v2613_v27  ;;  %13150 = vst [vmem:[#allocation61_spill] sm:$0xff] %v9853_v48  ;;  %v2548_v27 = vmul.f32 %v9526_v53, %v9335_v20 }
 0x48a   : > { %7121 = vtanh.f32 %v9814_v13  ;;  %v9850_v9 = vadd.f32 %v9441_v41, %v2614_v11  ;;  %v9862_v24 = vadd.f32 %v9441_v41, %v2615_v43  ;;  %v2549_v11 = vmul.f32 %v9526_v53, %v9348_v34  ;;  %v13153_v34 = vld [vmem:[#allocation30_spill] sm:$0xff] }
 0x48b   : > { %7123 = vtanh.f32 %v9822_v18  ;;  %v2550_v43 = vmul.f32 %v9526_v53, %v9361_v28 }
 0x48c   : > { %3646 = vrot.lane.b32.xlu0 %v7108_v17, %s7735_s22  ;;  %v9832_v17 = vadd.f32 %v9441_v41, %v2612_v33  ;;  %v7114_v23 = vpop.eup %7113  ;;  %v2547_v33 = vmul.f32 %v9526_v53, %v9322_v7  ;;  %13149 = vst [vmem:[#allocation60_spill] sm:$0xff] %v9850_v9  ;;  %13152 = vst [vmem:[#allocation63_spill] sm:$0xff] %v9862_v24  ;;  %v9889_v28 = vpop.permute.xlu0 %3378 }
 0x48d   : > { %3648 = vrot.lane.b32.xlu1 %v7110_v50, %s7735_s22  ;;  %v2546_v50 = vmul.f32 %v9526_v53, %v9309_v22  ;;  %v7116_v22 = vpop.eup %7115  ;;  %13154 = vst [vmem:[#allocation30_spill] sm:$0xff] %v9889_v28  ;;  %v13185_v28 = vld [vmem:[#allocation52_spill] sm:$0xff] }
 0x48e   : > { %7125 = vtanh.f32 %v9832_v17  ;;  %v2618_v48 = vmul.f32 %v9435_v14, %v2547_v33  ;;  %v2551_v33 = vmul.f32 %v9526_v53, %v13153_v34 }
 0x48f   : > { %v2617_v7 = vmul.f32 %v9435_v14, %v2546_v50  ;;  %7127 = vtanh.f32 %v9842_v44  ;;  %v2619_v50 = vmul.f32 %v9435_v14, %v2548_v27 }
 0x490   : > { %3650 = vrot.lane.b32.xlu0 %v7112_v15, %s7735_s22  ;;  %v7118_v15 = vpop.eup %7117  ;;  %7129 = vtanh.f32 %v9850_v9  ;;  %v9886_v9 = vadd.f32 %v9441_v41, %v2618_v48  ;;  %v2622_v53 = vmul.f32 %v9435_v14, %v2551_v33 }
 0x491   : > { %3652 = vrot.lane.b32.xlu1 %v7114_v23, %s7735_s22  ;;  %v9858_v23 = vpop.permute.xlu1 %3376  ;;  %v7120_v20 = vpop.eup %7119  ;;  %7131 = vtanh.f32 %v9862_v24  ;;  %v9896_v24 = vadd.f32 %v9441_v41, %v2619_v50 }
 0x492   : > { %13151 = vst [vmem:[#allocation62_spill] sm:$0xff] %v9858_v23 }
 0x494   : > { %3654 = vrot.lane.b32.xlu0 %v7116_v22, %s7735_s22  ;;  %v9870_v22 = vadd.f32 %v9441_v41, %v2616_v63  ;;  %v7122_v23 = vpop.eup %7121  ;;  %v2620_v63 = vmul.f32 %v9435_v14, %v2549_v11 }
 0x495   : > { %3656 = vrot.lane.b32.xlu1 %v7118_v15, %s7735_s22  ;;  %v9878_v15 = vadd.f32 %v9441_v41, %v2617_v7  ;;  %v7124_v27 = vpop.eup %7123 }
 0x496   : > { %7133 = vtanh.f32 %v9870_v22  ;;  %v9902_v48 = vadd.f32 %v9441_v41, %v2620_v63 }
 0x497   : > { %7135 = vtanh.f32 %v9878_v15 }
 0x498   : > { %3658 = vrot.lane.b32.xlu0 %v7120_v20, %s7735_s22  ;;  %v9891_v20 = vpop.permute.xlu1 %3380  ;;  %v7126_v7 = vpop.eup %7125  ;;  %7137 = vtanh.f32 %v9886_v9 }
 0x499   : > { %3660 = vrot.lane.b32.xlu1 %v7122_v23, %s7735_s22  ;;  %13155 = vst [vmem:[#allocation64_spill] sm:$0xff] %v9891_v20  ;;  %v2621_v23 = vmul.f32 %v9435_v14, %v2550_v43  ;;  %v7128_v11 = vpop.eup %7127  ;;  %v9905_v20 = vpop.permute.xlu0 %3382  ;;  %7139 = vtanh.f32 %v9896_v24  ;;  %v9916_v14 = vadd.f32 %v9441_v41, %v2622_v53 }
 0x49a   : > { %v7130_v34 = vpop.eup %7129  ;;  %13156 = vst [vmem:[#allocation65_spill] sm:$0xff] %v9905_v20  ;;  %7141 = vtanh.f32 %v9902_v48 }
 0x49b   : > { %v9909_v43 = vadd.f32 %v9441_v41, %v2621_v23  ;;  %v7132_v33 = vpop.eup %7131 }
 0x49c   : > { %3662 = vrot.lane.b32.xlu0 %v7124_v27, %s7735_s22  ;;  %v9912_v50 = vpop.permute.xlu1 %3384 }
 0x49d   : > { %3664 = vrot.lane.b32.xlu1 %v7126_v7, %s7735_s22  ;;  %13157 = vst [vmem:[#allocation66_spill] sm:$0xff] %v9912_v50  ;;  %7143 = vtanh.f32 %v9909_v43  ;;  %v9923_v27 = vpop.permute.xlu0 %3386  ;;  %v13184_v50 = vld [vmem:[#allocation19_spill] sm:$0xff] }
 0x49e   : > { %7145 = vtanh.f32 %v9916_v14  ;;  %13158 = vst [vmem:[#allocation67_spill] sm:$0xff] %v9923_v27  ;;  %v6059_v20 = vmul.f32 -1.442695, %v13184_v50 }
 0x49f   : > { %7147 = vtanh.f32 %v9556_v26 }
 0x4a0   : > { %3666 = vrot.lane.b32.xlu0 %v7128_v11, %s7735_s22  ;;  %v7134_v63 = vpop.eup %7133  ;;  %v9925_v23 = vpop.permute.xlu1 %3388  ;;  %7149 = vtanh.f32 %v9559_v0 }
 0x4a1   : > { %3668 = vrot.lane.b32.xlu1 %v7130_v34, %s7735_s22  ;;  %v7136_v7 = vpop.eup %7135  ;;  %13159 = vst [vmem:[#allocation68_spill] sm:$0xff] %v9925_v23  ;;  %v9931_v34 = vpop.permute.xlu0 %3390  ;;  %7151 = vtanh.f32 %v9562_v4 }
 0x4a2   : > { %v7138_v11 = vpop.eup %7137  ;;  %13160 = vst [vmem:[#allocation69_spill] sm:$0xff] %v9931_v34  ;;  %7153 = vtanh.f32 %v9565_v42 }
 0x4a3   : > { %v7140_v41 = vpop.eup %7139  ;;  %7155 = vtanh.f32 %v9529_v55 }
 0x4a4   : > { %3670 = vrot.lane.b32.xlu0 %v7132_v33, %s7735_s22  ;;  %v7142_v53 = vpop.eup %7141  ;;  %v9935_v33 = vpop.permute.xlu1 %3392  ;;  %7157 = vtanh.f32 %v9456_v8 }
 0x4a5   : > { %3672 = vrot.lane.b32.xlu1 %v7134_v63, %s7735_s22  ;;  %13161 = vst [vmem:[#allocation70_spill] sm:$0xff] %v9935_v33  ;;  %7159 = vtanh.f32 %v9568_v12 }
 0x4a6   : > { %7161 = vtanh.f32 %v9571_v36 }
 0x4a7   : > { %v7144_v63 = vpop.eup %7143  ;;  %7163 = vtanh.f32 %v9574_v46 }
 0x4a8   : > { %3674 = vrot.lane.b32.xlu0 %v7136_v7, %s7735_s22  ;;  %v7146_v7 = vpop.eup %7145  ;;  %v9945_v34 = vpop.permute.xlu1 %3396  ;;  %7165 = vtanh.f32 %v9577_v35 }
 0x4a9   : > { %3676 = vrot.lane.b32.xlu1 %v7138_v11, %s7735_s22  ;;  %v9943_v11 = vpop.permute.xlu0 %3394  ;;  %13163 = vst [vmem:[#allocation72_spill] sm:$0xff] %v9945_v34  ;;  %7167 = vtanh.f32 %v9580_v16 }
 0x4aa   : > { %13162 = vst [vmem:[#allocation71_spill] sm:$0xff] %v9943_v11  ;;  %7169 = vtanh.f32 %v9583_v56 }
 0x4ab   : > { %7171 = vtanh.f32 %v9586_v58 }
 0x4ac   : > { %3678 = vrot.lane.b32.xlu0 %v7140_v41, %s7735_s22  ;;  %v7148_v41 = vpop.eup %7147  ;;  %7173 = vtanh.f32 %v9589_v25 }
 0x4ad   : > { %3680 = vrot.lane.b32.xlu1 %v7142_v53, %s7735_s22  ;;  %v7150_v33 = vpop.eup %7149  ;;  %v9951_v23 = vpop.permute.xlu0 %3398  ;;  %7175 = vtanh.f32 %v9592_v38 }
 0x4ae   : > { %v7152_v53 = vpop.eup %7151  ;;  %13164 = vst [vmem:[#allocation73_spill] sm:$0xff] %v9951_v23  ;;  %7177 = vtanh.f32 %v9595_v19 }
 0x4af   : > { %7179 = vtanh.f32 %v9601_v40 }
 0x4b0   : > { %3682 = vrot.lane.b32.xlu0 %v7144_v63, %s7735_s22  ;;  %v7154_v63 = vpop.eup %7153  ;;  %7181 = vtanh.f32 %v9604_v3 }
 0x4b1   : > { %3684 = vrot.lane.b32.xlu1 %v7146_v7, %s7735_s22  ;;  %v9955_v7 = vpop.permute.xlu1 %3400  ;;  %7183 = vtanh.f32 %v9607_v60 }
 0x4b2   : > { %13165 = vst [vmem:[#allocation74_spill] sm:$0xff] %v9955_v7  ;;  %7185 = vtanh.f32 %v9612_v30 }
 0x4b4   : > { %3686 = vrot.lane.b32.xlu0 %v7148_v41, %s7735_s22  ;;  %v7156_v41 = vpop.eup %7155  ;;  %7187 = vtanh.f32 %v9615_v61 }
 0x4b5   : > { %3688 = vrot.lane.b32.xlu1 %v7150_v33, %s7735_s22  ;;  %v7158_v34 = vpop.eup %7157  ;;  %v9963_v33 = vpop.permute.xlu0 %3402  ;;  %7189 = vtanh.f32 %v9618_v52 }
 0x4b6   : > { %13166 = vst [vmem:[#allocation75_spill] sm:$0xff] %v9963_v33  ;;  %v9965_v23 = vpop.permute.xlu1 %3404 }
 0x4b7   : > { %13167 = vst [vmem:[#allocation76_spill] sm:$0xff] %v9965_v23 }
 0x4b8   : > { %3690 = vrot.lane.b32.xlu0 %v7152_v53, %s7735_s22  ;;  %v7160_v53 = vpop.eup %7159 }
 0x4b9   : > { %3692 = vrot.lane.b32.xlu1 %v7154_v63, %s7735_s22  ;;  %v7162_v7 = vpop.eup %7161  ;;  %v9971_v11 = vpop.permute.xlu0 %3406 }
 0x4ba   : > { %v7164_v63 = vpop.eup %7163  ;;  %13168 = vst [vmem:[#allocation77_spill] sm:$0xff] %v9971_v11 }
 0x4bc   : > { %3694 = vrot.lane.b32.xlu0 %v7156_v41, %s7735_s22  ;;  %v7166_v41 = vpop.eup %7165 }
 0x4bd   : > { %3696 = vrot.lane.b32.xlu1 %v7158_v34, %s7735_s22  ;;  %v9975_v34 = vpop.permute.xlu1 %3408 }
 0x4be   : > { %13169 = vst [vmem:[#allocation78_spill] sm:$0xff] %v9975_v34 }
 0x4c0   : > { %3698 = vrot.lane.b32.xlu0 %v7160_v53, %s7735_s22  ;;  %v7168_v53 = vpop.eup %7167 }
 0x4c1   : > { %3700 = vrot.lane.b32.xlu1 %v7162_v7, %s7735_s22  ;;  %v7170_v23 = vpop.eup %7169  ;;  %v9983_v7 = vpop.permute.xlu0 %3410 }
 0x4c2   : > { %13170 = vst [vmem:[#allocation79_spill] sm:$0xff] %v9983_v7  ;;  %v9985_v11 = vpop.permute.xlu1 %3412  ;;  %v6051_v7 = vmul.f32 -1.442695, %v9598_v10  ;;  %v6053_v10 = vmul.f32 -1.442695, %v9659_v49 }
 0x4c3   : > { %13171 = vst [vmem:[#allocation80_spill] sm:$0xff] %v9985_v11  ;;  %v6056_v49 = vmul.f32 -1.442695, %v9684_v57  ;;  %v13181_v57 = vld [vmem:[#allocation22_spill] sm:$0xff] }
 0x4c4   : > { %3702 = vrot.lane.b32.xlu0 %v7164_v63, %s7735_s22  ;;  %v7172_v63 = vpop.eup %7171 }
 0x4c5   : > { %3704 = vrot.lane.b32.xlu1 %v7166_v41, %s7735_s22  ;;  %v7174_v34 = vpop.eup %7173  ;;  %v9992_v33 = vpop.permute.xlu0 %3414 }
 0x4c6   : > { %v7176_v41 = vpop.eup %7175  ;;  %13172 = vst [vmem:[#allocation81_spill] sm:$0xff] %v9992_v33  ;;  %v9996_v11 = vpop.permute.xlu1 %3416 }
 0x4c7   : > { %13173 = vst [vmem:[#allocation82_spill] sm:$0xff] %v9996_v11 }
 0x4c8   : > { %3706 = vrot.lane.b32.xlu0 %v7168_v53, %s7735_s22  ;;  %v7178_v53 = vpop.eup %7177 }
 0x4c9   : > { %3708 = vrot.lane.b32.xlu1 %v7170_v23, %s7735_s22  ;;  %v6087_v23 = vmul.f32 -1.442695, %v9529_v55  ;;  %v6052_v55 = vmul.f32 -1.442695, %v9626_v1  ;;  %v6054_v1 = vmul.f32 -1.442695, %v9668_v37 }
 0x4ca   : > { %v10009_v11 = vpop.permute.xlu1 %3420 }
 0x4cb   : > { %7191 = vpow2.f32 %v6087_v23  ;;  %13175 = vst [vmem:[#allocation84_spill] sm:$0xff] %v10009_v11 }
 0x4cc   : > { %3710 = vrot.lane.b32.xlu0 %v7172_v63, %s7735_s22  ;;  %v7180_v63 = vpop.eup %7179  ;;  %7193 = vtanh.f32 %v9621_v62 }
 0x4cd   : > { %3712 = vrot.lane.b32.xlu1 %v7174_v34, %s7735_s22  ;;  %v7182_v34 = vpop.eup %7181  ;;  %7195 = vtanh.f32 %v9629_v31 }
 0x4ce   : > { %7197 = vtanh.f32 %v9632_v39  ;;  %v10022_v37 = vpop.permute.xlu1 %3424 }
 0x4cf   : > { %7199 = vpow2.f32 %v6051_v7  ;;  %13177 = vst [vmem:[#allocation86_spill] sm:$0xff] %v10022_v37  ;;  %v13182_v37 = vld [vmem:[#allocation51_spill] sm:$0xff] }
 0x4d0   : > { %3714 = vrot.lane.b32.xlu0 %v7176_v41, %s7735_s22  ;;  %v10006_v41 = vpop.permute.xlu0 %3418  ;;  %7201 = vpow2.f32 %v6052_v55  ;;  %v13178_v55 = vld [vmem:[#allocation49_spill] sm:$0xff] }
 0x4d1   : > { %3716 = vrot.lane.b32.xlu1 %v7178_v53, %s7735_s22  ;;  %13174 = vst [vmem:[#allocation83_spill] sm:$0xff] %v10006_v41  ;;  %v7184_v53 = vpop.eup %7183  ;;  %7203 = vtanh.f32 %v9635_v21  ;;  %v6055_v41 = vmul.f32 -1.442695, %v9677_v2 }
 0x4d2   : > { %v7186_v23 = vpop.eup %7185  ;;  %7205 = vtanh.f32 %v9638_v32 }
 0x4d3   : > { %7207 = vpow2.f32 %v6053_v10  ;;  %v13180_v10 = vld [vmem:[#allocation39_spill] sm:$0xff] }
 0x4d4   : > { %3718 = vrot.lane.b32.xlu0 %v7180_v63, %s7735_s22  ;;  %v7188_v63 = vpop.eup %7187  ;;  %v10018_v11 = vpop.permute.xlu0 %3422  ;;  %7209 = vpow2.f32 %v6054_v1  ;;  %v6057_v33 = vmul.f32 -1.442695, %v13180_v10  ;;  %v6058_v1 = vmul.f32 -1.442695, %v13181_v57 }
 0x4d5   : > { %3720 = vrot.lane.b32.xlu1 %v7182_v34, %s7735_s22  ;;  %v7190_v34 = vpop.eup %7189  ;;  %13176 = vst [vmem:[#allocation85_spill] sm:$0xff] %v10018_v11  ;;  %7211 = vtanh.f32 %v13178_v55  ;;  %v10038_v10 = vpop.permute.xlu1 %3428 }
 0x4d6   : > { %v10025_v7 = vpop.eup %7191  ;;  %13186 = vst [vmem:[#allocation22_spill] sm:$0xff] %v10038_v10 }
 0x4d8   : > { %3722 = vrot.lane.b32.xlu0 %v7184_v53, %s7735_s22  ;;  %v7194_v53 = vpop.eup %7193  ;;  %v10034_v11 = vpop.permute.xlu0 %3426 }
 0x4d9   : > { %3724 = vrot.lane.b32.xlu1 %v7186_v23, %s7735_s22  ;;  %v13179_v23 = vld [vmem:[#allocation50_spill] sm:$0xff]  ;;  %v7196_v2 = vpop.eup %7195  ;;  %13183 = vst [vmem:[#allocation39_spill] sm:$0xff] %v10034_v11  ;;  %v13188_v11 = vld [vmem:[#allocation53_spill] sm:$0xff] }
 0x4da   : > { %7213 = vtanh.f32 %v13179_v23 }
 0x4db   : > { %7215 = vpow2.f32 %v6055_v41 }
 0x4dc   : > { %3726 = vrot.lane.b32.xlu0 %v7188_v63, %s7735_s22  ;;  %v7198_v63 = vpop.eup %7197  ;;  %7217 = vpow2.f32 %v6056_v49 }
 0x4dd   : > { %3728 = vrot.lane.b32.xlu1 %v7190_v34, %s7735_s22  ;;  %v7200_v34 = vpop.eup %7199  ;;  %7219 = vtanh.f32 %v13182_v37 }
 0x4de   : > { %v7202_v27 = vpop.eup %7201  ;;  %7221 = vtanh.f32 %v13185_v28  ;;  %v6061_v28 = vmul.f32 -1.442695, %v9730_v5  ;;  %v6063_v5 = vmul.f32 -1.442695, %v9750_v59  ;;  %v6065_v59 = vmul.f32 -1.442695, %v9766_v45 }
 0x4df   : > { %v7204_v41 = vpop.eup %7203  ;;  %7223 = vpow2.f32 %v6057_v33  ;;  %v2919_v37 = vadd.f32 1.0, %v7202_v27  ;;  %v6067_v45 = vmul.f32 -1.442695, %v9786_v47 }
 0x4e0   : > { %3730 = vrot.lane.b32.xlu0 %v7194_v53, %s7735_s22  ;;  %v13187_v53 = vld [vmem:[#allocation21_spill] sm:$0xff]  ;;  %v7206_v49 = vpop.eup %7205  ;;  %7225 = vpow2.f32 %v6058_v1 }
 0x4e1   : > { %3732 = vrot.lane.b32.xlu1 %v7196_v2, %s7735_s22  ;;  %v6060_v23 = vmul.f32 -1.442695, %v13187_v53  ;;  %v2918_v2 = vadd.f32 1.0, %v7200_v34  ;;  %v7208_v57 = vpop.eup %7207  ;;  %7227 = vtanh.f32 %v13188_v11  ;;  %v13189_v53 = vld [vmem:[#allocation24_spill] sm:$0xff] }
 0x4e2   : > { %v7210_v55 = vpop.eup %7209  ;;  %7229 = vpow2.f32 %v6059_v20  ;;  %v6062_v33 = vmul.f32 -1.442695, %v13189_v53  ;;  %v2920_v1 = vadd.f32 1.0, %v7208_v57  ;;  %v6064_v53 = vmul.f32 -1.442695, %v9758_v29 }
 0x4e3   : > { %v7212_v32 = vpop.eup %7211  ;;  %7231 = vpow2.f32 %v6060_v23  ;;  %v6066_v29 = vmul.f32 -1.442695, %v9776_v51  ;;  %v6068_v51 = vmul.f32 -1.442695, %v9794_v6 }
 0x4e4   : > { %3734 = vrot.lane.b32.xlu0 %v7198_v63, %s7735_s22  ;;  %v7214_v63 = vpop.eup %7213  ;;  %7233 = vrcp.f32 %v2918_v2 }
 0x4e5   : > { %3736 = vrot.lane.b32.xlu1 %v7204_v41, %s7735_s22  ;;  %v7216_v34 = vpop.eup %7215  ;;  %v2921_v41 = vadd.f32 1.0, %v7210_v55  ;;  %7235 = vrcp.f32 %v2919_v37 }
 0x4e6   : > { %v3623_v50 = vpop.permute.xlu0 %3622  ;;  %v7218_v11 = vpop.eup %7217  ;;  %7237 = vpow2.f32 %v6061_v28 }
 0x4e7   : > { %v3625_v10 = vpop.permute.xlu1 %3624  ;;  %v7220_v21 = vpop.eup %7219  ;;  %7239 = vpow2.f32 %v6062_v33  ;;  %v2923_v55 = vadd.f32 1.0, %v7218_v11 }
 0x4e8   : > { %3738 = vrot.lane.b32.xlu0 %v7206_v49, %s7735_s22  ;;  %v7222_v23 = vpop.eup %7221  ;;  %v2922_v49 = vadd.f32 1.0, %v7216_v34  ;;  %7241 = vrcp.f32 %v2920_v1 }
 0x4e9   : > { %3740 = vrot.lane.b32.xlu1 %v7212_v32, %s7735_s22  ;;  %v7224_v32 = vpop.eup %7223  ;;  %7243 = vrcp.f32 %v2921_v41 }
 0x4ea   : > { %v3627_v27 = vpop.permute.xlu0 %3626  ;;  %v7226_v2 = vpop.eup %7225  ;;  %7245 = vpow2.f32 %v6063_v5 }
 0x4eb   : > { %v3629_v20 = vpop.permute.xlu1 %3628  ;;  %v7228_v57 = vpop.eup %7227  ;;  %7247 = vpow2.f32 %v6064_v53  ;;  %v2925_v11 = vadd.f32 1.0, %v7226_v2 }
 0x4ec   : > { %3742 = vrot.lane.b32.xlu0 %v7214_v63, %s7735_s22  ;;  %v7230_v33 = vpop.eup %7229  ;;  %v2924_v63 = vadd.f32 1.0, %v7224_v32  ;;  %7249 = vrcp.f32 %v2922_v49 }
 0x4ed   : > { %3744 = vrot.lane.b32.xlu1 %v7220_v21, %s7735_s22  ;;  %v7232_v21 = vpop.eup %7231  ;;  %7251 = vrcp.f32 %v2923_v55  ;;  %v2926_v49 = vadd.f32 1.0, %v7230_v33 }
 0x4ee   : > { %v3631_v37 = vpop.permute.xlu0 %3630  ;;  %v10056_v34 = vpop.eup %7233  ;;  %7253 = vpow2.f32 %v6065_v59  ;;  %v2927_v2 = vadd.f32 1.0, %v7232_v21 }
 0x4ef   : > { %v3633_v28 = vpop.permute.xlu1 %3632  ;;  %13190 = vst [vmem:[#allocation19_spill] sm:$0xff] %v10056_v34  ;;  %v10059_v5 = vpop.eup %7235  ;;  %7255 = vpow2.f32 %v6066_v29  ;;  %v3814_v53 = vmul.f32 %v10056_v34, %v3623_v50  ;;  %v6070_v29 = vmul.f32 -1.442695, %v9814_v13 }
 0x4f0   : > { %3746 = vrot.lane.b32.xlu0 %v7222_v23, %s7735_s22  ;;  %13191 = vst [vmem:[#allocation21_spill] sm:$0xff] %v10059_v5  ;;  %v7238_v23 = vpop.eup %7237  ;;  %7257 = vrcp.f32 %v2924_v63  ;;  %v3815_v32 = vmul.f32 %v10059_v5, %v3625_v10 }
 0x4f1   : > { %3748 = vrot.lane.b32.xlu1 %v7228_v57, %s7735_s22  ;;  %v7240_v55 = vpop.eup %7239  ;;  %7259 = vrcp.f32 %v2925_v11  ;;  %v6069_v57 = vmul.f32 -1.442695, %v9806_v54  ;;  %v2928_v63 = vadd.f32 1.0, %v7238_v23 }
 0x4f2   : > { %v3635_v1 = vpop.permute.xlu0 %3634  ;;  %v10067_v59 = vpop.eup %7241  ;;  %7261 = vpow2.f32 %v6067_v45 }
 0x4f3   : > { %v3637_v41 = vpop.permute.xlu1 %3636  ;;  %13192 = vst [vmem:[#allocation24_spill] sm:$0xff] %v10067_v59  ;;  %v10071_v50 = vpop.eup %7243  ;;  %7263 = vpow2.f32 %v6068_v51  ;;  %v3816_v10 = vmul.f32 %v10067_v59, %v3627_v27  ;;  %v6072_v51 = vmul.f32 -1.442695, %v9832_v17 }
 0x4f4   : > { %3942 = vrot.lane.b32.xlu0 %v3814_v53, %s7735_s22  ;;  %13193 = vst [vmem:[#allocation87_spill] sm:$0xff] %v10071_v50  ;;  %v7246_v33 = vpop.eup %7245  ;;  %7265 = vrcp.f32 %v2926_v49  ;;  %v3817_v21 = vmul.f32 %v10071_v50, %v3629_v20  ;;  %v2929_v53 = vadd.f32 1.0, %v7240_v55 }
 0x4f5   : > { %3944 = vrot.lane.b32.xlu1 %v3815_v32, %s7735_s22  ;;  %v7248_v11 = vpop.eup %7247  ;;  %7267 = vrcp.f32 %v2927_v2  ;;  %v6071_v32 = vmul.f32 -1.442695, %v9822_v18  ;;  %v2930_v49 = vadd.f32 1.0, %v7246_v33 }
 0x4f6   : > { %v10065_v47 = vpop.permute.xlu0 %3638  ;;  %v10079_v45 = vpop.eup %7249  ;;  %7269 = vpow2.f32 %v6069_v57 }
 0x4f7   : > { %v3641_v6 = vpop.permute.xlu1 %3640  ;;  %13194 = vst [vmem:[#allocation88_spill] sm:$0xff] %v10079_v45  ;;  %v10083_v27 = vpop.eup %7251  ;;  %7271 = vpow2.f32 %v6070_v29  ;;  %v3818_v20 = vmul.f32 %v10079_v45, %v3631_v37  ;;  %v13198_v29 = vld [vmem:[#allocation60_spill] sm:$0xff] }
 0x4f8   : > { %3946 = vrot.lane.b32.xlu0 %v3816_v10, %s7735_s22  ;;  %13195 = vst [vmem:[#allocation89_spill] sm:$0xff] %v10083_v27  ;;  %v7254_v23 = vpop.eup %7253  ;;  %7273 = vrcp.f32 %v2928_v63  ;;  %v3819_v55 = vmul.f32 %v10083_v27, %v3633_v28  ;;  %v2931_v10 = vadd.f32 1.0, %v7248_v11  ;;  %v6074_v33 = vmul.f32 -1.442695, %v13198_v29 }
 0x4f9   : > { %3948 = vrot.lane.b32.xlu1 %v3817_v21, %s7735_s22  ;;  %v7256_v2 = vpop.eup %7255  ;;  %7275 = vrcp.f32 %v2929_v53  ;;  %v6073_v21 = vmul.f32 -1.442695, %v9842_v44  ;;  %v2932_v11 = vadd.f32 1.0, %v7254_v23  ;;  %v6076_v23 = vmul.f32 -1.442695, %v9870_v22 }
 0x4fa   : > { %v10077_v54 = vpop.permute.xlu0 %3642  ;;  %v10091_v57 = vpop.eup %7257  ;;  %7277 = vpow2.f32 %v6071_v32  ;;  %v2933_v27 = vadd.f32 1.0, %v7256_v2  ;;  %v6077_v22 = vmul.f32 -1.442695, %v9878_v15 }
 0x4fb   : > { %v3645_v13 = vpop.permute.xlu1 %3644  ;;  %13196 = vst [vmem:[#allocation90_spill] sm:$0xff] %v10091_v57  ;;  %v10095_v37 = vpop.eup %7259  ;;  %7279 = vpow2.f32 %v6072_v51  ;;  %v3820_v28 = vmul.f32 %v10091_v57, %v3635_v1 }
 0x4fc   : > { %3950 = vrot.lane.b32.xlu0 %v3818_v20, %s7735_s22  ;;  %13197 = vst [vmem:[#allocation91_spill] sm:$0xff] %v10095_v37  ;;  %v7262_v63 = vpop.eup %7261  ;;  %7281 = vrcp.f32 %v2930_v49  ;;  %v3821_v53 = vmul.f32 %v10095_v37, %v3637_v41 }
 0x4fd   : > { %3952 = vrot.lane.b32.xlu1 %v3819_v55, %s7735_s22  ;;  %v7264_v20 = vpop.eup %7263  ;;  %7283 = vrcp.f32 %v2931_v10  ;;  %v13200_v55 = vld [vmem:[#allocation63_spill] sm:$0xff]  ;;  %v2934_v2 = vadd.f32 1.0, %v7262_v63  ;;  %v6078_v63 = vmul.f32 -1.442695, %v9886_v9  ;;  %v6079_v9 = vmul.f32 -1.442695, %v9896_v24 }
 0x4fe   : > { %v10089_v18 = vpop.permute.xlu0 %3646  ;;  %v10103_v32 = vpop.eup %7265  ;;  %v6075_v45 = vmul.f32 -1.442695, %v13200_v55  ;;  %7285 = vpow2.f32 %v6073_v21 }
 0x4ff   : > { %v3649_v17 = vpop.permute.xlu1 %3648  ;;  %13199 = vst [vmem:[#allocation60_spill] sm:$0xff] %v10103_v32  ;;  %v10107_v51 = vpop.eup %7267  ;;  %7287 = vpow2.f32 %v6074_v33  ;;  %v3822_v41 = vmul.f32 %v10103_v32, %v10065_v47 }
 0x500   : > { %3954 = vrot.lane.b32.xlu0 %v3820_v28, %s7735_s22  ;;  %13201 = vst [vmem:[#allocation63_spill] sm:$0xff] %v10107_v51  ;;  %v7270_v49 = vpop.eup %7269  ;;  %7289 = vrcp.f32 %v2932_v11  ;;  %v3823_v10 = vmul.f32 %v10107_v51, %v3641_v6  ;;  %v2935_v28 = vadd.f32 1.0, %v7264_v20 }
 0x501   : > { %3956 = vrot.lane.b32.xlu1 %v3821_v53, %s7735_s22  ;;  %v7272_v29 = vpop.eup %7271  ;;  %7291 = vrcp.f32 %v2933_v27  ;;  %v2936_v11 = vadd.f32 1.0, %v7270_v49  ;;  %v6080_v49 = vmul.f32 -1.442695, %v9902_v48 }
 0x502   : > { %v10101_v44 = vpop.permute.xlu0 %3650  ;;  %v10116_v53 = vpop.eup %7273  ;;  %7293 = vpow2.f32 %v6075_v45 }
 0x503   : > { %v3653_v1 = vpop.permute.xlu1 %3652  ;;  %13202 = vst [vmem:[#allocation92_spill] sm:$0xff] %v10116_v53  ;;  %v10120_v33 = vpop.eup %7275  ;;  %7295 = vpow2.f32 %v6076_v23  ;;  %v3824_v6 = vmul.f32 %v10116_v53, %v10077_v54 }
 0x504   : > { %3958 = vrot.lane.b32.xlu0 %v3822_v41, %s7735_s22  ;;  %13203 = vst [vmem:[#allocation93_spill] sm:$0xff] %v10120_v33  ;;  %v7278_v27 = vpop.eup %7277  ;;  %7297 = vrcp.f32 %v2934_v2  ;;  %v3825_v20 = vmul.f32 %v10120_v33, %v3645_v13  ;;  %v2937_v41 = vadd.f32 1.0, %v7272_v29 }
 0x505   : > { %3960 = vrot.lane.b32.xlu1 %v3823_v10, %s7735_s22  ;;  %v7280_v55 = vpop.eup %7279  ;;  %7299 = vrcp.f32 %v2935_v28  ;;  %v2938_v10 = vadd.f32 1.0, %v7278_v27 }
 0x506   : > { %v10114_v21 = vpop.permute.xlu0 %3654  ;;  %v10129_v45 = vpop.eup %7281  ;;  %7301 = vpow2.f32 %v6077_v22 }
 0x507   : > { %v3657_v47 = vpop.permute.xlu1 %3656  ;;  %13204 = vst [vmem:[#allocation94_spill] sm:$0xff] %v10129_v45  ;;  %v10133_v23 = vpop.eup %7283  ;;  %7303 = vpow2.f32 %v6078_v63  ;;  %v3826_v13 = vmul.f32 %v10129_v45, %v10089_v18  ;;  %v6082_v63 = vmul.f32 -1.442695, %v9916_v14 }
 0x508   : > { %3962 = vrot.lane.b32.xlu0 %v3824_v6, %s7735_s22  ;;  %13205 = vst [vmem:[#allocation95_spill] sm:$0xff] %v10133_v23  ;;  %v7286_v2 = vpop.eup %7285  ;;  %7305 = vrcp.f32 %v2936_v11  ;;  %v3827_v29 = vmul.f32 %v10133_v23, %v3649_v17  ;;  %v2939_v6 = vadd.f32 1.0, %v7280_v55 }
 0x509   : > { %3964 = vrot.lane.b32.xlu1 %v3825_v20, %s7735_s22  ;;  %v7288_v28 = vpop.eup %7287  ;;  %7307 = vrcp.f32 %v2937_v41  ;;  %v6081_v20 = vmul.f32 -1.442695, %v9909_v43  ;;  %v2940_v11 = vadd.f32 1.0, %v7286_v2 }
 0x50a   : > { %v10127_v15 = vpop.permute.xlu0 %3658  ;;  %v10140_v22 = vpop.eup %7289  ;;  %7309 = vpow2.f32 %v6079_v9 }
 0x50b   : > { %v3661_v54 = vpop.permute.xlu1 %3660  ;;  %13206 = vst [vmem:[#allocation96_spill] sm:$0xff] %v10140_v22  ;;  %v10144_v18 = vpop.eup %7291  ;;  %7311 = vpow2.f32 %v6080_v49  ;;  %v3828_v17 = vmul.f32 %v10140_v22, %v10101_v44  ;;  %v6084_v49 = vmul.f32 -1.442695, %v9559_v0 }
 0x50c   : > { %3966 = vrot.lane.b32.xlu0 %v3826_v13, %s7735_s22  ;;  %13207 = vst [vmem:[#allocation97_spill] sm:$0xff] %v10144_v18  ;;  %v7294_v27 = vpop.eup %7293  ;;  %7313 = vrcp.f32 %v2938_v10  ;;  %v3829_v55 = vmul.f32 %v10144_v18, %v3653_v1  ;;  %v2941_v13 = vadd.f32 1.0, %v7288_v28 }
 0x50d   : > { %3968 = vrot.lane.b32.xlu1 %v3827_v29, %s7735_s22  ;;  %v7296_v41 = vpop.eup %7295  ;;  %7315 = vrcp.f32 %v2939_v6  ;;  %v6083_v29 = vmul.f32 -1.442695, %v9556_v26  ;;  %v2942_v10 = vadd.f32 1.0, %v7294_v27 }
 0x50e   : > { %v3663_v24 = vpop.permute.xlu0 %3662  ;;  %v10151_v9 = vpop.eup %7297  ;;  %7317 = vpow2.f32 %v6081_v20 }
 0x50f   : > { %v3665_v48 = vpop.permute.xlu1 %3664  ;;  %13208 = vst [vmem:[#allocation98_spill] sm:$0xff] %v10151_v9  ;;  %v10155_v44 = vpop.eup %7299  ;;  %7319 = vpow2.f32 %v6082_v63  ;;  %v3830_v1 = vmul.f32 %v10151_v9, %v10114_v21  ;;  %v6086_v63 = vmul.f32 -1.442695, %v9565_v42 }
 0x510   : > { %3970 = vrot.lane.b32.xlu0 %v3828_v17, %s7735_s22  ;;  %13209 = vst [vmem:[#allocation99_spill] sm:$0xff] %v10155_v44  ;;  %v7302_v2 = vpop.eup %7301  ;;  %7321 = vrcp.f32 %v2940_v11  ;;  %v3831_v28 = vmul.f32 %v10155_v44, %v3657_v47  ;;  %v2943_v17 = vadd.f32 1.0, %v7296_v41 }
 0x511   : > { %3972 = vrot.lane.b32.xlu1 %v3829_v55, %s7735_s22  ;;  %v7304_v6 = vpop.eup %7303  ;;  %7323 = vrcp.f32 %v2941_v13  ;;  %v6085_v55 = vmul.f32 -1.442695, %v9562_v4  ;;  %v2944_v11 = vadd.f32 1.0, %v7302_v2 }
 0x512   : > { %v3667_v43 = vpop.permute.xlu0 %3666  ;;  %v10162_v20 = vpop.eup %7305  ;;  %7325 = vpow2.f32 %v6083_v29 }
 0x513   : > { %v3669_v14 = vpop.permute.xlu1 %3668  ;;  %13210 = vst [vmem:[#allocation100_spill] sm:$0xff] %v10162_v20  ;;  %v10166_v21 = vpop.eup %7307  ;;  %7327 = vpow2.f32 %v6084_v49  ;;  %v3832_v47 = vmul.f32 %v10162_v20, %v10127_v15  ;;  %v6088_v15 = vmul.f32 -1.442695, %v9456_v8 }
 0x514   : > { %3974 = vrot.lane.b32.xlu0 %v3830_v1, %s7735_s22  ;;  %13211 = vst [vmem:[#allocation101_spill] sm:$0xff] %v10166_v21  ;;  %v7310_v27 = vpop.eup %7309  ;;  %7329 = vrcp.f32 %v2942_v10  ;;  %v3833_v41 = vmul.f32 %v10166_v21, %v3661_v54  ;;  %v2945_v1 = vadd.f32 1.0, %v7304_v6 }
 0x515   : > { %3976 = vrot.lane.b32.xlu1 %v3831_v28, %s7735_s22  ;;  %v7312_v13 = vpop.eup %7311  ;;  %7331 = vrcp.f32 %v2943_v17  ;;  %v2946_v10 = vadd.f32 1.0, %v7310_v27 }
 0x516   : > { %v3671_v26 = vpop.permute.xlu0 %3670  ;;  %v10173_v29 = vpop.eup %7313  ;;  %7333 = vpow2.f32 %v6085_v55  ;;  %v2947_v17 = vadd.f32 1.0, %v7312_v13 }
 0x517   : > { %v3673_v0 = vpop.permute.xlu1 %3672  ;;  %13212 = vst [vmem:[#allocation102_spill] sm:$0xff] %v10173_v29  ;;  %v10176_v49 = vpop.eup %7315  ;;  %7335 = vpow2.f32 %v6086_v63  ;;  %v3834_v2 = vmul.f32 %v10173_v29, %v3663_v24  ;;  %v6089_v24 = vmul.f32 -1.442695, %v9568_v12 }
 0x518   : > { %3978 = vrot.lane.b32.xlu0 %v3832_v47, %s7735_s22  ;;  %13213 = vst [vmem:[#allocation103_spill] sm:$0xff] %v10176_v49  ;;  %v7318_v54 = vpop.eup %7317  ;;  %7337 = vrcp.f32 %v2944_v11  ;;  %v3835_v28 = vmul.f32 %v10176_v49, %v3665_v48  ;;  %v6091_v49 = vmul.f32 -1.442695, %v9574_v46 }
 0x519   : > { %3980 = vrot.lane.b32.xlu1 %v3833_v41, %s7735_s22  ;;  %v7320_v6 = vpop.eup %7319  ;;  %7339 = vrcp.f32 %v2945_v1  ;;  %v6090_v41 = vmul.f32 -1.442695, %v9571_v36  ;;  %v2948_v11 = vadd.f32 1.0, %v7318_v54 }
 0x51a   : > { %v3675_v4 = vpop.permute.xlu0 %3674  ;;  %v10182_v47 = vpop.eup %7321  ;;  %7341 = vpow2.f32 %v6088_v15  ;;  %v6092_v15 = vmul.f32 -1.442695, %v9577_v35 }
 0x51b   : > { %v3677_v42 = vpop.permute.xlu1 %3676  ;;  %13214 = vst [vmem:[#allocation104_spill] sm:$0xff] %v10182_v47  ;;  %v10186_v63 = vpop.eup %7323  ;;  %v3836_v48 = vmul.f32 %v10182_v47, %v3667_v43  ;;  %7343 = vrcp.f32 %v2946_v10 }
 0x51c   : > { %3982 = vrot.lane.b32.xlu0 %v3834_v2, %s7735_s22  ;;  %13215 = vst [vmem:[#allocation105_spill] sm:$0xff] %v10186_v63  ;;  %v7326_v27 = vpop.eup %7325  ;;  %v3837_v13 = vmul.f32 %v10186_v63, %v3669_v14  ;;  %v2949_v2 = vadd.f32 1.0, %v7320_v6  ;;  %7345 = vrcp.f32 %v2947_v17 }
 0x51d   : > { %3984 = vrot.lane.b32.xlu1 %v3835_v28, %s7735_s22  ;;  %v7328_v1 = vpop.eup %7327  ;;  %7347 = vpow2.f32 %v6090_v41  ;;  %v2950_v10 = vadd.f32 1.0, %v7326_v27 }
 0x51e   : > { %v3679_v55 = vpop.permute.xlu0 %3678  ;;  %v10192_v28 = vpop.eup %7329  ;;  %7349 = vpow2.f32 %v6089_v24  ;;  %v6094_v24 = vmul.f32 -1.442695, %v9583_v56 }
 0x51f   : > { %v3681_v8 = vpop.permute.xlu1 %3680  ;;  %13216 = vst [vmem:[#allocation106_spill] sm:$0xff] %v10192_v28  ;;  %v10196_v43 = vpop.eup %7331  ;;  %v3838_v14 = vmul.f32 %v10192_v28, %v3671_v26  ;;  %7351 = vrcp.f32 %v2948_v11 }
 0x520   : > { %3986 = vrot.lane.b32.xlu0 %v3836_v48, %s7735_s22  ;;  %13217 = vst [vmem:[#allocation107_spill] sm:$0xff] %v10196_v43  ;;  %v7334_v54 = vpop.eup %7333  ;;  %v3839_v6 = vmul.f32 %v10196_v43, %v3673_v0  ;;  %v2951_v48 = vadd.f32 1.0, %v7328_v1  ;;  %7353 = vrcp.f32 %v2949_v2 }
 0x521   : > { %3988 = vrot.lane.b32.xlu1 %v3837_v13, %s7735_s22  ;;  %v7336_v17 = vpop.eup %7335  ;;  %v6093_v13 = vmul.f32 -1.442695, %v9580_v16  ;;  %7355 = vpow2.f32 %v6091_v49  ;;  %v2952_v27 = vadd.f32 1.0, %v7334_v54 }
 0x522   : > { %v3683_v36 = vpop.permute.xlu0 %3682  ;;  %v10202_v41 = vpop.eup %7337  ;;  %7357 = vpow2.f32 %v6092_v15  ;;  %v2953_v2 = vadd.f32 1.0, %v7336_v17  ;;  %v6095_v15 = vmul.f32 -1.442695, %v9586_v58  ;;  %v6097_v58 = vmul.f32 -1.442695, %v9592_v38 }
 0x523   : > { %v3685_v12 = vpop.permute.xlu1 %3684  ;;  %13218 = vst [vmem:[#allocation108_spill] sm:$0xff] %v10202_v41  ;;  %v10206_v26 = vpop.eup %7339  ;;  %v3840_v0 = vmul.f32 %v10202_v41, %v3675_v4  ;;  %7359 = vrcp.f32 %v2950_v10  ;;  %v6096_v10 = vmul.f32 -1.442695, %v9589_v25  ;;  %v6098_v25 = vmul.f32 -1.442695, %v9595_v19 }
 0x524   : > { %3990 = vrot.lane.b32.xlu0 %v3838_v14, %s7735_s22  ;;  %13219 = vst [vmem:[#allocation109_spill] sm:$0xff] %v10206_v26  ;;  %v3841_v11 = vmul.f32 %v10206_v26, %v3677_v42  ;;  %v7342_v1 = vpop.eup %7341  ;;  %7361 = vrcp.f32 %v2951_v48  ;;  %v2954_v14 = vadd.f32 1.0, %v10025_v7 }
 0x525   : > { %3992 = vrot.lane.b32.xlu1 %v3839_v6, %s7735_s22  ;;  %v10214_v49 = vpop.eup %7343  ;;  %7363 = vpow2.f32 %v6093_v13  ;;  %v2955_v48 = vadd.f32 1.0, %v7342_v1 }
 0x526   : > { %v3687_v46 = vpop.permute.xlu0 %3686  ;;  %13220 = vst [vmem:[#allocation110_spill] sm:$0xff] %v10214_v49  ;;  %v10218_v4 = vpop.eup %7345  ;;  %7365 = vpow2.f32 %v6094_v24  ;;  %v3842_v42 = vmul.f32 %v10214_v49, %v3679_v55 }
 0x527   : > { %v3689_v35 = vpop.permute.xlu1 %3688  ;;  %13221 = vst [vmem:[#allocation111_spill] sm:$0xff] %v10218_v4  ;;  %v7348_v54 = vpop.eup %7347  ;;  %7367 = vrcp.f32 %v2952_v27  ;;  %v3843_v6 = vmul.f32 %v10218_v4, %v3681_v8 }
 0x528   : > { %3994 = vrot.lane.b32.xlu0 %v3840_v0, %s7735_s22  ;;  %v7350_v17 = vpop.eup %7349  ;;  %7369 = vrcp.f32 %v2953_v2  ;;  %v2957_v2 = vadd.f32 1.0, %v7348_v54 }
 0x529   : > { %3996 = vrot.lane.b32.xlu1 %v3841_v11, %s7735_s22  ;;  %v10227_v13 = vpop.eup %7351  ;;  %7371 = vrcp.f32 %v2954_v14  ;;  %v2956_v27 = vadd.f32 1.0, %v7350_v17 }
 0x52a   : > { %v10212_v16 = vpop.permute.xlu0 %3690  ;;  %13222 = vst [vmem:[#allocation112_spill] sm:$0xff] %v10227_v13  ;;  %v10231_v24 = vpop.eup %7353  ;;  %7373 = vpow2.f32 %v6095_v15  ;;  %v3844_v8 = vmul.f32 %v10227_v13, %v3683_v36  ;;  %v6100_v15 = vmul.f32 -1.442695, %v9604_v3 }
 0x52b   : > { %v3693_v56 = vpop.permute.xlu1 %3692  ;;  %13223 = vst [vmem:[#allocation113_spill] sm:$0xff] %v10231_v24  ;;  %v7356_v0 = vpop.eup %7355  ;;  %7375 = vpow2.f32 %v6096_v10  ;;  %v3845_v11 = vmul.f32 %v10231_v24, %v3685_v12 }
 0x52c   : > { %3998 = vrot.lane.b32.xlu0 %v3842_v42, %s7735_s22  ;;  %v7358_v1 = vpop.eup %7357  ;;  %7377 = vrcp.f32 %v2955_v48  ;;  %v6099_v42 = vmul.f32 -1.442695, %v9601_v40  ;;  %v2958_v10 = vadd.f32 1.0, %v7356_v0 }
 0x52d   : > { %4000 = vrot.lane.b32.xlu1 %v3843_v6, %s7735_s22  ;;  %v10239_v14 = vpop.eup %7359  ;;  %7379 = vpow2.f32 %v6097_v58  ;;  %v2959_v48 = vadd.f32 1.0, %v7358_v1 }
 0x52e   : > { %v10225_v7 = vpop.permute.xlu0 %3694  ;;  %13224 = vst [vmem:[#allocation114_spill] sm:$0xff] %v10239_v14  ;;  %v10243_v36 = vpop.eup %7361  ;;  %7381 = vpow2.f32 %v6098_v25  ;;  %v3846_v12 = vmul.f32 %v10239_v14, %v3687_v46  ;;  %v6102_v25 = vmul.f32 -1.442695, %v9612_v30  ;;  %v6103_v30 = vmul.f32 -1.442695, %v9615_v61 }
 0x52f   : > { %v3697_v55 = vpop.permute.xlu1 %3696  ;;  %13225 = vst [vmem:[#allocation115_spill] sm:$0xff] %v10243_v36  ;;  %v7364_v54 = vpop.eup %7363  ;;  %7383 = vrcp.f32 %v2956_v27  ;;  %v3847_v6 = vmul.f32 %v10243_v36, %v3689_v35 }
 0x530   : > { %4002 = vrot.lane.b32.xlu0 %v3844_v8, %s7735_s22  ;;  %v7366_v17 = vpop.eup %7365  ;;  %7385 = vrcp.f32 %v2957_v2  ;;  %v6101_v8 = vmul.f32 -1.442695, %v9607_v60  ;;  %v2960_v27 = vadd.f32 1.0, %v7364_v54 }
 0x531   : > { %4004 = vrot.lane.b32.xlu1 %v3845_v11, %s7735_s22  ;;  %v10251_v58 = vpop.eup %7367  ;;  %7387 = vpow2.f32 %v6099_v42  ;;  %v2961_v60 = vadd.f32 1.0, %v7366_v17 }
 0x532   : > { %v10237_v38 = vpop.permute.xlu0 %3698  ;;  %13226 = vst [vmem:[#allocation116_spill] sm:$0xff] %v10251_v58  ;;  %v10255_v46 = vpop.eup %7369  ;;  %7389 = vpow2.f32 %v6100_v15  ;;  %v3848_v35 = vmul.f32 %v10251_v58, %v10212_v16 }
 0x533   : > { %v3701_v19 = vpop.permute.xlu1 %3700  ;;  %13227 = vst [vmem:[#allocation117_spill] sm:$0xff] %v10255_v46  ;;  %v10260_v0 = vpop.eup %7371  ;;  %7391 = vrcp.f32 %v2958_v10  ;;  %v3849_v11 = vmul.f32 %v10255_v46, %v3693_v56 }
 0x534   : > { %4006 = vrot.lane.b32.xlu0 %v3846_v12, %s7735_s22  ;;  %13228 = vst [vmem:[#allocation118_spill] sm:$0xff] %v10260_v0  ;;  %v7374_v1 = vpop.eup %7373  ;;  %7393 = vrcp.f32 %v2959_v48  ;;  %v6104_v12 = vmul.f32 -1.442695, %v9618_v52  ;;  %v3850_v56 = vmul.f32 %v10260_v0, %v10225_v7  ;;  %v6105_v52 = vmul.f32 -1.442695, %v9621_v62 }
 0x535   : > { %4008 = vrot.lane.b32.xlu1 %v3847_v6, %s7735_s22  ;;  %v7376_v42 = vpop.eup %7375  ;;  %7395 = vpow2.f32 %v6101_v8  ;;  %v2962_v10 = vadd.f32 1.0, %v7374_v1 }
 0x536   : > { %v10249_v40 = vpop.permute.xlu0 %3702  ;;  %v10268_v15 = vpop.eup %7377  ;;  %7397 = vpow2.f32 %v6102_v25  ;;  %v2963_v48 = vadd.f32 1.0, %v7376_v42 }
 0x537   : > { %v3705_v3 = vpop.permute.xlu1 %3704  ;;  %13229 = vst [vmem:[#allocation119_spill] sm:$0xff] %v10268_v15  ;;  %v7380_v54 = vpop.eup %7379  ;;  %7399 = vrcp.f32 %v2960_v27  ;;  %v3851_v6 = vmul.f32 %v10268_v15, %v3697_v55 }
 0x538   : > { %4010 = vrot.lane.b32.xlu0 %v3848_v35, %s7735_s22  ;;  %v7382_v17 = vpop.eup %7381  ;;  %7401 = vrcp.f32 %v2961_v60  ;;  %v6106_v35 = vmul.f32 -1.442695, %v9629_v31  ;;  %v6107_v31 = vmul.f32 -1.442695, %v9632_v39 }
 0x539   : > { %4012 = vrot.lane.b32.xlu1 %v3849_v11, %s7735_s22  ;;  %v10277_v8 = vpop.eup %7383  ;;  %7403 = vpow2.f32 %v6103_v30  ;;  %v2964_v11 = vadd.f32 1.0, %v7380_v54  ;;  %v2965_v42 = vadd.f32 1.0, %v7382_v17 }
 0x53a   : > { %v10264_v2 = vpop.permute.xlu0 %3706  ;;  %13230 = vst [vmem:[#allocation120_spill] sm:$0xff] %v10277_v8  ;;  %v10281_v25 = vpop.eup %7385  ;;  %7405 = vpow2.f32 %v6104_v12  ;;  %v3852_v55 = vmul.f32 %v10277_v8, %v10237_v38 }
 0x53b   : > { %v3709_v16 = vpop.permute.xlu1 %3708  ;;  %13231 = vst [vmem:[#allocation121_spill] sm:$0xff] %v10281_v25  ;;  %v7388_v27 = vpop.eup %7387  ;;  %7407 = vrcp.f32 %v2962_v10  ;;  %v3853_v1 = vmul.f32 %v10281_v25, %v3701_v19 }
 0x53c   : > { %4014 = vrot.lane.b32.xlu0 %v3850_v56, %s7735_s22  ;;  %v7390_v60 = vpop.eup %7389  ;;  %7409 = vrcp.f32 %v2963_v48  ;;  %v13234_v56 = vld [vmem:[#allocation17_spill] sm:$0xff] }
 0x53d   : > { %4016 = vrot.lane.b32.xlu1 %v3851_v6, %s7735_s22  ;;  %v10290_v30 = vpop.eup %7391  ;;  %7411 = vpow2.f32 %v6105_v52  ;;  %v6108_v54 = vmul.f32 -1.442695, %v13234_v56  ;;  %v2966_v6 = vadd.f32 1.0, %v7388_v27  ;;  %v13238_v27 = vld [vmem:[#allocation49_spill] sm:$0xff] }
 0x53e   : > { %v10275_v61 = vpop.permute.xlu0 %3710  ;;  %13232 = vst [vmem:[#allocation122_spill] sm:$0xff] %v10290_v30  ;;  %v10294_v12 = vpop.eup %7393  ;;  %7413 = vpow2.f32 %v6106_v35  ;;  %v3854_v19 = vmul.f32 %v10290_v30, %v10249_v40 }
 0x53f   : > { %v3713_v7 = vpop.permute.xlu1 %3712  ;;  %13233 = vst [vmem:[#allocation123_spill] sm:$0xff] %v10294_v12  ;;  %v7396_v10 = vpop.eup %7395  ;;  %7415 = vrcp.f32 %v2964_v11  ;;  %v3855_v17 = vmul.f32 %v10294_v12, %v3705_v3  ;;  %v6110_v11 = vmul.f32 -1.442695, %v13238_v27 }
 0x540   : > { %4018 = vrot.lane.b32.xlu0 %v3852_v55, %s7735_s22  ;;  %v7398_v48 = vpop.eup %7397  ;;  %v2967_v55 = vadd.f32 1.0, %v7390_v60  ;;  %7417 = vrcp.f32 %v2965_v42  ;;  %v2968_v42 = vadd.f32 1.0, %v7396_v10  ;;  %v13242_v10 = vld [vmem:[#allocation51_spill] sm:$0xff] }
 0x541   : > { %4020 = vrot.lane.b32.xlu1 %v3853_v1, %s7735_s22  ;;  %v10301_v52 = vpop.eup %7399  ;;  %v13236_v1 = vld [vmem:[#allocation14_spill] sm:$0xff]  ;;  %7419 = vpow2.f32 %v6107_v31  ;;  %v2969_v12 = vadd.f32 1.0, %v7398_v48 }
 0x542   : > { %v10288_v62 = vpop.permute.xlu0 %3714  ;;  %13235 = vst [vmem:[#allocation17_spill] sm:$0xff] %v10301_v52  ;;  %v6109_v25 = vmul.f32 -1.442695, %v13236_v1  ;;  %v10305_v40 = vpop.eup %7401  ;;  %7421 = vpow2.f32 %v6108_v54  ;;  %v3856_v3 = vmul.f32 %v10301_v52, %v10264_v2  ;;  %v13240_v1 = vld [vmem:[#allocation50_spill] sm:$0xff] }
 0x543   : > { %v3717_v38 = vpop.permute.xlu1 %3716  ;;  %13237 = vst [vmem:[#allocation14_spill] sm:$0xff] %v10305_v40  ;;  %v7404_v60 = vpop.eup %7403  ;;  %7423 = vrcp.f32 %v2966_v6  ;;  %v3857_v56 = vmul.f32 %v10305_v40, %v3709_v16  ;;  %v6111_v30 = vmul.f32 -1.442695, %v13240_v1  ;;  %v6112_v6 = vmul.f32 -1.442695, %v13242_v10  ;;  %v13244_v1 = vld [vmem:[#allocation52_spill] sm:$0xff] }
 0x544   : > { %4022 = vrot.lane.b32.xlu0 %v3854_v19, %s7735_s22  ;;  %v7406_v19 = vpop.eup %7405  ;;  %7425 = vrcp.f32 %v2967_v55  ;;  %v2970_v55 = vadd.f32 1.0, %v7404_v60  ;;  %v6113_v52 = vmul.f32 -1.442695, %v13244_v1  ;;  %v13246_v60 = vld [vmem:[#allocation53_spill] sm:$0xff] }
 0x545   : > { %4024 = vrot.lane.b32.xlu1 %v3855_v17, %s7735_s22  ;;  %v10312_v17 = vpop.eup %7407  ;;  %7427 = vpow2.f32 %v6109_v25  ;;  %v2971_v40 = vadd.f32 1.0, %v7406_v19 }
 0x546   : > { %v3719_v39 = vpop.permute.xlu0 %3718  ;;  %13239 = vst [vmem:[#allocation49_spill] sm:$0xff] %v10312_v17  ;;  %v10316_v2 = vpop.eup %7409  ;;  %7429 = vpow2.f32 %v6110_v11  ;;  %v3858_v16 = vmul.f32 %v10312_v17, %v10275_v61 }
 0x547   : > { %v3721_v35 = vpop.permute.xlu1 %3720  ;;  %13241 = vst [vmem:[#allocation50_spill] sm:$0xff] %v10316_v2  ;;  %v7412_v48 = vpop.eup %7411  ;;  %7431 = vrcp.f32 %v2968_v42  ;;  %v3859_v27 = vmul.f32 %v10316_v2, %v3713_v7  ;;  %v6114_v42 = vmul.f32 -1.442695, %v13246_v60 }
 0x548   : > { %4026 = vrot.lane.b32.xlu0 %v3856_v3, %s7735_s22  ;;  %v7414_v3 = vpop.eup %7413  ;;  %7433 = vrcp.f32 %v2969_v12  ;;  %v2972_v19 = vadd.f32 1.0, %v7412_v48 }
 0x549   : > { %4028 = vrot.lane.b32.xlu1 %v3857_v56, %s7735_s22  ;;  %v10323_v56 = vpop.eup %7415  ;;  %7435 = vpow2.f32 %v6111_v30  ;;  %v2973_v2 = vadd.f32 1.0, %v7414_v3 }
 0x54a   : > { %v3723_v31 = vpop.permute.xlu0 %3722  ;;  %13243 = vst [vmem:[#allocation51_spill] sm:$0xff] %v10323_v56  ;;  %v10327_v61 = vpop.eup %7417  ;;  %7437 = vpow2.f32 %v6112_v6  ;;  %v3860_v7 = vmul.f32 %v10323_v56, %v10288_v62 }
 0x54b   : > { %v3725_v54 = vpop.permute.xlu1 %3724  ;;  %13245 = vst [vmem:[#allocation52_spill] sm:$0xff] %v10327_v61  ;;  %v7420_v12 = vpop.eup %7419  ;;  %7439 = vrcp.f32 %v2970_v55  ;;  %v3861_v10 = vmul.f32 %v10327_v61, %v3717_v38 }
 0x54c   : > { %4030 = vrot.lane.b32.xlu0 %v3858_v16, %s7735_s22  ;;  %v7422_v16 = vpop.eup %7421  ;;  %7441 = vrcp.f32 %v2971_v40  ;;  %v2974_v55 = vadd.f32 1.0, %v7420_v12 }
 0x54d   : > { %4032 = vrot.lane.b32.xlu1 %v3859_v27, %s7735_s22  ;;  %v10334_v27 = vpop.eup %7423  ;;  %7443 = vpow2.f32 %v6113_v52  ;;  %v2975_v3 = vadd.f32 1.0, %v7422_v16 }
 0x54e   : > { %v3727_v25 = vpop.permute.xlu0 %3726  ;;  %13247 = vst [vmem:[#allocation53_spill] sm:$0xff] %v10334_v27  ;;  %v10337_v1 = vpop.eup %7425  ;;  %7445 = vpow2.f32 %v6114_v42  ;;  %v3862_v62 = vmul.f32 %v10334_v27, %v3719_v39 }
 0x54f   : > { %v3729_v11 = vpop.permute.xlu1 %3728  ;;  %13248 = vst [vmem:[#allocation124_spill] sm:$0xff] %v10337_v1  ;;  %v7428_v48 = vpop.eup %7427  ;;  %7447 = vrcp.f32 %v2972_v19  ;;  %v3863_v38 = vmul.f32 %v10337_v1, %v3721_v35 }
 0x550   : > { %4034 = vrot.lane.b32.xlu0 %v3860_v7, %s7735_s22  ;;  %v7430_v40 = vpop.eup %7429  ;;  %7449 = vrcp.f32 %v2973_v2  ;;  %v2976_v12 = vadd.f32 1.0, %v7428_v48 }
 0x551   : > { %4036 = vrot.lane.b32.xlu1 %v3861_v10, %s7735_s22  ;;  %v10342_v52 = vpop.eup %7431  ;;  %7451 = vrcp.f32 %v2974_v55  ;;  %v2977_v16 = vadd.f32 1.0, %v7430_v40 }
 0x552   : > { %v3731_v30 = vpop.permute.xlu0 %3730  ;;  %13249 = vst [vmem:[#allocation125_spill] sm:$0xff] %v10342_v52  ;;  %v10345_v10 = vpop.eup %7433  ;;  %v3864_v39 = vmul.f32 %v10342_v52, %v3723_v31  ;;  %7453 = vrcp.f32 %v2975_v3 }
 0x553   : > { %v3733_v6 = vpop.permute.xlu1 %3732  ;;  %13250 = vst [vmem:[#allocation126_spill] sm:$0xff] %v10345_v10  ;;  %v7436_v42 = vpop.eup %7435  ;;  %v3865_v35 = vmul.f32 %v10345_v10, %v3725_v54  ;;  %7455 = vrcp.f32 %v2976_v12 }
 0x554   : > { %4038 = vrot.lane.b32.xlu0 %v3862_v62, %s7735_s22  ;;  %v7438_v19 = vpop.eup %7437  ;;  %v2978_v48 = vadd.f32 1.0, %v7436_v42  ;;  %7457 = vrcp.f32 %v2977_v16 }
 0x555   : > { %4040 = vrot.lane.b32.xlu1 %v3863_v38, %s7735_s22  ;;  %v10350_v62 = vpop.eup %7439  ;;  %v2979_v40 = vadd.f32 1.0, %v7438_v19 }
 0x556   : > { %v3735_v60 = vpop.permute.xlu0 %3734  ;;  %13251 = vst [vmem:[#allocation127_spill] sm:$0xff] %v10350_v62  ;;  %v10353_v1 = vpop.eup %7441  ;;  %v3866_v31 = vmul.f32 %v10350_v62, %v3727_v25  ;;  %7459 = vrcp.f32 %v2978_v48 }
 0x557   : > { %v3737_v7 = vpop.permute.xlu1 %3736  ;;  %13252 = vst [vmem:[#allocation128_spill] sm:$0xff] %v10353_v1  ;;  %v7444_v52 = vpop.eup %7443  ;;  %v3867_v54 = vmul.f32 %v10353_v1, %v3729_v11  ;;  %7461 = vrcp.f32 %v2979_v40 }
 0x558   : > { %4042 = vrot.lane.b32.xlu0 %v3864_v39, %s7735_s22  ;;  %v7446_v55 = vpop.eup %7445  ;;  %v2980_v62 = vadd.f32 1.0, %v7444_v52 }
 0x559   : > { %4044 = vrot.lane.b32.xlu1 %v3865_v35, %s7735_s22  ;;  %v10358_v39 = vpop.eup %7447  ;;  %v2981_v11 = vadd.f32 1.0, %v7446_v55 }
 0x55a   : > { %v3739_v2 = vpop.permute.xlu0 %3738  ;;  %13253 = vst [vmem:[#allocation129_spill] sm:$0xff] %v10358_v39  ;;  %v10361_v10 = vpop.eup %7449  ;;  %v3868_v25 = vmul.f32 %v10358_v39, %v3731_v30  ;;  %7463 = vrcp.f32 %v2980_v62 }
 0x55b   : > { %v3741_v38 = vpop.permute.xlu1 %3740  ;;  %13254 = vst [vmem:[#allocation130_spill] sm:$0xff] %v10361_v10  ;;  %v3869_v42 = vmul.f32 %v10361_v10, %v3733_v6  ;;  %v10366_v19 = vpop.eup %7451  ;;  %7465 = vrcp.f32 %v2981_v11 }
 0x55c   : > { %4046 = vrot.lane.b32.xlu0 %v3866_v31, %s7735_s22  ;;  %13255 = vst [vmem:[#allocation131_spill] sm:$0xff] %v10366_v19  ;;  %v10369_v31 = vpop.eup %7453 }
 0x55d   : > { %4048 = vrot.lane.b32.xlu1 %v3867_v54, %s7735_s22  ;;  %v3870_v54 = vmul.f32 %v10366_v19, %v3735_v60  ;;  %v3871_v30 = vmul.f32 %v10369_v31, %v3737_v7  ;;  %v10374_v6 = vpop.eup %7455 }
 0x55e   : > { %v3743_v3 = vpop.permute.xlu0 %3742  ;;  %13256 = vst [vmem:[#allocation132_spill] sm:$0xff] %v10374_v6  ;;  %v10377_v52 = vpop.eup %7457  ;;  %v3872_v48 = vmul.f32 %v10374_v6, %v3739_v2  ;;  %v13261_v6 = vld [vmem:[#allocation27_spill] sm:$0xff] }
 0x55f   : > { %v3745_v35 = vpop.permute.xlu1 %3744  ;;  %13257 = vst [vmem:[#allocation133_spill] sm:$0xff] %v10377_v52  ;;  %v3873_v40 = vmul.f32 %v10377_v52, %v3741_v38 }
 0x560   : > { %4050 = vrot.lane.b32.xlu0 %v3868_v25, %s7735_s22  ;;  %v10382_v60 = vpop.eup %7459 }
 0x561   : > { %4052 = vrot.lane.b32.xlu1 %v3869_v42, %s7735_s22  ;;  %13258 = vst [vmem:[#allocation134_spill] sm:$0xff] %v10382_v60  ;;  %v10385_v7 = vpop.eup %7461  ;;  %v3874_v62 = vmul.f32 %v10382_v60, %v3743_v3  ;;  %v3494_v3 = vmul.f32 %v10056_v34, %v13261_v6  ;;  %v13264_v6 = vld [vmem:[#allocation34_spill] sm:$0xff] }
 0x562   : > { %v3747_v12 = vpop.permute.xlu0 %3746  ;;  %13259 = vst [vmem:[#allocation135_spill] sm:$0xff] %v10385_v7  ;;  %v3875_v11 = vmul.f32 %v10385_v7, %v3745_v35  ;;  %v13262_v35 = vld [vmem:[#allocation32_spill] sm:$0xff] }
 0x563   : > { %v3749_v16 = vpop.permute.xlu1 %3748 }
 0x564   : > { %4054 = vrot.lane.b32.xlu0 %v3870_v54, %s7735_s22  ;;  %v10390_v2 = vpop.eup %7463 }
 0x565   : > { %4056 = vrot.lane.b32.xlu1 %v3871_v30, %s7735_s22  ;;  %13260 = vst [vmem:[#allocation136_spill] sm:$0xff] %v10390_v2  ;;  %v10393_v38 = vpop.eup %7465  ;;  %v3876_v30 = vmul.f32 %v10390_v2, %v3747_v12  ;;  %v13263_v2 = vld [vmem:[#allocation29_spill] sm:$0xff] }
 0x566   : > { %v3943_v55 = vpop.permute.xlu0 %3942 }
 0x567   : > { %v3945_v25 = vpop.permute.xlu1 %3944  ;;  %v10403_v7 = vadd.f32 %v3943_v55, %v3494_v3 }
 0x568   : > { %4058 = vrot.lane.b32.xlu0 %v3872_v48, %s7735_s22 }
 0x569   : > { %4060 = vrot.lane.b32.xlu1 %v3873_v40, %s7735_s22  ;;  %v3877_v40 = vmul.f32 %v10393_v38, %v3749_v16  ;;  %v3496_v16 = vmul.f32 %v10067_v59, %v13263_v2  ;;  %v13267_v2 = vld [vmem:[#allocation33_spill] sm:$0xff]  ;;  %7467 = vtanh.f32 %v10403_v7 }
 0x56a   : > { %v3947_v42 = vpop.permute.xlu0 %3946  ;;  %v13268_v59 = vld [vmem:[#allocation89_spill] sm:$0xff] }
 0x56b   : > { %v3949_v54 = vpop.permute.xlu1 %3948  ;;  %v3499_v34 = vmul.f32 %v13268_v59, %v13267_v2 }
 0x56c   : > { %4062 = vrot.lane.b32.xlu0 %v3874_v62, %s7735_s22  ;;  %v3495_v62 = vmul.f32 %v10059_v5, %v13262_v35  ;;  %v13265_v35 = vld [vmem:[#allocation31_spill] sm:$0xff] }
 0x56d   : > { %4064 = vrot.lane.b32.xlu1 %v3875_v11, %s7735_s22 }
 0x56e   : > { %v3951_v48 = vpop.permute.xlu0 %3950  ;;  %v10405_v60 = vadd.f32 %v3945_v25, %v3495_v62  ;;  %v13266_v62 = vld [vmem:[#allocation88_spill] sm:$0xff] }
 0x56f   : > { %v3953_v52 = vpop.permute.xlu1 %3952  ;;  %v3498_v5 = vmul.f32 %v13266_v62, %v13265_v35  ;;  %v13270_v35 = vld [vmem:[#allocation35_spill] sm:$0xff] }
 0x570   : > { %4066 = vrot.lane.b32.xlu0 %v3876_v30, %s7735_s22  ;;  %v3497_v30 = vmul.f32 %v10071_v50, %v13264_v6  ;;  %v3501_v62 = vmul.f32 %v10095_v37, %v13270_v35  ;;  %7469 = vtanh.f32 %v10405_v60 }
 0x571   : > { %4068 = vrot.lane.b32.xlu1 %v3877_v40, %s7735_s22  ;;  %v10415_v40 = vadd.f32 %v3947_v42, %v3496_v16  ;;  %v10427_v6 = vadd.f32 %v3951_v48, %v3498_v5  ;;  %v10429_v16 = vadd.f32 %v3953_v52, %v3499_v34  ;;  %v13271_v52 = vld [vmem:[#allocation40_spill] sm:$0xff] }
 0x572   : > { %v3955_v11 = vpop.permute.xlu0 %3954  ;;  %v10417_v3 = vadd.f32 %v3949_v54, %v3497_v30  ;;  %v13269_v30 = vld [vmem:[#allocation36_spill] sm:$0xff]  ;;  %v3502_v59 = vmul.f32 %v10103_v32, %v13271_v52  ;;  %v13274_v52 = vld [vmem:[#allocation18_spill] sm:$0xff] }
 0x573   : > { %v3957_v12 = vpop.permute.xlu1 %3956  ;;  %v3500_v50 = vmul.f32 %v10091_v57, %v13269_v30  ;;  %v13272_v30 = vld [vmem:[#allocation41_spill] sm:$0xff]  ;;  %v3505_v32 = vmul.f32 %v10120_v33, %v13274_v52  ;;  %7471 = vtanh.f32 %v10415_v40 }
 0x574   : > { %4646 = vrot.lane.b32.xlu0 %v10403_v7, %s7737_s30  ;;  %v10441_v48 = vadd.f32 %v3957_v12, %v3501_v62  ;;  %v3503_v57 = vmul.f32 %v10107_v51, %v13272_v30  ;;  %v13273_v62 = vld [vmem:[#allocation42_spill] sm:$0xff]  ;;  %7473 = vtanh.f32 %v10417_v3 }
 0x575   : > { %4648 = vrot.lane.b32.xlu1 %v10405_v60, %s7737_s30  ;;  %v10439_v2 = vadd.f32 %v3955_v11, %v3500_v50  ;;  %v3504_v37 = vmul.f32 %v10116_v53, %v13273_v62  ;;  %v13276_v62 = vld [vmem:[#allocation44_spill] sm:$0xff]  ;;  %7475 = vtanh.f32 %v10427_v6 }
 0x576   : > { %v3959_v55 = vpop.permute.xlu0 %3958  ;;  %v3507_v53 = vmul.f32 %v10133_v23, %v13276_v62  ;;  %7477 = vtanh.f32 %v10429_v16 }
 0x577   : > { %v3961_v25 = vpop.permute.xlu1 %3960  ;;  %v10451_v35 = vadd.f32 %v3959_v55, %v3502_v59  ;;  %7479 = vtanh.f32 %v10439_v2 }
 0x578   : > { %4650 = vrot.lane.b32.xlu0 %v10415_v40, %s7737_s30  ;;  %v10453_v11 = vadd.f32 %v3961_v25, %v3503_v57  ;;  %v13275_v25 = vld [vmem:[#allocation43_spill] sm:$0xff]  ;;  %7481 = vtanh.f32 %v10441_v48 }
 0x579   : > { %4652 = vrot.lane.b32.xlu1 %v10417_v3, %s7737_s30  ;;  %v3506_v51 = vmul.f32 %v10129_v45, %v13275_v25  ;;  %v13278_v25 = vld [vmem:[#allocation46_spill] sm:$0xff]  ;;  %v7468_v3 = vpop.eup %7467  ;;  %7483 = vtanh.f32 %v10451_v35 }
 0x57a   : > { %v3963_v42 = vpop.permute.xlu0 %3962  ;;  %v3509_v45 = vmul.f32 %v10144_v18, %v13278_v25  ;;  %7485 = vtanh.f32 %v10453_v11 }
 0x57b   : > { %v3965_v54 = vpop.permute.xlu1 %3964  ;;  %v10463_v30 = vadd.f32 %v3963_v42, %v3504_v37 }
 0x57c   : > { %4654 = vrot.lane.b32.xlu0 %v10427_v6, %s7737_s30  ;;  %v10465_v55 = vadd.f32 %v3965_v54, %v3505_v32  ;;  %v13277_v54 = vld [vmem:[#allocation45_spill] sm:$0xff] }
 0x57d   : > { %4656 = vrot.lane.b32.xlu1 %v10429_v16, %s7737_s30  ;;  %v3508_v33 = vmul.f32 %v10140_v22, %v13277_v54  ;;  %v13280_v54 = vld [vmem:[#allocation48_spill] sm:$0xff]  ;;  %7487 = vtanh.f32 %v10463_v30 }
 0x57e   : > { %v3967_v5 = vpop.permute.xlu0 %3966  ;;  %v3511_v22 = vmul.f32 %v10155_v44, %v13280_v54  ;;  %7489 = vtanh.f32 %v10465_v55 }
 0x57f   : > { %v3969_v34 = vpop.permute.xlu1 %3968  ;;  %v10475_v52 = vadd.f32 %v3967_v5, %v3506_v51 }
 0x580   : > { %4658 = vrot.lane.b32.xlu0 %v10439_v2, %s7737_s30  ;;  %v10477_v42 = vadd.f32 %v3969_v34, %v3507_v53  ;;  %v13279_v34 = vld [vmem:[#allocation47_spill] sm:$0xff] }
 0x581   : > { %4660 = vrot.lane.b32.xlu1 %v10441_v48, %s7737_s30  ;;  %v3510_v23 = vmul.f32 %v10151_v9, %v13279_v34  ;;  %v13283_v34 = vld [vmem:[#allocation12_spill] sm:$0xff]  ;;  %7491 = vtanh.f32 %v10475_v52 }
 0x582   : > { %v3971_v50 = vpop.permute.xlu0 %3970  ;;  %v3513_v9 = vmul.f32 %v10166_v21, %v13283_v34  ;;  %7493 = vtanh.f32 %v10477_v42 }
 0x583   : > { %v3973_v12 = vpop.permute.xlu1 %3972  ;;  %v10487_v62 = vadd.f32 %v3971_v50, %v3508_v33 }
 0x584   : > { %4662 = vrot.lane.b32.xlu0 %v10451_v35, %s7737_s30  ;;  %v10489_v5 = vadd.f32 %v3973_v12, %v3509_v45  ;;  %v13282_v12 = vld [vmem:[#allocation11_spill] sm:$0xff] }
 0x585   : > { %4664 = vrot.lane.b32.xlu1 %v10453_v11, %s7737_s30  ;;  %v3512_v18 = vmul.f32 %v10162_v20, %v13282_v12  ;;  %v13285_v12 = vld [vmem:[#allocation15_spill] sm:$0xff]  ;;  %7495 = vtanh.f32 %v10487_v62 }
 0x586   : > { %v3975_v59 = vpop.permute.xlu0 %3974  ;;  %v13286_v20 = vld [vmem:[#allocation103_spill] sm:$0xff]  ;;  %7497 = vtanh.f32 %v10489_v5 }
 0x587   : > { %v3977_v57 = vpop.permute.xlu1 %3976  ;;  %v10499_v25 = vadd.f32 %v3975_v59, %v3510_v23 }
 0x588   : > { %4666 = vrot.lane.b32.xlu0 %v10463_v30, %s7737_s30  ;;  %v10501_v50 = vadd.f32 %v3977_v57, %v3511_v22  ;;  %v13284_v57 = vld [vmem:[#allocation13_spill] sm:$0xff] }
 0x589   : > { %4668 = vrot.lane.b32.xlu1 %v10465_v55, %s7737_s30  ;;  %13281 = vst [vmem:[#allocation27_spill] sm:$0xff] %v10499_v25  ;;  %v3514_v44 = vmul.f32 %v10173_v29, %v13284_v57  ;;  %v13288_v57 = vld [vmem:[#allocation16_spill] sm:$0xff] }
 0x58a   : > { %v3979_v37 = vpop.permute.xlu0 %3978  ;;  %v3517_v29 = vmul.f32 %v10186_v63, %v13288_v57 }
 0x58b   : > { %v3981_v32 = vpop.permute.xlu1 %3980  ;;  %v10511_v54 = vadd.f32 %v3979_v37, %v3512_v18 }
 0x58c   : > { %4670 = vrot.lane.b32.xlu0 %v10475_v52, %s7737_s30  ;;  %v10513_v59 = vadd.f32 %v3981_v32, %v3513_v9  ;;  %v13287_v32 = vld [vmem:[#allocation37_spill] sm:$0xff] }
 0x58d   : > { %4672 = vrot.lane.b32.xlu1 %v10477_v42, %s7737_s30  ;;  %v3516_v21 = vmul.f32 %v10182_v47, %v13287_v32  ;;  %v13290_v32 = vld [vmem:[#allocation20_spill] sm:$0xff] }
 0x58e   : > { %v3983_v51 = vpop.permute.xlu0 %3982  ;;  %v3519_v47 = vmul.f32 %v10196_v43, %v13290_v32 }
 0x58f   : > { %v3985_v53 = vpop.permute.xlu1 %3984  ;;  %v10523_v34 = vadd.f32 %v3983_v51, %v3514_v44 }
 0x590   : > { %4674 = vrot.lane.b32.xlu0 %v10487_v62, %s7737_s30 }
 0x591   : > { %4676 = vrot.lane.b32.xlu1 %v10489_v5, %s7737_s30 }
 0x592   : > { %v3987_v33 = vpop.permute.xlu0 %3986 }
 0x593   : > { %v3989_v45 = vpop.permute.xlu1 %3988 }
 0x594   : > { %4678 = vrot.lane.b32.xlu0 %v10499_v25, %s7737_s30  ;;  %v3515_v25 = vmul.f32 %v13286_v20, %v13285_v12  ;;  %v10535_v12 = vadd.f32 %v3987_v33, %v3516_v21  ;;  %v10537_v51 = vadd.f32 %v3989_v45, %v3517_v29  ;;  %v13291_v45 = vld [vmem:[#allocation54_spill] sm:$0xff] }
 0x595   : > { %4680 = vrot.lane.b32.xlu1 %v10501_v50, %s7737_s30  ;;  %v3520_v63 = vmul.f32 %v10202_v41, %v13291_v45  ;;  %v13294_v45 = vld [vmem:[#allocation56_spill] sm:$0xff] }
 0x596   : > { %v3991_v23 = vpop.permute.xlu0 %3990  ;;  %v10525_v37 = vadd.f32 %v3985_v53, %v3515_v25  ;;  %v13289_v25 = vld [vmem:[#allocation38_spill] sm:$0xff]  ;;  %v3523_v41 = vmul.f32 %v10218_v4, %v13294_v45 }
 0x597   : > { %v3993_v22 = vpop.permute.xlu1 %3992  ;;  %v3518_v20 = vmul.f32 %v10192_v28, %v13289_v25  ;;  %v13292_v25 = vld [vmem:[#allocation55_spill] sm:$0xff] }
 0x598   : > { %4682 = vrot.lane.b32.xlu0 %v10511_v54, %s7737_s30  ;;  %v10549_v33 = vadd.f32 %v3993_v22, %v3519_v47  ;;  %v3521_v28 = vmul.f32 %v10206_v26, %v13292_v25  ;;  %v13293_v22 = vld [vmem:[#allocation26_spill] sm:$0xff] }
 0x599   : > { %4684 = vrot.lane.b32.xlu1 %v10513_v59, %s7737_s30  ;;  %v10547_v57 = vadd.f32 %v3991_v23, %v3518_v20  ;;  %v3522_v43 = vmul.f32 %v10214_v49, %v13293_v22  ;;  %v13296_v22 = vld [vmem:[#allocation25_spill] sm:$0xff] }
 0x59a   : > { %v3995_v18 = vpop.permute.xlu0 %3994  ;;  %v3525_v49 = vmul.f32 %v10231_v24, %v13296_v22 }
 0x59b   : > { %v3997_v9 = vpop.permute.xlu1 %3996  ;;  %v10559_v32 = vadd.f32 %v3995_v18, %v3520_v63 }
 0x59c   : > { %4686 = vrot.lane.b32.xlu0 %v10523_v34, %s7737_s30  ;;  %v10561_v23 = vadd.f32 %v3997_v9, %v3521_v28  ;;  %v13295_v9 = vld [vmem:[#allocation23_spill] sm:$0xff] }
 0x59d   : > { %4688 = vrot.lane.b32.xlu1 %v10525_v37, %s7737_s30  ;;  %v3524_v26 = vmul.f32 %v10227_v13, %v13295_v9  ;;  %v13298_v9 = vld [vmem:[#allocation57_spill] sm:$0xff] }
 0x59e   : > { %v3999_v44 = vpop.permute.xlu0 %3998  ;;  %v3527_v13 = vmul.f32 %v10243_v36, %v13298_v9 }
 0x59f   : > { %v4001_v53 = vpop.permute.xlu1 %4000  ;;  %v10571_v25 = vadd.f32 %v3999_v44, %v3522_v43 }
 0x5a0   : > { %4690 = vrot.lane.b32.xlu0 %v10535_v12, %s7737_s30  ;;  %v10573_v18 = vadd.f32 %v4001_v53, %v3523_v41  ;;  %v13297_v53 = vld [vmem:[#allocation28_spill] sm:$0xff] }
 0x5a1   : > { %4692 = vrot.lane.b32.xlu1 %v10537_v51, %s7737_s30  ;;  %v3526_v4 = vmul.f32 %v10239_v14, %v13297_v53  ;;  %v13300_v53 = vld [vmem:[#allocation59_spill] sm:$0xff] }
 0x5a2   : > { %v4003_v21 = vpop.permute.xlu0 %4002  ;;  %v3529_v14 = vmul.f32 %v10255_v46, %v13300_v53 }
 0x5a3   : > { %v4005_v29 = vpop.permute.xlu1 %4004  ;;  %v10583_v45 = vadd.f32 %v4003_v21, %v3524_v26 }
 0x5a4   : > { %4694 = vrot.lane.b32.xlu0 %v10547_v57, %s7737_s30  ;;  %v10585_v44 = vadd.f32 %v4005_v29, %v3525_v49  ;;  %v13299_v29 = vld [vmem:[#allocation58_spill] sm:$0xff] }
 0x5a5   : > { %4696 = vrot.lane.b32.xlu1 %v10549_v33, %s7737_s30  ;;  %v3528_v24 = vmul.f32 %v10251_v58, %v13299_v29  ;;  %v13304_v29 = vld [vmem:[#allocation62_spill] sm:$0xff] }
 0x5a6   : > { %v4007_v20 = vpop.permute.xlu0 %4006  ;;  %v3531_v58 = vmul.f32 %v10268_v15, %v13304_v29  ;;  %v13312_v15 = vld [vmem:[#allocation122_spill] sm:$0xff] }
 0x5a7   : > { %v4009_v47 = vpop.permute.xlu1 %4008  ;;  %v10595_v22 = vadd.f32 %v4007_v20, %v3526_v4 }
 0x5a8   : > { %4698 = vrot.lane.b32.xlu0 %v10559_v32, %s7737_s30  ;;  %v10597_v21 = vadd.f32 %v4009_v47, %v3527_v13  ;;  %v13303_v47 = vld [vmem:[#allocation61_spill] sm:$0xff] }
 0x5a9   : > { %4700 = vrot.lane.b32.xlu1 %v10561_v23, %s7737_s30  ;;  %v3530_v36 = vmul.f32 %v10260_v0, %v13303_v47  ;;  %v13308_v47 = vld [vmem:[#allocation64_spill] sm:$0xff]  ;;  %v13309_v0 = vld [vmem:[#allocation121_spill] sm:$0xff] }
 0x5aa   : > { %v4011_v63 = vpop.permute.xlu0 %4010 }
 0x5ab   : > { %v4013_v28 = vpop.permute.xlu1 %4012  ;;  %v10607_v9 = vadd.f32 %v4011_v63, %v3528_v24 }
 0x5ac   : > { %4702 = vrot.lane.b32.xlu0 %v10571_v25, %s7737_s30  ;;  %v10609_v20 = vadd.f32 %v4013_v28, %v3529_v14  ;;  %v13307_v28 = vld [vmem:[#allocation30_spill] sm:$0xff] }
 0x5ad   : > { %4704 = vrot.lane.b32.xlu1 %v10573_v18, %s7737_s30  ;;  %13301 = vst [vmem:[#allocation32_spill] sm:$0xff] %v10607_v9  ;;  %v3532_v46 = vmul.f32 %v10277_v8, %v13307_v28  ;;  %v13313_v28 = vld [vmem:[#allocation66_spill] sm:$0xff]  ;;  %v13314_v8 = vld [vmem:[#allocation123_spill] sm:$0xff] }
 0x5ae   : > { %v4015_v43 = vpop.permute.xlu0 %4014  ;;  %13302 = vst [vmem:[#allocation29_spill] sm:$0xff] %v10609_v20 }
 0x5af   : > { %v4017_v41 = vpop.permute.xlu1 %4016  ;;  %v10619_v53 = vadd.f32 %v4015_v43, %v3530_v36 }
 0x5b0   : > { %4706 = vrot.lane.b32.xlu0 %v10583_v45, %s7737_s30  ;;  %v10621_v63 = vadd.f32 %v4017_v41, %v3531_v58  ;;  %v13311_v41 = vld [vmem:[#allocation65_spill] sm:$0xff] }
 0x5b1   : > { %4708 = vrot.lane.b32.xlu1 %v10585_v44, %s7737_s30  ;;  %13305 = vst [vmem:[#allocation34_spill] sm:$0xff] %v10619_v53 }
 0x5b2   : > { %v4019_v26 = vpop.permute.xlu0 %4018  ;;  %13306 = vst [vmem:[#allocation31_spill] sm:$0xff] %v10621_v63 }
 0x5b3   : > { %v4021_v49 = vpop.permute.xlu1 %4020  ;;  %v10631_v29 = vadd.f32 %v4019_v26, %v3532_v46 }
 0x5b4   : > { %4710 = vrot.lane.b32.xlu0 %v10595_v22, %s7737_s30 }
 0x5b5   : > { %4712 = vrot.lane.b32.xlu1 %v10597_v21, %s7737_s30  ;;  %13310 = vst [vmem:[#allocation33_spill] sm:$0xff] %v10631_v29 }
 0x5b6   : > { %v4023_v4 = vpop.permute.xlu0 %4022 }
 0x5b7   : > { %v4025_v13 = vpop.permute.xlu1 %4024 }
 0x5b8   : > { %4714 = vrot.lane.b32.xlu0 %v10607_v9, %s7737_s30  ;;  %v3533_v9 = vmul.f32 %v13309_v0, %v13308_v47  ;;  %v13317_v0 = vld [vmem:[#allocation17_spill] sm:$0xff] }
 0x5b9   : > { %4716 = vrot.lane.b32.xlu1 %v10609_v20, %s7737_s30  ;;  %v3534_v20 = vmul.f32 %v13312_v15, %v13311_v41  ;;  %v13318_v41 = vld [vmem:[#allocation68_spill] sm:$0xff]  ;;  %v13319_v15 = vld [vmem:[#allocation14_spill] sm:$0xff] }
 0x5ba   : > { %v4027_v24 = vpop.permute.xlu0 %4026  ;;  %v10633_v43 = vadd.f32 %v4021_v49, %v3533_v9  ;;  %v13316_v9 = vld [vmem:[#allocation67_spill] sm:$0xff] }
 0x5bb   : > { %v4029_v14 = vpop.permute.xlu1 %4028  ;;  %v10643_v47 = vadd.f32 %v4023_v4, %v3534_v20 }
 0x5bc   : > { %4718 = vrot.lane.b32.xlu0 %v10619_v53, %s7737_s30  ;;  %v3535_v53 = vmul.f32 %v13314_v8, %v13313_v28 }
 0x5bd   : > { %4720 = vrot.lane.b32.xlu1 %v10621_v63, %s7737_s30  ;;  %13315 = vst [vmem:[#allocation36_spill] sm:$0xff] %v10643_v47  ;;  %v3536_v63 = vmul.f32 %v13317_v0, %v13316_v9  ;;  %v13321_v9 = vld [vmem:[#allocation70_spill] sm:$0xff] }
 0x5be   : > { %v4031_v36 = vpop.permute.xlu0 %4030  ;;  %v10645_v26 = vadd.f32 %v4025_v13, %v3535_v53  ;;  %v13320_v53 = vld [vmem:[#allocation69_spill] sm:$0xff]  ;;  %v13322_v0 = vld [vmem:[#allocation50_spill] sm:$0xff] }
 0x5bf   : > { %v4033_v58 = vpop.permute.xlu1 %4032  ;;  %v10655_v28 = vadd.f32 %v4027_v24, %v3536_v63  ;;  %v3538_v8 = vmul.f32 %v10312_v17, %v13320_v53  ;;  %v13326_v53 = vld [vmem:[#allocation72_spill] sm:$0xff] }
 0x5c0   : > { %4722 = vrot.lane.b32.xlu0 %v10631_v29, %s7737_s30  ;;  %v3537_v29 = vmul.f32 %v13319_v15, %v13318_v41  ;;  %v3541_v17 = vmul.f32 %v10327_v61, %v13326_v53  ;;  %v13333_v61 = vld [vmem:[#allocation125_spill] sm:$0xff] }
 0x5c1   : > { %4724 = vrot.lane.b32.xlu1 %v10633_v43, %s7737_s30  ;;  %v10667_v41 = vadd.f32 %v4031_v36, %v3538_v8 }
 0x5c2   : > { %v4035_v46 = vpop.permute.xlu0 %4034  ;;  %v10657_v20 = vadd.f32 %v4029_v14, %v3537_v29  ;;  %v13325_v29 = vld [vmem:[#allocation71_spill] sm:$0xff] }
 0x5c3   : > { %v4037_v49 = vpop.permute.xlu1 %4036  ;;  %13323 = vst [vmem:[#allocation35_spill] sm:$0xff] %v10667_v41  ;;  %v3540_v15 = vmul.f32 %v10323_v56, %v13325_v29  ;;  %v13330_v29 = vld [vmem:[#allocation74_spill] sm:$0xff]  ;;  %v13331_v56 = vld [vmem:[#allocation124_spill] sm:$0xff] }
 0x5c4   : > { %4726 = vrot.lane.b32.xlu0 %v10643_v47, %s7737_s30  ;;  %v3539_v47 = vmul.f32 %v13322_v0, %v13321_v9  ;;  %v10681_v36 = vadd.f32 %v4037_v49, %v3541_v17  ;;  %v13332_v49 = vld [vmem:[#allocation75_spill] sm:$0xff] }
 0x5c5   : > { %4728 = vrot.lane.b32.xlu1 %v10645_v26, %s7737_s30  ;;  %v10679_v9 = vadd.f32 %v4035_v46, %v3540_v15 }
 0x5c6   : > { %v4039_v4 = vpop.permute.xlu0 %4038  ;;  %v10669_v63 = vadd.f32 %v4033_v58, %v3539_v47  ;;  %13328 = vst [vmem:[#allocation42_spill] sm:$0xff] %v10681_v36  ;;  %v13329_v47 = vld [vmem:[#allocation73_spill] sm:$0xff] }
 0x5c7   : > { %v4041_v13 = vpop.permute.xlu1 %4040  ;;  %13327 = vst [vmem:[#allocation41_spill] sm:$0xff] %v10679_v9  ;;  %v3542_v0 = vmul.f32 %v10334_v27, %v13329_v47  ;;  %v13334_v47 = vld [vmem:[#allocation76_spill] sm:$0xff]  ;;  %v13335_v27 = vld [vmem:[#allocation126_spill] sm:$0xff] }
 0x5c8   : > { %4730 = vrot.lane.b32.xlu0 %v10655_v28, %s7737_s30  ;;  %13324 = vst [vmem:[#allocation40_spill] sm:$0xff] %v10669_v63 }
 0x5c9   : > { %4732 = vrot.lane.b32.xlu1 %v10657_v20, %s7737_s30  ;;  %v10691_v53 = vadd.f32 %v4039_v4, %v3542_v0 }
 0x5ca   : > { %v4043_v24 = vpop.permute.xlu0 %4042 }
 0x5cb   : > { %v4045_v14 = vpop.permute.xlu1 %4044 }
 0x5cc   : > { %4734 = vrot.lane.b32.xlu0 %v10667_v41, %s7737_s30  ;;  %v3543_v41 = vmul.f32 %v13331_v56, %v13330_v29  ;;  %v13337_v56 = vld [vmem:[#allocation127_spill] sm:$0xff] }
 0x5cd   : > { %4736 = vrot.lane.b32.xlu1 %v10669_v63, %s7737_s30  ;;  %v3544_v63 = vmul.f32 %v13333_v61, %v13332_v49  ;;  %v13338_v49 = vld [vmem:[#allocation78_spill] sm:$0xff] }
 0x5ce   : > { %v4047_v8 = vpop.permute.xlu0 %4046  ;;  %v10693_v46 = vadd.f32 %v4041_v13, %v3543_v41  ;;  %v13336_v41 = vld [vmem:[#allocation77_spill] sm:$0xff]  ;;  %v3547_v61 = vmul.f32 %v10353_v1, %v13338_v49 }
 0x5cf   : > { %v4049_v58 = vpop.permute.xlu1 %4048  ;;  %v10703_v29 = vadd.f32 %v4043_v24, %v3544_v63 }
 0x5d0   : > { %4738 = vrot.lane.b32.xlu0 %v10679_v9, %s7737_s30  ;;  %v3545_v9 = vmul.f32 %v13335_v27, %v13334_v47  ;;  %v10717_v63 = vadd.f32 %v4049_v58, %v3547_v61  ;;  %v13343_v58 = vld [vmem:[#allocation81_spill] sm:$0xff] }
 0x5d1   : > { %4740 = vrot.lane.b32.xlu1 %v10681_v36, %s7737_s30  ;;  %v3546_v36 = vmul.f32 %v13337_v56, %v13336_v41  ;;  %v13341_v41 = vld [vmem:[#allocation80_spill] sm:$0xff]  ;;  %v3550_v1 = vmul.f32 %v10366_v19, %v13343_v58  ;;  %v13348_v19 = vld [vmem:[#allocation133_spill] sm:$0xff] }
 0x5d2   : > { %v4051_v15 = vpop.permute.xlu0 %4050  ;;  %v10705_v4 = vadd.f32 %v4045_v14, %v3545_v9  ;;  %13339 = vst [vmem:[#allocation18_spill] sm:$0xff] %v10717_v63  ;;  %v13340_v9 = vld [vmem:[#allocation79_spill] sm:$0xff]  ;;  %v3549_v56 = vmul.f32 %v10361_v10, %v13341_v41  ;;  %v13346_v10 = vld [vmem:[#allocation132_spill] sm:$0xff] }
 0x5d3   : > { %v4053_v17 = vpop.permute.xlu1 %4052  ;;  %v10715_v47 = vadd.f32 %v4047_v8, %v3546_v36  ;;  %v3548_v27 = vmul.f32 %v10358_v39, %v13340_v9  ;;  %v13344_v9 = vld [vmem:[#allocation82_spill] sm:$0xff]  ;;  %v13347_v58 = vld [vmem:[#allocation84_spill] sm:$0xff] }
 0x5d4   : > { %4742 = vrot.lane.b32.xlu0 %v10691_v53, %s7737_s30  ;;  %v10729_v36 = vadd.f32 %v4053_v17, %v3549_v56  ;;  %v3551_v39 = vmul.f32 %v10369_v31, %v13344_v9  ;;  %v13345_v17 = vld [vmem:[#allocation83_spill] sm:$0xff] }
 0x5d5   : > { %4744 = vrot.lane.b32.xlu1 %v10693_v46, %s7737_s30  ;;  %v10727_v49 = vadd.f32 %v4051_v15, %v3548_v27 }
 0x5d6   : > { %v4055_v0 = vpop.permute.xlu0 %4054 }
 0x5d7   : > { %v4057_v13 = vpop.permute.xlu1 %4056  ;;  %13342 = vst [vmem:[#allocation43_spill] sm:$0xff] %v10727_v49  ;;  %v10739_v41 = vadd.f32 %v4055_v0, %v3550_v1 }
 0x5d8   : > { %4746 = vrot.lane.b32.xlu0 %v10703_v29, %s7737_s30  ;;  %v10741_v15 = vadd.f32 %v4057_v13, %v3551_v39  ;;  %v13351_v13 = vld [vmem:[#allocation85_spill] sm:$0xff] }
 0x5d9   : > { %4748 = vrot.lane.b32.xlu1 %v10705_v4, %s7737_s30 }
 0x5da   : > { %v4059_v24 = vpop.permute.xlu0 %4058 }
 0x5db   : > { %v4061_v14 = vpop.permute.xlu1 %4060 }
 0x5dc   : > { %4750 = vrot.lane.b32.xlu0 %v10715_v47, %s7737_s30 }
 0x5dd   : > { %4752 = vrot.lane.b32.xlu1 %v10717_v63, %s7737_s30  ;;  %v3552_v63 = vmul.f32 %v13346_v10, %v13345_v17  ;;  %v13352_v17 = vld [vmem:[#allocation134_spill] sm:$0xff] }
 0x5de   : > { %v4063_v8 = vpop.permute.xlu0 %4062  ;;  %v3554_v10 = vmul.f32 %v13352_v17, %v13351_v13 }
 0x5df   : > { %v4065_v61 = vpop.permute.xlu1 %4064  ;;  %v10751_v9 = vadd.f32 %v4059_v24, %v3552_v63  ;;  %v13353_v24 = vld [vmem:[#allocation86_spill] sm:$0xff]  ;;  %v13354_v63 = vld [vmem:[#allocation135_spill] sm:$0xff] }
 0x5e0   : > { %4754 = vrot.lane.b32.xlu0 %v10727_v49, %s7737_s30  ;;  %v3553_v49 = vmul.f32 %v13348_v19, %v13347_v58  ;;  %v3555_v58 = vmul.f32 %v13354_v63, %v13353_v24  ;;  %v13358_v24 = vld [vmem:[#allocation136_spill] sm:$0xff] }
 0x5e1   : > { %4756 = vrot.lane.b32.xlu1 %v10729_v36, %s7737_s30 }
 0x5e2   : > { %v4067_v27 = vpop.permute.xlu0 %4066  ;;  %v10755_v39 = vadd.f32 %v4061_v14, %v3553_v49  ;;  %v10773_v14 = vadd.f32 %v4063_v8, %v3554_v10  ;;  %v10777_v13 = vadd.f32 %v4065_v61, %v3555_v58  ;;  %v13359_v10 = vld [vmem:[#allocation22_spill] sm:$0xff] }
 0x5e3   : > { %v4069_v56 = vpop.permute.xlu1 %4068  ;;  %v3557_v60 = vmul.f32 %v10393_v38, %v13359_v10 }
 0x5e4   : > { %4758 = vrot.lane.b32.xlu0 %v10739_v41, %s7737_s30 }
 0x5e5   : > { %4760 = vrot.lane.b32.xlu1 %v10741_v15, %s7737_s30  ;;  %v10799_v61 = vadd.f32 %v4069_v56, %v3557_v60  ;;  %v7470_v56 = vpop.eup %7469 }
 0x5e6   : > { %v10753_v1 = vpop.permute.xlu0 %4646  ;;  %v7472_v16 = vpop.eup %7471 }
 0x5e7   : > { %13349 = vst [vmem:[#allocation44_spill] sm:$0xff] %v10753_v1  ;;  %v10757_v0 = vpop.permute.xlu1 %4648  ;;  %4839 = vst.msk [vmem:[#allocation3] sm:$0xff] %vm4838_vm5, %v10753_v1  ;;  %v13357_v1 = vld [vmem:[#allocation39_spill] sm:$0xff]  ;;  %v7474_v58 = vpop.eup %7473 }
 0x5e8   : > { %13350 = vst [vmem:[#allocation45_spill] sm:$0xff] %v10757_v0  ;;  %4840 = vst.msk [vmem:[#allocation3 + $0x8] sm:$0xff] %vm4838_vm5, %v10757_v0  ;;  %4762 = vrot.lane.b32.xlu0 %v10751_v9, %s7737_s30  ;;  %v3556_v63 = vmul.f32 %v13358_v24, %v13357_v1  ;;  %v7476_v48 = vpop.eup %7475 }
 0x5e9   : > { %4764 = vrot.lane.b32.xlu1 %v10755_v39, %s7737_s30  ;;  %v7478_v60 = vpop.eup %7477 }
 0x5ea   : > { %v10775_v49 = vpop.permute.xlu0 %4650  ;;  %v10795_v7 = vadd.f32 %v4067_v27, %v3556_v63  ;;  %v7480_v11 = vpop.eup %7479 }
 0x5eb   : > { %13355 = vst [vmem:[#allocation46_spill] sm:$0xff] %v10775_v49  ;;  %v10779_v0 = vpop.permute.xlu1 %4652  ;;  %4841 = vst.msk [vmem:[#allocation3 + $0x10] sm:$0xff] %vm4838_vm5, %v10775_v49 }
 0x5ec   : > { %13356 = vst [vmem:[#allocation47_spill] sm:$0xff] %v10779_v0  ;;  %4842 = vst.msk [vmem:[#allocation3 + $0x18] sm:$0xff] %vm4838_vm5, %v10779_v0  ;;  %4766 = vrot.lane.b32.xlu0 %v10773_v14, %s7737_s30 }
 0x5ed   : > { %4768 = vrot.lane.b32.xlu1 %v10777_v13, %s7737_s30 }
 0x5ee   : > { %v10797_v8 = vpop.permute.xlu0 %4654 }
 0x5ef   : > { %13360 = vst [vmem:[#allocation48_spill] sm:$0xff] %v10797_v8  ;;  %v10801_v1 = vpop.permute.xlu1 %4656  ;;  %4843 = vst.msk [vmem:[#allocation3 + $0x20] sm:$0xff] %vm4838_vm5, %v10797_v8 }
 0x5f0   : > { %13361 = vst [vmem:[#allocation11_spill] sm:$0xff] %v10801_v1  ;;  %4844 = vst.msk [vmem:[#allocation3 + $0x28] sm:$0xff] %vm4838_vm5, %v10801_v1  ;;  %4770 = vrot.lane.b32.xlu0 %v10795_v7, %s7737_s30 }
 0x5f1   : > { %4772 = vrot.lane.b32.xlu1 %v10799_v61, %s7737_s30 }
 0x5f2   : > { %v10813_v40 = vpop.permute.xlu0 %4658 }
 0x5f3   : > { %13362 = vst [vmem:[#allocation12_spill] sm:$0xff] %v10813_v40  ;;  %v10815_v27 = vpop.permute.xlu1 %4660  ;;  %4845 = vst.msk [vmem:[#allocation3 + $0x30] sm:$0xff] %vm4838_vm5, %v10813_v40 }
 0x5f4   : > { %13363 = vst [vmem:[#allocation13_spill] sm:$0xff] %v10815_v27  ;;  %4846 = vst.msk [vmem:[#allocation3 + $0x38] sm:$0xff] %vm4838_vm5, %v10815_v27  ;;  %4326 = vrot.lane.b32.xlu0 %v7468_v3, %s7735_s22 }
 0x5f5   : > { %4328 = vrot.lane.b32.xlu1 %v7470_v56, %s7735_s22  ;;  %v7482_v56 = vpop.eup %7481 }
 0x5f6   : > { %v10825_v6 = vpop.permute.xlu0 %4662  ;;  %v7484_v55 = vpop.eup %7483 }
 0x5f7   : > { %13364 = vst [vmem:[#allocation15_spill] sm:$0xff] %v10825_v6  ;;  %v10827_v63 = vpop.permute.xlu1 %4664  ;;  %4847 = vst.msk [vmem:[#allocation3 + $0x40] sm:$0xff] %vm4838_vm5, %v10825_v6 }
 0x5f8   : > { %13365 = vst [vmem:[#allocation37_spill] sm:$0xff] %v10827_v63  ;;  %4848 = vst.msk [vmem:[#allocation3 + $0x48] sm:$0xff] %vm4838_vm5, %v10827_v63  ;;  %4330 = vrot.lane.b32.xlu0 %v7472_v16, %s7735_s22 }
 0x5f9   : > { %4332 = vrot.lane.b32.xlu1 %v7474_v58, %s7735_s22  ;;  %v7486_v58 = vpop.eup %7485 }
 0x5fa   : > { %v10837_v2 = vpop.permute.xlu0 %4666  ;;  %v7488_v42 = vpop.eup %7487 }
 0x5fb   : > { %13366 = vst [vmem:[#allocation16_spill] sm:$0xff] %v10837_v2  ;;  %v10839_v10 = vpop.permute.xlu1 %4668  ;;  %4849 = vst.msk [vmem:[#allocation3 + $0x50] sm:$0xff] %vm4838_vm5, %v10837_v2 }
 0x5fc   : > { %13367 = vst [vmem:[#allocation38_spill] sm:$0xff] %v10839_v10  ;;  %4850 = vst.msk [vmem:[#allocation3 + $0x58] sm:$0xff] %vm4838_vm5, %v10839_v10  ;;  %4334 = vrot.lane.b32.xlu0 %v7476_v48, %s7735_s22 }
 0x5fd   : > { %4336 = vrot.lane.b32.xlu1 %v7478_v60, %s7735_s22  ;;  %v7490_v60 = vpop.eup %7489 }
 0x5fe   : > { %v10849_v35 = vpop.permute.xlu0 %4670  ;;  %v7492_v5 = vpop.eup %7491 }
 0x5ff   : > { %13368 = vst [vmem:[#allocation20_spill] sm:$0xff] %v10849_v35  ;;  %v10851_v3 = vpop.permute.xlu1 %4672  ;;  %4851 = vst.msk [vmem:[#allocation3 + $0x60] sm:$0xff] %vm4838_vm5, %v10849_v35 }
 0x600   : > { %13369 = vst [vmem:[#allocation54_spill] sm:$0xff] %v10851_v3  ;;  %4852 = vst.msk [vmem:[#allocation3 + $0x68] sm:$0xff] %vm4838_vm5, %v10851_v3  ;;  %4338 = vrot.lane.b32.xlu0 %v7480_v11, %s7735_s22  ;;  %v13374_v11 = vld [vmem:[#allocation27_spill] sm:$0xff] }
 0x601   : > { %4340 = vrot.lane.b32.xlu1 %v7482_v56, %s7735_s22  ;;  %7499 = vtanh.f32 %v13374_v11 }
 0x602   : > { %v10861_v30 = vpop.permute.xlu0 %4674  ;;  %7501 = vtanh.f32 %v10501_v50 }
 0x603   : > { %13370 = vst [vmem:[#allocation55_spill] sm:$0xff] %v10861_v30  ;;  %v10863_v16 = vpop.permute.xlu1 %4676  ;;  %4853 = vst.msk [vmem:[#allocation3 + $0x70] sm:$0xff] %vm4838_vm5, %v10861_v30  ;;  %7503 = vtanh.f32 %v10511_v54 }
 0x604   : > { %13371 = vst [vmem:[#allocation26_spill] sm:$0xff] %v10863_v16  ;;  %4854 = vst.msk [vmem:[#allocation3 + $0x78] sm:$0xff] %vm4838_vm5, %v10863_v16  ;;  %4342 = vrot.lane.b32.xlu0 %v7484_v55, %s7735_s22  ;;  %v7494_v55 = vpop.eup %7493  ;;  %7505 = vtanh.f32 %v10513_v59 }
 0x605   : > { %4344 = vrot.lane.b32.xlu1 %v7486_v58, %s7735_s22  ;;  %v7496_v58 = vpop.eup %7495  ;;  %7507 = vtanh.f32 %v10523_v34 }
 0x606   : > { %v10873_v52 = vpop.permute.xlu0 %4678  ;;  %7509 = vtanh.f32 %v10525_v37 }
 0x607   : > { %13372 = vst [vmem:[#allocation56_spill] sm:$0xff] %v10873_v52  ;;  %v10875_v48 = vpop.permute.xlu1 %4680  ;;  %4855 = vst.msk [vmem:[#allocation3 + $0x80] sm:$0xff] %vm4838_vm5, %v10873_v52  ;;  %7511 = vtanh.f32 %v10535_v12 }
 0x608   : > { %13373 = vst [vmem:[#allocation23_spill] sm:$0xff] %v10875_v48  ;;  %4856 = vst.msk [vmem:[#allocation3 + $0x88] sm:$0xff] %vm4838_vm5, %v10875_v48  ;;  %4346 = vrot.lane.b32.xlu0 %v7488_v42, %s7735_s22  ;;  %7513 = vtanh.f32 %v10537_v51 }
 0x609   : > { %4348 = vrot.lane.b32.xlu1 %v7490_v60, %s7735_s22  ;;  %v7498_v60 = vpop.eup %7497  ;;  %7515 = vtanh.f32 %v10547_v57 }
 0x60a   : > { %v10885_v62 = vpop.permute.xlu0 %4682  ;;  %7517 = vtanh.f32 %v10549_v33 }
 0x60b   : > { %13375 = vst [vmem:[#allocation25_spill] sm:$0xff] %v10885_v62  ;;  %v10887_v56 = vpop.permute.xlu1 %4684  ;;  %4857 = vst.msk [vmem:[#allocation3 + $0x90] sm:$0xff] %vm4838_vm5, %v10885_v62  ;;  %v7500_v59 = vpop.eup %7499  ;;  %7519 = vtanh.f32 %v10559_v32 }
 0x60c   : > { %13376 = vst [vmem:[#allocation28_spill] sm:$0xff] %v10887_v56  ;;  %4858 = vst.msk [vmem:[#allocation3 + $0x98] sm:$0xff] %vm4838_vm5, %v10887_v56  ;;  %4350 = vrot.lane.b32.xlu0 %v7492_v5, %s7735_s22  ;;  %v7502_v5 = vpop.eup %7501  ;;  %7521 = vtanh.f32 %v10561_v23 }
 0x60d   : > { %4352 = vrot.lane.b32.xlu1 %v7494_v55, %s7735_s22  ;;  %v7504_v37 = vpop.eup %7503  ;;  %7523 = vtanh.f32 %v10571_v25 }
 0x60e   : > { %v10897_v50 = vpop.permute.xlu0 %4686  ;;  %7525 = vtanh.f32 %v10573_v18 }
 0x60f   : > { %13377 = vst [vmem:[#allocation57_spill] sm:$0xff] %v10897_v50  ;;  %v10899_v42 = vpop.permute.xlu1 %4688  ;;  %4859 = vst.msk [vmem:[#allocation3 + $0xa0] sm:$0xff] %vm4838_vm5, %v10897_v50  ;;  %7527 = vtanh.f32 %v10583_v45 }
 0x610   : > { %13378 = vst [vmem:[#allocation58_spill] sm:$0xff] %v10899_v42  ;;  %4860 = vst.msk [vmem:[#allocation3 + $0xa8] sm:$0xff] %vm4838_vm5, %v10899_v42  ;;  %4354 = vrot.lane.b32.xlu0 %v7496_v58, %s7735_s22  ;;  %v7506_v58 = vpop.eup %7505  ;;  %7529 = vtanh.f32 %v10585_v44  ;;  %v13469_v42 = vld [vmem:[#allocation109_spill] sm:$0xff] }
 0x611   : > { %4356 = vrot.lane.b32.xlu1 %v7498_v60, %s7735_s22  ;;  %v7508_v51 = vpop.eup %7507  ;;  %7531 = vtanh.f32 %v10595_v22  ;;  %v13394_v22 = vld [vmem:[#allocation29_spill] sm:$0xff] }
 0x612   : > { %v10909_v54 = vpop.permute.xlu0 %4690  ;;  %7533 = vtanh.f32 %v10597_v21 }
 0x613   : > { %13379 = vst [vmem:[#allocation59_spill] sm:$0xff] %v10909_v54  ;;  %v10911_v11 = vpop.permute.xlu1 %4692  ;;  %4861 = vst.msk [vmem:[#allocation3 + $0xb0] sm:$0xff] %vm4838_vm5, %v10909_v54 }
 0x614   : > { %13380 = vst [vmem:[#allocation61_spill] sm:$0xff] %v10911_v11  ;;  %4862 = vst.msk [vmem:[#allocation3 + $0xb8] sm:$0xff] %vm4838_vm5, %v10911_v11  ;;  %4358 = vrot.lane.b32.xlu0 %v7500_v59, %s7735_s22  ;;  %v7510_v59 = vpop.eup %7509  ;;  %v13466_v11 = vld [vmem:[#allocation107_spill] sm:$0xff] }
 0x615   : > { %4360 = vrot.lane.b32.xlu1 %v7502_v5, %s7735_s22  ;;  %v7512_v33 = vpop.eup %7511 }
 0x616   : > { %v10921_v34 = vpop.permute.xlu0 %4694 }
 0x617   : > { %13381 = vst [vmem:[#allocation62_spill] sm:$0xff] %v10921_v34  ;;  %v10923_v55 = vpop.permute.xlu1 %4696  ;;  %4863 = vst.msk [vmem:[#allocation3 + $0xc0] sm:$0xff] %vm4838_vm5, %v10921_v34 }
 0x618   : > { %13382 = vst [vmem:[#allocation30_spill] sm:$0xff] %v10923_v55  ;;  %4864 = vst.msk [vmem:[#allocation3 + $0xc8] sm:$0xff] %vm4838_vm5, %v10923_v55  ;;  %4362 = vrot.lane.b32.xlu0 %v7504_v37, %s7735_s22  ;;  %v7514_v37 = vpop.eup %7513  ;;  %v13463_v55 = vld [vmem:[#allocation105_spill] sm:$0xff] }
 0x619   : > { %4364 = vrot.lane.b32.xlu1 %v7506_v58, %s7735_s22  ;;  %v7516_v23 = vpop.eup %7515 }
 0x61a   : > { %v10933_v12 = vpop.permute.xlu0 %4698 }
 0x61b   : > { %13383 = vst [vmem:[#allocation64_spill] sm:$0xff] %v10933_v12  ;;  %v10935_v60 = vpop.permute.xlu1 %4700  ;;  %4865 = vst.msk [vmem:[#allocation3 + $0xd0] sm:$0xff] %vm4838_vm5, %v10933_v12 }
 0x61c   : > { %13384 = vst [vmem:[#allocation65_spill] sm:$0xff] %v10935_v60  ;;  %4866 = vst.msk [vmem:[#allocation3 + $0xd8] sm:$0xff] %vm4838_vm5, %v10935_v60  ;;  %4366 = vrot.lane.b32.xlu0 %v7508_v51, %s7735_s22  ;;  %v7518_v51 = vpop.eup %7517  ;;  %v13460_v60 = vld [vmem:[#allocation103_spill] sm:$0xff] }
 0x61d   : > { %4368 = vrot.lane.b32.xlu1 %v7510_v59, %s7735_s22  ;;  %v7520_v18 = vpop.eup %7519 }
 0x61e   : > { %v10945_v57 = vpop.permute.xlu0 %4702 }
 0x61f   : > { %13385 = vst [vmem:[#allocation66_spill] sm:$0xff] %v10945_v57  ;;  %v10947_v5 = vpop.permute.xlu1 %4704  ;;  %4867 = vst.msk [vmem:[#allocation3 + $0xe0] sm:$0xff] %vm4838_vm5, %v10945_v57 }
 0x620   : > { %13386 = vst [vmem:[#allocation67_spill] sm:$0xff] %v10947_v5  ;;  %4868 = vst.msk [vmem:[#allocation3 + $0xe8] sm:$0xff] %vm4838_vm5, %v10947_v5  ;;  %4370 = vrot.lane.b32.xlu0 %v7512_v33, %s7735_s22  ;;  %v7522_v33 = vpop.eup %7521  ;;  %v13456_v5 = vld [vmem:[#allocation101_spill] sm:$0xff] }
 0x621   : > { %4372 = vrot.lane.b32.xlu1 %v7514_v37, %s7735_s22  ;;  %v7524_v44 = vpop.eup %7523 }
 0x622   : > { %v10957_v32 = vpop.permute.xlu0 %4706 }
 0x623   : > { %13387 = vst [vmem:[#allocation68_spill] sm:$0xff] %v10957_v32  ;;  %v10959_v58 = vpop.permute.xlu1 %4708  ;;  %4869 = vst.msk [vmem:[#allocation3 + $0xf0] sm:$0xff] %vm4838_vm5, %v10957_v32 }
 0x624   : > { %13388 = vst [vmem:[#allocation69_spill] sm:$0xff] %v10959_v58  ;;  %4870 = vst.msk [vmem:[#allocation3 + $0xf8] sm:$0xff] %vm4838_vm5, %v10959_v58  ;;  %4374 = vrot.lane.b32.xlu0 %v7516_v23, %s7735_s22  ;;  %v7526_v23 = vpop.eup %7525  ;;  %v13452_v58 = vld [vmem:[#allocation99_spill] sm:$0xff] }
 0x625   : > { %4376 = vrot.lane.b32.xlu1 %v7518_v51, %s7735_s22  ;;  %v13393_v51 = vld [vmem:[#allocation32_spill] sm:$0xff] }
 0x626   : > { %v10969_v25 = vpop.permute.xlu0 %4710  ;;  %7535 = vtanh.f32 %v13393_v51 }
 0x627   : > { %13389 = vst [vmem:[#allocation70_spill] sm:$0xff] %v10969_v25  ;;  %v10971_v59 = vpop.permute.xlu1 %4712  ;;  %4871 = vst.msk [vmem:[#allocation3 + $0x100] sm:$0xff] %vm4838_vm5, %v10969_v25  ;;  %7537 = vtanh.f32 %v13394_v22 }
 0x628   : > { %13390 = vst [vmem:[#allocation71_spill] sm:$0xff] %v10971_v59  ;;  %4872 = vst.msk [vmem:[#allocation3 + $0x108] sm:$0xff] %vm4838_vm5, %v10971_v59  ;;  %4378 = vrot.lane.b32.xlu0 %v7520_v18, %s7735_s22  ;;  %v7528_v18 = vpop.eup %7527  ;;  %v13448_v59 = vld [vmem:[#allocation97_spill] sm:$0xff] }
 0x629   : > { %4380 = vrot.lane.b32.xlu1 %v7522_v33, %s7735_s22 }
 0x62a   : > { %v10981_v45 = vpop.permute.xlu0 %4714 }
 0x62b   : > { %13391 = vst [vmem:[#allocation72_spill] sm:$0xff] %v10981_v45  ;;  %v10983_v37 = vpop.permute.xlu1 %4716  ;;  %4873 = vst.msk [vmem:[#allocation3 + $0x110] sm:$0xff] %vm4838_vm5, %v10981_v45  ;;  %v7530_v45 = vpop.eup %7529 }
 0x62c   : > { %13392 = vst [vmem:[#allocation73_spill] sm:$0xff] %v10983_v37  ;;  %4874 = vst.msk [vmem:[#allocation3 + $0x118] sm:$0xff] %vm4838_vm5, %v10983_v37  ;;  %4382 = vrot.lane.b32.xlu0 %v7524_v44, %s7735_s22  ;;  %v13397_v44 = vld [vmem:[#allocation34_spill] sm:$0xff]  ;;  %v7532_v22 = vpop.eup %7531 }
 0x62d   : > { %4384 = vrot.lane.b32.xlu1 %v7526_v23, %s7735_s22  ;;  %7539 = vtanh.f32 %v13397_v44  ;;  %v13398_v23 = vld [vmem:[#allocation31_spill] sm:$0xff] }
 0x62e   : > { %v10993_v21 = vpop.permute.xlu0 %4718  ;;  %7541 = vtanh.f32 %v13398_v23 }
 0x62f   : > { %13395 = vst [vmem:[#allocation74_spill] sm:$0xff] %v10993_v21  ;;  %v10995_v33 = vpop.permute.xlu1 %4720  ;;  %4875 = vst.msk [vmem:[#allocation3 + $0x120] sm:$0xff] %vm4838_vm5, %v10993_v21  ;;  %v7534_v21 = vpop.eup %7533 }
 0x630   : > { %13396 = vst [vmem:[#allocation75_spill] sm:$0xff] %v10995_v33  ;;  %4876 = vst.msk [vmem:[#allocation3 + $0x128] sm:$0xff] %vm4838_vm5, %v10995_v33  ;;  %4386 = vrot.lane.b32.xlu0 %v7528_v18, %s7735_s22  ;;  %v13401_v18 = vld [vmem:[#allocation33_spill] sm:$0xff]  ;;  %v7536_v44 = vpop.eup %7535 }
 0x631   : > { %4388 = vrot.lane.b32.xlu1 %v7530_v45, %s7735_s22  ;;  %7543 = vtanh.f32 %v13401_v18 }
 0x632   : > { %v11005_v51 = vpop.permute.xlu0 %4722  ;;  %7545 = vtanh.f32 %v10633_v43 }
 0x633   : > { %13399 = vst [vmem:[#allocation76_spill] sm:$0xff] %v11005_v51  ;;  %v11007_v37 = vpop.permute.xlu1 %4724  ;;  %4877 = vst.msk [vmem:[#allocation3 + $0x130] sm:$0xff] %vm4838_vm5, %v11005_v51  ;;  %v7538_v51 = vpop.eup %7537 }
 0x634   : > { %13400 = vst [vmem:[#allocation77_spill] sm:$0xff] %v11007_v37  ;;  %4878 = vst.msk [vmem:[#allocation3 + $0x138] sm:$0xff] %vm4838_vm5, %v11007_v37  ;;  %4390 = vrot.lane.b32.xlu0 %v7532_v22, %s7735_s22  ;;  %v13404_v22 = vld [vmem:[#allocation36_spill] sm:$0xff]  ;;  %v13446_v37 = vld [vmem:[#allocation95_spill] sm:$0xff] }
 0x635   : > { %4392 = vrot.lane.b32.xlu1 %v7534_v21, %s7735_s22  ;;  %7547 = vtanh.f32 %v13404_v22 }
 0x636   : > { %v11017_v45 = vpop.permute.xlu0 %4726  ;;  %7549 = vtanh.f32 %v10645_v26 }
 0x637   : > { %13402 = vst [vmem:[#allocation78_spill] sm:$0xff] %v11017_v45  ;;  %v11019_v23 = vpop.permute.xlu1 %4728  ;;  %4879 = vst.msk [vmem:[#allocation3 + $0x140] sm:$0xff] %vm4838_vm5, %v11017_v45  ;;  %v7540_v21 = vpop.eup %7539  ;;  %7551 = vtanh.f32 %v10655_v28  ;;  %v13410_v28 = vld [vmem:[#allocation40_spill] sm:$0xff] }
 0x638   : > { %13403 = vst [vmem:[#allocation79_spill] sm:$0xff] %v11019_v23  ;;  %4880 = vst.msk [vmem:[#allocation3 + $0x148] sm:$0xff] %vm4838_vm5, %v11019_v23  ;;  %4394 = vrot.lane.b32.xlu0 %v7536_v44, %s7735_s22  ;;  %v7542_v45 = vpop.eup %7541  ;;  %7553 = vtanh.f32 %v10657_v20 }
 0x639   : > { %4396 = vrot.lane.b32.xlu1 %v7538_v51, %s7735_s22 }
 0x63a   : > { %v11029_v43 = vpop.permute.xlu0 %4730 }
 0x63b   : > { %13405 = vst [vmem:[#allocation80_spill] sm:$0xff] %v11029_v43  ;;  %v11031_v18 = vpop.permute.xlu1 %4732  ;;  %4881 = vst.msk [vmem:[#allocation3 + $0x150] sm:$0xff] %vm4838_vm5, %v11029_v43  ;;  %v7544_v51 = vpop.eup %7543  ;;  %v13444_v43 = vld [vmem:[#allocation93_spill] sm:$0xff] }
 0x63c   : > { %13406 = vst [vmem:[#allocation81_spill] sm:$0xff] %v11031_v18  ;;  %4882 = vst.msk [vmem:[#allocation3 + $0x158] sm:$0xff] %vm4838_vm5, %v11031_v18  ;;  %4398 = vrot.lane.b32.xlu0 %v7540_v21, %s7735_s22  ;;  %v7546_v22 = vpop.eup %7545  ;;  %v13409_v21 = vld [vmem:[#allocation35_spill] sm:$0xff] }
 0x63d   : > { %4400 = vrot.lane.b32.xlu1 %v7542_v45, %s7735_s22  ;;  %7555 = vtanh.f32 %v13409_v21 }
 0x63e   : > { %v11041_v26 = vpop.permute.xlu0 %4734  ;;  %7557 = vtanh.f32 %v13410_v28 }
 0x63f   : > { %13407 = vst [vmem:[#allocation82_spill] sm:$0xff] %v11041_v26  ;;  %v11043_v44 = vpop.permute.xlu1 %4736  ;;  %4883 = vst.msk [vmem:[#allocation3 + $0x160] sm:$0xff] %vm4838_vm5, %v11041_v26  ;;  %v7548_v45 = vpop.eup %7547 }
 0x640   : > { %13408 = vst [vmem:[#allocation83_spill] sm:$0xff] %v11043_v44  ;;  %4884 = vst.msk [vmem:[#allocation3 + $0x168] sm:$0xff] %vm4838_vm5, %v11043_v44  ;;  %4402 = vrot.lane.b32.xlu0 %v7544_v51, %s7735_s22  ;;  %v7550_v26 = vpop.eup %7549  ;;  %v13413_v51 = vld [vmem:[#allocation41_spill] sm:$0xff] }
 0x641   : > { %4404 = vrot.lane.b32.xlu1 %v7546_v22, %s7735_s22  ;;  %7559 = vtanh.f32 %v13413_v51  ;;  %v13414_v22 = vld [vmem:[#allocation42_spill] sm:$0xff]  ;;  %v7552_v28 = vpop.eup %7551 }
 0x642   : > { %v11053_v20 = vpop.permute.xlu0 %4738  ;;  %7561 = vtanh.f32 %v13414_v22 }
 0x643   : > { %13411 = vst [vmem:[#allocation84_spill] sm:$0xff] %v11053_v20  ;;  %v11055_v18 = vpop.permute.xlu1 %4740  ;;  %4885 = vst.msk [vmem:[#allocation3 + $0x170] sm:$0xff] %vm4838_vm5, %v11053_v20  ;;  %v7554_v20 = vpop.eup %7553  ;;  %7563 = vtanh.f32 %v10691_v53 }
 0x644   : > { %13412 = vst [vmem:[#allocation133_spill] sm:$0xff] %v11055_v18  ;;  %4886 = vst.msk [vmem:[#allocation3 + $0x178] sm:$0xff] %vm4838_vm5, %v11055_v18  ;;  %4406 = vrot.lane.b32.xlu0 %v7548_v45, %s7735_s22  ;;  %7565 = vtanh.f32 %v10693_v46 }
 0x645   : > { %4408 = vrot.lane.b32.xlu1 %v7550_v26, %s7735_s22  ;;  %7567 = vtanh.f32 %v10703_v29  ;;  %v13421_v29 = vld [vmem:[#allocation18_spill] sm:$0xff] }
 0x646   : > { %v11065_v21 = vpop.permute.xlu0 %4742  ;;  %7569 = vtanh.f32 %v10705_v4 }
 0x647   : > { %13415 = vst [vmem:[#allocation85_spill] sm:$0xff] %v11065_v21  ;;  %v11067_v44 = vpop.permute.xlu1 %4744  ;;  %4887 = vst.msk [vmem:[#allocation3 + $0x180] sm:$0xff] %vm4838_vm5, %v11065_v21  ;;  %v7556_v45 = vpop.eup %7555  ;;  %7571 = vtanh.f32 %v10715_v47  ;;  %v13442_v21 = vld [vmem:[#allocation63_spill] sm:$0xff] }
 0x648   : > { %13416 = vst [vmem:[#allocation134_spill] sm:$0xff] %v11067_v44  ;;  %4888 = vst.msk [vmem:[#allocation3 + $0x188] sm:$0xff] %vm4838_vm5, %v11067_v44  ;;  %4410 = vrot.lane.b32.xlu0 %v7552_v28, %s7735_s22  ;;  %v7558_v22 = vpop.eup %7557  ;;  %7573 = vtanh.f32 %v13421_v29 }
 0x649   : > { %4412 = vrot.lane.b32.xlu1 %v7554_v20, %s7735_s22 }
 0x64a   : > { %v11077_v26 = vpop.permute.xlu0 %4746 }
 0x64b   : > { %13417 = vst [vmem:[#allocation86_spill] sm:$0xff] %v11077_v26  ;;  %v11079_v51 = vpop.permute.xlu1 %4748  ;;  %4889 = vst.msk [vmem:[#allocation3 + $0x190] sm:$0xff] %vm4838_vm5, %v11077_v26  ;;  %v7560_v46 = vpop.eup %7559  ;;  %v13440_v26 = vld [vmem:[#allocation91_spill] sm:$0xff] }
 0x64c   : > { %13418 = vst [vmem:[#allocation39_spill] sm:$0xff] %v11079_v51  ;;  %4890 = vst.msk [vmem:[#allocation3 + $0x198] sm:$0xff] %vm4838_vm5, %v11079_v51  ;;  %4414 = vrot.lane.b32.xlu0 %v7556_v45, %s7735_s22  ;;  %v7562_v28 = vpop.eup %7561 }
 0x64d   : > { %4416 = vrot.lane.b32.xlu1 %v7558_v22, %s7735_s22  ;;  %v7564_v45 = vpop.eup %7563 }
 0x64e   : > { %v11089_v53 = vpop.permute.xlu0 %4750 }
 0x64f   : > { %13419 = vst [vmem:[#allocation136_spill] sm:$0xff] %v11089_v53  ;;  %v11091_v20 = vpop.permute.xlu1 %4752  ;;  %4891 = vst.msk [vmem:[#allocation3 + $0x1a0] sm:$0xff] %vm4838_vm5, %v11089_v53  ;;  %v7566_v53 = vpop.eup %7565 }
 0x650   : > { %13420 = vst [vmem:[#allocation22_spill] sm:$0xff] %v11091_v20  ;;  %4892 = vst.msk [vmem:[#allocation3 + $0x1a8] sm:$0xff] %vm4838_vm5, %v11091_v20  ;;  %4418 = vrot.lane.b32.xlu0 %v7560_v46, %s7735_s22  ;;  %v13424_v46 = vld [vmem:[#allocation43_spill] sm:$0xff]  ;;  %v13438_v20 = vld [vmem:[#allocation89_spill] sm:$0xff] }
 0x651   : > { %4420 = vrot.lane.b32.xlu1 %v7562_v28, %s7735_s22  ;;  %7575 = vtanh.f32 %v13424_v46  ;;  %v7568_v28 = vpop.eup %7567 }
 0x652   : > { %v11101_v4 = vpop.permute.xlu0 %4754  ;;  %7577 = vtanh.f32 %v10729_v36 }
 0x653   : > { %13422 = vst [vmem:[#allocation27_spill] sm:$0xff] %v11101_v4  ;;  %v11103_v22 = vpop.permute.xlu1 %4756  ;;  %4893 = vst.msk [vmem:[#allocation3 + $0x1b0] sm:$0xff] %vm4838_vm5, %v11101_v4  ;;  %v7570_v4 = vpop.eup %7569  ;;  %7579 = vtanh.f32 %v10739_v41 }
 0x654   : > { %13423 = vst [vmem:[#allocation32_spill] sm:$0xff] %v11103_v22  ;;  %4894 = vst.msk [vmem:[#allocation3 + $0x1b8] sm:$0xff] %vm4838_vm5, %v11103_v22  ;;  %4422 = vrot.lane.b32.xlu0 %v7564_v45, %s7735_s22  ;;  %7581 = vtanh.f32 %v10741_v15 }
 0x655   : > { %4424 = vrot.lane.b32.xlu1 %v7566_v53, %s7735_s22  ;;  %v7572_v53 = vpop.eup %7571  ;;  %7583 = vtanh.f32 %v10751_v9 }
 0x656   : > { %v11113_v47 = vpop.permute.xlu0 %4758  ;;  %v7574_v46 = vpop.eup %7573  ;;  %7585 = vtanh.f32 %v10755_v39 }
 0x657   : > { %13425 = vst [vmem:[#allocation29_spill] sm:$0xff] %v11113_v47  ;;  %v11115_v29 = vpop.permute.xlu1 %4760  ;;  %4895 = vst.msk [vmem:[#allocation3 + $0x1c0] sm:$0xff] %vm4838_vm5, %v11113_v47  ;;  %7587 = vtanh.f32 %v10773_v14 }
 0x658   : > { %13426 = vst [vmem:[#allocation34_spill] sm:$0xff] %v11115_v29  ;;  %4896 = vst.msk [vmem:[#allocation3 + $0x1c8] sm:$0xff] %vm4838_vm5, %v11115_v29  ;;  %4426 = vrot.lane.b32.xlu0 %v7568_v28, %s7735_s22  ;;  %7589 = vtanh.f32 %v10777_v13 }
 0x659   : > { %4428 = vrot.lane.b32.xlu1 %v7570_v4, %s7735_s22  ;;  %7591 = vtanh.f32 %v10795_v7 }
 0x65a   : > { %v11125_v36 = vpop.permute.xlu0 %4762  ;;  %7593 = vtanh.f32 %v10799_v61 }
 0x65b   : > { %13427 = vst [vmem:[#allocation31_spill] sm:$0xff] %v11125_v36  ;;  %v11127_v45 = vpop.permute.xlu1 %4764  ;;  %4897 = vst.msk [vmem:[#allocation3 + $0x1d0] sm:$0xff] %vm4838_vm5, %v11125_v36  ;;  %v7576_v15 = vpop.eup %7575  ;;  %v13434_v36 = vld [vmem:[#allocation21_spill] sm:$0xff] }
 0x65c   : > { %13428 = vst [vmem:[#allocation33_spill] sm:$0xff] %v11127_v45  ;;  %4898 = vst.msk [vmem:[#allocation3 + $0x1d8] sm:$0xff] %vm4838_vm5, %v11127_v45  ;;  %4430 = vrot.lane.b32.xlu0 %v7572_v53, %s7735_s22  ;;  %v7578_v28 = vpop.eup %7577  ;;  %v13433_v45 = vld [vmem:[#allocation19_spill] sm:$0xff] }
 0x65d   : > { %4432 = vrot.lane.b32.xlu1 %v7574_v46, %s7735_s22  ;;  %v7580_v39 = vpop.eup %7579 }
 0x65e   : > { %v11137_v41 = vpop.permute.xlu0 %4766  ;;  %v7582_v46 = vpop.eup %7581 }
 0x65f   : > { %13429 = vst [vmem:[#allocation36_spill] sm:$0xff] %v11137_v41  ;;  %v11139_v4 = vpop.permute.xlu1 %4768  ;;  %4899 = vst.msk [vmem:[#allocation3 + $0x1e0] sm:$0xff] %vm4838_vm5, %v11137_v41  ;;  %v7584_v13 = vpop.eup %7583 }
 0x660   : > { %13430 = vst [vmem:[#allocation35_spill] sm:$0xff] %v11139_v4  ;;  %4900 = vst.msk [vmem:[#allocation3 + $0x1e8] sm:$0xff] %vm4838_vm5, %v11139_v4  ;;  %4434 = vrot.lane.b32.xlu0 %v7576_v15, %s7735_s22 }
 0x661   : > { %4436 = vrot.lane.b32.xlu1 %v7578_v28, %s7735_s22  ;;  %v7586_v28 = vpop.eup %7585 }
 0x662   : > { %v11149_v9 = vpop.permute.xlu0 %4770  ;;  %v7588_v4 = vpop.eup %7587 }
 0x663   : > { %13431 = vst [vmem:[#allocation40_spill] sm:$0xff] %v11149_v9  ;;  %v11151_v53 = vpop.permute.xlu1 %4772  ;;  %4901 = vst.msk [vmem:[#allocation3 + $0x1f0] sm:$0xff] %vm4838_vm5, %v11149_v9 }
 0x664   : > { %13432 = vst [vmem:[#allocation41_spill] sm:$0xff] %v11151_v53  ;;  %4902 = vst.msk [vmem:[#allocation3 + $0x1f8] sm:$0xff] %vm4838_vm5, %v11151_v53  ;;  %4438 = vrot.lane.b32.xlu0 %v7580_v39, %s7735_s22  ;;  %v7590_v53 = vpop.eup %7589 }
 0x665   : > { %4440 = vrot.lane.b32.xlu1 %v7582_v46, %s7735_s22  ;;  %v7592_v39 = vpop.eup %7591 }
 0x666   : > { %v4327_v14 = vpop.permute.xlu0 %4326  ;;  %v7594_v61 = vpop.eup %7593 }
 0x667   : > { %v4329_v15 = vpop.permute.xlu1 %4328 }
 0x668   : > { %4442 = vrot.lane.b32.xlu0 %v7584_v13, %s7735_s22  ;;  %v11168_v13 = vmul.f32 %v13433_v45, %v4327_v14  ;;  %v11171_v29 = vmul.f32 %v13434_v36, %v4329_v15  ;;  %v13437_v36 = vld [vmem:[#allocation88_spill] sm:$0xff] }
 0x669   : > { %4444 = vrot.lane.b32.xlu1 %v7586_v28, %s7735_s22 }
 0x66a   : > { %v4331_v9 = vpop.permute.xlu0 %4330 }
 0x66b   : > { %v4333_v41 = vpop.permute.xlu1 %4332 }
 0x66c   : > { %4446 = vrot.lane.b32.xlu0 %v7588_v4, %s7735_s22  ;;  %v13435_v4 = vld [vmem:[#allocation24_spill] sm:$0xff] }
 0x66d   : > { %4448 = vrot.lane.b32.xlu1 %v7590_v53, %s7735_s22  ;;  %v11178_v53 = vmul.f32 %v13435_v4, %v4331_v9 }
 0x66e   : > { %v4335_v7 = vpop.permute.xlu0 %4334 }
 0x66f   : > { %v4337_v46 = vpop.permute.xlu1 %4336  ;;  %v11188_v14 = vmul.f32 %v13437_v36, %v4335_v7 }
 0x670   : > { %4450 = vrot.lane.b32.xlu0 %v7592_v39, %s7735_s22  ;;  %v11191_v51 = vmul.f32 %v13438_v20, %v4337_v46  ;;  %v13441_v20 = vld [vmem:[#allocation60_spill] sm:$0xff] }
 0x671   : > { %4452 = vrot.lane.b32.xlu1 %v7594_v61, %s7735_s22  ;;  %v13436_v61 = vld [vmem:[#allocation87_spill] sm:$0xff] }
 0x672   : > { %v4339_v28 = vpop.permute.xlu0 %4338  ;;  %v11181_v22 = vmul.f32 %v13436_v61, %v4333_v41  ;;  %v13439_v41 = vld [vmem:[#allocation90_spill] sm:$0xff] }
 0x673   : > { %v4341_v47 = vpop.permute.xlu1 %4340  ;;  %v11198_v4 = vmul.f32 %v13439_v41, %v4339_v28 }
 0x674   : > { %4967 = vrot.lane.b32.xlu0 %v11168_v13, %s7738_s8  ;;  %v11201_v44 = vmul.f32 %v13440_v26, %v4341_v47  ;;  %v13443_v26 = vld [vmem:[#allocation92_spill] sm:$0xff] }
 0x675   : > { %4969 = vrot.lane.b32.xlu1 %v11171_v29, %s7738_s8 }
 0x676   : > { %v4343_v39 = vpop.permute.xlu0 %4342 }
 0x677   : > { %v4345_v45 = vpop.permute.xlu1 %4344  ;;  %v11208_v46 = vmul.f32 %v13441_v20, %v4343_v39 }
 0x678   : > { %4971 = vrot.lane.b32.xlu0 %v11178_v53, %s7738_s8  ;;  %v11211_v18 = vmul.f32 %v13442_v21, %v4345_v45  ;;  %v13445_v21 = vld [vmem:[#allocation94_spill] sm:$0xff] }
 0x679   : > { %4973 = vrot.lane.b32.xlu1 %v11181_v22, %s7738_s8 }
 0x67a   : > { %v4347_v15 = vpop.permute.xlu0 %4346 }
 0x67b   : > { %v4349_v9 = vpop.permute.xlu1 %4348  ;;  %v11218_v47 = vmul.f32 %v13443_v26, %v4347_v15 }
 0x67c   : > { %4975 = vrot.lane.b32.xlu0 %v11188_v14, %s7738_s8  ;;  %v11221_v23 = vmul.f32 %v13444_v43, %v4349_v9  ;;  %v13447_v43 = vld [vmem:[#allocation96_spill] sm:$0xff] }
 0x67d   : > { %4977 = vrot.lane.b32.xlu1 %v11191_v51, %s7738_s8 }
 0x67e   : > { %v4351_v61 = vpop.permute.xlu0 %4350 }
 0x67f   : > { %v4353_v7 = vpop.permute.xlu1 %4352  ;;  %v11228_v45 = vmul.f32 %v13445_v21, %v4351_v61 }
 0x680   : > { %4979 = vrot.lane.b32.xlu0 %v11198_v4, %s7738_s8  ;;  %v11231_v33 = vmul.f32 %v13446_v37, %v4353_v7  ;;  %v13450_v37 = vld [vmem:[#allocation98_spill] sm:$0xff] }
 0x681   : > { %4981 = vrot.lane.b32.xlu1 %v11201_v44, %s7738_s8 }
 0x682   : > { %v4355_v36 = vpop.permute.xlu0 %4354 }
 0x683   : > { %v4357_v28 = vpop.permute.xlu1 %4356  ;;  %v11238_v9 = vmul.f32 %v13447_v43, %v4355_v36 }
 0x684   : > { %4983 = vrot.lane.b32.xlu0 %v11208_v46, %s7738_s8  ;;  %v11241_v25 = vmul.f32 %v13448_v59, %v4357_v28  ;;  %v13454_v59 = vld [vmem:[#allocation100_spill] sm:$0xff] }
 0x685   : > { %4985 = vrot.lane.b32.xlu1 %v11211_v18, %s7738_s8 }
 0x686   : > { %v4359_v41 = vpop.permute.xlu0 %4358  ;;  %13449 = vst [vmem:[#allocation42_spill] sm:$0xff] %v11241_v25 }
 0x687   : > { %v4361_v39 = vpop.permute.xlu1 %4360  ;;  %v11248_v7 = vmul.f32 %v13450_v37, %v4359_v41 }
 0x688   : > { %4987 = vrot.lane.b32.xlu0 %v11218_v47, %s7738_s8  ;;  %v11251_v32 = vmul.f32 %v13452_v58, %v4361_v39  ;;  %v13458_v58 = vld [vmem:[#allocation102_spill] sm:$0xff] }
 0x689   : > { %4989 = vrot.lane.b32.xlu1 %v11221_v23, %s7738_s8  ;;  %13451 = vst [vmem:[#allocation18_spill] sm:$0xff] %v11248_v7 }
 0x68a   : > { %v4363_v20 = vpop.permute.xlu0 %4362  ;;  %13453 = vst [vmem:[#allocation43_spill] sm:$0xff] %v11251_v32 }
 0x68b   : > { %v4365_v15 = vpop.permute.xlu1 %4364  ;;  %v11258_v28 = vmul.f32 %v13454_v59, %v4363_v20 }
 0x68c   : > { %4991 = vrot.lane.b32.xlu0 %v11228_v45, %s7738_s8  ;;  %v11261_v57 = vmul.f32 %v13456_v5, %v4365_v15  ;;  %v13462_v5 = vld [vmem:[#allocation104_spill] sm:$0xff] }
 0x68d   : > { %4993 = vrot.lane.b32.xlu1 %v11231_v33, %s7738_s8  ;;  %13455 = vst [vmem:[#allocation19_spill] sm:$0xff] %v11258_v28 }
 0x68e   : > { %v4367_v26 = vpop.permute.xlu0 %4366  ;;  %13457 = vst [vmem:[#allocation21_spill] sm:$0xff] %v11261_v57 }
 0x68f   : > { %v4369_v61 = vpop.permute.xlu1 %4368  ;;  %v11268_v39 = vmul.f32 %v13458_v58, %v4367_v26 }
 0x690   : > { %4995 = vrot.lane.b32.xlu0 %v11238_v9, %s7738_s8  ;;  %v11271_v12 = vmul.f32 %v13460_v60, %v4369_v61  ;;  %v13464_v60 = vld [vmem:[#allocation106_spill] sm:$0xff] }
 0x691   : > { %4997 = vrot.lane.b32.xlu1 %v11241_v25, %s7738_s8  ;;  %13459 = vst [vmem:[#allocation24_spill] sm:$0xff] %v11268_v39 }
 0x692   : > { %v4371_v21 = vpop.permute.xlu0 %4370  ;;  %13461 = vst [vmem:[#allocation87_spill] sm:$0xff] %v11271_v12 }
 0x693   : > { %v4373_v36 = vpop.permute.xlu1 %4372  ;;  %v11278_v15 = vmul.f32 %v13462_v5, %v4371_v21 }
 0x694   : > { %4999 = vrot.lane.b32.xlu0 %v11248_v7, %s7738_s8  ;;  %v11281_v34 = vmul.f32 %v13463_v55, %v4373_v36  ;;  %v13468_v55 = vld [vmem:[#allocation108_spill] sm:$0xff] }
 0x695   : > { %5001 = vrot.lane.b32.xlu1 %v11251_v32, %s7738_s8 }
 0x696   : > { %v4375_v43 = vpop.permute.xlu0 %4374 }
 0x697   : > { %v4377_v41 = vpop.permute.xlu1 %4376  ;;  %v11288_v61 = vmul.f32 %v13464_v60, %v4375_v43 }
 0x698   : > { %5003 = vrot.lane.b32.xlu0 %v11258_v28, %s7738_s8  ;;  %v11291_v54 = vmul.f32 %v13466_v11, %v4377_v41  ;;  %v13471_v11 = vld [vmem:[#allocation110_spill] sm:$0xff] }
 0x699   : > { %5005 = vrot.lane.b32.xlu1 %v11261_v57, %s7738_s8  ;;  %13465 = vst [vmem:[#allocation88_spill] sm:$0xff] %v11288_v61 }
 0x69a   : > { %v4379_v37 = vpop.permute.xlu0 %4378  ;;  %13467 = vst [vmem:[#allocation89_spill] sm:$0xff] %v11291_v54 }
 0x69b   : > { %v4381_v20 = vpop.permute.xlu1 %4380  ;;  %v11298_v36 = vmul.f32 %v13468_v55, %v4379_v37  ;;  %v13473_v37 = vld [vmem:[#allocation111_spill] sm:$0xff] }
 0x69c   : > { %5007 = vrot.lane.b32.xlu0 %v11268_v39, %s7738_s8  ;;  %v11303_v50 = vmul.f32 %v13469_v42, %v4381_v20  ;;  %v13475_v42 = vld [vmem:[#allocation112_spill] sm:$0xff] }
 0x69d   : > { %5009 = vrot.lane.b32.xlu1 %v11271_v12, %s7738_s8 }
 0x69e   : > { %v4383_v59 = vpop.permute.xlu0 %4382  ;;  %13470 = vst [vmem:[#allocation90_spill] sm:$0xff] %v11303_v50 }
 0x69f   : > { %v4385_v26 = vpop.permute.xlu1 %4384  ;;  %v11312_v41 = vmul.f32 %v13471_v11, %v4383_v59  ;;  %v13476_v59 = vld [vmem:[#allocation113_spill] sm:$0xff] }
 0x6a0   : > { %5011 = vrot.lane.b32.xlu0 %v11278_v15, %s7738_s8  ;;  %v11317_v55 = vmul.f32 %v13473_v37, %v4385_v26 }
 0x6a1   : > { %5013 = vrot.lane.b32.xlu1 %v11281_v34, %s7738_s8  ;;  %13472 = vst [vmem:[#allocation91_spill] sm:$0xff] %v11312_v41 }
 0x6a2   : > { %v4387_v58 = vpop.permute.xlu0 %4386  ;;  %13474 = vst [vmem:[#allocation60_spill] sm:$0xff] %v11317_v55 }
 0x6a3   : > { %v4389_v21 = vpop.permute.xlu1 %4388  ;;  %v11326_v20 = vmul.f32 %v13475_v42, %v4387_v58 }
 0x6a4   : > { %5015 = vrot.lane.b32.xlu0 %v11288_v61, %s7738_s8  ;;  %v11331_v11 = vmul.f32 %v13476_v59, %v4389_v21 }
 0x6a5   : > { %5017 = vrot.lane.b32.xlu1 %v11291_v54, %s7738_s8 }
 0x6a6   : > { %v11300_v5 = vpop.permute.xlu0 %4390 }
 0x6a7   : > { %v11305_v43 = vpop.permute.xlu1 %4392 }
 0x6a8   : > { %5019 = vrot.lane.b32.xlu0 %v11298_v36, %s7738_s8 }
 0x6a9   : > { %5021 = vrot.lane.b32.xlu1 %v11303_v50, %s7738_s8 }
 0x6aa   : > { %v11314_v60 = vpop.permute.xlu0 %4394 }
 0x6ab   : > { %v11319_v56 = vpop.permute.xlu1 %4396 }
 0x6ac   : > { %5023 = vrot.lane.b32.xlu0 %v11312_v41, %s7738_s8 }
 0x6ad   : > { %5025 = vrot.lane.b32.xlu1 %v11317_v55, %s7738_s8 }
 0x6ae   : > { %v11328_v62 = vpop.permute.xlu0 %4398 }
 0x6af   : > { %v11333_v48 = vpop.permute.xlu1 %4400 }
 0x6b0   : > { %5027 = vrot.lane.b32.xlu0 %v11326_v20, %s7738_s8 }
 0x6b1   : > { %5029 = vrot.lane.b32.xlu1 %v11331_v11, %s7738_s8 }
 0x6b2   : > { %v11339_v26 = vpop.permute.xlu0 %4402 }
 0x6b3   : > { %v11341_v37 = vpop.permute.xlu1 %4404 }
 0x6b4   : > { %5225 = vrot.lane.b32.xlu0 %v11168_v13, %s7737_s30 }
 0x6b5   : > { %5227 = vrot.lane.b32.xlu1 %v11171_v29, %s7737_s30 }
 0x6b6   : > { %v11347_v58 = vpop.permute.xlu0 %4406 }
 0x6b7   : > { %v11349_v21 = vpop.permute.xlu1 %4408 }
 0x6b8   : > { %5229 = vrot.lane.b32.xlu0 %v11178_v53, %s7737_s30 }
 0x6b9   : > { %5231 = vrot.lane.b32.xlu1 %v11181_v22, %s7737_s30 }
 0x6ba   : > { %v11355_v42 = vpop.permute.xlu0 %4410 }
 0x6bb   : > { %v11357_v59 = vpop.permute.xlu1 %4412 }
 0x6bc   : > { %5233 = vrot.lane.b32.xlu0 %v11188_v14, %s7737_s30 }
 0x6bd   : > { %5235 = vrot.lane.b32.xlu1 %v11191_v51, %s7737_s30 }
 0x6be   : > { %v11363_v52 = vpop.permute.xlu0 %4414 }
 0x6bf   : > { %v11365_v16 = vpop.permute.xlu1 %4416 }
 0x6c0   : > { %5237 = vrot.lane.b32.xlu0 %v11198_v4, %s7737_s30 }
 0x6c1   : > { %5239 = vrot.lane.b32.xlu1 %v11201_v44, %s7737_s30 }
 0x6c2   : > { %v11371_v30 = vpop.permute.xlu0 %4418 }
 0x6c3   : > { %v11373_v3 = vpop.permute.xlu1 %4420 }
 0x6c4   : > { %5241 = vrot.lane.b32.xlu0 %v11208_v46, %s7737_s30 }
 0x6c5   : > { %5243 = vrot.lane.b32.xlu1 %v11211_v18, %s7737_s30 }
 0x6c6   : > { %v11379_v35 = vpop.permute.xlu0 %4422 }
 0x6c7   : > { %v11381_v10 = vpop.permute.xlu1 %4424 }
 0x6c8   : > { %5245 = vrot.lane.b32.xlu0 %v11218_v47, %s7737_s30 }
 0x6c9   : > { %5247 = vrot.lane.b32.xlu1 %v11221_v23, %s7737_s30 }
 0x6ca   : > { %v11387_v2 = vpop.permute.xlu0 %4426 }
 0x6cb   : > { %v11389_v63 = vpop.permute.xlu1 %4428 }
 0x6cc   : > { %5249 = vrot.lane.b32.xlu0 %v11228_v45, %s7737_s30 }
 0x6cd   : > { %5251 = vrot.lane.b32.xlu1 %v11231_v33, %s7737_s30 }
 0x6ce   : > { %v11395_v6 = vpop.permute.xlu0 %4430 }
 0x6cf   : > { %v11397_v27 = vpop.permute.xlu1 %4432 }
 0x6d0   : > { %5253 = vrot.lane.b32.xlu0 %v11238_v9, %s7737_s30 }
 0x6d1   : > { %5255 = vrot.lane.b32.xlu1 %v11241_v25, %s7737_s30 }
 0x6d2   : > { %v11403_v40 = vpop.permute.xlu0 %4434 }
 0x6d3   : > { %v11405_v1 = vpop.permute.xlu1 %4436 }
 0x6d4   : > { %5257 = vrot.lane.b32.xlu0 %v11248_v7, %s7737_s30 }
 0x6d5   : > { %5259 = vrot.lane.b32.xlu1 %v11251_v32, %s7737_s30 }
 0x6d6   : > { %v11411_v8 = vpop.permute.xlu0 %4438 }
 0x6d7   : > { %v11413_v0 = vpop.permute.xlu1 %4440 }
 0x6d8   : > { %5261 = vrot.lane.b32.xlu0 %v11258_v28, %s7737_s30 }
 0x6d9   : > { %5263 = vrot.lane.b32.xlu1 %v11261_v57, %s7737_s30 }
 0x6da   : > { %v11419_v49 = vpop.permute.xlu0 %4442 }
 0x6db   : > { %v11421_v25 = vpop.permute.xlu1 %4444 }
 0x6dc   : > { %5265 = vrot.lane.b32.xlu0 %v11268_v39, %s7737_s30 }
 0x6dd   : > { %5267 = vrot.lane.b32.xlu1 %v11271_v12, %s7737_s30 }
 0x6de   : > { %v11427_v32 = vpop.permute.xlu0 %4446 }
 0x6df   : > { %v11429_v7 = vpop.permute.xlu1 %4448 }
 0x6e0   : > { %5269 = vrot.lane.b32.xlu0 %v11278_v15, %s7737_s30 }
 0x6e1   : > { %5271 = vrot.lane.b32.xlu1 %v11281_v34, %s7737_s30 }
 0x6e2   : > { %v11435_v57 = vpop.permute.xlu0 %4450 }
 0x6e3   : > { %v11437_v28 = vpop.permute.xlu1 %4452 }
 0x6e4   : > { %5273 = vrot.lane.b32.xlu0 %v11288_v61, %s7737_s30 }
 0x6e5   : > { %5275 = vrot.lane.b32.xlu1 %v11291_v54, %s7737_s30 }
 0x6e6   : > { %v11443_v12 = vpop.permute.xlu0 %4967 }
 0x6e7   : > { %13477 = vst [vmem:[#allocation63_spill] sm:$0xff] %v11443_v12  ;;  %v11445_v39 = vpop.permute.xlu1 %4969  ;;  %5160 = vst.msk [vmem:[#allocation2 + $0x11] sm:$0xff] %vm4838_vm5, %v11443_v12 }
 0x6e8   : > { %13478 = vst [vmem:[#allocation92_spill] sm:$0xff] %v11445_v39  ;;  %5548 = vst.msk [vmem:[%s7855_s23] sm:$0xff] %vm4838_vm5, %v11443_v12  ;;  %5277 = vrot.lane.b32.xlu0 %v11298_v36, %s7737_s30 }
 0x6e9   : > { %5162 = vst.msk [vmem:[#allocation2 + $0x19] sm:$0x7f] %vm5161_vm6, %v11445_v39  ;;  %5279 = vrot.lane.b32.xlu1 %v11303_v50, %s7737_s30 }
 0x6ea   : > { %5549 = vst.msk [vmem:[%s7855_s23 + $0x8] sm:$0xff] %vm4838_vm5, %v11445_v39  ;;  %v11461_v54 = vpop.permute.xlu0 %4971 }
 0x6eb   : > { %13479 = vst [vmem:[#allocation93_spill] sm:$0xff] %v11461_v54  ;;  %v11463_v61 = vpop.permute.xlu1 %4973  ;;  %5163 = vst.msk [vmem:[#allocation2 + $0x21] sm:$0xff] %vm4838_vm5, %v11461_v54 }
 0x6ec   : > { %13480 = vst [vmem:[#allocation94_spill] sm:$0xff] %v11463_v61  ;;  %5550 = vst.msk [vmem:[%s7855_s23 + $0x10] sm:$0xff] %vm4838_vm5, %v11461_v54  ;;  %5281 = vrot.lane.b32.xlu0 %v11312_v41, %s7737_s30 }
 0x6ed   : > { %5164 = vst.msk [vmem:[#allocation2 + $0x29] sm:$0x7f] %vm5161_vm6, %v11463_v61  ;;  %5283 = vrot.lane.b32.xlu1 %v11317_v55, %s7737_s30 }
 0x6ee   : > { %5551 = vst.msk [vmem:[%s7855_s23 + $0x18] sm:$0xff] %vm4838_vm5, %v11463_v61  ;;  %v11479_v39 = vpop.permute.xlu0 %4975  ;;  %v13483_v61 = vld [vmem:[#allocation114_spill] sm:$0xff] }
 0x6ef   : > { %13481 = vst [vmem:[#allocation95_spill] sm:$0xff] %v11479_v39  ;;  %v11481_v12 = vpop.permute.xlu1 %4977  ;;  %5165 = vst.msk [vmem:[#allocation2 + $0x31] sm:$0xff] %vm4838_vm5, %v11479_v39  ;;  %v11499_v54 = vmul.f32 %v13483_v61, %v11300_v5 }
 0x6f0   : > { %13482 = vst [vmem:[#allocation96_spill] sm:$0xff] %v11481_v12  ;;  %5552 = vst.msk [vmem:[%s7855_s23 + $0x20] sm:$0xff] %vm4838_vm5, %v11479_v39  ;;  %5285 = vrot.lane.b32.xlu0 %v11326_v20, %s7737_s30  ;;  %v13485_v39 = vld [vmem:[#allocation115_spill] sm:$0xff] }
 0x6f1   : > { %5166 = vst.msk [vmem:[#allocation2 + $0x39] sm:$0x7f] %vm5161_vm6, %v11481_v12  ;;  %5287 = vrot.lane.b32.xlu1 %v11331_v11, %s7737_s30  ;;  %v11505_v41 = vmul.f32 %v13485_v39, %v11305_v43  ;;  %v13487_v39 = vld [vmem:[#allocation116_spill] sm:$0xff]  ;;  %v13489_v43 = vld [vmem:[#allocation117_spill] sm:$0xff] }
 0x6f2   : > { %5553 = vst.msk [vmem:[%s7855_s23 + $0x28] sm:$0xff] %vm4838_vm5, %v11481_v12  ;;  %v11501_v55 = vpop.permute.xlu0 %4979  ;;  %v11525_v61 = vmul.f32 %v13487_v39, %v11314_v60 }
 0x6f3   : > { %13484 = vst [vmem:[#allocation97_spill] sm:$0xff] %v11501_v55  ;;  %v11507_v50 = vpop.permute.xlu1 %4981  ;;  %5167 = vst.msk [vmem:[#allocation2 + $0x41] sm:$0xff] %vm4838_vm5, %v11501_v55 }
 0x6f4   : > { %13486 = vst [vmem:[#allocation98_spill] sm:$0xff] %v11507_v50  ;;  %5554 = vst.msk [vmem:[%s7855_s23 + $0x30] sm:$0xff] %vm4838_vm5, %v11501_v55  ;;  %5031 = vrot.lane.b32.xlu0 %v11499_v54, %s7738_s8  ;;  %v11531_v55 = vmul.f32 %v13489_v43, %v11319_v56  ;;  %v13491_v56 = vld [vmem:[#allocation118_spill] sm:$0xff]  ;;  %v13493_v43 = vld [vmem:[#allocation119_spill] sm:$0xff] }
 0x6f5   : > { %5168 = vst.msk [vmem:[#allocation2 + $0x49] sm:$0x7f] %vm5161_vm6, %v11507_v50  ;;  %5033 = vrot.lane.b32.xlu1 %v11505_v41, %s7738_s8  ;;  %v11551_v60 = vmul.f32 %v13491_v56, %v11328_v62 }
 0x6f6   : > { %5555 = vst.msk [vmem:[%s7855_s23 + $0x38] sm:$0xff] %vm4838_vm5, %v11507_v50  ;;  %v11527_v5 = vpop.permute.xlu0 %4983 }
 0x6f7   : > { %13488 = vst [vmem:[#allocation99_spill] sm:$0xff] %v11527_v5  ;;  %v11533_v12 = vpop.permute.xlu1 %4985  ;;  %5169 = vst.msk [vmem:[#allocation2 + $0x51] sm:$0xff] %vm4838_vm5, %v11527_v5 }
 0x6f8   : > { %13490 = vst [vmem:[#allocation100_spill] sm:$0xff] %v11533_v12  ;;  %5556 = vst.msk [vmem:[%s7855_s23 + $0x40] sm:$0xff] %vm4838_vm5, %v11527_v5  ;;  %5035 = vrot.lane.b32.xlu0 %v11525_v61, %s7738_s8  ;;  %v11557_v5 = vmul.f32 %v13493_v43, %v11333_v48  ;;  %v13495_v48 = vld [vmem:[#allocation120_spill] sm:$0xff]  ;;  %v13497_v43 = vld [vmem:[#allocation121_spill] sm:$0xff] }
 0x6f9   : > { %5170 = vst.msk [vmem:[#allocation2 + $0x59] sm:$0x7f] %vm5161_vm6, %v11533_v12  ;;  %5037 = vrot.lane.b32.xlu1 %v11531_v55, %s7738_s8  ;;  %v11577_v62 = vmul.f32 %v13495_v48, %v11339_v26  ;;  %v13499_v26 = vld [vmem:[#allocation122_spill] sm:$0xff] }
 0x6fa   : > { %5557 = vst.msk [vmem:[%s7855_s23 + $0x48] sm:$0xff] %vm4838_vm5, %v11533_v12  ;;  %v11553_v39 = vpop.permute.xlu0 %4987 }
 0x6fb   : > { %13492 = vst [vmem:[#allocation101_spill] sm:$0xff] %v11553_v39  ;;  %v11559_v50 = vpop.permute.xlu1 %4989  ;;  %5171 = vst.msk [vmem:[#allocation2 + $0x61] sm:$0xff] %vm4838_vm5, %v11553_v39 }
 0x6fc   : > { %13494 = vst [vmem:[#allocation102_spill] sm:$0xff] %v11559_v50  ;;  %5558 = vst.msk [vmem:[%s7855_s23 + $0x50] sm:$0xff] %vm4838_vm5, %v11553_v39  ;;  %5039 = vrot.lane.b32.xlu0 %v11551_v60, %s7738_s8  ;;  %v11583_v39 = vmul.f32 %v13497_v43, %v11341_v37  ;;  %v11603_v37 = vmul.f32 %v13499_v26, %v11347_v58  ;;  %v13501_v43 = vld [vmem:[#allocation123_spill] sm:$0xff]  ;;  %v13503_v58 = vld [vmem:[#allocation17_spill] sm:$0xff] }
 0x6fd   : > { %5172 = vst.msk [vmem:[#allocation2 + $0x69] sm:$0x7f] %vm5161_vm6, %v11559_v50  ;;  %5041 = vrot.lane.b32.xlu1 %v11557_v5, %s7738_s8 }
 0x6fe   : > { %5559 = vst.msk [vmem:[%s7855_s23 + $0x58] sm:$0xff] %vm4838_vm5, %v11559_v50  ;;  %v11579_v56 = vpop.permute.xlu0 %4991 }
 0x6ff   : > { %13496 = vst [vmem:[#allocation103_spill] sm:$0xff] %v11579_v56  ;;  %v11585_v12 = vpop.permute.xlu1 %4993  ;;  %5173 = vst.msk [vmem:[#allocation2 + $0x71] sm:$0xff] %vm4838_vm5, %v11579_v56 }
 0x700   : > { %13498 = vst [vmem:[#allocation104_spill] sm:$0xff] %v11585_v12  ;;  %5560 = vst.msk [vmem:[%s7855_s23 + $0x60] sm:$0xff] %vm4838_vm5, %v11579_v56  ;;  %5043 = vrot.lane.b32.xlu0 %v11577_v62, %s7738_s8  ;;  %v11609_v56 = vmul.f32 %v13501_v43, %v11349_v21  ;;  %v11629_v21 = vmul.f32 %v13503_v58, %v11355_v42  ;;  %v13505_v43 = vld [vmem:[#allocation14_spill] sm:$0xff]  ;;  %v13507_v42 = vld [vmem:[#allocation49_spill] sm:$0xff] }
 0x701   : > { %5174 = vst.msk [vmem:[#allocation2 + $0x79] sm:$0x7f] %vm5161_vm6, %v11585_v12  ;;  %5045 = vrot.lane.b32.xlu1 %v11583_v39, %s7738_s8 }
 0x702   : > { %5561 = vst.msk [vmem:[%s7855_s23 + $0x68] sm:$0xff] %vm4838_vm5, %v11585_v12  ;;  %v11605_v48 = vpop.permute.xlu0 %4995 }
 0x703   : > { %13500 = vst [vmem:[#allocation105_spill] sm:$0xff] %v11605_v48  ;;  %v11611_v50 = vpop.permute.xlu1 %4997  ;;  %5175 = vst.msk [vmem:[#allocation2 + $0x81] sm:$0xff] %vm4838_vm5, %v11605_v48 }
 0x704   : > { %13502 = vst [vmem:[#allocation106_spill] sm:$0xff] %v11611_v50  ;;  %5562 = vst.msk [vmem:[%s7855_s23 + $0x70] sm:$0xff] %vm4838_vm5, %v11605_v48  ;;  %5047 = vrot.lane.b32.xlu0 %v11603_v37, %s7738_s8  ;;  %v11635_v48 = vmul.f32 %v13505_v43, %v11357_v59  ;;  %v11655_v59 = vmul.f32 %v13507_v42, %v11363_v52  ;;  %v13509_v43 = vld [vmem:[#allocation50_spill] sm:$0xff] }
 0x705   : > { %5176 = vst.msk [vmem:[#allocation2 + $0x89] sm:$0x7f] %vm5161_vm6, %v11611_v50  ;;  %5049 = vrot.lane.b32.xlu1 %v11609_v56, %s7738_s8 }
 0x706   : > { %5563 = vst.msk [vmem:[%s7855_s23 + $0x78] sm:$0xff] %vm4838_vm5, %v11611_v50  ;;  %v11631_v26 = vpop.permute.xlu0 %4999 }
 0x707   : > { %13504 = vst [vmem:[#allocation107_spill] sm:$0xff] %v11631_v26  ;;  %v11637_v12 = vpop.permute.xlu1 %5001  ;;  %5177 = vst.msk [vmem:[#allocation2 + $0x91] sm:$0xff] %vm4838_vm5, %v11631_v26 }
 0x708   : > { %13506 = vst [vmem:[#allocation108_spill] sm:$0xff] %v11637_v12  ;;  %5564 = vst.msk [vmem:[%s7855_s23 + $0x80] sm:$0xff] %vm4838_vm5, %v11631_v26  ;;  %5051 = vrot.lane.b32.xlu0 %v11629_v21, %s7738_s8  ;;  %v11661_v26 = vmul.f32 %v13509_v43, %v11365_v16  ;;  %v13511_v16 = vld [vmem:[#allocation51_spill] sm:$0xff]  ;;  %v13513_v43 = vld [vmem:[#allocation52_spill] sm:$0xff] }
 0x709   : > { %5178 = vst.msk [vmem:[#allocation2 + $0x99] sm:$0x7f] %vm5161_vm6, %v11637_v12  ;;  %5053 = vrot.lane.b32.xlu1 %v11635_v48, %s7738_s8  ;;  %v11681_v52 = vmul.f32 %v13511_v16, %v11371_v30 }
 0x70a   : > { %5565 = vst.msk [vmem:[%s7855_s23 + $0x88] sm:$0xff] %vm4838_vm5, %v11637_v12  ;;  %v11657_v58 = vpop.permute.xlu0 %5003 }
 0x70b   : > { %13508 = vst [vmem:[#allocation109_spill] sm:$0xff] %v11657_v58  ;;  %v11663_v50 = vpop.permute.xlu1 %5005  ;;  %5179 = vst.msk [vmem:[#allocation2 + $0xa1] sm:$0xff] %vm4838_vm5, %v11657_v58 }
 0x70c   : > { %13510 = vst [vmem:[#allocation110_spill] sm:$0xff] %v11663_v50  ;;  %5566 = vst.msk [vmem:[%s7855_s23 + $0x90] sm:$0xff] %vm4838_vm5, %v11657_v58  ;;  %5055 = vrot.lane.b32.xlu0 %v11655_v59, %s7738_s8  ;;  %v11687_v58 = vmul.f32 %v13513_v43, %v11373_v3  ;;  %v13515_v3 = vld [vmem:[#allocation53_spill] sm:$0xff]  ;;  %v13517_v43 = vld [vmem:[#allocation124_spill] sm:$0xff] }
 0x70d   : > { %5180 = vst.msk [vmem:[#allocation2 + $0xa9] sm:$0x7f] %vm5161_vm6, %v11663_v50  ;;  %5057 = vrot.lane.b32.xlu1 %v11661_v26, %s7738_s8  ;;  %v11707_v30 = vmul.f32 %v13515_v3, %v11379_v35 }
 0x70e   : > { %5567 = vst.msk [vmem:[%s7855_s23 + $0x98] sm:$0xff] %vm4838_vm5, %v11663_v50  ;;  %v11683_v42 = vpop.permute.xlu0 %5007 }
 0x70f   : > { %13512 = vst [vmem:[#allocation111_spill] sm:$0xff] %v11683_v42  ;;  %v11689_v12 = vpop.permute.xlu1 %5009  ;;  %5181 = vst.msk [vmem:[#allocation2 + $0xb1] sm:$0xff] %vm4838_vm5, %v11683_v42 }
 0x710   : > { %13514 = vst [vmem:[#allocation112_spill] sm:$0xff] %v11689_v12  ;;  %5568 = vst.msk [vmem:[%s7855_s23 + $0xa0] sm:$0xff] %vm4838_vm5, %v11683_v42  ;;  %5059 = vrot.lane.b32.xlu0 %v11681_v52, %s7738_s8  ;;  %v11713_v42 = vmul.f32 %v13517_v43, %v11381_v10  ;;  %v13519_v10 = vld [vmem:[#allocation125_spill] sm:$0xff]  ;;  %v13521_v43 = vld [vmem:[#allocation126_spill] sm:$0xff] }
 0x711   : > { %5182 = vst.msk [vmem:[#allocation2 + $0xb9] sm:$0x7f] %vm5161_vm6, %v11689_v12  ;;  %5061 = vrot.lane.b32.xlu1 %v11687_v58, %s7738_s8  ;;  %v11733_v35 = vmul.f32 %v13519_v10, %v11387_v2 }
 0x712   : > { %5569 = vst.msk [vmem:[%s7855_s23 + $0xa8] sm:$0xff] %vm4838_vm5, %v11689_v12  ;;  %v11709_v16 = vpop.permute.xlu0 %5011 }
 0x713   : > { %13516 = vst [vmem:[#allocation113_spill] sm:$0xff] %v11709_v16  ;;  %v11715_v50 = vpop.permute.xlu1 %5013  ;;  %5183 = vst.msk [vmem:[#allocation2 + $0xc1] sm:$0xff] %vm4838_vm5, %v11709_v16 }
 0x714   : > { %13518 = vst [vmem:[#allocation114_spill] sm:$0xff] %v11715_v50  ;;  %5570 = vst.msk [vmem:[%s7855_s23 + $0xb0] sm:$0xff] %vm4838_vm5, %v11709_v16  ;;  %5063 = vrot.lane.b32.xlu0 %v11707_v30, %s7738_s8  ;;  %v11739_v16 = vmul.f32 %v13521_v43, %v11389_v63  ;;  %v13523_v63 = vld [vmem:[#allocation127_spill] sm:$0xff]  ;;  %v13525_v43 = vld [vmem:[#allocation128_spill] sm:$0xff] }
 0x715   : > { %5184 = vst.msk [vmem:[#allocation2 + $0xc9] sm:$0x7f] %vm5161_vm6, %v11715_v50  ;;  %5065 = vrot.lane.b32.xlu1 %v11713_v42, %s7738_s8  ;;  %v11759_v2 = vmul.f32 %v13523_v63, %v11395_v6 }
 0x716   : > { %5571 = vst.msk [vmem:[%s7855_s23 + $0xb8] sm:$0xff] %vm4838_vm5, %v11715_v50  ;;  %v11735_v3 = vpop.permute.xlu0 %5015 }
 0x717   : > { %13520 = vst [vmem:[#allocation115_spill] sm:$0xff] %v11735_v3  ;;  %v11741_v12 = vpop.permute.xlu1 %5017  ;;  %5185 = vst.msk [vmem:[#allocation2 + $0xd1] sm:$0xff] %vm4838_vm5, %v11735_v3 }
 0x718   : > { %13522 = vst [vmem:[#allocation116_spill] sm:$0xff] %v11741_v12  ;;  %5572 = vst.msk [vmem:[%s7855_s23 + $0xc0] sm:$0xff] %vm4838_vm5, %v11735_v3  ;;  %5067 = vrot.lane.b32.xlu0 %v11733_v35, %s7738_s8  ;;  %v11765_v3 = vmul.f32 %v13525_v43, %v11397_v27  ;;  %v13526_v27 = vld [vmem:[#allocation129_spill] sm:$0xff]  ;;  %v13528_v43 = vld [vmem:[#allocation130_spill] sm:$0xff] }
 0x719   : > { %5186 = vst.msk [vmem:[#allocation2 + $0xd9] sm:$0x7f] %vm5161_vm6, %v11741_v12  ;;  %5069 = vrot.lane.b32.xlu1 %v11739_v16, %s7738_s8  ;;  %v11785_v6 = vmul.f32 %v13526_v27, %v11403_v40 }
 0x71a   : > { %5573 = vst.msk [vmem:[%s7855_s23 + $0xc8] sm:$0xff] %vm4838_vm5, %v11741_v12  ;;  %v11761_v10 = vpop.permute.xlu0 %5019 }
 0x71b   : > { %13524 = vst [vmem:[#allocation117_spill] sm:$0xff] %v11761_v10  ;;  %v11767_v50 = vpop.permute.xlu1 %5021  ;;  %5187 = vst.msk [vmem:[#allocation2 + $0xe1] sm:$0xff] %vm4838_vm5, %v11761_v10 }
 0x71c   : > { %5574 = vst.msk [vmem:[%s7855_s23 + $0xd0] sm:$0xff] %vm4838_vm5, %v11761_v10  ;;  %5575 = vst.msk [vmem:[%s7855_s23 + $0xd8] sm:$0xff] %vm4838_vm5, %v11767_v50  ;;  %5071 = vrot.lane.b32.xlu0 %v11759_v2, %s7738_s8  ;;  %v11791_v10 = vmul.f32 %v13528_v43, %v11405_v1  ;;  %v13529_v1 = vld [vmem:[#allocation131_spill] sm:$0xff]  ;;  %v11817_v43 = vmul.f32 %v10369_v31, %v11413_v0  ;;  %v13531_v31 = vld [vmem:[#allocation132_spill] sm:$0xff] }
 0x71d   : > { %5188 = vst.msk [vmem:[#allocation2 + $0xe9] sm:$0x7f] %vm5161_vm6, %v11767_v50  ;;  %5073 = vrot.lane.b32.xlu1 %v11765_v3, %s7738_s8  ;;  %v11811_v40 = vmul.f32 %v13529_v1, %v11411_v8  ;;  %v11837_v0 = vmul.f32 %v13531_v31, %v11419_v49  ;;  %v11841_v1 = vmul.f32 %v13348_v19, %v11421_v25  ;;  %v13532_v25 = vld [vmem:[#allocation135_spill] sm:$0xff] }
 0x71e   : > { %v11787_v63 = vpop.permute.xlu0 %5023  ;;  %v11855_v19 = vmul.f32 %v13352_v17, %v11427_v32  ;;  %v11873_v17 = vmul.f32 %v13358_v24, %v11435_v57  ;;  %5643 = vst.msk [vmem:[#allocation6 + $0xd8] sm:$0xff] (!%p6115_p13), %vm4838_vm5, %v11767_v50 }
 0x71f   : > { %13527 = vst [vmem:[#allocation118_spill] sm:$0xff] %v11787_v63  ;;  %v11793_v12 = vpop.permute.xlu1 %5025  ;;  %5189 = vst.msk [vmem:[#allocation2 + $0xf1] sm:$0xff] %vm4838_vm5, %v11787_v63 }
 0x720   : > { %5576 = vst.msk [vmem:[%s7855_s23 + $0xe0] sm:$0xff] %vm4838_vm5, %v11787_v63  ;;  %5577 = vst.msk [vmem:[%s7855_s23 + $0xe8] sm:$0xff] %vm4838_vm5, %v11793_v12  ;;  %5075 = vrot.lane.b32.xlu0 %v11785_v6, %s7738_s8 }
 0x721   : > { %5190 = vst.msk [vmem:[#allocation2 + $0xf9] sm:$0x7f] %vm5161_vm6, %v11793_v12  ;;  %5077 = vrot.lane.b32.xlu1 %v11791_v10, %s7738_s8 }
 0x722   : > { %v11813_v27 = vpop.permute.xlu0 %5027  ;;  %5645 = vst.msk [vmem:[#allocation6 + $0xe8] sm:$0xff] (!%p6115_p13), %vm4838_vm5, %v11793_v12 }
 0x723   : > { %13530 = vst [vmem:[#allocation119_spill] sm:$0xff] %v11813_v27  ;;  %v11819_v63 = vpop.permute.xlu1 %5029  ;;  %5191 = vst.msk [vmem:[#allocation2 + $0x101] sm:$0xff] %vm4838_vm5, %v11813_v27 }
 0x724   : > { %5578 = vst.msk [vmem:[%s7855_s23 + $0xf0] sm:$0xff] %vm4838_vm5, %v11813_v27  ;;  %5579 = vst.msk [vmem:[%s7855_s23 + $0xf8] sm:$0xff] %vm4838_vm5, %v11819_v63  ;;  %5079 = vrot.lane.b32.xlu0 %v11811_v40, %s7738_s8 }
 0x725   : > { %5192 = vst.msk [vmem:[#allocation2 + $0x109] sm:$0x7f] %vm5161_vm6, %v11819_v63  ;;  %5081 = vrot.lane.b32.xlu1 %v11817_v43, %s7738_s8 }
 0x726   : > { %v5226_v8 = vpop.permute.xlu0 %5225  ;;  %5647 = vst.msk [vmem:[#allocation6 + $0xf8] sm:$0xff] (!%p6115_p13), %vm4838_vm5, %v11819_v63 }
 0x727   : > { %v5228_v27 = vpop.permute.xlu1 %5227  ;;  %5418 = vst.msk [vmem:[#allocation2 + $0x10] sm:$0xff] %vm5417_vm7, %v5226_v8  ;;  %v13537_v8 = vld [vmem:[#allocation21_spill] sm:$0xff] }
 0x728   : > { %5419 = vst.msk [vmem:[#allocation2 + $0x18] sm:$0xff] %vm5417_vm7, %v5228_v27  ;;  %5083 = vrot.lane.b32.xlu0 %v11837_v0, %s7738_s8  ;;  %v11859_v27 = vmul.f32 %v13532_v25, %v11429_v7 }
 0x729   : > { %5483 = vst.msk [vmem:[#allocation2 + $0xf] sm:$0xfe] %vm5482_vm8, %v11168_v13  ;;  %5085 = vrot.lane.b32.xlu1 %v11841_v1, %s7738_s8 }
 0x72a   : > { %5485 = vst.msk [vmem:[#allocation2 + $0x17] sm:$0xff] %vm5484_vm9, %v11171_v29  ;;  %v5230_v49 = vpop.permute.xlu0 %5229  ;;  %v11877_v29 = vmul.f32 %v10393_v38, %v11437_v28  ;;  %v13536_v28 = vld [vmem:[#allocation19_spill] sm:$0xff] }
 0x72b   : > { %v5232_v31 = vpop.permute.xlu1 %5231  ;;  %5420 = vst.msk [vmem:[#allocation2 + $0x20] sm:$0xff] %vm5417_vm7, %v5230_v49 }
 0x72c   : > { %5421 = vst.msk [vmem:[#allocation2 + $0x28] sm:$0xff] %vm5417_vm7, %v5232_v31  ;;  %5087 = vrot.lane.b32.xlu0 %v11855_v19, %s7738_s8  ;;  %v13538_v31 = vld [vmem:[#allocation24_spill] sm:$0xff] }
 0x72d   : > { %5486 = vst.msk [vmem:[#allocation2 + $0x1f] sm:$0xfe] %vm5482_vm8, %v11178_v53  ;;  %5089 = vrot.lane.b32.xlu1 %v11859_v27, %s7738_s8 }
 0x72e   : > { %5487 = vst.msk [vmem:[#allocation2 + $0x27] sm:$0xff] %vm5484_vm9, %v11181_v22  ;;  %v5234_v32 = vpop.permute.xlu0 %5233 }
 0x72f   : > { %v5236_v13 = vpop.permute.xlu1 %5235  ;;  %5422 = vst.msk [vmem:[#allocation2 + $0x30] sm:$0xff] %vm5417_vm7, %v5234_v32  ;;  %v13539_v32 = vld [vmem:[#allocation87_spill] sm:$0xff] }
 0x730   : > { %5423 = vst.msk [vmem:[#allocation2 + $0x38] sm:$0xff] %vm5417_vm7, %v5236_v13  ;;  %5091 = vrot.lane.b32.xlu0 %v11873_v17, %s7738_s8 }
 0x731   : > { %5488 = vst.msk [vmem:[#allocation2 + $0x2f] sm:$0xfe] %vm5482_vm8, %v11188_v14  ;;  %5093 = vrot.lane.b32.xlu1 %v11877_v29, %s7738_s8 }
 0x732   : > { %5489 = vst.msk [vmem:[#allocation2 + $0x37] sm:$0xff] %vm5484_vm9, %v11191_v51  ;;  %v5238_v24 = vpop.permute.xlu0 %5237 }
 0x733   : > { %v5240_v38 = vpop.permute.xlu1 %5239  ;;  %5424 = vst.msk [vmem:[#allocation2 + $0x40] sm:$0xff] %vm5417_vm7, %v5238_v24 }
 0x734   : > { %5425 = vst.msk [vmem:[#allocation2 + $0x48] sm:$0xff] %vm5417_vm7, %v5240_v38  ;;  %5289 = vrot.lane.b32.xlu0 %v11499_v54, %s7737_s30 }
 0x735   : > { %5490 = vst.msk [vmem:[#allocation2 + $0x3f] sm:$0xfe] %vm5482_vm8, %v11198_v4  ;;  %5291 = vrot.lane.b32.xlu1 %v11505_v41, %s7737_s30  ;;  %v13533_v4 = vld [vmem:[#allocation42_spill] sm:$0xff] }
 0x736   : > { %5491 = vst.msk [vmem:[#allocation2 + $0x47] sm:$0xff] %vm5484_vm9, %v11201_v44  ;;  %v5242_v57 = vpop.permute.xlu0 %5241 }
 0x737   : > { %v5244_v51 = vpop.permute.xlu1 %5243  ;;  %5426 = vst.msk [vmem:[#allocation2 + $0x50] sm:$0xff] %vm5417_vm7, %v5242_v57 }
 0x738   : > { %5427 = vst.msk [vmem:[#allocation2 + $0x58] sm:$0xff] %vm5417_vm7, %v5244_v51  ;;  %5293 = vrot.lane.b32.xlu0 %v11525_v61, %s7737_s30  ;;  %v13540_v51 = vld [vmem:[#allocation88_spill] sm:$0xff] }
 0x739   : > { %5492 = vst.msk [vmem:[#allocation2 + $0x4f] sm:$0xfe] %vm5482_vm8, %v11208_v46  ;;  %5295 = vrot.lane.b32.xlu1 %v11531_v55, %s7737_s30 }
 0x73a   : > { %5493 = vst.msk [vmem:[#allocation2 + $0x57] sm:$0xff] %vm5484_vm9, %v11211_v18  ;;  %v5246_v44 = vpop.permute.xlu0 %5245 }
 0x73b   : > { %v5248_v22 = vpop.permute.xlu1 %5247  ;;  %5428 = vst.msk [vmem:[#allocation2 + $0x60] sm:$0xff] %vm5417_vm7, %v5246_v44 }
 0x73c   : > { %5429 = vst.msk [vmem:[#allocation2 + $0x68] sm:$0xff] %vm5417_vm7, %v5248_v22  ;;  %5297 = vrot.lane.b32.xlu0 %v11551_v60, %s7737_s30  ;;  %v13542_v22 = vld [vmem:[#allocation90_spill] sm:$0xff] }
 0x73d   : > { %5494 = vst.msk [vmem:[#allocation2 + $0x5f] sm:$0xfe] %vm5482_vm8, %v11218_v47  ;;  %5299 = vrot.lane.b32.xlu1 %v11557_v5, %s7737_s30  ;;  %v13534_v47 = vld [vmem:[#allocation18_spill] sm:$0xff] }
 0x73e   : > { %5495 = vst.msk [vmem:[#allocation2 + $0x67] sm:$0xff] %vm5484_vm9, %v11221_v23  ;;  %v5250_v18 = vpop.permute.xlu0 %5249 }
 0x73f   : > { %v5252_v53 = vpop.permute.xlu1 %5251  ;;  %5430 = vst.msk [vmem:[#allocation2 + $0x70] sm:$0xff] %vm5417_vm7, %v5250_v18 }
 0x740   : > { %5431 = vst.msk [vmem:[#allocation2 + $0x78] sm:$0xff] %vm5417_vm7, %v5252_v53  ;;  %5301 = vrot.lane.b32.xlu0 %v11577_v62, %s7737_s30 }
 0x741   : > { %5496 = vst.msk [vmem:[#allocation2 + $0x6f] sm:$0xfe] %vm5482_vm8, %v11228_v45  ;;  %5303 = vrot.lane.b32.xlu1 %v11583_v39, %s7737_s30  ;;  %v13535_v45 = vld [vmem:[#allocation43_spill] sm:$0xff] }
 0x742   : > { %5497 = vst.msk [vmem:[#allocation2 + $0x77] sm:$0xff] %vm5484_vm9, %v11231_v33  ;;  %v5254_v23 = vpop.permute.xlu0 %5253 }
 0x743   : > { %v5256_v14 = vpop.permute.xlu1 %5255  ;;  %5432 = vst.msk [vmem:[#allocation2 + $0x80] sm:$0xff] %vm5417_vm7, %v5254_v23  ;;  %v13543_v23 = vld [vmem:[#allocation91_spill] sm:$0xff] }
 0x744   : > { %5433 = vst.msk [vmem:[#allocation2 + $0x88] sm:$0xff] %vm5417_vm7, %v5256_v14  ;;  %5305 = vrot.lane.b32.xlu0 %v11603_v37, %s7737_s30 }
 0x745   : > { %5498 = vst.msk [vmem:[#allocation2 + $0x7f] sm:$0xfe] %vm5482_vm8, %v11238_v9  ;;  %5307 = vrot.lane.b32.xlu1 %v11609_v56, %s7737_s30 }
 0x746   : > { %5499 = vst.msk [vmem:[#allocation2 + $0x87] sm:$0xff] %vm5484_vm9, %v13533_v4  ;;  %v5258_v33 = vpop.permute.xlu0 %5257 }
 0x747   : > { %v5260_v46 = vpop.permute.xlu1 %5259  ;;  %5434 = vst.msk [vmem:[#allocation2 + $0x90] sm:$0xff] %vm5417_vm7, %v5258_v33 }
 0x748   : > { %5435 = vst.msk [vmem:[#allocation2 + $0x98] sm:$0xff] %vm5417_vm7, %v5260_v46  ;;  %5309 = vrot.lane.b32.xlu0 %v11629_v21, %s7737_s30 }
 0x749   : > { %5500 = vst.msk [vmem:[#allocation2 + $0x8f] sm:$0xfe] %vm5482_vm8, %v13534_v47  ;;  %5311 = vrot.lane.b32.xlu1 %v11635_v48, %s7737_s30 }
 0x74a   : > { %5501 = vst.msk [vmem:[#allocation2 + $0x97] sm:$0xff] %vm5484_vm9, %v13535_v45  ;;  %v5262_v9 = vpop.permute.xlu0 %5261 }
 0x74b   : > { %v5264_v7 = vpop.permute.xlu1 %5263  ;;  %5436 = vst.msk [vmem:[#allocation2 + $0xa0] sm:$0xff] %vm5417_vm7, %v5262_v9 }
 0x74c   : > { %5437 = vst.msk [vmem:[#allocation2 + $0xa8] sm:$0xff] %vm5417_vm7, %v5264_v7  ;;  %5313 = vrot.lane.b32.xlu0 %v11655_v59, %s7737_s30 }
 0x74d   : > { %5502 = vst.msk [vmem:[#allocation2 + $0x9f] sm:$0xfe] %vm5482_vm8, %v13536_v28  ;;  %5315 = vrot.lane.b32.xlu1 %v11661_v26, %s7737_s30 }
 0x74e   : > { %5503 = vst.msk [vmem:[#allocation2 + $0xa7] sm:$0xff] %vm5484_vm9, %v13537_v8  ;;  %v5266_v49 = vpop.permute.xlu0 %5265 }
 0x74f   : > { %v5268_v25 = vpop.permute.xlu1 %5267  ;;  %5438 = vst.msk [vmem:[#allocation2 + $0xb0] sm:$0xff] %vm5417_vm7, %v5266_v49 }
 0x750   : > { %5439 = vst.msk [vmem:[#allocation2 + $0xb8] sm:$0xff] %vm5417_vm7, %v5268_v25  ;;  %5317 = vrot.lane.b32.xlu0 %v11681_v52, %s7737_s30 }
 0x751   : > { %5504 = vst.msk [vmem:[#allocation2 + $0xaf] sm:$0xfe] %vm5482_vm8, %v13538_v31  ;;  %5319 = vrot.lane.b32.xlu1 %v11687_v58, %s7737_s30 }
 0x752   : > { %5505 = vst.msk [vmem:[#allocation2 + $0xb7] sm:$0xff] %vm5484_vm9, %v13539_v32  ;;  %v5270_v13 = vpop.permute.xlu0 %5269 }
 0x753   : > { %v5272_v24 = vpop.permute.xlu1 %5271  ;;  %5440 = vst.msk [vmem:[#allocation2 + $0xc0] sm:$0xff] %vm5417_vm7, %v5270_v13 }
 0x754   : > { %5441 = vst.msk [vmem:[#allocation2 + $0xc8] sm:$0xff] %vm5417_vm7, %v5272_v24  ;;  %5321 = vrot.lane.b32.xlu0 %v11707_v30, %s7737_s30 }
 0x755   : > { %5506 = vst.msk [vmem:[#allocation2 + $0xbf] sm:$0xfe] %vm5482_vm8, %v11278_v15  ;;  %5323 = vrot.lane.b32.xlu1 %v11713_v42, %s7737_s30  ;;  %v13541_v15 = vld [vmem:[#allocation89_spill] sm:$0xff] }
 0x756   : > { %5507 = vst.msk [vmem:[#allocation2 + $0xc7] sm:$0xff] %vm5484_vm9, %v11281_v34  ;;  %v5274_v38 = vpop.permute.xlu0 %5273 }
 0x757   : > { %v5276_v57 = vpop.permute.xlu1 %5275  ;;  %5442 = vst.msk [vmem:[#allocation2 + $0xd0] sm:$0xff] %vm5417_vm7, %v5274_v38 }
 0x758   : > { %5443 = vst.msk [vmem:[#allocation2 + $0xd8] sm:$0xff] %vm5417_vm7, %v5276_v57  ;;  %5325 = vrot.lane.b32.xlu0 %v11733_v35, %s7737_s30 }
 0x759   : > { %5508 = vst.msk [vmem:[#allocation2 + $0xcf] sm:$0xfe] %vm5482_vm8, %v13540_v51  ;;  %5327 = vrot.lane.b32.xlu1 %v11739_v16, %s7737_s30 }
 0x75a   : > { %5509 = vst.msk [vmem:[#allocation2 + $0xd7] sm:$0xff] %vm5484_vm9, %v13541_v15  ;;  %v5278_v34 = vpop.permute.xlu0 %5277 }
 0x75b   : > { %v5280_v44 = vpop.permute.xlu1 %5279  ;;  %5444 = vst.msk [vmem:[#allocation2 + $0xe0] sm:$0xff] %vm5417_vm7, %v5278_v34 }
 0x75c   : > { %5445 = vst.msk [vmem:[#allocation2 + $0xe8] sm:$0xff] %vm5417_vm7, %v5280_v44  ;;  %5329 = vrot.lane.b32.xlu0 %v11759_v2, %s7737_s30 }
 0x75d   : > { %5510 = vst.msk [vmem:[#allocation2 + $0xdf] sm:$0xfe] %vm5482_vm8, %v11298_v36  ;;  %5331 = vrot.lane.b32.xlu1 %v11765_v3, %s7737_s30  ;;  %v13544_v36 = vld [vmem:[#allocation60_spill] sm:$0xff] }
 0x75e   : > { %5511 = vst.msk [vmem:[#allocation2 + $0xe7] sm:$0xff] %vm5484_vm9, %v13542_v22  ;;  %v5282_v18 = vpop.permute.xlu0 %5281 }
 0x75f   : > { %v5284_v53 = vpop.permute.xlu1 %5283  ;;  %5446 = vst.msk [vmem:[#allocation2 + $0xf0] sm:$0xff] %vm5417_vm7, %v5282_v18 }
 0x760   : > { %5447 = vst.msk [vmem:[#allocation2 + $0xf8] sm:$0xff] %vm5417_vm7, %v5284_v53  ;;  %5333 = vrot.lane.b32.xlu0 %v11785_v6, %s7737_s30 }
 0x761   : > { %5512 = vst.msk [vmem:[#allocation2 + $0xef] sm:$0xfe] %vm5482_vm8, %v13543_v23  ;;  %5335 = vrot.lane.b32.xlu1 %v11791_v10, %s7737_s30 }
 0x762   : > { %5513 = vst.msk [vmem:[#allocation2 + $0xf7] sm:$0xff] %vm5484_vm9, %v13544_v36  ;;  %v5286_v14 = vpop.permute.xlu0 %5285 }
 0x763   : > { %v5288_v4 = vpop.permute.xlu1 %5287  ;;  %5448 = vst.msk [vmem:[#allocation2 + $0x100] sm:$0xff] %vm5417_vm7, %v5286_v14 }
 0x764   : > { %5449 = vst.msk [vmem:[#allocation2 + $0x108] sm:$0xff] %vm5417_vm7, %v5288_v4  ;;  %5337 = vrot.lane.b32.xlu0 %v11811_v40, %s7737_s30 }
 0x765   : > { %5514 = vst.msk [vmem:[#allocation2 + $0xff] sm:$0xfe] %vm5482_vm8, %v11326_v20  ;;  %5339 = vrot.lane.b32.xlu1 %v11817_v43, %s7737_s30 }
 0x766   : > { %5515 = vst.msk [vmem:[#allocation2 + $0x107] sm:$0xff] %vm5484_vm9, %v11331_v11  ;;  %v12019_v33 = vpop.permute.xlu0 %5031 }
 0x767   : > { %v12021_v46 = vpop.permute.xlu1 %5033  ;;  %5193 = vst.msk [vmem:[#allocation2 + $0x131] sm:$0xff] %vm4838_vm5, %v12019_v33  ;;  %5580 = vst.msk [vmem:[%s7855_s23 + $0x100] sm:$0xff] %vm4838_vm5, %v12019_v33 }
 0x768   : > { %5194 = vst.msk [vmem:[#allocation2 + $0x139] sm:$0x7f] %vm5161_vm6, %v12021_v46  ;;  %5341 = vrot.lane.b32.xlu0 %v11837_v0, %s7737_s30 }
 0x769   : > { %5581 = vst.msk [vmem:[%s7855_s23 + $0x108] sm:$0xff] %vm4838_vm5, %v12021_v46  ;;  %5343 = vrot.lane.b32.xlu1 %v11841_v1, %s7737_s30  ;;  %5648 = vst.msk [vmem:[#allocation6 + $0x100] sm:$0xff] (!%p6115_p13), %vm4838_vm5, %v12019_v33 }
 0x76a   : > { %v12037_v20 = vpop.permute.xlu0 %5035  ;;  %5649 = vst.msk [vmem:[#allocation6 + $0x108] sm:$0xff] (!%p6115_p13), %vm4838_vm5, %v12021_v46 }
 0x76b   : > { %v12039_v11 = vpop.permute.xlu1 %5037  ;;  %5195 = vst.msk [vmem:[#allocation2 + $0x141] sm:$0xff] %vm4838_vm5, %v12037_v20  ;;  %5582 = vst.msk [vmem:[%s7855_s23 + $0x110] sm:$0xff] %vm4838_vm5, %v12037_v20 }
 0x76c   : > { %5196 = vst.msk [vmem:[#allocation2 + $0x149] sm:$0x7f] %vm5161_vm6, %v12039_v11  ;;  %5345 = vrot.lane.b32.xlu0 %v11855_v19, %s7737_s30 }
 0x76d   : > { %5583 = vst.msk [vmem:[%s7855_s23 + $0x118] sm:$0xff] %vm4838_vm5, %v12039_v11  ;;  %5347 = vrot.lane.b32.xlu1 %v11859_v27, %s7737_s30  ;;  %5650 = vst.msk [vmem:[#allocation6 + $0x110] sm:$0xff] (!%p6115_p13), %vm4838_vm5, %v12037_v20 }
 0x76e   : > { %v12055_v47 = vpop.permute.xlu0 %5039  ;;  %5651 = vst.msk [vmem:[#allocation6 + $0x118] sm:$0xff] (!%p6115_p13), %vm4838_vm5, %v12039_v11 }
 0x76f   : > { %v12057_v45 = vpop.permute.xlu1 %5041  ;;  %5197 = vst.msk [vmem:[#allocation2 + $0x151] sm:$0xff] %vm4838_vm5, %v12055_v47  ;;  %5584 = vst.msk [vmem:[%s7855_s23 + $0x120] sm:$0xff] %vm4838_vm5, %v12055_v47 }
 0x770   : > { %5198 = vst.msk [vmem:[#allocation2 + $0x159] sm:$0x7f] %vm5161_vm6, %v12057_v45  ;;  %5349 = vrot.lane.b32.xlu0 %v11873_v17, %s7737_s30 }
 0x771   : > { %5585 = vst.msk [vmem:[%s7855_s23 + $0x128] sm:$0xff] %vm4838_vm5, %v12057_v45  ;;  %5351 = vrot.lane.b32.xlu1 %v11877_v29, %s7737_s30  ;;  %5652 = vst.msk [vmem:[#allocation6 + $0x120] sm:$0xff] (!%p6115_p13), %vm4838_vm5, %v12055_v47  ;;  %v13588_v47 = vld [vmem:[#allocation44_spill] sm:$0xff] (!%p6115_p13) }
 0x772   : > { %v12073_v9 = vpop.permute.xlu0 %5043  ;;  %5653 = vst.msk [vmem:[#allocation6 + $0x128] sm:$0xff] (!%p6115_p13), %vm4838_vm5, %v12057_v45  ;;  %5680 = vst.msk [vmem:[#allocation8] sm:$0xff] (!%p6115_p13), %vm4838_vm5, %v13588_v47  ;;  %v13589_v45 = vld [vmem:[#allocation45_spill] sm:$0xff] (!%p6115_p13) }
 0x773   : > { %v12075_v7 = vpop.permute.xlu1 %5045  ;;  %5199 = vst.msk [vmem:[#allocation2 + $0x161] sm:$0xff] %vm4838_vm5, %v12073_v9  ;;  %5586 = vst.msk [vmem:[%s7855_s23 + $0x130] sm:$0xff] %vm4838_vm5, %v12073_v9 }
 0x774   : > { %5200 = vst.msk [vmem:[#allocation2 + $0x169] sm:$0x7f] %vm5161_vm6, %v12075_v7 }
 0x775   : > { %5587 = vst.msk [vmem:[%s7855_s23 + $0x138] sm:$0xff] %vm4838_vm5, %v12075_v7  ;;  %5654 = vst.msk [vmem:[#allocation6 + $0x130] sm:$0xff] (!%p6115_p13), %vm4838_vm5, %v12073_v9  ;;  %v13590_v9 = vld [vmem:[#allocation46_spill] sm:$0xff] (!%p6115_p13) }
 0x776   : > { %v12087_v28 = vpop.permute.xlu0 %5047  ;;  %5655 = vst.msk [vmem:[#allocation6 + $0x138] sm:$0xff] (!%p6115_p13), %vm4838_vm5, %v12075_v7  ;;  %5681 = vst.msk [vmem:[#allocation8 + $0x8] sm:$0xff] (!%p6115_p13), %vm4838_vm5, %v13589_v45  ;;  %v13591_v7 = vld [vmem:[#allocation47_spill] sm:$0xff] (!%p6115_p13) }
 0x777   : > { %v12089_v8 = vpop.permute.xlu1 %5049  ;;  %5201 = vst.msk [vmem:[#allocation2 + $0x171] sm:$0xff] %vm4838_vm5, %v12087_v28  ;;  %5588 = vst.msk [vmem:[%s7855_s23 + $0x140] sm:$0xff] %vm4838_vm5, %v12087_v28 }
 0x778   : > { %5202 = vst.msk [vmem:[#allocation2 + $0x179] sm:$0x7f] %vm5161_vm6, %v12089_v8 }
 0x779   : > { %5589 = vst.msk [vmem:[%s7855_s23 + $0x148] sm:$0xff] %vm4838_vm5, %v12089_v8  ;;  %5656 = vst.msk [vmem:[#allocation6 + $0x140] sm:$0xff] (!%p6115_p13), %vm4838_vm5, %v12087_v28  ;;  %v13592_v28 = vld [vmem:[#allocation48_spill] sm:$0xff] (!%p6115_p13) }
 0x77a   : > { %v12101_v49 = vpop.permute.xlu0 %5051  ;;  %5657 = vst.msk [vmem:[#allocation6 + $0x148] sm:$0xff] (!%p6115_p13), %vm4838_vm5, %v12089_v8  ;;  %5682 = vst.msk [vmem:[#allocation8 + $0x10] sm:$0xff] (!%p6115_p13), %vm4838_vm5, %v13590_v9  ;;  %v13593_v8 = vld [vmem:[#allocation11_spill] sm:$0xff] (!%p6115_p13) }
 0x77b   : > { %v12103_v25 = vpop.permute.xlu1 %5053  ;;  %5203 = vst.msk [vmem:[#allocation2 + $0x181] sm:$0xff] %vm4838_vm5, %v12101_v49  ;;  %5590 = vst.msk [vmem:[%s7855_s23 + $0x150] sm:$0xff] %vm4838_vm5, %v12101_v49 }
 0x77c   : > { %5204 = vst.msk [vmem:[#allocation2 + $0x189] sm:$0x7f] %vm5161_vm6, %v12103_v25 }
 0x77d   : > { %5591 = vst.msk [vmem:[%s7855_s23 + $0x158] sm:$0xff] %vm4838_vm5, %v12103_v25  ;;  %5658 = vst.msk [vmem:[#allocation6 + $0x150] sm:$0xff] (!%p6115_p13), %vm4838_vm5, %v12101_v49  ;;  %v13594_v49 = vld [vmem:[#allocation12_spill] sm:$0xff] (!%p6115_p13) }
 0x77e   : > { %v12115_v31 = vpop.permute.xlu0 %5055  ;;  %5659 = vst.msk [vmem:[#allocation6 + $0x158] sm:$0xff] (!%p6115_p13), %vm4838_vm5, %v12103_v25  ;;  %5683 = vst.msk [vmem:[#allocation8 + $0x18] sm:$0xff] (!%p6115_p13), %vm4838_vm5, %v13591_v7  ;;  %v13595_v25 = vld [vmem:[#allocation13_spill] sm:$0xff] (!%p6115_p13) }
 0x77f   : > { %v12117_v32 = vpop.permute.xlu1 %5057  ;;  %5205 = vst.msk [vmem:[#allocation2 + $0x191] sm:$0xff] %vm4838_vm5, %v12115_v31  ;;  %5592 = vst.msk [vmem:[%s7855_s23 + $0x160] sm:$0xff] %vm4838_vm5, %v12115_v31 }
 0x780   : > { %5206 = vst.msk [vmem:[#allocation2 + $0x199] sm:$0x7f] %vm5161_vm6, %v12117_v32 }
 0x781   : > { %5593 = vst.msk [vmem:[%s7855_s23 + $0x168] sm:$0xff] %vm4838_vm5, %v12117_v32  ;;  %5660 = vst.msk [vmem:[#allocation6 + $0x160] sm:$0xff] (!%p6115_p13), %vm4838_vm5, %v12115_v31  ;;  %v13596_v31 = vld [vmem:[#allocation15_spill] sm:$0xff] (!%p6115_p13) }
 0x782   : > { %v12129_v13 = vpop.permute.xlu0 %5059  ;;  %5661 = vst.msk [vmem:[#allocation6 + $0x168] sm:$0xff] (!%p6115_p13), %vm4838_vm5, %v12117_v32  ;;  %5684 = vst.msk [vmem:[#allocation8 + $0x20] sm:$0xff] (!%p6115_p13), %vm4838_vm5, %v13592_v28  ;;  %v13597_v32 = vld [vmem:[#allocation37_spill] sm:$0xff] (!%p6115_p13) }
 0x783   : > { %v12131_v24 = vpop.permute.xlu1 %5061  ;;  %5207 = vst.msk [vmem:[#allocation2 + $0x1a1] sm:$0xff] %vm4838_vm5, %v12129_v13  ;;  %5594 = vst.msk [vmem:[%s7855_s23 + $0x170] sm:$0xff] %vm4838_vm5, %v12129_v13 }
 0x784   : > { %5208 = vst.msk [vmem:[#allocation2 + $0x1a9] sm:$0x7f] %vm5161_vm6, %v12131_v24 }
 0x785   : > { %5595 = vst.msk [vmem:[%s7855_s23 + $0x178] sm:$0xff] %vm4838_vm5, %v12131_v24  ;;  %5662 = vst.msk [vmem:[#allocation6 + $0x170] sm:$0xff] (!%p6115_p13), %vm4838_vm5, %v12129_v13  ;;  %v13598_v13 = vld [vmem:[#allocation16_spill] sm:$0xff] (!%p6115_p13) }
 0x786   : > { %v12143_v38 = vpop.permute.xlu0 %5063  ;;  %5663 = vst.msk [vmem:[#allocation6 + $0x178] sm:$0xff] (!%p6115_p13), %vm4838_vm5, %v12131_v24  ;;  %5685 = vst.msk [vmem:[#allocation8 + $0x28] sm:$0xff] (!%p6115_p13), %vm4838_vm5, %v13593_v8  ;;  %v13599_v24 = vld [vmem:[#allocation38_spill] sm:$0xff] (!%p6115_p13) }
 0x787   : > { %v12145_v57 = vpop.permute.xlu1 %5065  ;;  %5209 = vst.msk [vmem:[#allocation2 + $0x1b1] sm:$0xff] %vm4838_vm5, %v12143_v38  ;;  %5596 = vst.msk [vmem:[%s7855_s23 + $0x180] sm:$0xff] %vm4838_vm5, %v12143_v38 }
 0x788   : > { %5210 = vst.msk [vmem:[#allocation2 + $0x1b9] sm:$0x7f] %vm5161_vm6, %v12145_v57 }
 0x789   : > { %5597 = vst.msk [vmem:[%s7855_s23 + $0x188] sm:$0xff] %vm4838_vm5, %v12145_v57  ;;  %5664 = vst.msk [vmem:[#allocation6 + $0x180] sm:$0xff] (!%p6115_p13), %vm4838_vm5, %v12143_v38  ;;  %v13600_v38 = vld [vmem:[#allocation20_spill] sm:$0xff] (!%p6115_p13) }
 0x78a   : > { %v12157_v51 = vpop.permute.xlu0 %5067  ;;  %5665 = vst.msk [vmem:[#allocation6 + $0x188] sm:$0xff] (!%p6115_p13), %vm4838_vm5, %v12145_v57  ;;  %5686 = vst.msk [vmem:[#allocation8 + $0x30] sm:$0xff] (!%p6115_p13), %vm4838_vm5, %v13594_v49  ;;  %v13601_v57 = vld [vmem:[#allocation54_spill] sm:$0xff] (!%p6115_p13) }
 0x78b   : > { %v12159_v15 = vpop.permute.xlu1 %5069  ;;  %5211 = vst.msk [vmem:[#allocation2 + $0x1c1] sm:$0xff] %vm4838_vm5, %v12157_v51  ;;  %5598 = vst.msk [vmem:[%s7855_s23 + $0x190] sm:$0xff] %vm4838_vm5, %v12157_v51 }
 0x78c   : > { %5212 = vst.msk [vmem:[#allocation2 + $0x1c9] sm:$0x7f] %vm5161_vm6, %v12159_v15 }
 0x78d   : > { %5599 = vst.msk [vmem:[%s7855_s23 + $0x198] sm:$0xff] %vm4838_vm5, %v12159_v15  ;;  %5666 = vst.msk [vmem:[#allocation6 + $0x190] sm:$0xff] (!%p6115_p13), %vm4838_vm5, %v12157_v51  ;;  %v13602_v51 = vld [vmem:[#allocation55_spill] sm:$0xff] (!%p6115_p13) }
 0x78e   : > { %v12171_v34 = vpop.permute.xlu0 %5071  ;;  %5667 = vst.msk [vmem:[#allocation6 + $0x198] sm:$0xff] (!%p6115_p13), %vm4838_vm5, %v12159_v15  ;;  %5687 = vst.msk [vmem:[#allocation8 + $0x38] sm:$0xff] (!%p6115_p13), %vm4838_vm5, %v13595_v25  ;;  %v13603_v15 = vld [vmem:[#allocation26_spill] sm:$0xff] (!%p6115_p13) }
 0x78f   : > { %v12173_v44 = vpop.permute.xlu1 %5073  ;;  %5213 = vst.msk [vmem:[#allocation2 + $0x1d1] sm:$0xff] %vm4838_vm5, %v12171_v34  ;;  %5600 = vst.msk [vmem:[%s7855_s23 + $0x1a0] sm:$0xff] %vm4838_vm5, %v12171_v34 }
 0x790   : > { %5214 = vst.msk [vmem:[#allocation2 + $0x1d9] sm:$0x7f] %vm5161_vm6, %v12173_v44 }
 0x791   : > { %5601 = vst.msk [vmem:[%s7855_s23 + $0x1a8] sm:$0xff] %vm4838_vm5, %v12173_v44  ;;  %5668 = vst.msk [vmem:[#allocation6 + $0x1a0] sm:$0xff] (!%p6115_p13), %vm4838_vm5, %v12171_v34  ;;  %v13604_v34 = vld [vmem:[#allocation56_spill] sm:$0xff] (!%p6115_p13) }
 0x792   : > { %v12185_v22 = vpop.permute.xlu0 %5075  ;;  %5669 = vst.msk [vmem:[#allocation6 + $0x1a8] sm:$0xff] (!%p6115_p13), %vm4838_vm5, %v12173_v44  ;;  %5688 = vst.msk [vmem:[#allocation8 + $0x40] sm:$0xff] (!%p6115_p13), %vm4838_vm5, %v13596_v31  ;;  %v13605_v44 = vld [vmem:[#allocation23_spill] sm:$0xff] (!%p6115_p13) }
 0x793   : > { %v12187_v18 = vpop.permute.xlu1 %5077  ;;  %5215 = vst.msk [vmem:[#allocation2 + $0x1e1] sm:$0xff] %vm4838_vm5, %v12185_v22  ;;  %5602 = vst.msk [vmem:[%s7855_s23 + $0x1b0] sm:$0xff] %vm4838_vm5, %v12185_v22 }
 0x794   : > { %5216 = vst.msk [vmem:[#allocation2 + $0x1e9] sm:$0x7f] %vm5161_vm6, %v12187_v18 }
 0x795   : > { %5603 = vst.msk [vmem:[%s7855_s23 + $0x1b8] sm:$0xff] %vm4838_vm5, %v12187_v18  ;;  %5670 = vst.msk [vmem:[#allocation6 + $0x1b0] sm:$0xff] (!%p6115_p13), %vm4838_vm5, %v12185_v22  ;;  %v13606_v22 = vld [vmem:[#allocation25_spill] sm:$0xff] (!%p6115_p13) }
 0x796   : > { %v12199_v53 = vpop.permute.xlu0 %5079  ;;  %5671 = vst.msk [vmem:[#allocation6 + $0x1b8] sm:$0xff] (!%p6115_p13), %vm4838_vm5, %v12187_v18  ;;  %5689 = vst.msk [vmem:[#allocation8 + $0x48] sm:$0xff] (!%p6115_p13), %vm4838_vm5, %v13597_v32  ;;  %v13607_v18 = vld [vmem:[#allocation28_spill] sm:$0xff] (!%p6115_p13) }
 0x797   : > { %13545 = vst [vmem:[#allocation120_spill] sm:$0xff] %v12199_v53  ;;  %v12201_v23 = vpop.permute.xlu1 %5081  ;;  %5217 = vst.msk [vmem:[#allocation2 + $0x1f1] sm:$0xff] %vm4838_vm5, %v12199_v53 }
 0x798   : > { %13546 = vst [vmem:[#allocation121_spill] sm:$0xff] %v12201_v23  ;;  %5604 = vst.msk [vmem:[%s7855_s23 + $0x1c0] sm:$0xff] %vm4838_vm5, %v12199_v53 }
 0x799   : > { %5218 = vst.msk [vmem:[#allocation2 + $0x1f9] sm:$0x7f] %vm5161_vm6, %v12201_v23 }
 0x79a   : > { %5605 = vst.msk [vmem:[%s7855_s23 + $0x1c8] sm:$0xff] %vm4838_vm5, %v12201_v23  ;;  %v12213_v36 = vpop.permute.xlu0 %5083  ;;  %5690 = vst.msk [vmem:[#allocation8 + $0x50] sm:$0xff] (!%p6115_p13), %vm4838_vm5, %v13598_v13 }
 0x79b   : > { %13547 = vst [vmem:[#allocation122_spill] sm:$0xff] %v12213_v36  ;;  %v12215_v14 = vpop.permute.xlu1 %5085  ;;  %5219 = vst.msk [vmem:[#allocation2 + $0x201] sm:$0xff] %vm4838_vm5, %v12213_v36 }
 0x79c   : > { %13548 = vst [vmem:[#allocation123_spill] sm:$0xff] %v12215_v14  ;;  %5606 = vst.msk [vmem:[%s7855_s23 + $0x1d0] sm:$0xff] %vm4838_vm5, %v12213_v36 }
 0x79d   : > { %5220 = vst.msk [vmem:[#allocation2 + $0x209] sm:$0x7f] %vm5161_vm6, %v12215_v14 }
 0x79e   : > { %5607 = vst.msk [vmem:[%s7855_s23 + $0x1d8] sm:$0xff] %vm4838_vm5, %v12215_v14  ;;  %v12227_v4 = vpop.permute.xlu0 %5087  ;;  %v13581_v50 = vld [vmem:[#allocation120_spill] sm:$0xff] (!%p6115_p13)  ;;  %5691 = vst.msk [vmem:[#allocation8 + $0x58] sm:$0xff] (!%p6115_p13), %vm4838_vm5, %v13599_v24 }
 0x79f   : > { %13549 = vst [vmem:[#allocation17_spill] sm:$0xff] %v12227_v4  ;;  %v12229_v23 = vpop.permute.xlu1 %5089  ;;  %5221 = vst.msk [vmem:[#allocation2 + $0x211] sm:$0xff] %vm4838_vm5, %v12227_v4  ;;  %v13582_v12 = vld [vmem:[#allocation121_spill] sm:$0xff] (!%p6115_p13) }
 0x7a0   : > { %13550 = vst [vmem:[#allocation14_spill] sm:$0xff] %v12229_v23  ;;  %5608 = vst.msk [vmem:[%s7855_s23 + $0x1e0] sm:$0xff] %vm4838_vm5, %v12227_v4 }
 0x7a1   : > { %5222 = vst.msk [vmem:[#allocation2 + $0x219] sm:$0x7f] %vm5161_vm6, %v12229_v23 }
 0x7a2   : > { %5609 = vst.msk [vmem:[%s7855_s23 + $0x1e8] sm:$0xff] %vm4838_vm5, %v12229_v23  ;;  %v12241_v36 = vpop.permute.xlu0 %5091  ;;  %5672 = vst.msk [vmem:[#allocation6 + $0x1c0] sm:$0xff] (!%p6115_p13), %vm4838_vm5, %v13581_v50  ;;  %v13583_v63 = vld [vmem:[#allocation122_spill] sm:$0xff] (!%p6115_p13) }
 0x7a3   : > { %13551 = vst [vmem:[#allocation49_spill] sm:$0xff] %v12241_v36  ;;  %v12243_v53 = vpop.permute.xlu1 %5093  ;;  %5223 = vst.msk [vmem:[#allocation2 + $0x221] sm:$0xff] %vm4838_vm5, %v12241_v36  ;;  %v13584_v33 = vld [vmem:[#allocation123_spill] sm:$0xff] (!%p6115_p13)  ;;  %v13645_v50 = vld [vmem:[#allocation34_spill] sm:$0xff] (!%p6115_p13) }
 0x7a4   : > { %5610 = vst.msk [vmem:[%s7855_s23 + $0x1f0] sm:$0xff] %vm4838_vm5, %v12241_v36  ;;  %5611 = vst.msk [vmem:[%s7855_s23 + $0x1f8] sm:$0xff] %vm4838_vm5, %v12243_v53 }
 0x7a5   : > { %5224 = vst.msk [vmem:[#allocation2 + $0x229] sm:$0x7f] %vm5161_vm6, %v12243_v53 }
 0x7a6   : > { %v5290_v4 = vpop.permute.xlu0 %5289  ;;  %5673 = vst.msk [vmem:[#allocation6 + $0x1c8] sm:$0xff] (!%p6115_p13), %vm4838_vm5, %v13582_v12  ;;  %5674 = vst.msk [vmem:[#allocation6 + $0x1d0] sm:$0xff] (!%p6115_p13), %vm4838_vm5, %v13583_v63  ;;  %v13585_v46 = vld [vmem:[#allocation17_spill] sm:$0xff] (!%p6115_p13)  ;;  %v13646_v12 = vld [vmem:[#allocation31_spill] sm:$0xff] (!%p6115_p13) }
 0x7a7   : > { %v5292_v14 = vpop.permute.xlu1 %5291  ;;  %5450 = vst.msk [vmem:[#allocation2 + $0x130] sm:$0xff] %vm5417_vm7, %v5290_v4  ;;  %v13586_v20 = vld [vmem:[#allocation14_spill] sm:$0xff] (!%p6115_p13)  ;;  %v13647_v63 = vld [vmem:[#allocation33_spill] sm:$0xff] (!%p6115_p13) }
 0x7a8   : > { %5451 = vst.msk [vmem:[#allocation2 + $0x138] sm:$0xff] %vm5417_vm7, %v5292_v14 }
 0x7a9   : > { %5516 = vst.msk [vmem:[#allocation2 + $0x12f] sm:$0xfe] %vm5482_vm8, %v11499_v54 }
 0x7aa   : > { %5517 = vst.msk [vmem:[#allocation2 + $0x137] sm:$0xff] %vm5484_vm9, %v11505_v41  ;;  %v5294_v23 = vpop.permute.xlu0 %5293  ;;  %v13587_v11 = vld [vmem:[#allocation49_spill] sm:$0xff] (!%p6115_p13) }
 0x7ab   : > { %v5296_v36 = vpop.permute.xlu1 %5295  ;;  %5452 = vst.msk [vmem:[#allocation2 + $0x140] sm:$0xff] %vm5417_vm7, %v5294_v23  ;;  %v13556_v23 = vld [vmem:[#allocation95_spill] sm:$0xff] (!%p6115_p13) }
 0x7ac   : > { %5453 = vst.msk [vmem:[#allocation2 + $0x148] sm:$0xff] %vm5417_vm7, %v5296_v36  ;;  %v13559_v36 = vld [vmem:[#allocation98_spill] sm:$0xff] (!%p6115_p13) }
 0x7ad   : > { %5518 = vst.msk [vmem:[#allocation2 + $0x13f] sm:$0xfe] %vm5482_vm8, %v11525_v61 }
 0x7ae   : > { %5519 = vst.msk [vmem:[#allocation2 + $0x147] sm:$0xff] %vm5484_vm9, %v11531_v55  ;;  %v5298_v4 = vpop.permute.xlu0 %5297 }
 0x7af   : > { %v5300_v14 = vpop.permute.xlu1 %5299  ;;  %5454 = vst.msk [vmem:[#allocation2 + $0x150] sm:$0xff] %vm5417_vm7, %v5298_v4  ;;  %v13560_v4 = vld [vmem:[#allocation99_spill] sm:$0xff] (!%p6115_p13) }
 0x7b0   : > { %5455 = vst.msk [vmem:[#allocation2 + $0x158] sm:$0xff] %vm5417_vm7, %v5300_v14  ;;  %v13561_v14 = vld [vmem:[#allocation100_spill] sm:$0xff] (!%p6115_p13) }
 0x7b1   : > { %5520 = vst.msk [vmem:[#allocation2 + $0x14f] sm:$0xfe] %vm5482_vm8, %v11551_v60 }
 0x7b2   : > { %5521 = vst.msk [vmem:[#allocation2 + $0x157] sm:$0xff] %vm5484_vm9, %v11557_v5  ;;  %v5302_v54 = vpop.permute.xlu0 %5301 }
 0x7b3   : > { %v5304_v41 = vpop.permute.xlu1 %5303  ;;  %5456 = vst.msk [vmem:[#allocation2 + $0x160] sm:$0xff] %vm5417_vm7, %v5302_v54  ;;  %v13562_v54 = vld [vmem:[#allocation101_spill] sm:$0xff] (!%p6115_p13) }
 0x7b4   : > { %5457 = vst.msk [vmem:[#allocation2 + $0x168] sm:$0xff] %vm5417_vm7, %v5304_v41  ;;  %v13563_v41 = vld [vmem:[#allocation102_spill] sm:$0xff] (!%p6115_p13) }
 0x7b5   : > { %5522 = vst.msk [vmem:[#allocation2 + $0x15f] sm:$0xfe] %vm5482_vm8, %v11577_v62 }
 0x7b6   : > { %5523 = vst.msk [vmem:[#allocation2 + $0x167] sm:$0xff] %vm5484_vm9, %v11583_v39  ;;  %v5306_v55 = vpop.permute.xlu0 %5305 }
 0x7b7   : > { %v5308_v61 = vpop.permute.xlu1 %5307  ;;  %5458 = vst.msk [vmem:[#allocation2 + $0x170] sm:$0xff] %vm5417_vm7, %v5306_v55  ;;  %v13564_v55 = vld [vmem:[#allocation103_spill] sm:$0xff] (!%p6115_p13) }
 0x7b8   : > { %5459 = vst.msk [vmem:[#allocation2 + $0x178] sm:$0xff] %vm5417_vm7, %v5308_v61  ;;  %v13565_v61 = vld [vmem:[#allocation104_spill] sm:$0xff] (!%p6115_p13) }
 0x7b9   : > { %5524 = vst.msk [vmem:[#allocation2 + $0x16f] sm:$0xfe] %vm5482_vm8, %v11603_v37 }
 0x7ba   : > { %5525 = vst.msk [vmem:[#allocation2 + $0x177] sm:$0xff] %vm5484_vm9, %v11609_v56  ;;  %v5310_v5 = vpop.permute.xlu0 %5309 }
 0x7bb   : > { %v5312_v60 = vpop.permute.xlu1 %5311  ;;  %5460 = vst.msk [vmem:[#allocation2 + $0x180] sm:$0xff] %vm5417_vm7, %v5310_v5  ;;  %v13566_v5 = vld [vmem:[#allocation105_spill] sm:$0xff] (!%p6115_p13) }
 0x7bc   : > { %5461 = vst.msk [vmem:[#allocation2 + $0x188] sm:$0xff] %vm5417_vm7, %v5312_v60  ;;  %v13567_v60 = vld [vmem:[#allocation106_spill] sm:$0xff] (!%p6115_p13) }
 0x7bd   : > { %5526 = vst.msk [vmem:[#allocation2 + $0x17f] sm:$0xfe] %vm5482_vm8, %v11629_v21 }
 0x7be   : > { %5527 = vst.msk [vmem:[#allocation2 + $0x187] sm:$0xff] %vm5484_vm9, %v11635_v48  ;;  %v5314_v39 = vpop.permute.xlu0 %5313 }
 0x7bf   : > { %v5316_v62 = vpop.permute.xlu1 %5315  ;;  %5462 = vst.msk [vmem:[#allocation2 + $0x190] sm:$0xff] %vm5417_vm7, %v5314_v39  ;;  %v13568_v39 = vld [vmem:[#allocation107_spill] sm:$0xff] (!%p6115_p13) }
 0x7c0   : > { %5463 = vst.msk [vmem:[#allocation2 + $0x198] sm:$0xff] %vm5417_vm7, %v5316_v62  ;;  %v13569_v62 = vld [vmem:[#allocation108_spill] sm:$0xff] (!%p6115_p13) }
 0x7c1   : > { %5528 = vst.msk [vmem:[#allocation2 + $0x18f] sm:$0xfe] %vm5482_vm8, %v11655_v59 }
 0x7c2   : > { %5529 = vst.msk [vmem:[#allocation2 + $0x197] sm:$0xff] %vm5484_vm9, %v11661_v26  ;;  %v5318_v56 = vpop.permute.xlu0 %5317 }
 0x7c3   : > { %v5320_v37 = vpop.permute.xlu1 %5319  ;;  %5464 = vst.msk [vmem:[#allocation2 + $0x1a0] sm:$0xff] %vm5417_vm7, %v5318_v56  ;;  %v13570_v56 = vld [vmem:[#allocation109_spill] sm:$0xff] (!%p6115_p13) }
 0x7c4   : > { %5465 = vst.msk [vmem:[#allocation2 + $0x1a8] sm:$0xff] %vm5417_vm7, %v5320_v37  ;;  %v13571_v37 = vld [vmem:[#allocation110_spill] sm:$0xff] (!%p6115_p13) }
 0x7c5   : > { %5530 = vst.msk [vmem:[#allocation2 + $0x19f] sm:$0xfe] %vm5482_vm8, %v11681_v52 }
 0x7c6   : > { %5531 = vst.msk [vmem:[#allocation2 + $0x1a7] sm:$0xff] %vm5484_vm9, %v11687_v58  ;;  %v5322_v48 = vpop.permute.xlu0 %5321 }
 0x7c7   : > { %v5324_v21 = vpop.permute.xlu1 %5323  ;;  %5466 = vst.msk [vmem:[#allocation2 + $0x1b0] sm:$0xff] %vm5417_vm7, %v5322_v48  ;;  %v13572_v48 = vld [vmem:[#allocation111_spill] sm:$0xff] (!%p6115_p13) }
 0x7c8   : > { %5467 = vst.msk [vmem:[#allocation2 + $0x1b8] sm:$0xff] %vm5417_vm7, %v5324_v21  ;;  %v13573_v21 = vld [vmem:[#allocation112_spill] sm:$0xff] (!%p6115_p13) }
 0x7c9   : > { %5532 = vst.msk [vmem:[#allocation2 + $0x1af] sm:$0xfe] %vm5482_vm8, %v11707_v30 }
 0x7ca   : > { %5533 = vst.msk [vmem:[#allocation2 + $0x1b7] sm:$0xff] %vm5484_vm9, %v11713_v42  ;;  %v5326_v26 = vpop.permute.xlu0 %5325 }
 0x7cb   : > { %v5328_v59 = vpop.permute.xlu1 %5327  ;;  %5468 = vst.msk [vmem:[#allocation2 + $0x1c0] sm:$0xff] %vm5417_vm7, %v5326_v26  ;;  %v13574_v26 = vld [vmem:[#allocation113_spill] sm:$0xff] (!%p6115_p13) }
 0x7cc   : > { %5469 = vst.msk [vmem:[#allocation2 + $0x1c8] sm:$0xff] %vm5417_vm7, %v5328_v59  ;;  %v13575_v59 = vld [vmem:[#allocation114_spill] sm:$0xff] (!%p6115_p13) }
 0x7cd   : > { %5534 = vst.msk [vmem:[#allocation2 + $0x1bf] sm:$0xfe] %vm5482_vm8, %v11733_v35 }
 0x7ce   : > { %5535 = vst.msk [vmem:[#allocation2 + $0x1c7] sm:$0xff] %vm5484_vm9, %v11739_v16  ;;  %v5330_v58 = vpop.permute.xlu0 %5329 }
 0x7cf   : > { %v5332_v52 = vpop.permute.xlu1 %5331  ;;  %5470 = vst.msk [vmem:[#allocation2 + $0x1d0] sm:$0xff] %vm5417_vm7, %v5330_v58  ;;  %v13576_v58 = vld [vmem:[#allocation115_spill] sm:$0xff] (!%p6115_p13) }
 0x7d0   : > { %5471 = vst.msk [vmem:[#allocation2 + $0x1d8] sm:$0xff] %vm5417_vm7, %v5332_v52  ;;  %v13577_v52 = vld [vmem:[#allocation116_spill] sm:$0xff] (!%p6115_p13) }
 0x7d1   : > { %5536 = vst.msk [vmem:[#allocation2 + $0x1cf] sm:$0xfe] %vm5482_vm8, %v11759_v2 }
 0x7d2   : > { %5537 = vst.msk [vmem:[#allocation2 + $0x1d7] sm:$0xff] %vm5484_vm9, %v11765_v3  ;;  %v5334_v42 = vpop.permute.xlu0 %5333 }
 0x7d3   : > { %v5336_v30 = vpop.permute.xlu1 %5335  ;;  %5472 = vst.msk [vmem:[#allocation2 + $0x1e0] sm:$0xff] %vm5417_vm7, %v5334_v42  ;;  %v13578_v42 = vld [vmem:[#allocation117_spill] sm:$0xff] (!%p6115_p13) }
 0x7d4   : > { %5473 = vst.msk [vmem:[#allocation2 + $0x1e8] sm:$0xff] %vm5417_vm7, %v5336_v30  ;;  %v13579_v30 = vld [vmem:[#allocation118_spill] sm:$0xff] (!%p6115_p13) }
 0x7d5   : > { %5538 = vst.msk [vmem:[#allocation2 + $0x1df] sm:$0xfe] %vm5482_vm8, %v11785_v6 }
 0x7d6   : > { %5539 = vst.msk [vmem:[#allocation2 + $0x1e7] sm:$0xff] %vm5484_vm9, %v11791_v10  ;;  %v5338_v16 = vpop.permute.xlu0 %5337 }
 0x7d7   : > { %v5340_v35 = vpop.permute.xlu1 %5339  ;;  %5474 = vst.msk [vmem:[#allocation2 + $0x1f0] sm:$0xff] %vm5417_vm7, %v5338_v16  ;;  %v13580_v16 = vld [vmem:[#allocation119_spill] sm:$0xff] (!%p6115_p13) }
 0x7d8   : > { %5475 = vst.msk [vmem:[#allocation2 + $0x1f8] sm:$0xff] %vm5417_vm7, %v5340_v35  ;;  %v13609_v35 = vld [vmem:[#allocation58_spill] sm:$0xff] (!%p6115_p13) }
 0x7d9   : > { %5540 = vst.msk [vmem:[#allocation2 + $0x1ef] sm:$0xfe] %vm5482_vm8, %v11811_v40 }
 0x7da   : > { %5541 = vst.msk [vmem:[#allocation2 + $0x1f7] sm:$0xff] %vm5484_vm9, %v11817_v43  ;;  %v5342_v3 = vpop.permute.xlu0 %5341 }
 0x7db   : > { %v5344_v2 = vpop.permute.xlu1 %5343  ;;  %5476 = vst.msk [vmem:[#allocation2 + $0x200] sm:$0xff] %vm5417_vm7, %v5342_v3  ;;  %v13610_v3 = vld [vmem:[#allocation59_spill] sm:$0xff] (!%p6115_p13) }
 0x7dc   : > { %5477 = vst.msk [vmem:[#allocation2 + $0x208] sm:$0xff] %vm5417_vm7, %v5344_v2  ;;  %v13611_v2 = vld [vmem:[#allocation61_spill] sm:$0xff] (!%p6115_p13) }
 0x7dd   : > { %5542 = vst.msk [vmem:[#allocation2 + $0x1ff] sm:$0xfe] %vm5482_vm8, %v11837_v0  ;;  %v13552_v0 = vld [vmem:[#allocation63_spill] sm:$0xff] (!%p6115_p13) }
 0x7de   : > { %5543 = vst.msk [vmem:[#allocation2 + $0x207] sm:$0xff] %vm5484_vm9, %v11841_v1  ;;  %v5346_v10 = vpop.permute.xlu0 %5345  ;;  %v13553_v1 = vld [vmem:[#allocation92_spill] sm:$0xff] (!%p6115_p13) }
 0x7df   : > { %v5348_v6 = vpop.permute.xlu1 %5347  ;;  %5478 = vst.msk [vmem:[#allocation2 + $0x210] sm:$0xff] %vm5417_vm7, %v5346_v10  ;;  %v13612_v10 = vld [vmem:[#allocation62_spill] sm:$0xff] (!%p6115_p13) }
 0x7e0   : > { %5479 = vst.msk [vmem:[#allocation2 + $0x218] sm:$0xff] %vm5417_vm7, %v5348_v6  ;;  %5615 = sbr.rel (%p6115_p13) target bundleno = 2066 (0x812), region = 48  ;;  %v13613_v6 = vld [vmem:[#allocation30_spill] sm:$0xff] (!%p6115_p13) }
 0x7e1   : > { %5544 = vst.msk [vmem:[#allocation2 + $0x20f] sm:$0xfe] %vm5482_vm8, %v11855_v19  ;;  %v13554_v19 = vld [vmem:[#allocation93_spill] sm:$0xff] (!%p6115_p13) }
 0x7e2   : > { %5545 = vst.msk [vmem:[#allocation2 + $0x217] sm:$0xff] %vm5484_vm9, %v11859_v27  ;;  %v5350_v40 = vpop.permute.xlu0 %5349  ;;  %v13555_v27 = vld [vmem:[#allocation94_spill] sm:$0xff] (!%p6115_p13) }
 0x7e3   : > { %v5352_v43 = vpop.permute.xlu1 %5351  ;;  %5480 = vst.msk [vmem:[#allocation2 + $0x220] sm:$0xff] %vm5417_vm7, %v5350_v40  ;;  %v13614_v40 = vld [vmem:[#allocation64_spill] sm:$0xff] (!%p6115_p13) }
 0x7e4   : > { %5481 = vst.msk [vmem:[#allocation2 + $0x228] sm:$0xff] %vm5417_vm7, %v5352_v43  ;;  %v13615_v43 = vld [vmem:[#allocation65_spill] sm:$0xff] (!%p6115_p13) }
 0x7e5   : > { %5546 = vst.msk [vmem:[#allocation2 + $0x21f] sm:$0xfe] %vm5482_vm8, %v11873_v17  ;;  %v13557_v17 = vld [vmem:[#allocation96_spill] sm:$0xff] (!%p6115_p13) }
 0x7e6   : > { %5547 = vst.msk [vmem:[#allocation2 + $0x227] sm:$0xff] %vm5484_vm9, %v11877_v29  ;;  %v13558_v29 = vld [vmem:[#allocation97_spill] sm:$0xff] (!%p6115_p13) }
 0x7e7   : > { %5616 = vst.msk [vmem:[#allocation6] sm:$0xff] %vm4838_vm5, %v13552_v0  ;;  %5617 = vst.msk [vmem:[#allocation6 + $0x8] sm:$0xff] %vm4838_vm5, %v13553_v1  ;;  %v13616_v0 = vld [vmem:[#allocation66_spill] sm:$0xff]  ;;  %v13617_v1 = vld [vmem:[#allocation67_spill] sm:$0xff] }
 0x7e8   : > { %5618 = vst.msk [vmem:[#allocation6 + $0x10] sm:$0xff] %vm4838_vm5, %v13554_v19  ;;  %5619 = vst.msk [vmem:[#allocation6 + $0x18] sm:$0xff] %vm4838_vm5, %v13555_v27  ;;  %v13618_v19 = vld [vmem:[#allocation68_spill] sm:$0xff]  ;;  %v13619_v27 = vld [vmem:[#allocation69_spill] sm:$0xff] }
 0x7e9   : > { %5620 = vst.msk [vmem:[#allocation6 + $0x20] sm:$0xff] %vm4838_vm5, %v13556_v23  ;;  %5621 = vst.msk [vmem:[#allocation6 + $0x28] sm:$0xff] %vm4838_vm5, %v13557_v17  ;;  %v13620_v23 = vld [vmem:[#allocation70_spill] sm:$0xff]  ;;  %v13621_v17 = vld [vmem:[#allocation71_spill] sm:$0xff] }
 0x7ea   : > { %5622 = vst.msk [vmem:[#allocation6 + $0x30] sm:$0xff] %vm4838_vm5, %v13558_v29  ;;  %5623 = vst.msk [vmem:[#allocation6 + $0x38] sm:$0xff] %vm4838_vm5, %v13559_v36  ;;  %v13622_v29 = vld [vmem:[#allocation72_spill] sm:$0xff]  ;;  %v13623_v36 = vld [vmem:[#allocation73_spill] sm:$0xff] }
 0x7eb   : > { %5624 = vst.msk [vmem:[#allocation6 + $0x40] sm:$0xff] %vm4838_vm5, %v13560_v4  ;;  %5625 = vst.msk [vmem:[#allocation6 + $0x48] sm:$0xff] %vm4838_vm5, %v13561_v14  ;;  %v13624_v4 = vld [vmem:[#allocation74_spill] sm:$0xff]  ;;  %v13625_v14 = vld [vmem:[#allocation75_spill] sm:$0xff] }
 0x7ec   : > { %5626 = vst.msk [vmem:[#allocation6 + $0x50] sm:$0xff] %vm4838_vm5, %v13562_v54  ;;  %5627 = vst.msk [vmem:[#allocation6 + $0x58] sm:$0xff] %vm4838_vm5, %v13563_v41  ;;  %v13626_v54 = vld [vmem:[#allocation76_spill] sm:$0xff]  ;;  %v13627_v41 = vld [vmem:[#allocation77_spill] sm:$0xff] }
 0x7ed   : > { %5628 = vst.msk [vmem:[#allocation6 + $0x60] sm:$0xff] %vm4838_vm5, %v13564_v55  ;;  %5629 = vst.msk [vmem:[#allocation6 + $0x68] sm:$0xff] %vm4838_vm5, %v13565_v61  ;;  %v13628_v55 = vld [vmem:[#allocation78_spill] sm:$0xff]  ;;  %v13629_v61 = vld [vmem:[#allocation79_spill] sm:$0xff] }
 0x7ee   : > { %5630 = vst.msk [vmem:[#allocation6 + $0x70] sm:$0xff] %vm4838_vm5, %v13566_v5  ;;  %5631 = vst.msk [vmem:[#allocation6 + $0x78] sm:$0xff] %vm4838_vm5, %v13567_v60  ;;  %v13630_v5 = vld [vmem:[#allocation80_spill] sm:$0xff]  ;;  %v13631_v60 = vld [vmem:[#allocation81_spill] sm:$0xff] }
 0x7ef   : > { %5632 = vst.msk [vmem:[#allocation6 + $0x80] sm:$0xff] %vm4838_vm5, %v13568_v39  ;;  %5633 = vst.msk [vmem:[#allocation6 + $0x88] sm:$0xff] %vm4838_vm5, %v13569_v62  ;;  %v13632_v39 = vld [vmem:[#allocation82_spill] sm:$0xff]  ;;  %v13633_v62 = vld [vmem:[#allocation83_spill] sm:$0xff] }
 0x7f0   : > { %5634 = vst.msk [vmem:[#allocation6 + $0x90] sm:$0xff] %vm4838_vm5, %v13570_v56  ;;  %5635 = vst.msk [vmem:[#allocation6 + $0x98] sm:$0xff] %vm4838_vm5, %v13571_v37  ;;  %v13634_v56 = vld [vmem:[#allocation84_spill] sm:$0xff]  ;;  %v13635_v37 = vld [vmem:[#allocation133_spill] sm:$0xff] }
 0x7f1   : > { %5636 = vst.msk [vmem:[#allocation6 + $0xa0] sm:$0xff] %vm4838_vm5, %v13572_v48  ;;  %5637 = vst.msk [vmem:[#allocation6 + $0xa8] sm:$0xff] %vm4838_vm5, %v13573_v21  ;;  %v13636_v48 = vld [vmem:[#allocation85_spill] sm:$0xff]  ;;  %v13637_v21 = vld [vmem:[#allocation134_spill] sm:$0xff] }
 0x7f2   : > { %5638 = vst.msk [vmem:[#allocation6 + $0xb0] sm:$0xff] %vm4838_vm5, %v13574_v26  ;;  %5639 = vst.msk [vmem:[#allocation6 + $0xb8] sm:$0xff] %vm4838_vm5, %v13575_v59  ;;  %v13638_v26 = vld [vmem:[#allocation86_spill] sm:$0xff]  ;;  %v13639_v59 = vld [vmem:[#allocation39_spill] sm:$0xff] }
 0x7f3   : > { %5640 = vst.msk [vmem:[#allocation6 + $0xc0] sm:$0xff] %vm4838_vm5, %v13576_v58  ;;  %5641 = vst.msk [vmem:[#allocation6 + $0xc8] sm:$0xff] %vm4838_vm5, %v13577_v52  ;;  %v13640_v58 = vld [vmem:[#allocation136_spill] sm:$0xff]  ;;  %v13641_v52 = vld [vmem:[#allocation22_spill] sm:$0xff] }
 0x7f4   : > { %5642 = vst.msk [vmem:[#allocation6 + $0xd0] sm:$0xff] %vm4838_vm5, %v13578_v42  ;;  %5644 = vst.msk [vmem:[#allocation6 + $0xe0] sm:$0xff] %vm4838_vm5, %v13579_v30  ;;  %v13642_v42 = vld [vmem:[#allocation27_spill] sm:$0xff]  ;;  %v13643_v30 = vld [vmem:[#allocation32_spill] sm:$0xff] }
 0x7f5   : > { %5646 = vst.msk [vmem:[#allocation6 + $0xf0] sm:$0xff] %vm4838_vm5, %v13580_v16  ;;  %5675 = vst.msk [vmem:[#allocation6 + $0x1d8] sm:$0xff] %vm4838_vm5, %v13584_v33  ;;  %v13644_v16 = vld [vmem:[#allocation29_spill] sm:$0xff]  ;;  %v13648_v33 = vld [vmem:[#allocation36_spill] sm:$0xff] }
 0x7f6   : > { %5676 = vst.msk [vmem:[#allocation6 + $0x1e0] sm:$0xff] %vm4838_vm5, %v13585_v46  ;;  %5677 = vst.msk [vmem:[#allocation6 + $0x1e8] sm:$0xff] %vm4838_vm5, %v13586_v20  ;;  %v13649_v46 = vld [vmem:[#allocation35_spill] sm:$0xff]  ;;  %v13650_v20 = vld [vmem:[#allocation40_spill] sm:$0xff] }
 0x7f7   : > { %5678 = vst.msk [vmem:[#allocation6 + $0x1f0] sm:$0xff] %vm4838_vm5, %v13587_v11  ;;  %5679 = vst.msk [vmem:[#allocation6 + $0x1f8] sm:$0xff] %vm4838_vm5, %v12243_v53  ;;  %v13608_v53 = vld [vmem:[#allocation57_spill] sm:$0xff] }
 0x7f8   : > { %5692 = vst.msk [vmem:[#allocation8 + $0x60] sm:$0xff] %vm4838_vm5, %v13600_v38  ;;  %5693 = vst.msk [vmem:[#allocation8 + $0x68] sm:$0xff] %vm4838_vm5, %v13601_v57  ;;  %v13651_v11 = vld [vmem:[#allocation41_spill] sm:$0xff] }
 0x7f9   : > { %5694 = vst.msk [vmem:[#allocation8 + $0x70] sm:$0xff] %vm4838_vm5, %v13602_v51  ;;  %5695 = vst.msk [vmem:[#allocation8 + $0x78] sm:$0xff] %vm4838_vm5, %v13603_v15 }
 0x7fa   : > { %5696 = vst.msk [vmem:[#allocation8 + $0x80] sm:$0xff] %vm4838_vm5, %v13604_v34  ;;  %5697 = vst.msk [vmem:[#allocation8 + $0x88] sm:$0xff] %vm4838_vm5, %v13605_v44 }
 0x7fb   : > { %5698 = vst.msk [vmem:[#allocation8 + $0x90] sm:$0xff] %vm4838_vm5, %v13606_v22  ;;  %5699 = vst.msk [vmem:[#allocation8 + $0x98] sm:$0xff] %vm4838_vm5, %v13607_v18 }
 0x7fc   : > { %5700 = vst.msk [vmem:[#allocation8 + $0xa0] sm:$0xff] %vm4838_vm5, %v13608_v53  ;;  %5701 = vst.msk [vmem:[#allocation8 + $0xa8] sm:$0xff] %vm4838_vm5, %v13609_v35 }
 0x7fd   : > { %5702 = vst.msk [vmem:[#allocation8 + $0xb0] sm:$0xff] %vm4838_vm5, %v13610_v3  ;;  %5703 = vst.msk [vmem:[#allocation8 + $0xb8] sm:$0xff] %vm4838_vm5, %v13611_v2 }
 0x7fe   : > { %5704 = vst.msk [vmem:[#allocation8 + $0xc0] sm:$0xff] %vm4838_vm5, %v13612_v10  ;;  %5705 = vst.msk [vmem:[#allocation8 + $0xc8] sm:$0xff] %vm4838_vm5, %v13613_v6 }
 0x7ff   : > { %5706 = vst.msk [vmem:[#allocation8 + $0xd0] sm:$0xff] %vm4838_vm5, %v13614_v40  ;;  %5707 = vst.msk [vmem:[#allocation8 + $0xd8] sm:$0xff] %vm4838_vm5, %v13615_v43 }
 0x800   : > { %5708 = vst.msk [vmem:[#allocation8 + $0xe0] sm:$0xff] %vm4838_vm5, %v13616_v0  ;;  %5709 = vst.msk [vmem:[#allocation8 + $0xe8] sm:$0xff] %vm4838_vm5, %v13617_v1 }
 0x801   : > { %5710 = vst.msk [vmem:[#allocation8 + $0xf0] sm:$0xff] %vm4838_vm5, %v13618_v19  ;;  %5711 = vst.msk [vmem:[#allocation8 + $0xf8] sm:$0xff] %vm4838_vm5, %v13619_v27 }
 0x802   : > { %5712 = vst.msk [vmem:[#allocation8 + $0x100] sm:$0xff] %vm4838_vm5, %v13620_v23  ;;  %5713 = vst.msk [vmem:[#allocation8 + $0x108] sm:$0xff] %vm4838_vm5, %v13621_v17 }
 0x803   : > { %5714 = vst.msk [vmem:[#allocation8 + $0x110] sm:$0xff] %vm4838_vm5, %v13622_v29  ;;  %5715 = vst.msk [vmem:[#allocation8 + $0x118] sm:$0xff] %vm4838_vm5, %v13623_v36 }
 0x804   : > { %5716 = vst.msk [vmem:[#allocation8 + $0x120] sm:$0xff] %vm4838_vm5, %v13624_v4  ;;  %5717 = vst.msk [vmem:[#allocation8 + $0x128] sm:$0xff] %vm4838_vm5, %v13625_v14 }
 0x805   : > { %5718 = vst.msk [vmem:[#allocation8 + $0x130] sm:$0xff] %vm4838_vm5, %v13626_v54  ;;  %5719 = vst.msk [vmem:[#allocation8 + $0x138] sm:$0xff] %vm4838_vm5, %v13627_v41 }
 0x806   : > { %5720 = vst.msk [vmem:[#allocation8 + $0x140] sm:$0xff] %vm4838_vm5, %v13628_v55  ;;  %5721 = vst.msk [vmem:[#allocation8 + $0x148] sm:$0xff] %vm4838_vm5, %v13629_v61 }
 0x807   : > { %5722 = vst.msk [vmem:[#allocation8 + $0x150] sm:$0xff] %vm4838_vm5, %v13630_v5  ;;  %5723 = vst.msk [vmem:[#allocation8 + $0x158] sm:$0xff] %vm4838_vm5, %v13631_v60 }
 0x808   : > { %5724 = vst.msk [vmem:[#allocation8 + $0x160] sm:$0xff] %vm4838_vm5, %v13632_v39  ;;  %5725 = vst.msk [vmem:[#allocation8 + $0x168] sm:$0xff] %vm4838_vm5, %v13633_v62 }
 0x809   : > { %5726 = vst.msk [vmem:[#allocation8 + $0x170] sm:$0xff] %vm4838_vm5, %v13634_v56  ;;  %5727 = vst.msk [vmem:[#allocation8 + $0x178] sm:$0xff] %vm4838_vm5, %v13635_v37 }
 0x80a   : > { %5728 = vst.msk [vmem:[#allocation8 + $0x180] sm:$0xff] %vm4838_vm5, %v13636_v48  ;;  %5729 = vst.msk [vmem:[#allocation8 + $0x188] sm:$0xff] %vm4838_vm5, %v13637_v21 }
 0x80b   : > { %5730 = vst.msk [vmem:[#allocation8 + $0x190] sm:$0xff] %vm4838_vm5, %v13638_v26  ;;  %5731 = vst.msk [vmem:[#allocation8 + $0x198] sm:$0xff] %vm4838_vm5, %v13639_v59 }
 0x80c   : > { %5732 = vst.msk [vmem:[#allocation8 + $0x1a0] sm:$0xff] %vm4838_vm5, %v13640_v58  ;;  %5733 = vst.msk [vmem:[#allocation8 + $0x1a8] sm:$0xff] %vm4838_vm5, %v13641_v52 }
 0x80d   : > { %5734 = vst.msk [vmem:[#allocation8 + $0x1b0] sm:$0xff] %vm4838_vm5, %v13642_v42  ;;  %5735 = vst.msk [vmem:[#allocation8 + $0x1b8] sm:$0xff] %vm4838_vm5, %v13643_v30 }
 0x80e   : > { %5736 = vst.msk [vmem:[#allocation8 + $0x1c0] sm:$0xff] %vm4838_vm5, %v13644_v16  ;;  %5737 = vst.msk [vmem:[#allocation8 + $0x1c8] sm:$0xff] %vm4838_vm5, %v13645_v50 }
 0x80f   : > { %5738 = vst.msk [vmem:[#allocation8 + $0x1d0] sm:$0xff] %vm4838_vm5, %v13646_v12  ;;  %5739 = vst.msk [vmem:[#allocation8 + $0x1d8] sm:$0xff] %vm4838_vm5, %v13647_v63 }
 0x810   : > { %5740 = vst.msk [vmem:[#allocation8 + $0x1e0] sm:$0xff] %vm4838_vm5, %v13648_v33  ;;  %5741 = vst.msk [vmem:[#allocation8 + $0x1e8] sm:$0xff] %vm4838_vm5, %v13649_v46 }
 0x811   : > { %5742 = vst.msk [vmem:[#allocation8 + $0x1f0] sm:$0xff] %vm4838_vm5, %v13650_v20  ;;  %5743 = vst.msk [vmem:[#allocation8 + $0x1f8] sm:$0xff] %vm4838_vm5, %v13651_v11 }
 0x812 PF: > { %s7739_s10 = smov [#allocation6]   ;;  %s6126_s17 = sshll.u32 %s7721_s27, 13 }
 0x813   : > { %s5778_s13 = sshll.u32 %s7739_s10, 4  ;;  %s5779_s13 = int_to_ptr.vmem [resolvable:$true] %s5778_s13 }
 0x814   : > { %s7595_s22 = scalar_lea.vmem %s5779_s13, 8192  ;;  %p7602_p5 = scmp.lt.s32.totalorder %s5779_s13, %s5779_s13 }
 0x815   : > { %p7596_p0 = scmp.ne.s32.totalorder %s5779_s13, %s7595_s22  ;;  %p7603_p6 = scmp.lt.s32.totalorder %s7595_s22, %s7595_s22 }
 0x817   : > { %p7597_p1 = pnand %p7596_p0, %p7820_p2  ;;  %p7604_p7 = por %p7603_p6, %p7602_p5 }
 0x819   : > { %p7598_p3 = pneg %p7597_p1 }
 0x81b   : > { %p7605_p9 = pnand %p7604_p7, %p7598_p3 }
 0x81d   : > { %7608 = shalt.err (!%p7605_p9)
}
 0x81e   : > { %s7609_s20 = scalar_lea.hbm %s12720_s6, 8192 }
 0x81f   : > { %p7610_p10 = scmp.ne.s32.totalorder %s12720_s6, %s7609_s20  ;;  %p7615_p13 = scmp.lt.u32.totalorder %s7609_s20, %s12720_s6 }
 0x821   : > { %p7611_p11 = pnand %p7610_p10, %p7820_p2 }
 0x823   : > { %p7612_p12 = pneg %p7611_p11 }
 0x825   : > { %p7617_p0 = pnand %p7615_p13, %p7612_p12 }
 0x827   : > { %7620 = shalt.err (!%p7617_p0)
}
 0x828   : > { %s7740_s10 = smov 128   ;;  %s7741_s22 = smov 8  }
 0x829   : > { %6986 = dma.vmem_to_hbm [thread:$0]  (%p7820_p2), %s5779_s13, 8192, %s12720_s6, [#allocation7], %s7740_s10, %s7740_s10, %s7741_s22  }
 0x82a   : > { %s12633_s20 = scalar_lea.hbm %s12719_s5, %s6126_s17  ;;  %s5761_s27 = sshll.u32 %s7855_s23, 4  ;;  %s12636_s27 = int_to_ptr.vmem [resolvable:$true] %s5761_s27 }
 0x82b   : > { %s12640_s8 = scalar_lea.sflag [#allocation5], %s298_s16  ;;  %s7621_s0 = scalar_lea.vmem %s12636_s27, 8192 }
 0x82c   : > { %p7622_p1 = scmp.ne.s32.totalorder %s12636_s27, %s7621_s0  ;;  %s7742_s13 = smov [#allocation4]  }
 0x82d   : > { %s7625_s18 = sshll.u32 %s7742_s13, 4  ;;  %s7626_s18 = int_to_ptr.vmem [resolvable:$false] %s7625_s18 }
 0x82e   : > { %p7623_p3 = pnand %p7622_p1, %p7830_p4  ;;  %s7627_s19 = scalar_lea.vmem %s7626_s18, 16384 }
 0x82f   : > { %p7628_p6 = scmp.lt.s32.totalorder %s12636_s27, %s7626_s18  ;;  %p7629_p7 = scmp.lt.s32.totalorder %s7627_s19, %s7621_s0 }
 0x830   : > { %p7624_p5 = pneg %p7623_p3 }
 0x831   : > { %p7630_p9 = por %p7629_p7, %p7628_p6 }
 0x833   : > { %p7631_p10 = pnand %p7630_p9, %p7624_p5 }
 0x835   : > { %7634 = shalt.err (!%p7631_p10)
}
 0x836   : > { %s7635_s16 = scalar_lea.hbm %s12633_s20, 8192  ;;  %s7639_s21 = scalar_lea.hbm %s12719_s5, 65536 }
 0x837   : > { %p7636_p11 = scmp.ne.s32.totalorder %s12633_s20, %s7635_s16  ;;  %p7640_p0 = scmp.lt.u32.totalorder %s12633_s20, %s12719_s5 }
 0x838   : > { %p7641_p1 = scmp.lt.u32.totalorder %s7639_s21, %s7635_s16  ;;  %p7643_p5 = scmp.lt.u32.totalorder %s7635_s16, %s12633_s20 }
 0x839   : > { %p7637_p12 = pnand %p7636_p11, %p7830_p4 }
 0x83a   : > { %p7642_p3 = por %p7641_p1, %p7640_p0 }
 0x83b   : > { %p7638_p13 = pneg %p7637_p12 }
 0x83c   : > { %p7644_p6 = por %p7643_p5, %p7642_p3 }
 0x83e   : > { %p7645_p7 = pnand %p7644_p6, %p7638_p13 }
 0x840   : > { %7648 = shalt.err (!%p7645_p7)
}
 0x841   : > { %6984 = dma.vmem_to_hbm [thread:$0]  (%p7830_p4), %s12636_s27, 8192, %s12633_s20, %s12640_s8, %s7740_s10, %s7740_s10, %s7741_s22  }
 0x842   : > { %s7743_s0 = smov [#allocation8]  }
 0x843   : > { %s5795_s18 = sshll.u32 %s7743_s0, 4  ;;  %s5796_s18 = int_to_ptr.vmem [resolvable:$true] %s5795_s18 }
 0x844   : > { %s7649_s19 = scalar_lea.vmem %s5796_s18, 8192  ;;  %p7656_p12 = scmp.lt.s32.totalorder %s5796_s18, %s5796_s18 }
 0x845   : > { %p7650_p9 = scmp.ne.s32.totalorder %s5796_s18, %s7649_s19  ;;  %p7657_p13 = scmp.lt.s32.totalorder %s7649_s19, %s7649_s19 }
 0x847   : > { %p7651_p10 = pnand %p7650_p9, %p7820_p2  ;;  %p7658_p0 = por %p7657_p13, %p7656_p12 }
 0x849   : > { %p7652_p11 = pneg %p7651_p10 }
 0x84b   : > { %p7659_p1 = pnand %p7658_p0, %p7652_p11 }
 0x84d   : > { %7662 = shalt.err (!%p7659_p1)
}
 0x84e   : > { %s7663_s23 = scalar_lea.hbm %s12721_s7, 8192 }
 0x84f   : > { %p7664_p4 = scmp.ne.s32.totalorder %s12721_s7, %s7663_s23  ;;  %p7669_p6 = scmp.lt.u32.totalorder %s7663_s23, %s12721_s7 }
 0x851   : > { %p7665_p3 = pnand %p7664_p4, %p7820_p2 }
 0x853   : > { %p7666_p5 = pneg %p7665_p3 }
 0x855   : > { %p7671_p7 = pnand %p7669_p6, %p7666_p5 }
 0x857   : > { %7674 = shalt.err (!%p7671_p7)
}
 0x858   : > { %6988 = dma.vmem_to_hbm [thread:$0]  (%p7820_p2), %s5796_s18, 8192, %s12721_s7, [#allocation7], %s7740_s10, %s7740_s10, %s7741_s22  }
 0x859   : > { %7700 = dma.done.wait (%p7820_p2), [#allocation7], 16384  }
 0x85a   : > { %7702 = vsyncadd (%p7820_p2), [#allocation7], 4294950912 }
 0x85b PF: > { %p7002_p9 = scmp.ge.s32.totalorder %s7729_s29, 2  ;;  %s5818_s13 = sand.u32 1, %s7709_s24  }
 0x85c   : > { %s5819_s0 = scalar_lea.sflag [#allocation5], %s5818_s13 }
 0x85d   : > { %p6995_p10 = pnand %p7002_p9, %p7837_p8 }
 0x85f   : > { %7704 = dma.done.wait (!%p6995_p10), %s5819_s0, 8192  }
 0x860   : > { %7706 = vsyncadd (!%p6995_p10), %s5819_s0, 4294959104  ;;  %s22_s29 = sadd.s32 1, %s7729_s29   ;;  %s13652_s24 = smov %s7713_s25 }
 0x861   : > { %p19_p11 = scmp.ge.s32.totalorder %s22_s29, 10   ;;  %s13653_s25 = smov %s7717_s26 }
 0x862   : > { %s13654_s26 = smov %s7843_s15  ;;  %s13655_s27 = smov %s7725_s28 }
 0x863   : > { %s13656_s28 = smov %s13658_s9  ;;  %21 = sbr.rel (!%p19_p11) target bundleno = 7 (0x7), region = 104 }
 0x86a   :  { %5824 = vsyncpa [#allocation5], 1 }
 0x86b   :  { %5826 = vsyncpa [#allocation5 + $0x1], 1 }
 0x86c   :  { %5827 = vsyncpa [#allocation7], 1 }

</bundles_post_ra>
